<compile_context>
chip_gen: v7x
topology: tpu7x:2x2x1
jax: 0.10.0
libtpu: 0.0.40
codegen_flags: <defaults>
</compile_context>

<pallas_src>
import functools

import jax
import jax.numpy as jnp
from jax.experimental import pallas as pl
from jax.experimental.pallas import tpu as pltpu

EPS = 1e-5  # nn.BatchNorm2d default


# --------------------------------------------------------------------------
# shared helpers
# --------------------------------------------------------------------------

def _partial_stats(z, mask=None):
    """Per-tile [sum; sum-of-squares] over rows of z (f32), optionally masked."""
    zm = z if mask is None else z * mask
    return jnp.concatenate(
        [jnp.sum(zm, axis=0, keepdims=True),
         jnp.sum(zm * z, axis=0, keepdims=True)], axis=0)      # (2, B*C)


def _fold_bn(stats, gamma, beta, count):
    """Fold batch statistics and gamma/beta into per-lane scale/bias rows."""
    mean = stats[0] / count
    var = stats[1] / count - mean * mean                        # biased variance
    inv = jax.lax.rsqrt(var + EPS)
    scale = gamma.reshape(-1) * inv
    bias = beta.reshape(-1) - mean * scale
    return (scale[None, :].astype(jnp.float32),
            bias[None, :].astype(jnp.float32))


# --------------------------------------------------------------------------
# fused-branch pointwise (1x1 conv) stage
# --------------------------------------------------------------------------

def _pw_stats_kernel(a_ref, w_ref, stat_ref):
    """Per-tile partial sum / sum-of-squares of z = a @ Wcat."""
    z = jnp.dot(a_ref[...], w_ref[...], preferred_element_type=jnp.float32)
    stat_ref[...] = _partial_stats(z)[None]


def _pw_apply_kernel(a_ref, w_ref, scale_ref, bias_ref, *rest,
                     num_branches, c_out):
    """out = relu( sum_b relu( z_b * scale_b + bias_b ) [+ res] )."""
    if len(rest) == 2:
        res_ref, out_ref = rest
    else:
        (out_ref,) = rest
        res_ref = None
    z = jnp.dot(a_ref[...], w_ref[...], preferred_element_type=jnp.float32)
    y = jnp.maximum(z * scale_ref[...] + bias_ref[...], 0.0)
    acc = y[:, 0:c_out]
    for b in range(1, num_branches):                   # static, unrolled
        acc = acc + y[:, b * c_out:(b + 1) * c_out]
    if res_ref is not None:
        acc = acc + res_ref[...]
    out_ref[...] = jnp.maximum(acc, 0.0).astype(out_ref.dtype)


def pointwise_stats(a, w_cat, *, tm=512):
    """Global (2, B*C) sum / sum-of-squares of a @ Wcat via per-tile partials."""
    m, k = a.shape
    bc = w_cat.shape[1]
    tm = min(tm, max(8, ((m + 7) // 8) * 8))
    m_pad = pl.cdiv(m, tm) * tm
    if m_pad != m:          # zero rows contribute nothing to sum / sum-of-sq
        a = jnp.pad(a, ((0, m_pad - m), (0, 0)))
    ntiles = m_pad // tm
    partial = pl.pallas_call(
        _pw_stats_kernel,
        out_shape=jax.ShapeDtypeStruct((ntiles, 2, bc), jnp.float32),
        grid=(ntiles,),
        in_specs=[pl.BlockSpec((tm, k), lambda i: (i, 0)),
                  pl.BlockSpec((k, bc), lambda i: (0, 0))],
        out_specs=pl.BlockSpec((1, 2, bc), lambda i: (i, 0, 0)),
        compiler_params=pltpu.CompilerParams(
            dimension_semantics=("parallel",)),
    )(a, w_cat)
    return jnp.sum(partial, axis=0)


def pointwise_apply(a, w_cat, scale, bias, num_branches, c_out, res=None, *,
                    tm=512, out_dtype=jnp.bfloat16):
    """Fused branch 1x1 conv -> folded BN -> ReLU -> branch sum (-> +res) -> ReLU."""
    m, k = a.shape
    bc = num_branches * c_out
    assert w_cat.shape == (k, bc)
    tm = min(tm, max(8, ((m + 7) // 8) * 8))
    m_pad = pl.cdiv(m, tm) * tm
    if m_pad != m:
        a = jnp.pad(a, ((0, m_pad - m), (0, 0)))
    grid = (m_pad // tm,)

    in_specs = [pl.BlockSpec((tm, k), lambda i: (i, 0)),
                pl.BlockSpec((k, bc), lambda i: (0, 0)),
                pl.BlockSpec((1, bc), lambda i: (0, 0)),
                pl.BlockSpec((1, bc), lambda i: (0, 0))]
    args = [a, w_cat, scale, bias]
    if res is not None:
        if m_pad != m:
            res = jnp.pad(res, ((0, m_pad - m), (0, 0)))
        in_specs.append(pl.BlockSpec((tm, c_out), lambda i: (i, 0)))
        args.append(res)

    out = pl.pallas_call(
        functools.partial(_pw_apply_kernel, num_branches=num_branches,
                          c_out=c_out),
        out_shape=jax.ShapeDtypeStruct((m_pad, c_out), out_dtype),
        grid=grid,
        in_specs=in_specs,
        out_specs=pl.BlockSpec((tm, c_out), lambda i: (i, 0)),
        compiler_params=pltpu.CompilerParams(
            dimension_semantics=("parallel",)),
    )(*args)
    return out[:m]


def pointwise_stage(a, w_cat, gamma, beta, res=None, *, tm=512,
                    out_dtype=jnp.bfloat16):
    """Full pointwise stage: batch stats pass + folded BN apply pass."""
    m = a.shape[0]
    num_branches, c_out = gamma.shape
    stats = pointwise_stats(a, w_cat, tm=tm)
    scale, bias = _fold_bn(stats, gamma, beta, m)
    return pointwise_apply(a, w_cat, scale, bias, num_branches, c_out,
                           res=res, tm=tm, out_dtype=out_dtype)


# --------------------------------------------------------------------------
# fused-branch 3x3 (stride 1, pad 1) conv stage  (+ fused stage-3 statistics)
# --------------------------------------------------------------------------
# In the flattened (H+2)*(W+2)-padded row layout the (dy, dx) conv tap of an
# output row sits at the CONSTANT row offset dy*(W+2)+dx, so the conv becomes
# a sum of 9 offset matmuls; each grid step only needs two consecutive row
# blocks of the padded input (block i and block i+1).

def _conv3_z(xa_ref, xb_ref, w_ref, *, wrow):
    xcat = jnp.concatenate([xa_ref[...], xb_ref[...]], axis=0)   # (2*TR, Cin)
    tr = xa_ref.shape[0]
    z = None
    for dy in range(3):
        for dx in range(3):
            off = dy * wrow + dx                                  # static
            piece = xcat[off:off + tr, :]
            zz = jnp.dot(piece, w_ref[dy * 3 + dx],
                         preferred_element_type=jnp.float32)
            z = zz if z is None else z + zz
    return z                                                      # (TR, B*C)


def _conv3_stats_kernel(xa_ref, xb_ref, w_ref, mask_ref, stat_ref, *, wrow):
    z = _conv3_z(xa_ref, xb_ref, w_ref, wrow=wrow)
    stat_ref[...] = _partial_stats(z, mask_ref[...])[None]


def _conv3_apply_kernel(xa_ref, xb_ref, w_ref, scale_ref, bias_ref, mask_ref,
                        w3_ref, out_ref, stat3_ref, *, wrow, num_branches,
                        c_out):
    z = _conv3_z(xa_ref, xb_ref, w_ref, wrow=wrow)
    y = jnp.maximum(z * scale_ref[...] + bias_ref[...], 0.0)
    acc = y[:, 0:c_out]
    for b in range(1, num_branches):
        acc = acc + y[:, b * c_out:(b + 1) * c_out]
    out2 = jnp.maximum(acc, 0.0).astype(out_ref.dtype)
    out_ref[...] = out2
    # Fused stage-3 statistics: run the stored bf16 tile through the stage-3
    # 1x1 matmul now so stage 3 does not need its own statistics pass.  Using
    # the bf16-cast tile keeps the stats exactly consistent with stage-3's
    # apply-pass recompute from HBM.
    z3 = jnp.dot(out2, w3_ref[...], preferred_element_type=jnp.float32)
    stat3_ref[...] = _partial_stats(z3, mask_ref[...])[None]


def conv3_stage(x_nhwc, w9, gamma, beta, w3_cat, *, tr=256,
                out_dtype=jnp.bfloat16):
    """Fused parallel-branch 3x3 conv (stride 1, pad 1) -> BN -> ReLU ->
    branch sum -> ReLU, plus fused stage-3 BN statistics.

      x_nhwc: (N, H, W, Cin) bf16
      w9:     (9, Cin, B*C)  bf16  tap-major, branch-concatenated weights
      gamma:  (B, C)         f32
      beta:   (B, C)         f32
      w3_cat: (C, B*C3)      bf16  stage-3 branch-concatenated weights
    returns   ((N*H*W, C) out_dtype, (2, B*C3) f32 stage-3 stats)
    """
    n, h, w, c_in = x_nhwc.shape
    num_branches, c_out = gamma.shape
    bc = num_branches * c_out
    bc3 = w3_cat.shape[1]
    wrow = w + 2

    xp = jnp.pad(x_nhwc, ((0, 0), (1, 1), (1, 1), (0, 0)))
    mp = n * (h + 2) * wrow
    xp_flat = xp.reshape(mp, c_in)

    tr = max(tr, ((2 * wrow + 2 + 7) // 8) * 8)   # halo must fit in one block
    mp_pad = pl.cdiv(mp, tr) * tr
    # pad to a whole number of tiles plus one extra tile so block (i+1) exists
    xp_flat = jnp.pad(xp_flat, ((0, mp_pad - mp + tr), (0, 0)))

    # rows corresponding to real output positions (h < H and w < W)
    valid = (jnp.arange(h + 2)[:, None] < h) & (jnp.arange(wrow)[None, :] < w)
    mask = jnp.broadcast_to(valid[None], (n, h + 2, wrow)).reshape(mp, 1)
    mask = jnp.pad(mask, ((0, mp_pad - mp), (0, 0))).astype(jnp.float32)

    ntiles = mp_pad // tr
    grid = (ntiles,)
    xa_spec = pl.BlockSpec((tr, c_in), lambda i: (i, 0))
    xb_spec = pl.BlockSpec((tr, c_in), lambda i: (i + 1, 0))
    w_spec = pl.BlockSpec((9, c_in, bc), lambda i: (0, 0, 0))
    mask_spec = pl.BlockSpec((tr, 1), lambda i: (i, 0))

    partial = pl.pallas_call(
        functools.partial(_conv3_stats_kernel, wrow=wrow),
        out_shape=jax.ShapeDtypeStruct((ntiles, 2, bc), jnp.float32),
        grid=grid,
        in_specs=[xa_spec, xb_spec, w_spec, mask_spec],
        out_specs=pl.BlockSpec((1, 2, bc), lambda i: (i, 0, 0)),
        compiler_params=pltpu.CompilerParams(
            dimension_semantics=("parallel",)),
    )(xp_flat, xp_flat, w9, mask)
    scale, bias = _fold_bn(jnp.sum(partial, axis=0), gamma, beta, n * h * w)

    out, partial3 = pl.pallas_call(
        functools.partial(_conv3_apply_kernel, wrow=wrow,
                          num_branches=num_branches, c_out=c_out),
        out_shape=(jax.ShapeDtypeStruct((mp_pad, c_out), out_dtype),
                   jax.ShapeDtypeStruct((ntiles, 2, bc3), jnp.float32)),
        grid=grid,
        in_specs=[xa_spec, xb_spec, w_spec,
                  pl.BlockSpec((1, bc), lambda i: (0, 0)),
                  pl.BlockSpec((1, bc), lambda i: (0, 0)),
                  mask_spec,
                  pl.BlockSpec((c_out, bc3), lambda i: (0, 0))],
        out_specs=(pl.BlockSpec((tr, c_out), lambda i: (i, 0)),
                   pl.BlockSpec((1, 2, bc3), lambda i: (i, 0, 0))),
        compiler_params=pltpu.CompilerParams(
            dimension_semantics=("parallel",)),
    )(xp_flat, xp_flat, w9, scale, bias, mask, w3_cat)

    out = out[:mp].reshape(n, h + 2, wrow, c_out)[:, :h, :w, :]
    return out.reshape(n * h * w, c_out), jnp.sum(partial3, axis=0)


# --------------------------------------------------------------------------
# parameters, forward pass, reference
# --------------------------------------------------------------------------

def init_params(key, f_in, f_out, num_parallel_branch):
    """Deterministic synthetic parameters (f32, per-branch layout).

    1x1 conv weights: (B, C_in, C_out); 3x3 conv weights: (B, 9*C_in, C_out)
    with (dy, dx, ci) row ordering.
    """
    expansion = 4
    bottleneck = int(4 * round(f_out * expansion / 4))
    ks = jax.random.split(key, 9)
    B = num_parallel_branch

    def nrm(k, shape, scale):
        return scale * jax.random.normal(k, shape, jnp.float32)

    params = dict(
        w1=nrm(ks[0], (B, f_in, f_out), 1.0 / jnp.sqrt(f_in)),
        g1=1.0 + 0.1 * jax.random.normal(ks[1], (B, f_out), jnp.float32),
        b1=0.1 * jax.random.normal(ks[2], (B, f_out), jnp.float32),
        w2=nrm(ks[3], (B, 9 * f_out, f_out), 1.0 / jnp.sqrt(9 * f_out)),
        g2=1.0 + 0.1 * jax.random.normal(ks[4], (B, f_out), jnp.float32),
        b2=0.1 * jax.random.normal(ks[5], (B, f_out), jnp.float32),
        w3=nrm(ks[6], (B, f_out, bottleneck), 1.0 / jnp.sqrt(f_out)),
        g3=1.0 + 0.1 * jax.random.normal(ks[7], (B, bottleneck), jnp.float32),
        b3=0.1 * jax.random.normal(ks[8], (B, bottleneck), jnp.float32),
    )
    return params, bottleneck


def prep_kernel_weights(params):
    """Branch-concatenated bf16 weights for the fused MXU matmuls."""
    w1, w2, w3 = params["w1"], params["w2"], params["w3"]
    B, k1, c1 = w1.shape
    w1c = jnp.transpose(w1, (1, 0, 2)).reshape(k1, B * c1)
    _, k9, c2 = w2.shape
    cin2 = k9 // 9
    w9 = (w2.reshape(B, 9, cin2, c2).transpose(1, 2, 0, 3)
          .reshape(9, cin2, B * c2))
    _, k3, c3 = w3.shape
    w3c = jnp.transpose(w3, (1, 0, 2)).reshape(k3, B * c3)
    return dict(w1=w1c.astype(jnp.bfloat16),
                w2=w9.astype(jnp.bfloat16),
                w3=w3c.astype(jnp.bfloat16))


def block_iso_flop_parallel(x_nchw, params, kernel_weights, f_out, bottleneck):
    """Forward pass of BlockISOFlopParallel (downsample=False, identity shortcut).

    # TODO(synk): the non-identity shortcut branch of the reference module
    # (Conv2d(f_in, f_out, 1, stride) + BN) emits f_out channels while
    # out_third has 4*f_out channels, so that configuration cannot execute in
    # PyTorch either; only the identity-shortcut / stride-1 configuration
    # (f_in == 4*f_out, downsample=False) is implemented here.
    """
    n, c_in, h, w = x_nchw.shape
    assert c_in == bottleneck, "identity-shortcut configuration required"
    num_branches = params["g1"].shape[0]
    x_nhwc = jnp.transpose(x_nchw, (0, 2, 3, 1)).astype(jnp.float32)
    x_flat = x_nhwc.reshape(n * h * w, c_in)

    # stage 1: parallel 1x1 conv -> BN -> ReLU branches, summed, ReLU
    out1 = pointwise_stage(x_flat.astype(jnp.bfloat16), kernel_weights["w1"],
                           params["g1"], params["b1"])
    # stage 2: parallel 3x3 conv (stride 1, pad 1) -> BN -> ReLU, summed, ReLU
    # (also emits stage-3 BN statistics, fused into its apply pass)
    out2, stats3 = conv3_stage(out1.reshape(n, h, w, f_out),
                               kernel_weights["w2"], params["g2"],
                               params["b2"], kernel_weights["w3"])
    # stage 3: parallel 1x1 conv -> BN -> ReLU, summed, + identity, ReLU
    scale3, bias3 = _fold_bn(stats3, params["g3"], params["b3"], n * h * w)
    out3 = pointwise_apply(out2, kernel_weights["w3"], scale3, bias3,
                           num_branches, bottleneck, res=x_flat,
                           out_dtype=jnp.float32)
    return out3.reshape(n, h, w, bottleneck).transpose(0, 3, 1, 2)


def _im2col_3x3(x_nhwc):
    """Reference-only 3x3 / stride-1 / pad-1 patch extraction (plain JAX)."""
    n, h, w, c = x_nhwc.shape
    xp = jnp.pad(x_nhwc, ((0, 0), (1, 1), (1, 1), (0, 0)))
    cols = []
    for dy in range(3):
        for dx in range(3):
            cols.append(xp[:, dy:dy + h, dx:dx + w, :])
    return jnp.concatenate(cols, axis=-1).reshape(n * h * w, 9 * c)


def reference(x_nchw, params, f_out, bottleneck):
    """Pure-JAX f32 reference for verification."""
    n, c_in, h, w = x_nchw.shape
    x_flat = jnp.transpose(x_nchw, (0, 2, 3, 1)).reshape(n * h * w, c_in)

    def stage(a, wm, g, b, res):
        acc = jnp.zeros((a.shape[0], wm.shape[2]), jnp.float32)
        for i in range(wm.shape[0]):
            z = jnp.dot(a, wm[i], precision=jax.lax.Precision.HIGHEST)
            mean = z.mean(0, keepdims=True)
            var = ((z - mean) ** 2).mean(0, keepdims=True)
            y = (z - mean) / jnp.sqrt(var + EPS) * g[i][None] + b[i][None]
            acc = acc + jnp.maximum(y, 0.0)
        return jnp.maximum(acc + res, 0.0)

    zeros = jnp.zeros((n * h * w, f_out), jnp.float32)
    o1 = stage(x_flat, params["w1"], params["g1"], params["b1"], zeros)
    a2 = _im2col_3x3(o1.reshape(n, h, w, f_out))
    o2 = stage(a2, params["w2"], params["g2"], params["b2"], zeros)
    o3 = stage(o2, params["w3"], params["g3"], params["b3"], x_flat)
    return o3.reshape(n, h, w, bottleneck).transpose(0, 3, 1, 2)


if __name__ == "__main__":
    f_out = 4
    num_parallel_branch = 2
    key = jax.random.PRNGKey(0)
    k_params, k_x = jax.random.split(key)
    params, bottleneck = init_params(
        k_params, f_in=16, f_out=f_out, num_parallel_branch=num_parallel_branch)
    kernel_weights = prep_kernel_weights(params)
    # identity-shortcut config: f_in == bottleneck_channels == 4*f_out == 16
    x = jax.random.normal(k_x, (2, bottleneck, 16, 16), jnp.float32)

    fwd = jax.jit(lambda xx: block_iso_flop_parallel(
        xx, params, kernel_weights, f_out, bottleneck))
    out = jax.block_until_ready(fwd(x))

    ref = reference(x, params, f_out, bottleneck)
    assert out.shape == (2, bottleneck, 16, 16)
    max_err = float(jnp.max(jnp.abs(out - ref)))
    # bf16 matmul operands (f32 accumulation) vs the full-f32 reference
    assert jnp.allclose(out, ref, rtol=5e-2, atol=5e-2), max_err
    print("KERNEL_OK")
</pallas_src>

<mosaic_0001>
module attributes {stable_mosaic.version = 11 : i64} {
  func.func @_pw_stats_kernel(%arg0: i32, %arg1: memref<512x16xbf16, #tpu.memory_space<vmem>>, %arg2: memref<16x8xbf16, #tpu.memory_space<vmem>>, %arg3: memref<1x2x8xf32, #tpu.memory_space<vmem>>) attributes {dimension_semantics = [#tpu.dimension_semantics<parallel>], iteration_bounds = array<i64: 1>, scalar_prefetch = 0 : i64, scratch_operands = 0 : i64, tpu.core_type = #tpu.core_type<tc>, window_params = [{transform_indices = @transform_0, window_bounds = array<i64: 512, 16>}, {pipeline_mode = #tpu.pipeline_mode<synchronous>, transform_indices = @transform_1, window_bounds = array<i64: 16, 8>}, {transform_indices = @transform_2, window_bounds = array<i64: 1, 2, 8>}]} {
    %c0 = arith.constant 0 : index
    %c0_0 = arith.constant 0 : index
    %0 = vector.load %arg1[%c0, %c0_0] : memref<512x16xbf16, #tpu.memory_space<vmem>>, vector<512x16xbf16>
    %c0_1 = arith.constant 0 : index
    %c0_2 = arith.constant 0 : index
    %1 = vector.load %arg2[%c0_1, %c0_2] : memref<16x8xbf16, #tpu.memory_space<vmem>>, vector<16x8xbf16>
    %cst = arith.constant dense<0.000000e+00> : vector<512x8xf32>
    %2 = tpu.matmul %0, %1, %cst {dimension_numbers = #tpu.dot_dimension_numbers<[1], [0], [0], [1], [0, 0, 1, 1], [], []>} : vector<512x16xbf16>, vector<16x8xbf16>, vector<512x8xf32> -> vector<512x8xf32>
    %cst_3 = arith.constant dense<0.000000e+00> : vector<8xf32>
    %3 = vector.multi_reduction <add>, %2, %cst_3 [0] : vector<512x8xf32> to vector<8xf32>
    %4 = vector.shape_cast %3 : vector<8xf32> to vector<1x8xf32>
    %5 = arith.mulf %2, %2 : vector<512x8xf32>
    %cst_4 = arith.constant dense<0.000000e+00> : vector<8xf32>
    %6 = vector.multi_reduction <add>, %5, %cst_4 [0] : vector<512x8xf32> to vector<8xf32>
    %7 = vector.shape_cast %6 : vector<8xf32> to vector<1x8xf32>
    %8 = tpu.concatenate %4, %7 in 0 : vector<1x8xf32>, vector<1x8xf32> -> vector<2x8xf32>
    %9 = vector.shape_cast %8 : vector<2x8xf32> to vector<1x2x8xf32>
    %c0_5 = arith.constant 0 : index
    %c0_6 = arith.constant 0 : index
    %c0_7 = arith.constant 0 : index
    %10 = vector.load %arg3[%c0_5, %c0_6, %c0_7] : memref<1x2x8xf32, #tpu.memory_space<vmem>>, vector<1x2x8xf32>
    tpu.vector_store %arg3[%c0_5, %c0_6, %c0_7], %9 {strides = array<i32>} : memref<1x2x8xf32, #tpu.memory_space<vmem>>, vector<1x2x8xf32>,
    return
  }
  func.func @transform_0(%arg0: i32) -> (i32, i32) {
    %c0_i32 = arith.constant 0 : i32
    %c0_i32_0 = arith.constant 0 : i32
    return %arg0, %c0_i32 : i32, i32
  }
  func.func @transform_1(%arg0: i32) -> (i32, i32) {
    %c0_i32 = arith.constant 0 : i32
    %c0_i32_0 = arith.constant 0 : i32
    %c0_i32_1 = arith.constant 0 : i32
    return %c0_i32, %c0_i32_0 : i32, i32
  }
  func.func @transform_2(%arg0: i32) -> (i32, i32, i32) {
    %c0_i32 = arith.constant 0 : i32
    %c0_i32_0 = arith.constant 0 : i32
    %c0_i32_1 = arith.constant 0 : i32
    return %arg0, %c0_i32, %c0_i32_0 : i32, i32, i32
  }
}

module attributes {stable_mosaic.version = 11 : i64} {
  func.func @_pw_apply_kernel(%arg0: i32, %arg1: memref<512x16xbf16, #tpu.memory_space<vmem>>, %arg2: memref<16x8xbf16, #tpu.memory_space<vmem>>, %arg3: memref<1x8xf32, #tpu.memory_space<vmem>>, %arg4: memref<1x8xf32, #tpu.memory_space<vmem>>, %arg5: memref<512x4xbf16, #tpu.memory_space<vmem>>) attributes {dimension_semantics = [#tpu.dimension_semantics<parallel>], iteration_bounds = array<i64: 1>, scalar_prefetch = 0 : i64, scratch_operands = 0 : i64, tpu.core_type = #tpu.core_type<tc>, window_params = [{transform_indices = @transform_0, window_bounds = array<i64: 512, 16>}, {pipeline_mode = #tpu.pipeline_mode<synchronous>, transform_indices = @transform_1, window_bounds = array<i64: 16, 8>}, {pipeline_mode = #tpu.pipeline_mode<synchronous>, transform_indices = @transform_2, window_bounds = array<i64: 1, 8>}, {pipeline_mode = #tpu.pipeline_mode<synchronous>, transform_indices = @transform_3, window_bounds = array<i64: 1, 8>}, {transform_indices = @transform_4, window_bounds = array<i64: 512, 4>}]} {
    %c0 = arith.constant 0 : index
    %c0_0 = arith.constant 0 : index
    %0 = vector.load %arg1[%c0, %c0_0] : memref<512x16xbf16, #tpu.memory_space<vmem>>, vector<512x16xbf16>
    %c0_1 = arith.constant 0 : index
    %c0_2 = arith.constant 0 : index
    %1 = vector.load %arg2[%c0_1, %c0_2] : memref<16x8xbf16, #tpu.memory_space<vmem>>, vector<16x8xbf16>
    %cst = arith.constant dense<0.000000e+00> : vector<512x8xf32>
    %2 = tpu.matmul %0, %1, %cst {dimension_numbers = #tpu.dot_dimension_numbers<[1], [0], [0], [1], [0, 0, 1, 1], [], []>} : vector<512x16xbf16>, vector<16x8xbf16>, vector<512x8xf32> -> vector<512x8xf32>
    %c0_3 = arith.constant 0 : index
    %c0_4 = arith.constant 0 : index
    %3 = vector.load %arg3[%c0_3, %c0_4] : memref<1x8xf32, #tpu.memory_space<vmem>>, vector<1x8xf32>
    %4 = vector.broadcast %3 : vector<1x8xf32> to vector<512x8xf32>
    %5 = arith.mulf %2, %4 : vector<512x8xf32>
    %c0_5 = arith.constant 0 : index
    %c0_6 = arith.constant 0 : index
    %6 = vector.load %arg4[%c0_5, %c0_6] : memref<1x8xf32, #tpu.memory_space<vmem>>, vector<1x8xf32>
    %7 = vector.broadcast %6 : vector<1x8xf32> to vector<512x8xf32>
    %8 = arith.addf %5, %7 : vector<512x8xf32>
    %cst_7 = arith.constant 0.000000e+00 : f32
    %9 = vector.broadcast %cst_7 : f32 to vector<512x8xf32>
    %10 = arith.maximumf %8, %9 : vector<512x8xf32>
    %11 = vector.extract_strided_slice %10 {offsets = [0, 0], sizes = [512, 4], strides = [1, 1]} : vector<512x8xf32> to vector<512x4xf32>
    %12 = vector.extract_strided_slice %10 {offsets = [0, 4], sizes = [512, 4], strides = [1, 1]} : vector<512x8xf32> to vector<512x4xf32>
    %13 = arith.addf %11, %12 : vector<512x4xf32>
    %cst_8 = arith.constant 0.000000e+00 : f32
    %14 = vector.broadcast %cst_8 : f32 to vector<512x4xf32>
    %15 = arith.maximumf %13, %14 : vector<512x4xf32>
    %16 = arith.truncf %15 : vector<512x4xf32> to vector<512x4xbf16>
    %c0_9 = arith.constant 0 : index
    %c0_10 = arith.constant 0 : index
    %17 = vector.load %arg5[%c0_9, %c0_10] : memref<512x4xbf16, #tpu.memory_space<vmem>>, vector<512x4xbf16>
    tpu.vector_store %arg5[%c0_9, %c0_10], %16 {strides = array<i32>} : memref<512x4xbf16, #tpu.memory_space<vmem>>, vector<512x4xbf16>,
    return
  }
  func.func @transform_0(%arg0: i32) -> (i32, i32) {
    %c0_i32 = arith.constant 0 : i32
    %c0_i32_0 = arith.constant 0 : i32
    return %arg0, %c0_i32 : i32, i32
  }
  func.func @transform_1(%arg0: i32) -> (i32, i32) {
    %c0_i32 = arith.constant 0 : i32
    %c0_i32_0 = arith.constant 0 : i32
    %c0_i32_1 = arith.constant 0 : i32
    return %c0_i32, %c0_i32_0 : i32, i32
  }
  func.func @transform_2(%arg0: i32) -> (i32, i32) {
    %c0_i32 = arith.constant 0 : i32
    %c0_i32_0 = arith.constant 0 : i32
    %c0_i32_1 = arith.constant 0 : i32
    return %c0_i32, %c0_i32_0 : i32, i32
  }
  func.func @transform_3(%arg0: i32) -> (i32, i32) {
    %c0_i32 = arith.constant 0 : i32
    %c0_i32_0 = arith.constant 0 : i32
    %c0_i32_1 = arith.constant 0 : i32
    return %c0_i32, %c0_i32_0 : i32, i32
  }
  func.func @transform_4(%arg0: i32) -> (i32, i32) {
    %c0_i32 = arith.constant 0 : i32
    %c0_i32_0 = arith.constant 0 : i32
    return %arg0, %c0_i32 : i32, i32
  }
}

module attributes {stable_mosaic.version = 11 : i64} {
  func.func @_conv3_stats_kernel(%arg0: i32, %arg1: memref<256x4xbf16, #tpu.memory_space<vmem>>, %arg2: memref<256x4xbf16, #tpu.memory_space<vmem>>, %arg3: memref<9x4x8xbf16, #tpu.memory_space<vmem>>, %arg4: memref<256x1xf32, #tpu.memory_space<vmem>>, %arg5: memref<1x2x8xf32, #tpu.memory_space<vmem>>) attributes {dimension_semantics = [#tpu.dimension_semantics<parallel>], iteration_bounds = array<i64: 3>, scalar_prefetch = 0 : i64, scratch_operands = 0 : i64, tpu.core_type = #tpu.core_type<tc>, window_params = [{transform_indices = @transform_0, window_bounds = array<i64: 256, 4>}, {transform_indices = @transform_1, window_bounds = array<i64: 256, 4>}, {pipeline_mode = #tpu.pipeline_mode<synchronous>, transform_indices = @transform_2, window_bounds = array<i64: 9, 4, 8>}, {transform_indices = @transform_3, window_bounds = array<i64: 256, 1>}, {transform_indices = @transform_4, window_bounds = array<i64: 1, 2, 8>}]} {
    %c0 = arith.constant 0 : index
    %c0_0 = arith.constant 0 : index
    %0 = vector.load %arg1[%c0, %c0_0] : memref<256x4xbf16, #tpu.memory_space<vmem>>, vector<256x4xbf16>
    %c0_1 = arith.constant 0 : index
    %c0_2 = arith.constant 0 : index
    %1 = vector.load %arg2[%c0_1, %c0_2] : memref<256x4xbf16, #tpu.memory_space<vmem>>, vector<256x4xbf16>
    %2 = tpu.concatenate %0, %1 in 0 : vector<256x4xbf16>, vector<256x4xbf16> -> vector<512x4xbf16>
    %3 = vector.extract_strided_slice %2 {offsets = [0, 0], sizes = [256, 4], strides = [1, 1]} : vector<512x4xbf16> to vector<256x4xbf16>
    %c0_3 = arith.constant 0 : index
    %c0_4 = arith.constant 0 : index
    %c0_5 = arith.constant 0 : index
    %4 = vector.load %arg3[%c0_3, %c0_4, %c0_5] : memref<9x4x8xbf16, #tpu.memory_space<vmem>>, vector<1x4x8xbf16>
    %5 = vector.shape_cast %4 : vector<1x4x8xbf16> to vector<4x8xbf16>
    %cst = arith.constant dense<0.000000e+00> : vector<256x8xf32>
    %6 = tpu.matmul %3, %5, %cst {dimension_numbers = #tpu.dot_dimension_numbers<[1], [0], [0], [1], [0, 0, 1, 1], [], []>} : vector<256x4xbf16>, vector<4x8xbf16>, vector<256x8xf32> -> vector<256x8xf32>
    %7 = vector.extract_strided_slice %2 {offsets = [1, 0], sizes = [256, 4], strides = [1, 1]} : vector<512x4xbf16> to vector<256x4xbf16>
    %c1 = arith.constant 1 : index
    %c0_6 = arith.constant 0 : index
    %c0_7 = arith.constant 0 : index
    %8 = vector.load %arg3[%c1, %c0_6, %c0_7] : memref<9x4x8xbf16, #tpu.memory_space<vmem>>, vector<1x4x8xbf16>
    %9 = vector.shape_cast %8 : vector<1x4x8xbf16> to vector<4x8xbf16>
    %cst_8 = arith.constant dense<0.000000e+00> : vector<256x8xf32>
    %10 = tpu.matmul %7, %9, %cst_8 {dimension_numbers = #tpu.dot_dimension_numbers<[1], [0], [0], [1], [0, 0, 1, 1], [], []>} : vector<256x4xbf16>, vector<4x8xbf16>, vector<256x8xf32> -> vector<256x8xf32>
    %11 = arith.addf %6, %10 : vector<256x8xf32>
    %12 = vector.extract_strided_slice %2 {offsets = [2, 0], sizes = [256, 4], strides = [1, 1]} : vector<512x4xbf16> to vector<256x4xbf16>
    %c2 = arith.constant 2 : index
    %c0_9 = arith.constant 0 : index
    %c0_10 = arith.constant 0 : index
    %13 = vector.load %arg3[%c2, %c0_9, %c0_10] : memref<9x4x8xbf16, #tpu.memory_space<vmem>>, vector<1x4x8xbf16>
    %14 = vector.shape_cast %13 : vector<1x4x8xbf16> to vector<4x8xbf16>
    %cst_11 = arith.constant dense<0.000000e+00> : vector<256x8xf32>
    %15 = tpu.matmul %12, %14, %cst_11 {dimension_numbers = #tpu.dot_dimension_numbers<[1], [0], [0], [1], [0, 0, 1, 1], [], []>} : vector<256x4xbf16>, vector<4x8xbf16>, vector<256x8xf32> -> vector<256x8xf32>
    %16 = arith.addf %11, %15 : vector<256x8xf32>
    %17 = vector.extract_strided_slice %2 {offsets = [18, 0], sizes = [256, 4], strides = [1, 1]} : vector<512x4xbf16> to vector<256x4xbf16>
    %c3 = arith.constant 3 : index
    %c0_12 = arith.constant 0 : index
    %c0_13 = arith.constant 0 : index
    %18 = vector.load %arg3[%c3, %c0_12, %c0_13] : memref<9x4x8xbf16, #tpu.memory_space<vmem>>, vector<1x4x8xbf16>
    %19 = vector.shape_cast %18 : vector<1x4x8xbf16> to vector<4x8xbf16>
    %cst_14 = arith.constant dense<0.000000e+00> : vector<256x8xf32>
    %20 = tpu.matmul %17, %19, %cst_14 {dimension_numbers = #tpu.dot_dimension_numbers<[1], [0], [0], [1], [0, 0, 1, 1], [], []>} : vector<256x4xbf16>, vector<4x8xbf16>, vector<256x8xf32> -> vector<256x8xf32>
    %21 = arith.addf %16, %20 : vector<256x8xf32>
    %22 = vector.extract_strided_slice %2 {offsets = [19, 0], sizes = [256, 4], strides = [1, 1]} : vector<512x4xbf16> to vector<256x4xbf16>
    %c4 = arith.constant 4 : index
    %c0_15 = arith.constant 0 : index
    %c0_16 = arith.constant 0 : index
    %23 = vector.load %arg3[%c4, %c0_15, %c0_16] : memref<9x4x8xbf16, #tpu.memory_space<vmem>>, vector<1x4x8xbf16>
    %24 = vector.shape_cast %23 : vector<1x4x8xbf16> to vector<4x8xbf16>
    %cst_17 = arith.constant dense<0.000000e+00> : vector<256x8xf32>
    %25 = tpu.matmul %22, %24, %cst_17 {dimension_numbers = #tpu.dot_dimension_numbers<[1], [0], [0], [1], [0, 0, 1, 1], [], []>} : vector<256x4xbf16>, vector<4x8xbf16>, vector<256x8xf32> -> vector<256x8xf32>
    %26 = arith.addf %21, %25 : vector<256x8xf32>
    %27 = vector.extract_strided_slice %2 {offsets = [20, 0], sizes = [256, 4], strides = [1, 1]} : vector<512x4xbf16> to vector<256x4xbf16>
    %c5 = arith.constant 5 : index
    %c0_18 = arith.constant 0 : index
    %c0_19 = arith.constant 0 : index
    %28 = vector.load %arg3[%c5, %c0_18, %c0_19] : memref<9x4x8xbf16, #tpu.memory_space<vmem>>, vector<1x4x8xbf16>
    %29 = vector.shape_cast %28 : vector<1x4x8xbf16> to vector<4x8xbf16>
    %cst_20 = arith.constant dense<0.000000e+00> : vector<256x8xf32>
    %30 = tpu.matmul %27, %29, %cst_20 {dimension_numbers = #tpu.dot_dimension_numbers<[1], [0], [0], [1], [0, 0, 1, 1], [], []>} : vector<256x4xbf16>, vector<4x8xbf16>, vector<256x8xf32> -> vector<256x8xf32>
    %31 = arith.addf %26, %30 : vector<256x8xf32>
    %32 = vector.extract_strided_slice %2 {offsets = [36, 0], sizes = [256, 4], strides = [1, 1]} : vector<512x4xbf16> to vector<256x4xbf16>
    %c6 = arith.constant 6 : index
    %c0_21 = arith.constant 0 : index
    %c0_22 = arith.constant 0 : index
    %33 = vector.load %arg3[%c6, %c0_21, %c0_22] : memref<9x4x8xbf16, #tpu.memory_space<vmem>>, vector<1x4x8xbf16>
    %34 = vector.shape_cast %33 : vector<1x4x8xbf16> to vector<4x8xbf16>
    %cst_23 = arith.constant dense<0.000000e+00> : vector<256x8xf32>
    %35 = tpu.matmul %32, %34, %cst_23 {dimension_numbers = #tpu.dot_dimension_numbers<[1], [0], [0], [1], [0, 0, 1, 1], [], []>} : vector<256x4xbf16>, vector<4x8xbf16>, vector<256x8xf32> -> vector<256x8xf32>
    %36 = arith.addf %31, %35 : vector<256x8xf32>
    %37 = vector.extract_strided_slice %2 {offsets = [37, 0], sizes = [256, 4], strides = [1, 1]} : vector<512x4xbf16> to vector<256x4xbf16>
    %c7 = arith.constant 7 : index
    %c0_24 = arith.constant 0 : index
    %c0_25 = arith.constant 0 : index
    %38 = vector.load %arg3[%c7, %c0_24, %c0_25] : memref<9x4x8xbf16, #tpu.memory_space<vmem>>, vector<1x4x8xbf16>
    %39 = vector.shape_cast %38 : vector<1x4x8xbf16> to vector<4x8xbf16>
    %cst_26 = arith.constant dense<0.000000e+00> : vector<256x8xf32>
    %40 = tpu.matmul %37, %39, %cst_26 {dimension_numbers = #tpu.dot_dimension_numbers<[1], [0], [0], [1], [0, 0, 1, 1], [], []>} : vector<256x4xbf16>, vector<4x8xbf16>, vector<256x8xf32> -> vector<256x8xf32>
    %41 = arith.addf %36, %40 : vector<256x8xf32>
    %42 = vector.extract_strided_slice %2 {offsets = [38, 0], sizes = [256, 4], strides = [1, 1]} : vector<512x4xbf16> to vector<256x4xbf16>
    %c8 = arith.constant 8 : index
    %c0_27 = arith.constant 0 : index
    %c0_28 = arith.constant 0 : index
    %43 = vector.load %arg3[%c8, %c0_27, %c0_28] : memref<9x4x8xbf16, #tpu.memory_space<vmem>>, vector<1x4x8xbf16>
    %44 = vector.shape_cast %43 : vector<1x4x8xbf16> to vector<4x8xbf16>
    %cst_29 = arith.constant dense<0.000000e+00> : vector<256x8xf32>
    %45 = tpu.matmul %42, %44, %cst_29 {dimension_numbers = #tpu.dot_dimension_numbers<[1], [0], [0], [1], [0, 0, 1, 1], [], []>} : vector<256x4xbf16>, vector<4x8xbf16>, vector<256x8xf32> -> vector<256x8xf32>
    %46 = arith.addf %41, %45 : vector<256x8xf32>
    %c0_30 = arith.constant 0 : index
    %c0_31 = arith.constant 0 : index
    %47 = vector.load %arg4[%c0_30, %c0_31] : memref<256x1xf32, #tpu.memory_space<vmem>>, vector<256x1xf32>
    %48 = vector.broadcast %47 : vector<256x1xf32> to vector<256x8xf32>
    %49 = arith.mulf %46, %48 : vector<256x8xf32>
    %cst_32 = arith.constant dense<0.000000e+00> : vector<8xf32>
    %50 = vector.multi_reduction <add>, %49, %cst_32 [0] : vector<256x8xf32> to vector<8xf32>
    %51 = vector.shape_cast %50 : vector<8xf32> to vector<1x8xf32>
    %52 = arith.mulf %49, %46 : vector<256x8xf32>
    %cst_33 = arith.constant dense<0.000000e+00> : vector<8xf32>
    %53 = vector.multi_reduction <add>, %52, %cst_33 [0] : vector<256x8xf32> to vector<8xf32>
    %54 = vector.shape_cast %53 : vector<8xf32> to vector<1x8xf32>
    %55 = tpu.concatenate %51, %54 in 0 : vector<1x8xf32>, vector<1x8xf32> -> vector<2x8xf32>
    %56 = vector.shape_cast %55 : vector<2x8xf32> to vector<1x2x8xf32>
    %c0_34 = arith.constant 0 : index
    %c0_35 = arith.constant 0 : index
    %c0_36 = arith.constant 0 : index
    %57 = vector.load %arg5[%c0_34, %c0_35, %c0_36] : memref<1x2x8xf32, #tpu.memory_space<vmem>>, vector<1x2x8xf32>
    tpu.vector_store %arg5[%c0_34, %c0_35, %c0_36], %56 {strides = array<i32>} : memref<1x2x8xf32, #tpu.memory_space<vmem>>, vector<1x2x8xf32>,
    return
  }
  func.func @transform_0(%arg0: i32) -> (i32, i32) {
    %c0_i32 = arith.constant 0 : i32
    %c0_i32_0 = arith.constant 0 : i32
    return %arg0, %c0_i32 : i32, i32
  }
  func.func @transform_1(%arg0: i32) -> (i32, i32) {
    %c1_i32 = arith.constant 1 : i32
    %0 = arith.addi %arg0, %c1_i32 : i32
    %c0_i32 = arith.constant 0 : i32
    %c0_i32_0 = arith.constant 0 : i32
    return %0, %c0_i32 : i32, i32
  }
  func.func @transform_2(%arg0: i32) -> (i32, i32, i32) {
    %c0_i32 = arith.constant 0 : i32
    %c0_i32_0 = arith.constant 0 : i32
    %c0_i32_1 = arith.constant 0 : i32
    %c0_i32_2 = arith.constant 0 : i32
    return %c0_i32, %c0_i32_0, %c0_i32_1 : i32, i32, i32
  }
  func.func @transform_3(%arg0: i32) -> (i32, i32) {
    %c0_i32 = arith.constant 0 : i32
    %c0_i32_0 = arith.constant 0 : i32
    return %arg0, %c0_i32 : i32, i32
  }
  func.func @transform_4(%arg0: i32) -> (i32, i32, i32) {
    %c0_i32 = arith.constant 0 : i32
    %c0_i32_0 = arith.constant 0 : i32
    %c0_i32_1 = arith.constant 0 : i32
    return %arg0, %c0_i32, %c0_i32_0 : i32, i32, i32
  }
}

module attributes {stable_mosaic.version = 11 : i64} {
  func.func @_conv3_apply_kernel(%arg0: i32, %arg1: memref<256x4xbf16, #tpu.memory_space<vmem>>, %arg2: memref<256x4xbf16, #tpu.memory_space<vmem>>, %arg3: memref<9x4x8xbf16, #tpu.memory_space<vmem>>, %arg4: memref<1x8xf32, #tpu.memory_space<vmem>>, %arg5: memref<1x8xf32, #tpu.memory_space<vmem>>, %arg6: memref<256x1xf32, #tpu.memory_space<vmem>>, %arg7: memref<4x32xbf16, #tpu.memory_space<vmem>>, %arg8: memref<256x4xbf16, #tpu.memory_space<vmem>>, %arg9: memref<1x2x32xf32, #tpu.memory_space<vmem>>) attributes {dimension_semantics = [#tpu.dimension_semantics<parallel>], iteration_bounds = array<i64: 3>, scalar_prefetch = 0 : i64, scratch_operands = 0 : i64, tpu.core_type = #tpu.core_type<tc>, window_params = [{transform_indices = @transform_0, window_bounds = array<i64: 256, 4>}, {transform_indices = @transform_1, window_bounds = array<i64: 256, 4>}, {pipeline_mode = #tpu.pipeline_mode<synchronous>, transform_indices = @transform_2, window_bounds = array<i64: 9, 4, 8>}, {pipeline_mode = #tpu.pipeline_mode<synchronous>, transform_indices = @transform_3, window_bounds = array<i64: 1, 8>}, {pipeline_mode = #tpu.pipeline_mode<synchronous>, transform_indices = @transform_4, window_bounds = array<i64: 1, 8>}, {transform_indices = @transform_5, window_bounds = array<i64: 256, 1>}, {pipeline_mode = #tpu.pipeline_mode<synchronous>, transform_indices = @transform_6, window_bounds = array<i64: 4, 32>}, {transform_indices = @transform_7, window_bounds = array<i64: 256, 4>}, {transform_indices = @transform_8, window_bounds = array<i64: 1, 2, 32>}]} {
    %c0 = arith.constant 0 : index
    %c0_0 = arith.constant 0 : index
    %0 = vector.load %arg1[%c0, %c0_0] : memref<256x4xbf16, #tpu.memory_space<vmem>>, vector<256x4xbf16>
    %c0_1 = arith.constant 0 : index
    %c0_2 = arith.constant 0 : index
    %1 = vector.load %arg2[%c0_1, %c0_2] : memref<256x4xbf16, #tpu.memory_space<vmem>>, vector<256x4xbf16>
    %2 = tpu.concatenate %0, %1 in 0 : vector<256x4xbf16>, vector<256x4xbf16> -> vector<512x4xbf16>
    %3 = vector.extract_strided_slice %2 {offsets = [0, 0], sizes = [256, 4], strides = [1, 1]} : vector<512x4xbf16> to vector<256x4xbf16>
    %c0_3 = arith.constant 0 : index
    %c0_4 = arith.constant 0 : index
    %c0_5 = arith.constant 0 : index
    %4 = vector.load %arg3[%c0_3, %c0_4, %c0_5] : memref<9x4x8xbf16, #tpu.memory_space<vmem>>, vector<1x4x8xbf16>
    %5 = vector.shape_cast %4 : vector<1x4x8xbf16> to vector<4x8xbf16>
    %cst = arith.constant dense<0.000000e+00> : vector<256x8xf32>
    %6 = tpu.matmul %3, %5, %cst {dimension_numbers = #tpu.dot_dimension_numbers<[1], [0], [0], [1], [0, 0, 1, 1], [], []>} : vector<256x4xbf16>, vector<4x8xbf16>, vector<256x8xf32> -> vector<256x8xf32>
    %7 = vector.extract_strided_slice %2 {offsets = [1, 0], sizes = [256, 4], strides = [1, 1]} : vector<512x4xbf16> to vector<256x4xbf16>
    %c1 = arith.constant 1 : index
    %c0_6 = arith.constant 0 : index
    %c0_7 = arith.constant 0 : index
    %8 = vector.load %arg3[%c1, %c0_6, %c0_7] : memref<9x4x8xbf16, #tpu.memory_space<vmem>>, vector<1x4x8xbf16>
    %9 = vector.shape_cast %8 : vector<1x4x8xbf16> to vector<4x8xbf16>
    %cst_8 = arith.constant dense<0.000000e+00> : vector<256x8xf32>
    %10 = tpu.matmul %7, %9, %cst_8 {dimension_numbers = #tpu.dot_dimension_numbers<[1], [0], [0], [1], [0, 0, 1, 1], [], []>} : vector<256x4xbf16>, vector<4x8xbf16>, vector<256x8xf32> -> vector<256x8xf32>
    %11 = arith.addf %6, %10 : vector<256x8xf32>
    %12 = vector.extract_strided_slice %2 {offsets = [2, 0], sizes = [256, 4], strides = [1, 1]} : vector<512x4xbf16> to vector<256x4xbf16>
    %c2 = arith.constant 2 : index
    %c0_9 = arith.constant 0 : index
    %c0_10 = arith.constant 0 : index
    %13 = vector.load %arg3[%c2, %c0_9, %c0_10] : memref<9x4x8xbf16, #tpu.memory_space<vmem>>, vector<1x4x8xbf16>
    %14 = vector.shape_cast %13 : vector<1x4x8xbf16> to vector<4x8xbf16>
    %cst_11 = arith.constant dense<0.000000e+00> : vector<256x8xf32>
    %15 = tpu.matmul %12, %14, %cst_11 {dimension_numbers = #tpu.dot_dimension_numbers<[1], [0], [0], [1], [0, 0, 1, 1], [], []>} : vector<256x4xbf16>, vector<4x8xbf16>, vector<256x8xf32> -> vector<256x8xf32>
    %16 = arith.addf %11, %15 : vector<256x8xf32>
    %17 = vector.extract_strided_slice %2 {offsets = [18, 0], sizes = [256, 4], strides = [1, 1]} : vector<512x4xbf16> to vector<256x4xbf16>
    %c3 = arith.constant 3 : index
    %c0_12 = arith.constant 0 : index
    %c0_13 = arith.constant 0 : index
    %18 = vector.load %arg3[%c3, %c0_12, %c0_13] : memref<9x4x8xbf16, #tpu.memory_space<vmem>>, vector<1x4x8xbf16>
    %19 = vector.shape_cast %18 : vector<1x4x8xbf16> to vector<4x8xbf16>
    %cst_14 = arith.constant dense<0.000000e+00> : vector<256x8xf32>
    %20 = tpu.matmul %17, %19, %cst_14 {dimension_numbers = #tpu.dot_dimension_numbers<[1], [0], [0], [1], [0, 0, 1, 1], [], []>} : vector<256x4xbf16>, vector<4x8xbf16>, vector<256x8xf32> -> vector<256x8xf32>
    %21 = arith.addf %16, %20 : vector<256x8xf32>
    %22 = vector.extract_strided_slice %2 {offsets = [19, 0], sizes = [256, 4], strides = [1, 1]} : vector<512x4xbf16> to vector<256x4xbf16>
    %c4 = arith.constant 4 : index
    %c0_15 = arith.constant 0 : index
    %c0_16 = arith.constant 0 : index
    %23 = vector.load %arg3[%c4, %c0_15, %c0_16] : memref<9x4x8xbf16, #tpu.memory_space<vmem>>, vector<1x4x8xbf16>
    %24 = vector.shape_cast %23 : vector<1x4x8xbf16> to vector<4x8xbf16>
    %cst_17 = arith.constant dense<0.000000e+00> : vector<256x8xf32>
    %25 = tpu.matmul %22, %24, %cst_17 {dimension_numbers = #tpu.dot_dimension_numbers<[1], [0], [0], [1], [0, 0, 1, 1], [], []>} : vector<256x4xbf16>, vector<4x8xbf16>, vector<256x8xf32> -> vector<256x8xf32>
    %26 = arith.addf %21, %25 : vector<256x8xf32>
    %27 = vector.extract_strided_slice %2 {offsets = [20, 0], sizes = [256, 4], strides = [1, 1]} : vector<512x4xbf16> to vector<256x4xbf16>
    %c5 = arith.constant 5 : index
    %c0_18 = arith.constant 0 : index
    %c0_19 = arith.constant 0 : index
    %28 = vector.load %arg3[%c5, %c0_18, %c0_19] : memref<9x4x8xbf16, #tpu.memory_space<vmem>>, vector<1x4x8xbf16>
    %29 = vector.shape_cast %28 : vector<1x4x8xbf16> to vector<4x8xbf16>
    %cst_20 = arith.constant dense<0.000000e+00> : vector<256x8xf32>
    %30 = tpu.matmul %27, %29, %cst_20 {dimension_numbers = #tpu.dot_dimension_numbers<[1], [0], [0], [1], [0, 0, 1, 1], [], []>} : vector<256x4xbf16>, vector<4x8xbf16>, vector<256x8xf32> -> vector<256x8xf32>
    %31 = arith.addf %26, %30 : vector<256x8xf32>
    %32 = vector.extract_strided_slice %2 {offsets = [36, 0], sizes = [256, 4], strides = [1, 1]} : vector<512x4xbf16> to vector<256x4xbf16>
    %c6 = arith.constant 6 : index
    %c0_21 = arith.constant 0 : index
    %c0_22 = arith.constant 0 : index
    %33 = vector.load %arg3[%c6, %c0_21, %c0_22] : memref<9x4x8xbf16, #tpu.memory_space<vmem>>, vector<1x4x8xbf16>
    %34 = vector.shape_cast %33 : vector<1x4x8xbf16> to vector<4x8xbf16>
    %cst_23 = arith.constant dense<0.000000e+00> : vector<256x8xf32>
    %35 = tpu.matmul %32, %34, %cst_23 {dimension_numbers = #tpu.dot_dimension_numbers<[1], [0], [0], [1], [0, 0, 1, 1], [], []>} : vector<256x4xbf16>, vector<4x8xbf16>, vector<256x8xf32> -> vector<256x8xf32>
    %36 = arith.addf %31, %35 : vector<256x8xf32>
    %37 = vector.extract_strided_slice %2 {offsets = [37, 0], sizes = [256, 4], strides = [1, 1]} : vector<512x4xbf16> to vector<256x4xbf16>
    %c7 = arith.constant 7 : index
    %c0_24 = arith.constant 0 : index
    %c0_25 = arith.constant 0 : index
    %38 = vector.load %arg3[%c7, %c0_24, %c0_25] : memref<9x4x8xbf16, #tpu.memory_space<vmem>>, vector<1x4x8xbf16>
    %39 = vector.shape_cast %38 : vector<1x4x8xbf16> to vector<4x8xbf16>
    %cst_26 = arith.constant dense<0.000000e+00> : vector<256x8xf32>
    %40 = tpu.matmul %37, %39, %cst_26 {dimension_numbers = #tpu.dot_dimension_numbers<[1], [0], [0], [1], [0, 0, 1, 1], [], []>} : vector<256x4xbf16>, vector<4x8xbf16>, vector<256x8xf32> -> vector<256x8xf32>
    %41 = arith.addf %36, %40 : vector<256x8xf32>
    %42 = vector.extract_strided_slice %2 {offsets = [38, 0], sizes = [256, 4], strides = [1, 1]} : vector<512x4xbf16> to vector<256x4xbf16>
    %c8 = arith.constant 8 : index
    %c0_27 = arith.constant 0 : index
    %c0_28 = arith.constant 0 : index
    %43 = vector.load %arg3[%c8, %c0_27, %c0_28] : memref<9x4x8xbf16, #tpu.memory_space<vmem>>, vector<1x4x8xbf16>
    %44 = vector.shape_cast %43 : vector<1x4x8xbf16> to vector<4x8xbf16>
    %cst_29 = arith.constant dense<0.000000e+00> : vector<256x8xf32>
    %45 = tpu.matmul %42, %44, %cst_29 {dimension_numbers = #tpu.dot_dimension_numbers<[1], [0], [0], [1], [0, 0, 1, 1], [], []>} : vector<256x4xbf16>, vector<4x8xbf16>, vector<256x8xf32> -> vector<256x8xf32>
    %46 = arith.addf %41, %45 : vector<256x8xf32>
    %c0_30 = arith.constant 0 : index
    %c0_31 = arith.constant 0 : index
    %47 = vector.load %arg4[%c0_30, %c0_31] : memref<1x8xf32, #tpu.memory_space<vmem>>, vector<1x8xf32>
    %48 = vector.broadcast %47 : vector<1x8xf32> to vector<256x8xf32>
    %49 = arith.mulf %46, %48 : vector<256x8xf32>
    %c0_32 = arith.constant 0 : index
    %c0_33 = arith.constant 0 : index
    %50 = vector.load %arg5[%c0_32, %c0_33] : memref<1x8xf32, #tpu.memory_space<vmem>>, vector<1x8xf32>
    %51 = vector.broadcast %50 : vector<1x8xf32> to vector<256x8xf32>
    %52 = arith.addf %49, %51 : vector<256x8xf32>
    %cst_34 = arith.constant 0.000000e+00 : f32
    %53 = vector.broadcast %cst_34 : f32 to vector<256x8xf32>
    %54 = arith.maximumf %52, %53 : vector<256x8xf32>
    %55 = vector.extract_strided_slice %54 {offsets = [0, 0], sizes = [256, 4], strides = [1, 1]} : vector<256x8xf32> to vector<256x4xf32>
    %56 = vector.extract_strided_slice %54 {offsets = [0, 4], sizes = [256, 4], strides = [1, 1]} : vector<256x8xf32> to vector<256x4xf32>
    %57 = arith.addf %55, %56 : vector<256x4xf32>
    %cst_35 = arith.constant 0.000000e+00 : f32
    %58 = vector.broadcast %cst_35 : f32 to vector<256x4xf32>
    %59 = arith.maximumf %57, %58 : vector<256x4xf32>
    %60 = arith.truncf %59 : vector<256x4xf32> to vector<256x4xbf16>
    %c0_36 = arith.constant 0 : index
    %c0_37 = arith.constant 0 : index
    %61 = vector.load %arg8[%c0_36, %c0_37] : memref<256x4xbf16, #tpu.memory_space<vmem>>, vector<256x4xbf16>
    tpu.vector_store %arg8[%c0_36, %c0_37], %60 {strides = array<i32>} : memref<256x4xbf16, #tpu.memory_space<vmem>>, vector<256x4xbf16>,
    %c0_38 = arith.constant 0 : index
    %c0_39 = arith.constant 0 : index
    %62 = vector.load %arg7[%c0_38, %c0_39] : memref<4x32xbf16, #tpu.memory_space<vmem>>, vector<4x32xbf16>
    %cst_40 = arith.constant dense<0.000000e+00> : vector<256x32xf32>
    %63 = tpu.matmul %60, %62, %cst_40 {dimension_numbers = #tpu.dot_dimension_numbers<[1], [0], [0], [1], [0, 0, 1, 1], [], []>} : vector<256x4xbf16>, vector<4x32xbf16>, vector<256x32xf32> -> vector<256x32xf32>
    %c0_41 = arith.constant 0 : index
    %c0_42 = arith.constant 0 : index
    %64 = vector.load %arg6[%c0_41, %c0_42] : memref<256x1xf32, #tpu.memory_space<vmem>>, vector<256x1xf32>
    %65 = vector.broadcast %64 : vector<256x1xf32> to vector<256x32xf32>
    %66 = arith.mulf %63, %65 : vector<256x32xf32>
    %cst_43 = arith.constant dense<0.000000e+00> : vector<32xf32>
    %67 = vector.multi_reduction <add>, %66, %cst_43 [0] : vector<256x32xf32> to vector<32xf32>
    %68 = vector.shape_cast %67 : vector<32xf32> to vector<1x32xf32>
    %69 = arith.mulf %66, %63 : vector<256x32xf32>
    %cst_44 = arith.constant dense<0.000000e+00> : vector<32xf32>
    %70 = vector.multi_reduction <add>, %69, %cst_44 [0] : vector<256x32xf32> to vector<32xf32>
    %71 = vector.shape_cast %70 : vector<32xf32> to vector<1x32xf32>
    %72 = tpu.concatenate %68, %71 in 0 : vector<1x32xf32>, vector<1x32xf32> -> vector<2x32xf32>
    %73 = vector.shape_cast %72 : vector<2x32xf32> to vector<1x2x32xf32>
    %c0_45 = arith.constant 0 : index
    %c0_46 = arith.constant 0 : index
    %c0_47 = arith.constant 0 : index
    %74 = vector.load %arg9[%c0_45, %c0_46, %c0_47] : memref<1x2x32xf32, #tpu.memory_space<vmem>>, vector<1x2x32xf32>
    tpu.vector_store %arg9[%c0_45, %c0_46, %c0_47], %73 {strides = array<i32>} : memref<1x2x32xf32, #tpu.memory_space<vmem>>, vector<1x2x32xf32>,
    return
  }
  func.func @transform_0(%arg0: i32) -> (i32, i32) {
    %c0_i32 = arith.constant 0 : i32
    %c0_i32_0 = arith.constant 0 : i32
    return %arg0, %c0_i32 : i32, i32
  }
  func.func @transform_1(%arg0: i32) -> (i32, i32) {
    %c1_i32 = arith.constant 1 : i32
    %0 = arith.addi %arg0, %c1_i32 : i32
    %c0_i32 = arith.constant 0 : i32
    %c0_i32_0 = arith.constant 0 : i32
    return %0, %c0_i32 : i32, i32
  }
  func.func @transform_2(%arg0: i32) -> (i32, i32, i32) {
    %c0_i32 = arith.constant 0 : i32
    %c0_i32_0 = arith.constant 0 : i32
    %c0_i32_1 = arith.constant 0 : i32
    %c0_i32_2 = arith.constant 0 : i32
    return %c0_i32, %c0_i32_0, %c0_i32_1 : i32, i32, i32
  }
  func.func @transform_3(%arg0: i32) -> (i32, i32) {
    %c0_i32 = arith.constant 0 : i32
    %c0_i32_0 = arith.constant 0 : i32
    %c0_i32_1 = arith.constant 0 : i32
    return %c0_i32, %c0_i32_0 : i32, i32
  }
  func.func @transform_4(%arg0: i32) -> (i32, i32) {
    %c0_i32 = arith.constant 0 : i32
    %c0_i32_0 = arith.constant 0 : i32
    %c0_i32_1 = arith.constant 0 : i32
    return %c0_i32, %c0_i32_0 : i32, i32
  }
  func.func @transform_5(%arg0: i32) -> (i32, i32) {
    %c0_i32 = arith.constant 0 : i32
    %c0_i32_0 = arith.constant 0 : i32
    return %arg0, %c0_i32 : i32, i32
  }
  func.func @transform_6(%arg0: i32) -> (i32, i32) {
    %c0_i32 = arith.constant 0 : i32
    %c0_i32_0 = arith.constant 0 : i32
    %c0_i32_1 = arith.constant 0 : i32
    return %c0_i32, %c0_i32_0 : i32, i32
  }
  func.func @transform_7(%arg0: i32) -> (i32, i32) {
    %c0_i32 = arith.constant 0 : i32
    %c0_i32_0 = arith.constant 0 : i32
    return %arg0, %c0_i32 : i32, i32
  }
  func.func @transform_8(%arg0: i32) -> (i32, i32, i32) {
    %c0_i32 = arith.constant 0 : i32
    %c0_i32_0 = arith.constant 0 : i32
    %c0_i32_1 = arith.constant 0 : i32
    return %arg0, %c0_i32, %c0_i32_0 : i32, i32, i32
  }
}

module attributes {stable_mosaic.version = 11 : i64} {
  func.func @_pw_apply_kernel(%arg0: i32, %arg1: memref<512x4xbf16, #tpu.memory_space<vmem>>, %arg2: memref<4x32xbf16, #tpu.memory_space<vmem>>, %arg3: memref<1x32xf32, #tpu.memory_space<vmem>>, %arg4: memref<1x32xf32, #tpu.memory_space<vmem>>, %arg5: memref<512x16xf32, #tpu.memory_space<vmem>>, %arg6: memref<512x16xf32, #tpu.memory_space<vmem>>) attributes {dimension_semantics = [#tpu.dimension_semantics<parallel>], iteration_bounds = array<i64: 1>, scalar_prefetch = 0 : i64, scratch_operands = 0 : i64, tpu.core_type = #tpu.core_type<tc>, window_params = [{transform_indices = @transform_0, window_bounds = array<i64: 512, 4>}, {pipeline_mode = #tpu.pipeline_mode<synchronous>, transform_indices = @transform_1, window_bounds = array<i64: 4, 32>}, {pipeline_mode = #tpu.pipeline_mode<synchronous>, transform_indices = @transform_2, window_bounds = array<i64: 1, 32>}, {pipeline_mode = #tpu.pipeline_mode<synchronous>, transform_indices = @transform_3, window_bounds = array<i64: 1, 32>}, {transform_indices = @transform_4, window_bounds = array<i64: 512, 16>}, {transform_indices = @transform_5, window_bounds = array<i64: 512, 16>}]} {
    %c0 = arith.constant 0 : index
    %c0_0 = arith.constant 0 : index
    %0 = vector.load %arg1[%c0, %c0_0] : memref<512x4xbf16, #tpu.memory_space<vmem>>, vector<512x4xbf16>
    %c0_1 = arith.constant 0 : index
    %c0_2 = arith.constant 0 : index
    %1 = vector.load %arg2[%c0_1, %c0_2] : memref<4x32xbf16, #tpu.memory_space<vmem>>, vector<4x32xbf16>
    %cst = arith.constant dense<0.000000e+00> : vector<512x32xf32>
    %2 = tpu.matmul %0, %1, %cst {dimension_numbers = #tpu.dot_dimension_numbers<[1], [0], [0], [1], [0, 0, 1, 1], [], []>} : vector<512x4xbf16>, vector<4x32xbf16>, vector<512x32xf32> -> vector<512x32xf32>
    %c0_3 = arith.constant 0 : index
    %c0_4 = arith.constant 0 : index
    %3 = vector.load %arg3[%c0_3, %c0_4] : memref<1x32xf32, #tpu.memory_space<vmem>>, vector<1x32xf32>
    %4 = vector.broadcast %3 : vector<1x32xf32> to vector<512x32xf32>
    %5 = arith.mulf %2, %4 : vector<512x32xf32>
    %c0_5 = arith.constant 0 : index
    %c0_6 = arith.constant 0 : index
    %6 = vector.load %arg4[%c0_5, %c0_6] : memref<1x32xf32, #tpu.memory_space<vmem>>, vector<1x32xf32>
    %7 = vector.broadcast %6 : vector<1x32xf32> to vector<512x32xf32>
    %8 = arith.addf %5, %7 : vector<512x32xf32>
    %cst_7 = arith.constant 0.000000e+00 : f32
    %9 = vector.broadcast %cst_7 : f32 to vector<512x32xf32>
    %10 = arith.maximumf %8, %9 : vector<512x32xf32>
    %11 = vector.extract_strided_slice %10 {offsets = [0, 0], sizes = [512, 16], strides = [1, 1]} : vector<512x32xf32> to vector<512x16xf32>
    %12 = vector.extract_strided_slice %10 {offsets = [0, 16], sizes = [512, 16], strides = [1, 1]} : vector<512x32xf32> to vector<512x16xf32>
    %13 = arith.addf %11, %12 : vector<512x16xf32>
    %c0_8 = arith.constant 0 : index
    %c0_9 = arith.constant 0 : index
    %14 = vector.load %arg5[%c0_8, %c0_9] : memref<512x16xf32, #tpu.memory_space<vmem>>, vector<512x16xf32>
    %15 = arith.addf %13, %14 : vector<512x16xf32>
    %cst_10 = arith.constant 0.000000e+00 : f32
    %16 = vector.broadcast %cst_10 : f32 to vector<512x16xf32>
    %17 = arith.maximumf %15, %16 : vector<512x16xf32>
    %c0_11 = arith.constant 0 : index
    %c0_12 = arith.constant 0 : index
    %18 = vector.load %arg6[%c0_11, %c0_12] : memref<512x16xf32, #tpu.memory_space<vmem>>, vector<512x16xf32>
    tpu.vector_store %arg6[%c0_11, %c0_12], %17 {strides = array<i32>} : memref<512x16xf32, #tpu.memory_space<vmem>>, vector<512x16xf32>,
    return
  }
  func.func @transform_0(%arg0: i32) -> (i32, i32) {
    %c0_i32 = arith.constant 0 : i32
    %c0_i32_0 = arith.constant 0 : i32
    return %arg0, %c0_i32 : i32, i32
  }
  func.func @transform_1(%arg0: i32) -> (i32, i32) {
    %c0_i32 = arith.constant 0 : i32
    %c0_i32_0 = arith.constant 0 : i32
    %c0_i32_1 = arith.constant 0 : i32
    return %c0_i32, %c0_i32_0 : i32, i32
  }
  func.func @transform_2(%arg0: i32) -> (i32, i32) {
    %c0_i32 = arith.constant 0 : i32
    %c0_i32_0 = arith.constant 0 : i32
    %c0_i32_1 = arith.constant 0 : i32
    return %c0_i32, %c0_i32_0 : i32, i32
  }
  func.func @transform_3(%arg0: i32) -> (i32, i32) {
    %c0_i32 = arith.constant 0 : i32
    %c0_i32_0 = arith.constant 0 : i32
    %c0_i32_1 = arith.constant 0 : i32
    return %c0_i32, %c0_i32_0 : i32, i32
  }
  func.func @transform_4(%arg0: i32) -> (i32, i32) {
    %c0_i32 = arith.constant 0 : i32
    %c0_i32_0 = arith.constant 0 : i32
    return %arg0, %c0_i32 : i32, i32
  }
  func.func @transform_5(%arg0: i32) -> (i32, i32) {
    %c0_i32 = arith.constant 0 : i32
    %c0_i32_0 = arith.constant 0 : i32
    return %arg0, %c0_i32 : i32, i32
  }
}

</mosaic_0001>

<bundles_post_ra>
// kernel: _lambda_.5
= control target key start
LH: loop header
LB: loop body
LE: loop exit
PB: predicated region body
PF: predicated region fallthrough
CT: control target
= control target key end

     0   :  { %vm244_vm0 = vcmask 130048   ;;  %vm630_vm1 = vcmask 64512   ;;  %vm961_vm2 = vcmask 1040384   ;;  %vm963_vm3 = vcmask 58368   ;;  %s1605_s1 = inlined_call_operand.vmem [shape: bf16[16,8], index: 1, kind: input, shape index: {}]   ;;  %s1606_s0 = inlined_call_operand.vmem [shape: bf16[512,16], index: 0, kind: input, shape index: {}]   ;;  %s1607_s2 = inlined_call_operand.vmem [shape: f32[1,2,8], index: 2, kind: output, shape index: {}]  }
   0x1   :  { %v1135_v0 = vld [vmem:[%s1605_s1] sm:$0xff]   ;;  %v1137_v2 = vld [vmem:[%s1606_s0 + $0x8] sm:$0xff]   ;;  %v1138_v3 = vld [vmem:[%s1606_s0 + $0x10] sm:$0xff]  }
   0x2   :  { %v1136_v1 = vld [vmem:[%s1606_s0] sm:$0xff]   ;;  %1067 = vmatprep.subr.bf16.mxu0 %v1135_v0  ;;  %1133 = vmatprep.subr.bf16.mxu1 %v1135_v0  ;;  %v1139_v4 = vld [vmem:[%s1606_s0 + $0x18] sm:$0xff]   ;;  %v1141_v6 = vld [vmem:[%s1606_s0 + $0x28] sm:$0xff]  }
   0x3   :  { %1068 = vmatpush3.bf16.msra.mxu0 %v1135_v0  ;;  %1069 = vmatprep.mubr.msk.bf16.mxu0 %vm244_vm0, %v1136_v1  ;;  %v1140_v5 = vld [vmem:[%s1606_s0 + $0x20] sm:$0xff]   ;;  %v1142_v7 = vld [vmem:[%s1606_s0 + $0x30] sm:$0xff]   ;;  %v1153_v9 = vld [vmem:[%s1606_s0 + $0x88] sm:$0xff]  }
   0x4   :  { %1134 = vmatpush3.bf16.msra.mxu1 %v1135_v0  ;;  %v1152_v8 = vld [vmem:[%s1606_s0 + $0x80] sm:$0xff]   ;;  %v1154_v10 = vld [vmem:[%s1606_s0 + $0x90] sm:$0xff]   ;;  %v1155_v11 = vld [vmem:[%s1606_s0 + $0x98] sm:$0xff]  }
   0x5   :  { %1101 = vmatprep.mubr.msk.bf16.mxu1 %vm244_vm0, %v1152_v8  ;;  %v1156_v12 = vld [vmem:[%s1606_s0 + $0xa0] sm:$0xff]   ;;  %v1143_v13 = vld [vmem:[%s1606_s0 + $0x38] sm:$0xff]   ;;  %v1157_v15 = vld [vmem:[%s1606_s0 + $0xa8] sm:$0xff]  }
   0x6   :  { %1070 = vmatmul.mubr.msk.bf16.vlgmr.msra.gmra.mrb[0].mxu0 %vm244_vm0, %v1137_v2  ;;  %v1144_v14 = vld [vmem:[%s1606_s0 + $0x40] sm:$0xff]   ;;  %v1158_v16 = vld [vmem:[%s1606_s0 + $0xb0] sm:$0xff]   ;;  %v1145_v17 = vld [vmem:[%s1606_s0 + $0x48] sm:$0xff]  }
   0x7   :  { %1073 = vmatprep.mubr.msk.bf16.mxu0 %vm244_vm0, %v1138_v3  ;;  %1102 = vmatmul.mubr.msk.bf16.vlgmr.msra.gmra.mrb[0].mxu1 %vm244_vm0, %v1153_v9  ;;  %v1146_v18 = vld [vmem:[%s1606_s0 + $0x50] sm:$0xff]   ;;  %v1159_v19 = vld [vmem:[%s1606_s0 + $0xb8] sm:$0xff]   ;;  %v1160_v20 = vld [vmem:[%s1606_s0 + $0xc0] sm:$0xff]  }
   0x8   :  { %1105 = vmatprep.mubr.msk.bf16.mxu1 %vm244_vm0, %v1154_v10  ;;  %v1147_v21 = vld [vmem:[%s1606_s0 + $0x58] sm:$0xff]   ;;  %v1148_v22 = vld [vmem:[%s1606_s0 + $0x60] sm:$0xff]   ;;  %v1161_v23 = vld [vmem:[%s1606_s0 + $0xc8] sm:$0xff]  }
   0x9   :  { %v1162_v24 = vld [vmem:[%s1606_s0 + $0xd0] sm:$0xff]   ;;  %v1149_v25 = vld [vmem:[%s1606_s0 + $0x68] sm:$0xff]   ;;  %v1163_v27 = vld [vmem:[%s1606_s0 + $0xd8] sm:$0xff]  }
   0xa   :  { %v1150_v26 = vld [vmem:[%s1606_s0 + $0x70] sm:$0xff]   ;;  %v1164_v28 = vld [vmem:[%s1606_s0 + $0xe0] sm:$0xff]   ;;  %v1151_v29 = vld [vmem:[%s1606_s0 + $0x78] sm:$0xff]  }
   0xb   :  { %v1165_v30 = vld [vmem:[%s1606_s0 + $0xe8] sm:$0xff]   ;;  %v1166_v31 = vld [vmem:[%s1606_s0 + $0xf0] sm:$0xff]   ;;  %v1167_v32 = vld [vmem:[%s1606_s0 + $0xf8] sm:$0xff]  }
   0xe   :  { %1074 = vmatmul.mubr.msk.bf16.gmra.mrb[4].mxu0 %vm244_vm0, %v1139_v4 }
   0xf   :  { %1077 = vmatprep.mubr.msk.bf16.mxu0 %vm244_vm0, %v1140_v5  ;;  %1106 = vmatmul.mubr.msk.bf16.gmra.mrb[4].mxu1 %vm244_vm0, %v1155_v11 }
  0x10   :  { %1109 = vmatprep.mubr.msk.bf16.mxu1 %vm244_vm0, %v1156_v12 }
  0x16   :  { %1078 = vmatmul.mubr.msk.bf16.gmra.mrb[8].mxu0 %vm244_vm0, %v1141_v6 }
  0x17   :  { %1081 = vmatprep.mubr.msk.bf16.mxu0 %vm244_vm0, %v1142_v7  ;;  %1110 = vmatmul.mubr.msk.bf16.gmra.mrb[8].mxu1 %vm244_vm0, %v1157_v15 }
  0x18   :  { %1113 = vmatprep.mubr.msk.bf16.mxu1 %vm244_vm0, %v1158_v16 }
  0x1e   :  { %1082 = vmatmul.mubr.msk.bf16.gmra.mrb[12].mxu0 %vm244_vm0, %v1143_v13 }
  0x1f   :  { %1085 = vmatprep.mubr.msk.bf16.mxu0 %vm244_vm0, %v1144_v14  ;;  %1114 = vmatmul.mubr.msk.bf16.gmra.mrb[12].mxu1 %vm244_vm0, %v1159_v19 }
  0x20   :  { %1117 = vmatprep.mubr.msk.bf16.mxu1 %vm244_vm0, %v1160_v20 }
  0x26   :  { %1086 = vmatmul.mubr.msk.bf16.gmra.mrb[16].mxu0 %vm244_vm0, %v1145_v17 }
  0x27   :  { %1089 = vmatprep.mubr.msk.bf16.mxu0 %vm244_vm0, %v1146_v18  ;;  %1118 = vmatmul.mubr.msk.bf16.gmra.mrb[16].mxu1 %vm244_vm0, %v1161_v23 }
  0x28   :  { %1121 = vmatprep.mubr.msk.bf16.mxu1 %vm244_vm0, %v1162_v24 }
  0x2e   :  { %1090 = vmatmul.mubr.msk.bf16.gmra.mrb[20].mxu0 %vm244_vm0, %v1147_v21 }
  0x2f   :  { %1093 = vmatprep.mubr.msk.bf16.mxu0 %vm244_vm0, %v1148_v22  ;;  %1122 = vmatmul.mubr.msk.bf16.gmra.mrb[20].mxu1 %vm244_vm0, %v1163_v27 }
  0x30   :  { %1125 = vmatprep.mubr.msk.bf16.mxu1 %vm244_vm0, %v1164_v28 }
  0x36   :  { %1094 = vmatmul.mubr.msk.bf16.gmra.mrb[24].mxu0 %vm244_vm0, %v1149_v25 }
  0x37   :  { %1097 = vmatprep.mubr.msk.bf16.mxu0 %vm244_vm0, %v1150_v26  ;;  %1126 = vmatmul.mubr.msk.bf16.gmra.mrb[24].mxu1 %vm244_vm0, %v1165_v30 }
  0x38   :  { %1129 = vmatprep.mubr.msk.bf16.mxu1 %vm244_vm0, %v1166_v31 }
  0x3e   :  { %1098 = vmatmul.mubr.msk.bf16.gmra.mrb[28].mxu0 %vm244_vm0, %v1151_v29 }
  0x3f   :  { %1130 = vmatmul.mubr.msk.bf16.gmra.mrb[28].mxu1 %vm244_vm0, %v1167_v32 }
  0xd9   :  { %v1071_v33 = vpop.f32.mrb[0].mxu0 }
  0xda   :  { %v375_v34 = vpop.f32.mrb[1].mxu0  ;;  %v766_v38 = vmul.f32 %v1071_v33, %v1071_v33  ;;  %v634_v43 = vsel %vm630_vm1, %v1071_v33, 0.0  ;;  %v1327_v7 = vpop.f32.mrb[0].mxu1 }
  0xdb   :  { %v764_v35 = vmul.f32 %v375_v34, %v375_v34  ;;  %v1072_v36 = vpop.f32.mrb[2].mxu0  ;;  %v631_v39 = vsel %vm630_vm1, %v375_v34, 0.0  ;;  %v1329_v10 = vpop.f32.mrb[1].mxu1 }
  0xdc   :  { %v378_v37 = vpop.f32.mrb[3].mxu0  ;;  %v767_v45 = vmul.f32 %v1072_v36, %v1072_v36  ;;  %v831_v49 = vsel %vm630_vm1, %v766_v38, 0.0  ;;  %v636_v50 = vsel %vm630_vm1, %v1072_v36, 0.0  ;;  %v1333_v14 = vpop.f32.mrb[2].mxu1 }
  0xdd   :  { %v632_v40 = vsel %vm630_vm1, %v378_v37, 0.0  ;;  %v765_v41 = vmul.f32 %v378_v37, %v378_v37  ;;  %v828_v44 = vsel %vm630_vm1, %v764_v35, 0.0  ;;  %v1335_v18 = vpop.f32.mrb[3].mxu1 }
  0xde   :  { %v633_v42 = vadd.f32 %v632_v40, %v631_v39  ;;  %v833_v55 = vsel %vm630_vm1, %v767_v45, 0.0 }
  0xdf   :  { %v829_v46 = vsel %vm630_vm1, %v765_v41, 0.0 }
  0xe0   :  { %v635_v47 = vadd.f32 %v634_v43, %v633_v42  ;;  %v830_v48 = vadd.f32 %v829_v46, %v828_v44 }
  0xe1   :  { %v1075_v51 = vpop.f32.mrb[4].mxu0 }
  0xe2   :  { %v832_v52 = vadd.f32 %v831_v49, %v830_v48  ;;  %v391_v53 = vpop.f32.mrb[5].mxu0  ;;  %v637_v54 = vadd.f32 %v636_v50, %v635_v47  ;;  %v770_v62 = vmul.f32 %v1075_v51, %v1075_v51  ;;  %v642_v4 = vsel %vm630_vm1, %v1075_v51, 0.0  ;;  %v1343_v35 = vpop.f32.mrb[4].mxu1 }
  0xe3   :  { %v638_v56 = vsel %vm630_vm1, %v391_v53, 0.0  ;;  %v768_v57 = vmul.f32 %v391_v53, %v391_v53  ;;  %v1076_v58 = vpop.f32.mrb[6].mxu0  ;;  %v1345_v38 = vpop.f32.mrb[5].mxu1 }
  0xe4   :  { %v639_v59 = vadd.f32 %v638_v56, %v637_v54  ;;  %v834_v60 = vadd.f32 %v833_v55, %v832_v52  ;;  %v394_v61 = vpop.f32.mrb[7].mxu0  ;;  %v771_v5 = vmul.f32 %v1076_v58, %v1076_v58  ;;  %v839_v11 = vsel %vm630_vm1, %v770_v62, 0.0  ;;  %v1349_v42 = vpop.f32.mrb[6].mxu1 }
  0xe5   :  { %v835_v63 = vsel %vm630_vm1, %v768_v57, 0.0  ;;  %v640_v0 = vsel %vm630_vm1, %v394_v61, 0.0  ;;  %v769_v1 = vmul.f32 %v394_v61, %v394_v61  ;;  %v644_v12 = vsel %vm630_vm1, %v1076_v58, 0.0  ;;  %v1351_v46 = vpop.f32.mrb[7].mxu1 }
  0xe6   :  { %v836_v2 = vadd.f32 %v835_v63, %v834_v60  ;;  %v641_v3 = vadd.f32 %v640_v0, %v639_v59  ;;  %v841_v19 = vsel %vm630_vm1, %v771_v5, 0.0 }
  0xe7   :  { %v837_v6 = vsel %vm630_vm1, %v769_v1, 0.0 }
  0xe8   :  { %v643_v8 = vadd.f32 %v642_v4, %v641_v3  ;;  %v838_v9 = vadd.f32 %v837_v6, %v836_v2 }
  0xe9   :  { %v1079_v13 = vpop.f32.mrb[8].mxu0 }
  0xea   :  { %v840_v15 = vadd.f32 %v839_v11, %v838_v9  ;;  %v407_v16 = vpop.f32.mrb[9].mxu0  ;;  %v645_v17 = vadd.f32 %v644_v12, %v643_v8  ;;  %v774_v26 = vmul.f32 %v1079_v13, %v1079_v13  ;;  %v650_v32 = vsel %vm630_vm1, %v1079_v13, 0.0  ;;  %v1359_v63 = vpop.f32.mrb[8].mxu1 }
  0xeb   :  { %v646_v20 = vsel %vm630_vm1, %v407_v16, 0.0  ;;  %v772_v21 = vmul.f32 %v407_v16, %v407_v16  ;;  %v1080_v22 = vpop.f32.mrb[10].mxu0  ;;  %v1361_v2 = vpop.f32.mrb[9].mxu1 }
  0xec   :  { %v647_v23 = vadd.f32 %v646_v20, %v645_v17  ;;  %v842_v24 = vadd.f32 %v841_v19, %v840_v15  ;;  %v410_v25 = vpop.f32.mrb[11].mxu0  ;;  %v775_v33 = vmul.f32 %v1080_v22, %v1080_v22  ;;  %v847_v39 = vsel %vm630_vm1, %v774_v26, 0.0  ;;  %v1365_v6 = vpop.f32.mrb[10].mxu1 }
  0xed   :  { %v843_v27 = vsel %vm630_vm1, %v772_v21, 0.0  ;;  %v648_v28 = vsel %vm630_vm1, %v410_v25, 0.0  ;;  %v773_v29 = vmul.f32 %v410_v25, %v410_v25  ;;  %v652_v40 = vsel %vm630_vm1, %v1080_v22, 0.0  ;;  %v1367_v12 = vpop.f32.mrb[11].mxu1 }
  0xee   :  { %v844_v30 = vadd.f32 %v843_v27, %v842_v24  ;;  %v649_v31 = vadd.f32 %v648_v28, %v647_v23  ;;  %v849_v47 = vsel %vm630_vm1, %v775_v33, 0.0 }
  0xef   :  { %v845_v34 = vsel %vm630_vm1, %v773_v29, 0.0 }
  0xf0   :  { %v651_v36 = vadd.f32 %v650_v32, %v649_v31  ;;  %v846_v37 = vadd.f32 %v845_v34, %v844_v30 }
  0xf1   :  { %v1083_v41 = vpop.f32.mrb[12].mxu0 }
  0xf2   :  { %v848_v43 = vadd.f32 %v847_v39, %v846_v37  ;;  %v423_v44 = vpop.f32.mrb[13].mxu0  ;;  %v653_v45 = vadd.f32 %v652_v40, %v651_v36  ;;  %v778_v54 = vmul.f32 %v1083_v41, %v1083_v41  ;;  %v658_v60 = vsel %vm630_vm1, %v1083_v41, 0.0  ;;  %v1375_v31 = vpop.f32.mrb[12].mxu1 }
  0xf3   :  { %v654_v48 = vsel %vm630_vm1, %v423_v44, 0.0  ;;  %v776_v49 = vmul.f32 %v423_v44, %v423_v44  ;;  %v1084_v50 = vpop.f32.mrb[14].mxu0  ;;  %v1377_v34 = vpop.f32.mrb[13].mxu1 }
  0xf4   :  { %v655_v51 = vadd.f32 %v654_v48, %v653_v45  ;;  %v850_v52 = vadd.f32 %v849_v47, %v848_v43  ;;  %v426_v53 = vpop.f32.mrb[15].mxu0  ;;  %v779_v61 = vmul.f32 %v1084_v50, %v1084_v50  ;;  %v855_v3 = vsel %vm630_vm1, %v778_v54, 0.0  ;;  %v1381_v40 = vpop.f32.mrb[14].mxu1 }
  0xf5   :  { %v851_v55 = vsel %vm630_vm1, %v776_v49, 0.0  ;;  %v656_v56 = vsel %vm630_vm1, %v426_v53, 0.0  ;;  %v777_v57 = vmul.f32 %v426_v53, %v426_v53  ;;  %v660_v4 = vsel %vm630_vm1, %v1084_v50, 0.0  ;;  %v1383_v45 = vpop.f32.mrb[15].mxu1 }
  0xf6   :  { %v852_v58 = vadd.f32 %v851_v55, %v850_v52  ;;  %v657_v59 = vadd.f32 %v656_v56, %v655_v51  ;;  %v857_v13 = vsel %vm630_vm1, %v779_v61, 0.0 }
  0xf7   :  { %v853_v62 = vsel %vm630_vm1, %v777_v57, 0.0 }
  0xf8   :  { %v659_v0 = vadd.f32 %v658_v60, %v657_v59  ;;  %v854_v1 = vadd.f32 %v853_v62, %v852_v58 }
  0xf9   :  { %v1087_v5 = vpop.f32.mrb[16].mxu0 }
  0xfa   :  { %v856_v8 = vadd.f32 %v855_v3, %v854_v1  ;;  %v439_v9 = vpop.f32.mrb[17].mxu0  ;;  %v661_v11 = vadd.f32 %v660_v4, %v659_v0  ;;  %v782_v22 = vmul.f32 %v1087_v5, %v1087_v5  ;;  %v666_v28 = vsel %vm630_vm1, %v1087_v5, 0.0  ;;  %v1391_v0 = vpop.f32.mrb[16].mxu1 }
  0xfb   :  { %v662_v15 = vsel %vm630_vm1, %v439_v9, 0.0  ;;  %v780_v16 = vmul.f32 %v439_v9, %v439_v9  ;;  %v1088_v17 = vpop.f32.mrb[18].mxu0  ;;  %v1393_v4 = vpop.f32.mrb[17].mxu1 }
  0xfc   :  { %v663_v19 = vadd.f32 %v662_v15, %v661_v11  ;;  %v858_v20 = vadd.f32 %v857_v13, %v856_v8  ;;  %v442_v21 = vpop.f32.mrb[19].mxu0  ;;  %v783_v29 = vmul.f32 %v1088_v17, %v1088_v17  ;;  %v863_v36 = vsel %vm630_vm1, %v782_v22, 0.0  ;;  %v1397_v11 = vpop.f32.mrb[18].mxu1 }
  0xfd   :  { %v859_v23 = vsel %vm630_vm1, %v780_v16, 0.0  ;;  %v664_v24 = vsel %vm630_vm1, %v442_v21, 0.0  ;;  %v781_v25 = vmul.f32 %v442_v21, %v442_v21  ;;  %v668_v37 = vsel %vm630_vm1, %v1088_v17, 0.0  ;;  %v1399_v17 = vpop.f32.mrb[19].mxu1 }
  0xfe   :  { %v860_v26 = vadd.f32 %v859_v23, %v858_v20  ;;  %v665_v27 = vadd.f32 %v664_v24, %v663_v19  ;;  %v865_v47 = vsel %vm630_vm1, %v783_v29, 0.0 }
  0xff   :  { %v861_v30 = vsel %vm630_vm1, %v781_v25, 0.0 }
 0x100   :  { %v667_v32 = vadd.f32 %v666_v28, %v665_v27  ;;  %v862_v33 = vadd.f32 %v861_v30, %v860_v26 }
 0x101   :  { %v1091_v39 = vpop.f32.mrb[20].mxu0 }
 0x102   :  { %v864_v41 = vadd.f32 %v863_v36, %v862_v33  ;;  %v455_v43 = vpop.f32.mrb[21].mxu0  ;;  %v669_v44 = vadd.f32 %v668_v37, %v667_v32  ;;  %v786_v54 = vmul.f32 %v1091_v39, %v1091_v39  ;;  %v674_v60 = vsel %vm630_vm1, %v1091_v39, 0.0  ;;  %v1407_v39 = vpop.f32.mrb[20].mxu1 }
 0x103   :  { %v670_v48 = vsel %vm630_vm1, %v455_v43, 0.0  ;;  %v784_v49 = vmul.f32 %v455_v43, %v455_v43  ;;  %v1092_v50 = vpop.f32.mrb[22].mxu0 }
 0x104   :  { %v671_v51 = vadd.f32 %v670_v48, %v669_v44  ;;  %v866_v52 = vadd.f32 %v865_v47, %v864_v41  ;;  %v458_v53 = vpop.f32.mrb[23].mxu0  ;;  %v787_v61 = vmul.f32 %v1092_v50, %v1092_v50  ;;  %v871_v5 = vsel %vm630_vm1, %v786_v54, 0.0  ;;  %v1409_v44 = vpop.f32.mrb[21].mxu1 }
 0x105   :  { %v867_v55 = vsel %vm630_vm1, %v784_v49, 0.0  ;;  %v672_v56 = vsel %vm630_vm1, %v458_v53, 0.0  ;;  %v785_v57 = vmul.f32 %v458_v53, %v458_v53  ;;  %v676_v8 = vsel %vm630_vm1, %v1092_v50, 0.0  ;;  %v1413_v50 = vpop.f32.mrb[22].mxu1 }
 0x106   :  { %v868_v58 = vadd.f32 %v867_v55, %v866_v52  ;;  %v673_v59 = vadd.f32 %v672_v56, %v671_v51  ;;  %v873_v19 = vsel %vm630_vm1, %v787_v61, 0.0  ;;  %v1415_v54 = vpop.f32.mrb[23].mxu1 }
 0x107   :  { %v869_v62 = vsel %vm630_vm1, %v785_v57, 0.0 }
 0x108   :  { %v675_v1 = vadd.f32 %v674_v60, %v673_v59  ;;  %v870_v3 = vadd.f32 %v869_v62, %v868_v58 }
 0x109   :  { %v1095_v9 = vpop.f32.mrb[24].mxu0 }
 0x10a   :  { %v872_v13 = vadd.f32 %v871_v5, %v870_v3  ;;  %v471_v15 = vpop.f32.mrb[25].mxu0  ;;  %v677_v16 = vadd.f32 %v676_v8, %v675_v1  ;;  %v790_v26 = vmul.f32 %v1095_v9, %v1095_v9  ;;  %v682_v33 = vsel %vm630_vm1, %v1095_v9, 0.0 }
 0x10b   :  { %v678_v20 = vsel %vm630_vm1, %v471_v15, 0.0  ;;  %v788_v21 = vmul.f32 %v471_v15, %v471_v15  ;;  %v1096_v22 = vpop.f32.mrb[26].mxu0 }
 0x10c   :  { %v679_v23 = vadd.f32 %v678_v20, %v677_v16  ;;  %v874_v24 = vadd.f32 %v873_v19, %v872_v13  ;;  %v474_v25 = vpop.f32.mrb[27].mxu0  ;;  %v791_v36 = vmul.f32 %v1096_v22, %v1096_v22  ;;  %v879_v47 = vsel %vm630_vm1, %v790_v26, 0.0  ;;  %v1425_v20 = vpop.f32.mrb[24].mxu1 }
 0x10d   :  { %v875_v27 = vsel %vm630_vm1, %v788_v21, 0.0  ;;  %v680_v28 = vsel %vm630_vm1, %v474_v25, 0.0  ;;  %v789_v29 = vmul.f32 %v474_v25, %v474_v25  ;;  %v684_v48 = vsel %vm630_vm1, %v1096_v22, 0.0 }
 0x10e   :  { %v876_v30 = vadd.f32 %v875_v27, %v874_v24  ;;  %v681_v32 = vadd.f32 %v680_v28, %v679_v23  ;;  %v881_v55 = vsel %vm630_vm1, %v791_v36, 0.0  ;;  %v796_v19 = vmul.f32 %v1329_v10, %v1329_v10  ;;  %v1427_v23 = vpop.f32.mrb[25].mxu1 }
 0x10f   :  { %v877_v37 = vsel %vm630_vm1, %v789_v29, 0.0  ;;  %v694_v26 = vsel %vm630_vm1, %v1329_v10, 0.0  ;;  %v1433_v27 = vpop.f32.mrb[26].mxu1  ;;  %v797_v36 = vmul.f32 %v1335_v18, %v1335_v18  ;;  %v696_v10 = vsel %vm630_vm1, %v1335_v18, 0.0 }
 0x110   :  { %v683_v41 = vadd.f32 %v682_v33, %v681_v32  ;;  %v878_v43 = vadd.f32 %v877_v37, %v876_v30  ;;  %v1435_v30 = vpop.f32.mrb[27].mxu1  ;;  %v891_v33 = vsel %vm630_vm1, %v796_v19, 0.0  ;;  %v706_v19 = vsel %vm630_vm1, %v1343_v35, 0.0 }
 0x111   :  { %v1099_v49 = vpop.f32.mrb[28].mxu0 }
 0x112   :  { %v880_v51 = vadd.f32 %v879_v47, %v878_v43  ;;  %v487_v52 = vpop.f32.mrb[29].mxu0  ;;  %v685_v53 = vadd.f32 %v684_v48, %v683_v41  ;;  %v794_v62 = vmul.f32 %v1099_v49, %v1099_v49  ;;  %v690_v13 = vsel %vm630_vm1, %v1099_v49, 0.0 }
 0x113   :  { %v686_v56 = vsel %vm630_vm1, %v487_v52, 0.0  ;;  %v792_v57 = vmul.f32 %v487_v52, %v487_v52  ;;  %v1100_v58 = vpop.f32.mrb[30].mxu0  ;;  %v798_v43 = vmul.f32 %v1327_v7, %v1327_v7  ;;  %v698_v49 = vsel %vm630_vm1, %v1327_v7, 0.0 }
 0x114   :  { %v687_v59 = vadd.f32 %v686_v56, %v685_v53  ;;  %v882_v60 = vadd.f32 %v881_v55, %v880_v51  ;;  %v490_v61 = vpop.f32.mrb[31].mxu0  ;;  %v795_v15 = vmul.f32 %v1100_v58, %v1100_v58  ;;  %v887_v24 = vsel %vm630_vm1, %v794_v62, 0.0  ;;  %v1452_v55 = vpop.f32.mrb[28].mxu1 }
 0x115   :  { %v883_v1 = vsel %vm630_vm1, %v792_v57, 0.0  ;;  %v688_v3 = vsel %vm630_vm1, %v490_v61, 0.0  ;;  %v793_v5 = vmul.f32 %v490_v61, %v490_v61  ;;  %v692_v25 = vsel %vm630_vm1, %v1100_v58, 0.0  ;;  %v1454_v58 = vpop.f32.mrb[29].mxu1 }
 0x116   :  { %v884_v8 = vadd.f32 %v883_v1, %v882_v60  ;;  %v689_v9 = vadd.f32 %v688_v3, %v687_v59  ;;  %v889_v32 = vsel %vm630_vm1, %v795_v15, 0.0  ;;  %v799_v51 = vmul.f32 %v1333_v14, %v1333_v14  ;;  %v1461_v60 = vpop.f32.mrb[30].mxu1 }
 0x117   :  { %v885_v16 = vsel %vm630_vm1, %v793_v5, 0.0  ;;  %v893_v52 = vsel %vm630_vm1, %v797_v36, 0.0  ;;  %v800_v53 = vmul.f32 %v1345_v38, %v1345_v38  ;;  %v895_v18 = vsel %vm630_vm1, %v798_v43, 0.0  ;;  %v1463_v1 = vpop.f32.mrb[31].mxu1 }
 0x118   :  { %v691_v21 = vadd.f32 %v690_v13, %v689_v9  ;;  %v886_v22 = vadd.f32 %v885_v16, %v884_v8  ;;  %v700_v59 = vsel %vm630_vm1, %v1333_v14, 0.0  ;;  %v702_v7 = vsel %vm630_vm1, %v1345_v38, 0.0 }
 0x119   :  { %v897_v3 = vsel %vm630_vm1, %v799_v51, 0.0  ;;  %v899_v5 = vsel %vm630_vm1, %v800_v53, 0.0  ;;  %v801_v8 = vmul.f32 %v1351_v46, %v1351_v46  ;;  %v802_v14 = vmul.f32 %v1343_v35, %v1343_v35 }
 0x11a   :  { %v888_v28 = vadd.f32 %v887_v24, %v886_v22  ;;  %v693_v29 = vadd.f32 %v692_v25, %v691_v21  ;;  %v704_v38 = vsel %vm630_vm1, %v1351_v46, 0.0  ;;  %v803_v21 = vmul.f32 %v1349_v42, %v1349_v42 }
 0x11b   :  { %v901_v22 = vsel %vm630_vm1, %v801_v8, 0.0  ;;  %v804_v24 = vmul.f32 %v1361_v2, %v1361_v2  ;;  %v708_v46 = vsel %vm630_vm1, %v1349_v42, 0.0  ;;  %v712_v42 = vsel %vm630_vm1, %v1367_v12, 0.0 }
 0x11c   :  { %v695_v37 = vadd.f32 %v694_v26, %v693_v29  ;;  %v890_v41 = vadd.f32 %v889_v32, %v888_v28  ;;  %v903_v28 = vsel %vm630_vm1, %v802_v14, 0.0  ;;  %v710_v29 = vsel %vm630_vm1, %v1361_v2, 0.0 }
 0x11d   :  { %v907_v36 = vsel %vm630_vm1, %v804_v24, 0.0  ;;  %v714_v2 = vsel %vm630_vm1, %v1359_v63, 0.0  ;;  %v810_v8 = vmul.f32 %v1375_v31, %v1375_v31  ;;  %v811_v14 = vmul.f32 %v1381_v40, %v1381_v40 }
 0x11e   :  { %v892_v47 = vadd.f32 %v891_v33, %v890_v41  ;;  %v697_v48 = vadd.f32 %v696_v10, %v695_v37  ;;  %v905_v33 = vsel %vm630_vm1, %v803_v21, 0.0  ;;  %v805_v37 = vmul.f32 %v1367_v12, %v1367_v12 }
 0x11f   :  { %v806_v10 = vmul.f32 %v1359_v63, %v1359_v63  ;;  %v716_v12 = vsel %vm630_vm1, %v1365_v6, 0.0  ;;  %v919_v21 = vsel %vm630_vm1, %v810_v8, 0.0 }
 0x120   :  { %v699_v56 = vadd.f32 %v698_v49, %v697_v48  ;;  %v894_v57 = vadd.f32 %v893_v52, %v892_v47  ;;  %v807_v49 = vmul.f32 %v1365_v6, %v1365_v6  ;;  %v909_v51 = vsel %vm630_vm1, %v805_v37, 0.0 }
 0x121   :  { %v808_v52 = vmul.f32 %v1377_v34, %v1377_v34  ;;  %v720_v6 = vsel %vm630_vm1, %v1383_v45, 0.0 }
 0x122   :  { %v896_v61 = vadd.f32 %v895_v18, %v894_v57  ;;  %v701_v62 = vadd.f32 %v700_v59, %v699_v56  ;;  %v911_v57 = vsel %vm630_vm1, %v806_v10, 0.0  ;;  %v718_v18 = vsel %vm630_vm1, %v1377_v34, 0.0 }
 0x123   :  { %v722_v34 = vsel %vm630_vm1, %v1375_v31, 0.0 }
 0x124   :  { %v703_v9 = vadd.f32 %v702_v7, %v701_v62  ;;  %v898_v13 = vadd.f32 %v897_v3, %v896_v61  ;;  %v913_v7 = vsel %vm630_vm1, %v807_v49, 0.0  ;;  %v915_v61 = vsel %vm630_vm1, %v808_v52, 0.0 }
 0x125   :  { %v809_v62 = vmul.f32 %v1383_v45, %v1383_v45  ;;  %v724_v45 = vsel %vm630_vm1, %v1381_v40, 0.0  ;;  %v728_v40 = vsel %vm630_vm1, %v1399_v17, 0.0 }
 0x126   :  { %v900_v15 = vadd.f32 %v899_v5, %v898_v13  ;;  %v705_v16 = vadd.f32 %v704_v38, %v703_v9 }
 0x127   :  { %v917_v38 = vsel %vm630_vm1, %v809_v62, 0.0 }
 0x128   :  { %v707_v25 = vadd.f32 %v706_v19, %v705_v16  ;;  %v902_v26 = vadd.f32 %v901_v22, %v900_v15  ;;  %v812_v15 = vmul.f32 %v1393_v4, %v1393_v4  ;;  %v726_v22 = vsel %vm630_vm1, %v1393_v4, 0.0 }
 0x129   :  { %v730_v4 = vsel %vm630_vm1, %v1391_v0, 0.0 }
 0x12a   :  { %v904_v32 = vadd.f32 %v903_v28, %v902_v26  ;;  %v709_v35 = vadd.f32 %v708_v46, %v707_v25  ;;  %v921_v25 = vsel %vm630_vm1, %v811_v14, 0.0  ;;  %v923_v26 = vsel %vm630_vm1, %v812_v15, 0.0 }
 0x12b   :  { %v813_v28 = vmul.f32 %v1399_v17, %v1399_v17  ;;  %v732_v17 = vsel %vm630_vm1, %v1397_v11, 0.0  ;;  %v822_v14 = vmul.f32 %v1425_v20, %v1425_v20 }
 0x12c   :  { %v711_v41 = vadd.f32 %v710_v29, %v709_v35  ;;  %v906_v43 = vadd.f32 %v905_v33, %v904_v32  ;;  %v814_v32 = vmul.f32 %v1391_v0, %v1391_v0 }
 0x12d   :  { %v925_v37 = vsel %vm630_vm1, %v813_v28, 0.0 }
 0x12e   :  { %v908_v47 = vadd.f32 %v907_v36, %v906_v43  ;;  %v713_v48 = vadd.f32 %v712_v42, %v711_v41  ;;  %v815_v36 = vmul.f32 %v1397_v11, %v1397_v11  ;;  %v816_v41 = vmul.f32 %v1409_v44, %v1409_v44 }
 0x12f   :  { %v927_v42 = vsel %vm630_vm1, %v814_v32, 0.0  ;;  %v736_v11 = vsel %vm630_vm1, %v1415_v54, 0.0 }
 0x130   :  { %v715_v53 = vadd.f32 %v714_v2, %v713_v48  ;;  %v910_v56 = vadd.f32 %v909_v51, %v908_v47  ;;  %v734_v47 = vsel %vm630_vm1, %v1409_v44, 0.0  ;;  %v929_v2 = vsel %vm630_vm1, %v815_v36, 0.0 }
 0x131   :  { %v931_v49 = vsel %vm630_vm1, %v816_v41, 0.0  ;;  %v817_v51 = vmul.f32 %v1415_v54, %v1415_v54  ;;  %v738_v44 = vsel %vm630_vm1, %v1407_v39, 0.0  ;;  %v740_v54 = vsel %vm630_vm1, %v1413_v50, 0.0 }
 0x132   :  { %v912_v59 = vadd.f32 %v911_v57, %v910_v56  ;;  %v717_v63 = vadd.f32 %v716_v12, %v715_v53  ;;  %v818_v56 = vmul.f32 %v1407_v39, %v1407_v39 }
 0x134   :  { %v719_v3 = vadd.f32 %v718_v18, %v717_v63  ;;  %v914_v5 = vadd.f32 %v913_v7, %v912_v59  ;;  %v819_v18 = vmul.f32 %v1413_v50, %v1413_v50  ;;  %v933_v59 = vsel %vm630_vm1, %v817_v51, 0.0 }
 0x135   :  { %v820_v63 = vmul.f32 %v1427_v23, %v1427_v23  ;;  %v935_v62 = vsel %vm630_vm1, %v818_v56, 0.0  ;;  %v744_v50 = vsel %vm630_vm1, %v1435_v30, 0.0 }
 0x136   :  { %v916_v9 = vadd.f32 %v915_v61, %v914_v5  ;;  %v721_v13 = vadd.f32 %v720_v6, %v719_v3  ;;  %v742_v3 = vsel %vm630_vm1, %v1427_v23, 0.0  ;;  %v937_v8 = vsel %vm630_vm1, %v819_v18, 0.0 }
 0x137   :  { %v939_v6 = vsel %vm630_vm1, %v820_v63, 0.0  ;;  %v746_v23 = vsel %vm630_vm1, %v1425_v20, 0.0 }
 0x138   :  { %v723_v16 = vadd.f32 %v722_v34, %v721_v13  ;;  %v918_v19 = vadd.f32 %v917_v38, %v916_v9  ;;  %v821_v9 = vmul.f32 %v1435_v30, %v1435_v30  ;;  %v748_v30 = vsel %vm630_vm1, %v1433_v27, 0.0 }
 0x13a   :  { %v920_v24 = vadd.f32 %v919_v21, %v918_v19  ;;  %v725_v31 = vadd.f32 %v724_v45, %v723_v16  ;;  %v823_v16 = vmul.f32 %v1433_v27, %v1433_v27  ;;  %v941_v19 = vsel %vm630_vm1, %v821_v9, 0.0 }
 0x13b   :  { %v824_v21 = vmul.f32 %v1454_v58, %v1454_v58  ;;  %v752_v27 = vsel %vm630_vm1, %v1463_v1, 0.0 }
 0x13c   :  { %v727_v46 = vadd.f32 %v726_v22, %v725_v31  ;;  %v922_v29 = vadd.f32 %v921_v25, %v920_v24  ;;  %v943_v24 = vsel %vm630_vm1, %v822_v14, 0.0  ;;  %v750_v31 = vsel %vm630_vm1, %v1454_v58, 0.0 }
 0x13d   :  { %v947_v28 = vsel %vm630_vm1, %v824_v21, 0.0  ;;  %v754_v58 = vsel %vm630_vm1, %v1452_v55, 0.0 }
 0x13e   :  { %v924_v35 = vadd.f32 %v923_v26, %v922_v29  ;;  %v729_v33 = vadd.f32 %v728_v40, %v727_v46  ;;  %v945_v26 = vsel %vm630_vm1, %v823_v16, 0.0  ;;  %v825_v46 = vmul.f32 %v1463_v1, %v1463_v1 }
 0x13f   :  { %v826_v40 = vmul.f32 %v1452_v55, %v1452_v55 }
 0x140   :  { %v731_v43 = vadd.f32 %v730_v4, %v729_v33  ;;  %v926_v10 = vadd.f32 %v925_v37, %v924_v35  ;;  %v827_v4 = vmul.f32 %v1461_v60, %v1461_v60  ;;  %v949_v36 = vsel %vm630_vm1, %v825_v46, 0.0 }
 0x142   :  { %v928_v48 = vadd.f32 %v927_v42, %v926_v10  ;;  %v733_v0 = vadd.f32 %v732_v17, %v731_v43  ;;  %v951_v43 = vsel %vm630_vm1, %v826_v40, 0.0  ;;  %v756_v10 = vsel %vm630_vm1, %v1461_v60, 0.0 }
 0x143   :  { %v953_v1 = vsel %vm630_vm1, %v827_v4, 0.0 }
 0x144   :  { %v735_v52 = vadd.f32 %v734_v47, %v733_v0  ;;  %v930_v53 = vadd.f32 %v929_v2, %v928_v48 }
 0x146   :  { %v932_v57 = vadd.f32 %v931_v49, %v930_v53  ;;  %v737_v12 = vadd.f32 %v736_v11, %v735_v52 }
 0x148   :  { %v739_v7 = vadd.f32 %v738_v44, %v737_v12  ;;  %v934_v61 = vadd.f32 %v933_v59, %v932_v57 }
 0x14a   :  { %v936_v5 = vadd.f32 %v935_v62, %v934_v61  ;;  %v741_v39 = vadd.f32 %v740_v54, %v739_v7 }
 0x14c   :  { %v743_v13 = vadd.f32 %v742_v3, %v741_v39  ;;  %v938_v34 = vadd.f32 %v937_v8, %v936_v5 }
 0x14e   :  { %v940_v38 = vadd.f32 %v939_v6, %v938_v34  ;;  %v745_v15 = vadd.f32 %v744_v50, %v743_v13 }
 0x150   :  { %v747_v45 = vadd.f32 %v746_v23, %v745_v15  ;;  %v942_v22 = vadd.f32 %v941_v19, %v940_v38 }
 0x152   :  { %v944_v25 = vadd.f32 %v943_v24, %v942_v22  ;;  %v749_v20 = vadd.f32 %v748_v30, %v747_v45 }
 0x154   :  { %v751_v29 = vadd.f32 %v750_v31, %v749_v20  ;;  %v946_v32 = vadd.f32 %v945_v26, %v944_v25 }
 0x156   :  { %v948_v35 = vadd.f32 %v947_v28, %v946_v32  ;;  %v753_v33 = vadd.f32 %v752_v27, %v751_v29 }
 0x158   :  { %v755_v37 = vadd.f32 %v754_v58, %v753_v33  ;;  %v950_v41 = vadd.f32 %v949_v36, %v948_v35 }
 0x15a   :  { %v757_v42 = vadd.f32 %v756_v10, %v755_v37  ;;  %v952_v17 = vadd.f32 %v951_v43, %v950_v41 }
 0x15c   :  { %v758_v47 = vrot.slane %v757_v42, 4  ;;  %v954_v48 = vadd.f32 %v953_v1, %v952_v17 }
 0x15e   :  { %v759_v0 = vadd.f32 %v758_v47, %v757_v42  ;;  %v955_v55 = vrot.slane %v954_v48, 4 }
 0x160   :  { %v760_v2 = vrot.slane %v759_v0, 2  ;;  %v956_v49 = vadd.f32 %v955_v55, %v954_v48 }
 0x162   :  { %v761_v51 = vadd.f32 %v760_v2, %v759_v0  ;;  %v957_v52 = vrot.slane %v956_v49, 2 }
 0x164   :  { %v762_v53 = vrot.slane %v761_v51, 1  ;;  %v958_v56 = vadd.f32 %v957_v52, %v956_v49 }
 0x166   :  { %v959_v11 = vrot.slane %v958_v56, 1  ;;  %v763_v57 = vadd.f32 %v762_v53, %v761_v51 }
 0x168   :  { %v960_v12 = vadd.f32 %v959_v11, %v958_v56 }
 0x16a   :  { %v962_v60 = vsel %vm961_vm2, %v763_v57, %v960_v12 }
 0x16b   :  { %964 = vst.msk [vmem:[%s1607_s2] sm:$0x3] %vm963_vm3, %v962_v60 }

// kernel: _lambda_.6
= control target key start
LH: loop header
LB: loop body
LE: loop exit
PB: predicated region body
PF: predicated region fallthrough
CT: control target
= control target key end

     0   :  { %vm250_vm0 = vcmask 130048   ;;  %vm1482_vm1 = vcmask 27648   ;;  %s2971_s1 = inlined_call_operand.vmem [shape: bf16[16,8], index: 1, kind: input, shape index: {}]   ;;  %s2972_s0 = inlined_call_operand.vmem [shape: bf16[512,16], index: 0, kind: input, shape index: {}]   ;;  %s2973_s2 = inlined_call_operand.vmem [shape: f32[1,8], index: 2, kind: input, shape index: {}]   ;;  %s2974_s3 = inlined_call_operand.vmem [shape: f32[1,8], index: 3, kind: input, shape index: {}]   ;;  %s2975_s4 = inlined_call_operand.vmem [shape: bf16[512,4], index: 4, kind: output, shape index: {}]  }
   0x1   :  { %v1848_v0 = vld [vmem:[%s2971_s1] sm:$0xff]   ;;  %v1851_v3 = vld [vmem:[%s2972_s0 + $0x8] sm:$0xff]   ;;  %v1853_v5 = vld [vmem:[%s2972_s0 + $0x10] sm:$0xff]  }
   0x2   :  { %v1849_v1 = vld [vmem:[%s2972_s0] sm:$0xff]   ;;  %1779 = vmatprep.subr.bf16.mxu0 %v1848_v0  ;;  %1845 = vmatprep.subr.bf16.mxu1 %v1848_v0  ;;  %v1852_v4 = vld [vmem:[%s2972_s0 + $0x88] sm:$0xff]   ;;  %v1855_v6 = vld [vmem:[%s2972_s0 + $0x90] sm:$0xff]  }
   0x3   :  { %v1850_v2 = vld [vmem:[%s2972_s0 + $0x80] sm:$0xff]   ;;  %1780 = vmatpush3.bf16.msra.mxu0 %v1848_v0  ;;  %1846 = vmatpush3.bf16.msra.mxu1 %v1848_v0  ;;  %v1854_v7 = vld [vmem:[%s2972_s0 + $0x18] sm:$0xff]   ;;  %v1858_v11 = vld [vmem:[%s2972_s0 + $0x28] sm:$0xff]  }
   0x4   :  { %1781 = vmatprep.mubr.msk.bf16.mxu0 %vm250_vm0, %v1849_v1  ;;  %1813 = vmatprep.mubr.msk.bf16.mxu1 %vm250_vm0, %v1850_v2  ;;  %v1856_v8 = vld [vmem:[%s2972_s0 + $0x98] sm:$0xff]   ;;  %v1857_v9 = vld [vmem:[%s2972_s0 + $0x20] sm:$0xff]   ;;  %v1860_v12 = vld [vmem:[%s2972_s0 + $0xa8] sm:$0xff]  }
   0x5   :  { %v1859_v10 = vld [vmem:[%s2972_s0 + $0xa0] sm:$0xff]   ;;  %v1861_v13 = vld [vmem:[%s2972_s0 + $0x30] sm:$0xff]   ;;  %v1862_v15 = vld [vmem:[%s2972_s0 + $0x38] sm:$0xff]  }
   0x6   :  { %1782 = vmatmul.mubr.msk.bf16.vlgmr.msra.gmra.mrb[0].mxu0 %vm250_vm0, %v1851_v3  ;;  %1814 = vmatmul.mubr.msk.bf16.vlgmr.msra.gmra.mrb[0].mxu1 %vm250_vm0, %v1852_v4  ;;  %v1863_v14 = vld [vmem:[%s2972_s0 + $0xb0] sm:$0xff]   ;;  %v1864_v16 = vld [vmem:[%s2972_s0 + $0xb8] sm:$0xff]   ;;  %v1865_v17 = vld [vmem:[%s2972_s0 + $0x40] sm:$0xff]  }
   0x7   :  { %1785 = vmatprep.mubr.msk.bf16.mxu0 %vm250_vm0, %v1853_v5  ;;  %1817 = vmatprep.mubr.msk.bf16.mxu1 %vm250_vm0, %v1855_v6  ;;  %v1867_v18 = vld [vmem:[%s2972_s0 + $0xc0] sm:$0xff]   ;;  %v1866_v19 = vld [vmem:[%s2972_s0 + $0x48] sm:$0xff]   ;;  %v1869_v21 = vld [vmem:[%s2972_s0 + $0x50] sm:$0xff]  }
   0x8   :  { %v1868_v20 = vld [vmem:[%s2972_s0 + $0xc8] sm:$0xff]   ;;  %v1871_v22 = vld [vmem:[%s2972_s0 + $0xd0] sm:$0xff]   ;;  %v1870_v23 = vld [vmem:[%s2972_s0 + $0x58] sm:$0xff]  }
   0x9   :  { %v1872_v24 = vld [vmem:[%s2972_s0 + $0xd8] sm:$0xff]   ;;  %v1873_v25 = vld [vmem:[%s2972_s0 + $0x60] sm:$0xff]   ;;  %v1874_v27 = vld [vmem:[%s2972_s0 + $0x68] sm:$0xff]  }
   0xa   :  { %v1875_v26 = vld [vmem:[%s2972_s0 + $0xe0] sm:$0xff]   ;;  %v1876_v28 = vld [vmem:[%s2972_s0 + $0xe8] sm:$0xff]   ;;  %v1877_v29 = vld [vmem:[%s2972_s0 + $0x70] sm:$0xff]  }
   0xb   :  { %v1879_v30 = vld [vmem:[%s2972_s0 + $0xf0] sm:$0xff]   ;;  %v1878_v31 = vld [vmem:[%s2972_s0 + $0x78] sm:$0xff]   ;;  %v2041_v33 = vld [vmem:[%s2973_s2] ss:$0 sm:$0xff] }
   0xc   :  { %v1880_v32 = vld [vmem:[%s2972_s0 + $0xf8] sm:$0xff]   ;;  %v2046_v36 = vld [vmem:[%s2974_s3] ss:$0 sm:$0xff]  ;;  %s1881_s0 = smov 124  }
   0xe   :  { %1786 = vmatmul.mubr.msk.bf16.gmra.mrb[4].mxu0 %vm250_vm0, %v1854_v7  ;;  %1818 = vmatmul.mubr.msk.bf16.gmra.mrb[4].mxu1 %vm250_vm0, %v1856_v8 }
   0xf   :  { %1789 = vmatprep.mubr.msk.bf16.mxu0 %vm250_vm0, %v1857_v9  ;;  %1821 = vmatprep.mubr.msk.bf16.mxu1 %vm250_vm0, %v1859_v10 }
  0x16   :  { %1790 = vmatmul.mubr.msk.bf16.gmra.mrb[8].mxu0 %vm250_vm0, %v1858_v11  ;;  %1822 = vmatmul.mubr.msk.bf16.gmra.mrb[8].mxu1 %vm250_vm0, %v1860_v12 }
  0x17   :  { %1793 = vmatprep.mubr.msk.bf16.mxu0 %vm250_vm0, %v1861_v13  ;;  %1825 = vmatprep.mubr.msk.bf16.mxu1 %vm250_vm0, %v1863_v14 }
  0x1e   :  { %1794 = vmatmul.mubr.msk.bf16.gmra.mrb[12].mxu0 %vm250_vm0, %v1862_v15  ;;  %1826 = vmatmul.mubr.msk.bf16.gmra.mrb[12].mxu1 %vm250_vm0, %v1864_v16 }
  0x1f   :  { %1797 = vmatprep.mubr.msk.bf16.mxu0 %vm250_vm0, %v1865_v17  ;;  %1829 = vmatprep.mubr.msk.bf16.mxu1 %vm250_vm0, %v1867_v18 }
  0x26   :  { %1798 = vmatmul.mubr.msk.bf16.gmra.mrb[16].mxu0 %vm250_vm0, %v1866_v19  ;;  %1830 = vmatmul.mubr.msk.bf16.gmra.mrb[16].mxu1 %vm250_vm0, %v1868_v20 }
  0x27   :  { %1801 = vmatprep.mubr.msk.bf16.mxu0 %vm250_vm0, %v1869_v21  ;;  %1833 = vmatprep.mubr.msk.bf16.mxu1 %vm250_vm0, %v1871_v22 }
  0x2e   :  { %1802 = vmatmul.mubr.msk.bf16.gmra.mrb[20].mxu0 %vm250_vm0, %v1870_v23  ;;  %1834 = vmatmul.mubr.msk.bf16.gmra.mrb[20].mxu1 %vm250_vm0, %v1872_v24 }
  0x2f   :  { %1805 = vmatprep.mubr.msk.bf16.mxu0 %vm250_vm0, %v1873_v25  ;;  %1837 = vmatprep.mubr.msk.bf16.mxu1 %vm250_vm0, %v1875_v26 }
  0x36   :  { %1806 = vmatmul.mubr.msk.bf16.gmra.mrb[24].mxu0 %vm250_vm0, %v1874_v27  ;;  %1838 = vmatmul.mubr.msk.bf16.gmra.mrb[24].mxu1 %vm250_vm0, %v1876_v28 }
  0x37   :  { %1809 = vmatprep.mubr.msk.bf16.mxu0 %vm250_vm0, %v1877_v29  ;;  %1841 = vmatprep.mubr.msk.bf16.mxu1 %vm250_vm0, %v1879_v30 }
  0x3e   :  { %1810 = vmatmul.mubr.msk.bf16.gmra.mrb[28].mxu0 %vm250_vm0, %v1878_v31  ;;  %1842 = vmatmul.mubr.msk.bf16.gmra.mrb[28].mxu1 %vm250_vm0, %v1880_v32 }
  0xd9   :  { %v1783_v34 = vpop.f32.mrb[0].mxu0  ;;  %v1815_v35 = vpop.f32.mrb[0].mxu1 }
  0xda   :  { %v645_v37 = vmul.f32 %v1783_v34, %v2041_v33  ;;  %v677_v38 = vmul.f32 %v1815_v35, %v2041_v33  ;;  %v381_v39 = vpop.f32.mrb[1].mxu0  ;;  %v509_v40 = vpop.f32.mrb[1].mxu1 }
  0xdb   :  { %v643_v41 = vmul.f32 %v2041_v33, %v381_v39  ;;  %v1784_v42 = vpop.f32.mrb[2].mxu0  ;;  %v1816_v43 = vpop.f32.mrb[2].mxu1  ;;  %v675_v49 = vmul.f32 %v2041_v33, %v509_v40 }
  0xdc   :  { %v646_v44 = vmul.f32 %v1784_v42, %v2041_v33  ;;  %v384_v45 = vpop.f32.mrb[3].mxu0  ;;  %v512_v46 = vpop.f32.mrb[3].mxu1  ;;  %v2053_v47 = vadd.f32 %v2046_v36, %v677_v38  ;;  %v2056_v48 = vadd.f32 %v2046_v36, %v645_v37  ;;  %v678_v50 = vmul.f32 %v1816_v43, %v2041_v33 }
  0xdd   :  { %v2061_v51 = vadd.f32 %v2046_v36, %v643_v41  ;;  %v2075_v55 = vadd.f32 %v2046_v36, %v675_v49  ;;  %v644_v56 = vmul.f32 %v2041_v33, %v384_v45  ;;  %v676_v62 = vmul.f32 %v2041_v33, %v512_v46 }
  0xde   :  { %v2064_v52 = vadd.f32 %v2046_v36, %v646_v44  ;;  %v2997_v53 = vmax.f32 %v2053_v47, 0.0  ;;  %v2996_v54 = vmax.f32 %v2056_v48, 0.0  ;;  %v2081_v61 = vadd.f32 %v2046_v36, %v678_v50 }
  0xdf   :  { %v2995_v59 = vmax.f32 %v2061_v51, 0.0  ;;  %v2993_v5 = vmax.f32 %v2075_v55, 0.0  ;;  %v2092_v6 = vadd.f32 %v2046_v36, %v644_v56  ;;  %v2096_v8 = vadd.f32 %v2046_v36, %v676_v62 }
  0xe0   :  { %974 = vrot.lane.b32.xlu0 %v2997_v53, %s1881_s0  ;;  %910 = vrot.lane.b32.xlu1 %v2996_v54, %s1881_s0  ;;  %v2994_v60 = vmax.f32 %v2064_v52, 0.0  ;;  %v2990_v7 = vmax.f32 %v2081_v61, 0.0 }
  0xe1   :  { %v1787_v57 = vpop.f32.mrb[4].mxu0  ;;  %v1819_v58 = vpop.f32.mrb[4].mxu1  ;;  %v2986_v11 = vmax.f32 %v2092_v6, 0.0  ;;  %v2987_v15 = vmax.f32 %v2096_v8, 0.0 }
  0xe2   :  { %v397_v63 = vpop.f32.mrb[5].mxu0  ;;  %v525_v0 = vpop.f32.mrb[5].mxu1  ;;  %v649_v9 = vmul.f32 %v1787_v57, %v2041_v33  ;;  %v681_v12 = vmul.f32 %v1819_v58, %v2041_v33 }
  0xe3   :  { %v1788_v1 = vpop.f32.mrb[6].mxu0  ;;  %v1820_v2 = vpop.f32.mrb[6].mxu1  ;;  %v647_v25 = vmul.f32 %v2041_v33, %v397_v63  ;;  %v679_v31 = vmul.f32 %v2041_v33, %v525_v0 }
  0xe4   :  { %906 = vrot.lane.b32.xlu0 %v2995_v59, %s1881_s0  ;;  %912 = vrot.lane.b32.xlu1 %v2994_v60, %s1881_s0  ;;  %v400_v3 = vpop.f32.mrb[7].mxu0  ;;  %v528_v4 = vpop.f32.mrb[7].mxu1  ;;  %v650_v10 = vmul.f32 %v1788_v1, %v2041_v33  ;;  %v2110_v16 = vadd.f32 %v2046_v36, %v649_v9  ;;  %v682_v18 = vmul.f32 %v1820_v2, %v2041_v33 }
  0xe5   :  { %v2126_v26 = vadd.f32 %v2046_v36, %v681_v12  ;;  %v648_v29 = vmul.f32 %v2041_v33, %v400_v3  ;;  %v680_v32 = vmul.f32 %v2041_v33, %v528_v4  ;;  %v2147_v37 = vadd.f32 %v2046_v36, %v647_v25 }
  0xe6   :  { %v2113_v17 = vadd.f32 %v2046_v36, %v650_v10  ;;  %v2985_v27 = vmax.f32 %v2110_v16, 0.0  ;;  %v2132_v30 = vadd.f32 %v2046_v36, %v682_v18  ;;  %v2174_v50 = vadd.f32 %v2046_v36, %v679_v31 }
  0xe7   :  { %v2150_v38 = vadd.f32 %v2046_v36, %v648_v29  ;;  %v2983_v39 = vmax.f32 %v2126_v26, 0.0  ;;  %v2177_v56 = vadd.f32 %v2046_v36, %v680_v32  ;;  %v2980_v57 = vmax.f32 %v2147_v37, 0.0 }
  0xe8   :  { %970 = vrot.lane.b32.xlu0 %v2993_v5, %s1881_s0  ;;  %976 = vrot.lane.b32.xlu1 %v2990_v7, %s1881_s0  ;;  %v2984_v28 = vmax.f32 %v2113_v17, 0.0  ;;  %v2982_v40 = vmax.f32 %v2132_v30, 0.0  ;;  %v2976_v1 = vmax.f32 %v2174_v50, 0.0 }
  0xe9   :  { %v1791_v13 = vpop.f32.mrb[8].mxu0  ;;  %v1823_v14 = vpop.f32.mrb[8].mxu1  ;;  %v2978_v58 = vmax.f32 %v2150_v38, 0.0  ;;  %v2977_v2 = vmax.f32 %v2177_v56, 0.0 }
  0xea   :  { %v413_v19 = vpop.f32.mrb[9].mxu0  ;;  %v541_v20 = vpop.f32.mrb[9].mxu1  ;;  %v653_v45 = vmul.f32 %v1791_v13, %v2041_v33  ;;  %v685_v63 = vmul.f32 %v1823_v14, %v2041_v33 }
  0xeb   :  { %v1792_v21 = vpop.f32.mrb[10].mxu0  ;;  %v1824_v22 = vpop.f32.mrb[10].mxu1  ;;  %v651_v3 = vmul.f32 %v2041_v33, %v413_v19  ;;  %v683_v4 = vmul.f32 %v2041_v33, %v541_v20 }
  0xec   :  { %972 = vrot.lane.b32.xlu1 %v2987_v15, %s1881_s0  ;;  %908 = vrot.lane.b32.xlu0 %v2986_v11, %s1881_s0  ;;  %v416_v23 = vpop.f32.mrb[11].mxu0  ;;  %v2122_v24 = vpop.f32.mrb[11].mxu1  ;;  %v654_v62 = vmul.f32 %v1792_v21, %v2041_v33  ;;  %v2184_v0 = vadd.f32 %v2046_v36, %v653_v45  ;;  %v686_v13 = vmul.f32 %v1824_v22, %v2041_v33 }
  0xed   :  { %v652_v29 = vmul.f32 %v2041_v33, %v416_v23  ;;  %v2204_v31 = vadd.f32 %v2046_v36, %v685_v63 }
  0xee   :  { %v2197_v12 = vadd.f32 %v2046_v36, %v654_v62  ;;  %v2979_v62 = vmax.f32 %v2184_v0, 0.0 }
  0xef   :  { %3044 = vst [vmem:[#allocation2_spill] sm:$0xff] %v2204_v31 }
  0xf0   :  { %918 = vrot.lane.b32.xlu0 %v2985_v27, %s1881_s0  ;;  %920 = vrot.lane.b32.xlu1 %v2984_v28, %s1881_s0 }
  0xf1   :  { %v2142_v34 = vpop.f32.mrb[12].mxu0  ;;  %v2144_v35 = vpop.f32.mrb[12].mxu1 }
  0xf2   :  { %v2154_v41 = vpop.f32.mrb[13].mxu0  ;;  %v2156_v42 = vpop.f32.mrb[13].mxu1 }
  0xf3   :  { %v2158_v43 = vpop.f32.mrb[14].mxu0  ;;  %v2160_v44 = vpop.f32.mrb[14].mxu1 }
  0xf4   :  { %982 = vrot.lane.b32.xlu0 %v2983_v39, %s1881_s0  ;;  %984 = vrot.lane.b32.xlu1 %v2982_v40, %s1881_s0  ;;  %v2169_v46 = vpop.f32.mrb[15].mxu0  ;;  %v2171_v49 = vpop.f32.mrb[15].mxu1 }
  0xf5   :  { %v656_v59 = vmul.f32 %v2041_v33, %v2169_v46 }
  0xf8   :  { %914 = vrot.lane.b32.xlu0 %v2980_v57, %s1881_s0  ;;  %916 = vrot.lane.b32.xlu1 %v2978_v58, %s1881_s0  ;;  %v2232_v58 = vadd.f32 %v2046_v36, %v686_v13 }
  0xf9   :  { %v1799_v9 = vpop.f32.mrb[16].mxu0  ;;  %v1831_v10 = vpop.f32.mrb[16].mxu1 }
  0xfa   :  { %v661_v14 = vmul.f32 %v1799_v9, %v2041_v33  ;;  %v445_v18 = vpop.f32.mrb[17].mxu0  ;;  %v693_v21 = vmul.f32 %v1831_v10, %v2041_v33  ;;  %v573_v25 = vpop.f32.mrb[17].mxu1  ;;  %3045 = vst [vmem:[#allocation3_spill] sm:$0xff] %v2232_v58 }
  0xfb   :  { %v659_v19 = vmul.f32 %v2041_v33, %v445_v18  ;;  %v1800_v20 = vpop.f32.mrb[18].mxu0  ;;  %v691_v32 = vmul.f32 %v2041_v33, %v573_v25  ;;  %v1832_v45 = vpop.f32.mrb[18].mxu1 }
  0xfc   :  { %978 = vrot.lane.b32.xlu0 %v2976_v1, %s1881_s0  ;;  %980 = vrot.lane.b32.xlu1 %v2977_v2, %s1881_s0  ;;  %v2216_v22 = vadd.f32 %v2046_v36, %v661_v14  ;;  %v662_v23 = vmul.f32 %v1800_v20, %v2041_v33  ;;  %v448_v63 = vpop.f32.mrb[19].mxu0  ;;  %v2220_v9 = vadd.f32 %v2046_v36, %v693_v21  ;;  %v576_v10 = vpop.f32.mrb[19].mxu1  ;;  %v2981_v14 = vmax.f32 %v2197_v12, 0.0 }
  0xfd   :  { %v2223_v18 = vadd.f32 %v2046_v36, %v659_v19  ;;  %v660_v25 = vmul.f32 %v2041_v33, %v448_v63  ;;  %v2227_v1 = vadd.f32 %v2046_v36, %v691_v32  ;;  %v694_v2 = vmul.f32 %v1832_v45, %v2041_v33 }
  0xfe   :  { %v2235_v20 = vadd.f32 %v2046_v36, %v662_v23  ;;  %v692_v21 = vmul.f32 %v2041_v33, %v576_v10  ;;  %v684_v19 = vmul.f32 %v2041_v33, %v2122_v24  ;;  %v2247_v45 = vadd.f32 %v2046_v36, %v651_v3 }
  0xff   :  { %v2241_v63 = vadd.f32 %v2046_v36, %v660_v25  ;;  %v2244_v32 = vadd.f32 %v2046_v36, %v694_v2  ;;  %v2988_v24 = vmax.f32 %v2204_v31, 0.0  ;;  %v2260_v23 = vadd.f32 %v2046_v36, %v683_v4 }
 0x100   :  { %3046 = vst [vmem:[#allocation4_spill] sm:$0xff] %v2247_v45  ;;  %926 = vrot.lane.b32.xlu0 %v2979_v62, %s1881_s0  ;;  %928 = vrot.lane.b32.xlu1 %v2981_v14, %s1881_s0  ;;  %v2256_v13 = vadd.f32 %v2046_v36, %v692_v21  ;;  %v2263_v3 = vadd.f32 %v2046_v36, %v652_v29  ;;  %v2989_v25 = vmax.f32 %v2232_v58, 0.0  ;;  %v2991_v11 = vmax.f32 %v2247_v45, 0.0 }
 0x101   :  { %3047 = vst [vmem:[#allocation5_spill] sm:$0xff] %v2260_v23  ;;  %v1803_v2 = vpop.f32.mrb[20].mxu0  ;;  %v1835_v10 = vpop.f32.mrb[20].mxu1  ;;  %v2269_v21 = vadd.f32 %v2046_v36, %v684_v19  ;;  %v657_v4 = vmul.f32 %v2142_v34, %v2041_v33 }
 0x102   :  { %3048 = vst [vmem:[#allocation6_spill] sm:$0xff] %v2263_v3  ;;  %v665_v62 = vmul.f32 %v1803_v2, %v2041_v33  ;;  %v461_v57 = vpop.f32.mrb[21].mxu0  ;;  %v697_v14 = vmul.f32 %v1835_v10, %v2041_v33  ;;  %v589_v40 = vpop.f32.mrb[21].mxu1 }
 0x103   :  { %3049 = vst [vmem:[#allocation7_spill] sm:$0xff] %v2269_v21  ;;  %v663_v39 = vmul.f32 %v2041_v33, %v461_v57  ;;  %v1804_v28 = vpop.f32.mrb[22].mxu0  ;;  %v695_v29 = vmul.f32 %v2041_v33, %v589_v40  ;;  %v1836_v27 = vpop.f32.mrb[22].mxu1 }
 0x104   :  { %990 = vrot.lane.b32.xlu0 %v2988_v24, %s1881_s0  ;;  %992 = vrot.lane.b32.xlu1 %v2989_v25, %s1881_s0  ;;  %v2283_v19 = vadd.f32 %v2046_v36, %v665_v62  ;;  %v666_v34 = vmul.f32 %v1804_v28, %v2041_v33  ;;  %v464_v57 = vpop.f32.mrb[23].mxu0  ;;  %v2287_v2 = vadd.f32 %v2046_v36, %v697_v14  ;;  %v592_v40 = vpop.f32.mrb[23].mxu1  ;;  %v2992_v62 = vmax.f32 %v2263_v3, 0.0 }
 0x105   :  { %v2290_v10 = vadd.f32 %v2046_v36, %v663_v39  ;;  %v664_v15 = vmul.f32 %v2041_v33, %v464_v57  ;;  %v2294_v24 = vadd.f32 %v2046_v36, %v695_v29  ;;  %v698_v25 = vmul.f32 %v1836_v27, %v2041_v33 }
 0x106   :  { %v658_v28 = vmul.f32 %v2158_v43, %v2041_v33  ;;  %v2301_v7 = vadd.f32 %v2046_v36, %v666_v34  ;;  %v696_v14 = vmul.f32 %v2041_v33, %v592_v40  ;;  %v689_v39 = vmul.f32 %v2144_v35, %v2041_v33 }
 0x107   :  { %v2307_v57 = vadd.f32 %v2046_v36, %v664_v15  ;;  %v2310_v29 = vadd.f32 %v2046_v36, %v698_v25  ;;  %v2313_v27 = vadd.f32 %v2046_v36, %v657_v4  ;;  %v2999_v15 = vmax.f32 %v2260_v23, 0.0 }
 0x108   :  { %922 = vrot.lane.b32.xlu0 %v2991_v11, %s1881_s0  ;;  %924 = vrot.lane.b32.xlu1 %v2992_v62, %s1881_s0  ;;  %v2322_v43 = vadd.f32 %v2046_v36, %v696_v14  ;;  %v655_v25 = vmul.f32 %v2041_v33, %v2154_v41  ;;  %v2329_v40 = vadd.f32 %v2046_v36, %v658_v28 }
 0x109   :  { %3050 = vst [vmem:[#allocation8_spill] sm:$0xff] %v2313_v27  ;;  %v1807_v4 = vpop.f32.mrb[24].mxu0  ;;  %v1839_v34 = vpop.f32.mrb[24].mxu1  ;;  %v690_v11 = vmul.f32 %v2160_v44, %v2041_v33  ;;  %v2338_v54 = vadd.f32 %v2046_v36, %v689_v39 }
 0x10a   :  { %3051 = vst [vmem:[#allocation9_spill] sm:$0xff] %v2329_v40  ;;  %v669_v62 = vmul.f32 %v1807_v4, %v2041_v33  ;;  %v477_v5 = vpop.f32.mrb[25].mxu0  ;;  %v701_v14 = vmul.f32 %v1839_v34, %v2041_v33  ;;  %v605_v60 = vpop.f32.mrb[25].mxu1  ;;  %v3053_v4 = vmax.f32 %v2269_v21, 0.0 }
 0x10b   :  { %3052 = vst [vmem:[#allocation10_spill] sm:$0xff] %v2338_v54  ;;  %v667_v41 = vmul.f32 %v2041_v33, %v477_v5  ;;  %v1808_v53 = vpop.f32.mrb[26].mxu0  ;;  %v699_v28 = vmul.f32 %v2041_v33, %v605_v60  ;;  %v1840_v35 = vpop.f32.mrb[26].mxu1  ;;  %v2366_v21 = vadd.f32 %v2046_v36, %v690_v11  ;;  %v3055_v11 = vmax.f32 %v2313_v27, 0.0 }
 0x10c   :  { %986 = vrot.lane.b32.xlu0 %v2999_v15, %s1881_s0  ;;  %988 = vrot.lane.b32.xlu1 %v3053_v4, %s1881_s0  ;;  %v2350_v46 = vadd.f32 %v2046_v36, %v669_v62  ;;  %v670_v39 = vmul.f32 %v1808_v53, %v2041_v33  ;;  %v480_v5 = vpop.f32.mrb[27].mxu0  ;;  %v2354_v34 = vadd.f32 %v2046_v36, %v701_v14  ;;  %v608_v60 = vpop.f32.mrb[27].mxu1  ;;  %v3003_v62 = vmax.f32 %v2329_v40, 0.0 }
 0x10d   :  { %v2357_v44 = vadd.f32 %v2046_v36, %v667_v41  ;;  %v668_v23 = vmul.f32 %v2041_v33, %v480_v5  ;;  %v2361_v15 = vadd.f32 %v2046_v36, %v699_v28  ;;  %v702_v4 = vmul.f32 %v1840_v35, %v2041_v33  ;;  %3054 = vst [vmem:[#allocation11_spill] sm:$0xff] %v2366_v21 }
 0x10e   :  { %v2369_v53 = vadd.f32 %v2046_v36, %v670_v39  ;;  %v700_v14 = vmul.f32 %v2041_v33, %v608_v60  ;;  %v687_v41 = vmul.f32 %v2041_v33, %v2156_v42  ;;  %v2381_v35 = vadd.f32 %v2046_v36, %v655_v25 }
 0x10f   :  { %v2375_v5 = vadd.f32 %v2046_v36, %v668_v23  ;;  %v2378_v28 = vadd.f32 %v2046_v36, %v702_v4  ;;  %v688_v23 = vmul.f32 %v2041_v33, %v2171_v49  ;;  %v2396_v25 = vadd.f32 %v2046_v36, %v656_v59 }
 0x110   :  { %934 = vrot.lane.b32.xlu0 %v3055_v11, %s1881_s0  ;;  %936 = vrot.lane.b32.xlu1 %v3003_v62, %s1881_s0  ;;  %v2390_v39 = vadd.f32 %v2046_v36, %v700_v14  ;;  %v2402_v14 = vadd.f32 %v2046_v36, %v687_v41  ;;  %v3056_v27 = vmax.f32 %v2338_v54, 0.0 }
 0x111   :  { %v1811_v60 = vpop.f32.mrb[28].mxu0  ;;  %v1843_v4 = vpop.f32.mrb[28].mxu1 }
 0x112   :  { %v673_v11 = vmul.f32 %v1811_v60, %v2041_v33  ;;  %v493_v3 = vpop.f32.mrb[29].mxu0  ;;  %v705_v62 = vmul.f32 %v1843_v4, %v2041_v33  ;;  %v621_v40 = vpop.f32.mrb[29].mxu1  ;;  %v3057_v60 = vmax.f32 %v2366_v21, 0.0  ;;  %v2430_v21 = vadd.f32 %v2046_v36, %v688_v23 }
 0x113   :  { %v671_v42 = vmul.f32 %v2041_v33, %v493_v3  ;;  %v1812_v45 = vpop.f32.mrb[30].mxu0  ;;  %v703_v49 = vmul.f32 %v2041_v33, %v621_v40  ;;  %v1844_v58 = vpop.f32.mrb[30].mxu1  ;;  %v3035_v23 = vmax.f32 %v2402_v14, 0.0 }
 0x114   :  { %998 = vrot.lane.b32.xlu0 %v3056_v27, %s1881_s0  ;;  %1000 = vrot.lane.b32.xlu1 %v3057_v60, %s1881_s0  ;;  %v2414_v4 = vadd.f32 %v2046_v36, %v673_v11  ;;  %v674_v41 = vmul.f32 %v1812_v45, %v2041_v33  ;;  %v496_v3 = vpop.f32.mrb[31].mxu0  ;;  %v2418_v31 = vadd.f32 %v2046_v36, %v705_v62  ;;  %v624_v40 = vpop.f32.mrb[31].mxu1  ;;  %v3036_v11 = vmax.f32 %v2396_v25, 0.0 }
 0x115   :  { %v2421_v59 = vadd.f32 %v2046_v36, %v671_v42  ;;  %v672_v54 = vmul.f32 %v2041_v33, %v496_v3  ;;  %v2425_v27 = vadd.f32 %v2046_v36, %v703_v49  ;;  %v706_v60 = vmul.f32 %v1844_v58, %v2041_v33 }
 0x116   :  { %3058 = vst [vmem:[#allocation12_spill] sm:$0xff] %v2414_v4  ;;  %v2433_v45 = vadd.f32 %v2046_v36, %v674_v41  ;;  %v704_v62 = vmul.f32 %v2041_v33, %v624_v40  ;;  %v3061_v49 = vmax.f32 %v2381_v35, 0.0  ;;  %v3034_v33 = vmax.f32 %v2430_v21, 0.0 }
 0x117   :  { %3059 = vst [vmem:[#allocation13_spill] sm:$0xff] %v2421_v59  ;;  %v2437_v42 = vadd.f32 %v2046_v36, %v672_v54  ;;  %v2440_v3 = vadd.f32 %v2046_v36, %v706_v60  ;;  %v3032_v54 = vmax.f32 %v2216_v22, 0.0  ;;  %v3031_v41 = vmax.f32 %v2235_v20, 0.0 }
 0x118   :  { %3060 = vst [vmem:[#allocation14_spill] sm:$0xff] %v2433_v45  ;;  %930 = vrot.lane.b32.xlu0 %v3061_v49, %s1881_s0  ;;  %932 = vrot.lane.b32.xlu1 %v3036_v11, %s1881_s0  ;;  %v2449_v58 = vadd.f32 %v2046_v36, %v704_v62  ;;  %v3010_v36 = vmax.f32 %v2220_v9, 0.0  ;;  %v3011_v40 = vmax.f32 %v2244_v32, 0.0  ;;  %v3012_v60 = vmax.f32 %v2223_v18, 0.0 }
 0x119   :  { %v3013_v62 = vmax.f32 %v2241_v63, 0.0  ;;  %v3014_v49 = vmax.f32 %v2227_v1, 0.0 }
 0x11c   :  { %994 = vrot.lane.b32.xlu0 %v3035_v23, %s1881_s0  ;;  %996 = vrot.lane.b32.xlu1 %v3034_v33, %s1881_s0  ;;  %v3063_v23 = vmax.f32 %v2056_v48, 0.0 }
 0x120   :  { %942 = vrot.lane.b32.xlu0 %v3032_v54, %s1881_s0  ;;  %944 = vrot.lane.b32.xlu1 %v3031_v41, %s1881_s0 }
 0x124   :  { %1006 = vrot.lane.b32.xlu0 %v3010_v36, %s1881_s0  ;;  %1008 = vrot.lane.b32.xlu1 %v3011_v40, %s1881_s0  ;;  %v3015_v36 = vmax.f32 %v2256_v13, 0.0  ;;  %v3016_v40 = vmax.f32 %v2283_v19, 0.0 }
 0x128   :  { %938 = vrot.lane.b32.xlu0 %v3012_v60, %s1881_s0  ;;  %940 = vrot.lane.b32.xlu1 %v3013_v62, %s1881_s0  ;;  %v3017_v60 = vmax.f32 %v2301_v7, 0.0  ;;  %v3018_v62 = vmax.f32 %v2287_v2, 0.0 }
 0x12c   :  { %1002 = vrot.lane.b32.xlu0 %v3014_v49, %s1881_s0  ;;  %1004 = vrot.lane.b32.xlu1 %v3015_v36, %s1881_s0  ;;  %v3019_v49 = vmax.f32 %v2310_v29, 0.0  ;;  %v3020_v36 = vmax.f32 %v2290_v10, 0.0 }
 0x130   :  { %950 = vrot.lane.b32.xlu0 %v3016_v40, %s1881_s0  ;;  %952 = vrot.lane.b32.xlu1 %v3017_v60, %s1881_s0  ;;  %v3021_v40 = vmax.f32 %v2307_v57, 0.0  ;;  %v3022_v60 = vmax.f32 %v2294_v24, 0.0 }
 0x134   :  { %1014 = vrot.lane.b32.xlu0 %v3018_v62, %s1881_s0  ;;  %1016 = vrot.lane.b32.xlu1 %v3019_v49, %s1881_s0  ;;  %v3023_v62 = vmax.f32 %v2322_v43, 0.0  ;;  %v3024_v49 = vmax.f32 %v2350_v46, 0.0 }
 0x138   :  { %946 = vrot.lane.b32.xlu0 %v3020_v36, %s1881_s0  ;;  %948 = vrot.lane.b32.xlu1 %v3021_v40, %s1881_s0  ;;  %v3025_v36 = vmax.f32 %v2369_v53, 0.0  ;;  %v3026_v40 = vmax.f32 %v2354_v34, 0.0 }
 0x13c   :  { %1010 = vrot.lane.b32.xlu0 %v3022_v60, %s1881_s0  ;;  %1012 = vrot.lane.b32.xlu1 %v3023_v62, %s1881_s0  ;;  %v3027_v60 = vmax.f32 %v2378_v28, 0.0  ;;  %v3028_v62 = vmax.f32 %v2357_v44, 0.0 }
 0x140   :  { %958 = vrot.lane.b32.xlu0 %v3024_v49, %s1881_s0  ;;  %960 = vrot.lane.b32.xlu1 %v3025_v36, %s1881_s0  ;;  %v3029_v49 = vmax.f32 %v2375_v5, 0.0  ;;  %v3030_v36 = vmax.f32 %v2361_v15, 0.0 }
 0x144   :  { %1022 = vrot.lane.b32.xlu0 %v3026_v40, %s1881_s0  ;;  %1024 = vrot.lane.b32.xlu1 %v3027_v60, %s1881_s0  ;;  %v3033_v40 = vmax.f32 %v2390_v39, 0.0  ;;  %v3038_v60 = vmax.f32 %v2414_v4, 0.0  ;;  %v3043_v4 = vmax.f32 %v2449_v58, 0.0 }
 0x148   :  { %954 = vrot.lane.b32.xlu0 %v3028_v62, %s1881_s0  ;;  %956 = vrot.lane.b32.xlu1 %v3029_v49, %s1881_s0  ;;  %v3037_v62 = vmax.f32 %v2433_v45, 0.0  ;;  %v3041_v49 = vmax.f32 %v2421_v59, 0.0  ;;  %v838_v45 = vmax.f32 %v2425_v27, 0.0 }
 0x14c   :  { %1018 = vrot.lane.b32.xlu0 %v3030_v36, %s1881_s0  ;;  %1020 = vrot.lane.b32.xlu1 %v3033_v40, %s1881_s0  ;;  %v807_v36 = vmax.f32 %v2437_v42, 0.0  ;;  %v3062_v40 = vmax.f32 %v2053_v47, 0.0 }
 0x150   :  { %966 = vrot.lane.b32.xlu0 %v3038_v60, %s1881_s0  ;;  %968 = vrot.lane.b32.xlu1 %v3037_v62, %s1881_s0 }
 0x152   :  { %v975_v41 = vpop.permute.xlu0 %974  ;;  %v911_v54 = vpop.permute.xlu1 %910 }
 0x153   :  { %v1132_v33 = vadd.f32 %v975_v41, %v3062_v40  ;;  %v1100_v11 = vadd.f32 %v911_v54, %v3063_v23  ;;  %v3064_v23 = vmax.f32 %v2061_v51, 0.0 }
 0x154   :  { %962 = vrot.lane.b32.xlu0 %v3041_v49, %s1881_s0  ;;  %964 = vrot.lane.b32.xlu1 %v807_v36, %s1881_s0  ;;  %v3065_v49 = vmax.f32 %v2064_v52, 0.0 }
 0x155   :  { %v1196_v62 = vmax.f32 %v1132_v33, 0.0  ;;  %v1164_v60 = vmax.f32 %v1100_v11, 0.0  ;;  %v840_v11 = vmax.f32 %v2418_v31, 0.0  ;;  %v841_v33 = vmax.f32 %v2440_v3, 0.0 }
 0x156   :  { %v907_v47 = vpop.permute.xlu0 %906  ;;  %v913_v41 = vpop.permute.xlu1 %912 }
 0x157   :  { %v1716_v40 = vpack.c.bf16 %v1196_v62, %v1196_v62  ;;  %v1684_v48 = vpack.c.bf16 %v1164_v60, %v1164_v60  ;;  %v1098_v54 = vadd.f32 %v907_v47, %v3064_v23  ;;  %v1101_v59 = vadd.f32 %v913_v41, %v3065_v49 }
 0x158   :  { %1026 = vrot.lane.b32.xlu0 %v838_v45, %s1881_s0  ;;  %1028 = vrot.lane.b32.xlu1 %v3043_v4, %s1881_s0  ;;  %v3066_v41 = vmax.f32 %v2075_v55, 0.0 }
 0x159   :  { %1517 = vst.msk [vmem:[%s2975_s4 + $0x88] sm:$0xf] %vm1482_vm1, %v1716_v40  ;;  %1485 = vst.msk [vmem:[%s2975_s4 + $0x8] sm:$0xf] %vm1482_vm1, %v1684_v48  ;;  %v1162_v51 = vmax.f32 %v1098_v54, 0.0  ;;  %v1165_v52 = vmax.f32 %v1101_v59, 0.0 }
 0x15a   :  { %v971_v60 = vpop.permute.xlu0 %970  ;;  %v977_v62 = vpop.permute.xlu1 %976  ;;  %v3067_v40 = vmax.f32 %v2081_v61, 0.0 }
 0x15b   :  { %v1682_v49 = vpack.c.bf16 %v1162_v51, %v1162_v51  ;;  %v1685_v47 = vpack.c.bf16 %v1165_v52, %v1165_v52  ;;  %v1130_v23 = vadd.f32 %v971_v60, %v3066_v41  ;;  %v3068_v52 = vmax.f32 %v2096_v8, 0.0 }
 0x15c   :  { %v1133_v4 = vadd.f32 %v977_v62, %v3067_v40  ;;  %1030 = vrot.lane.b32.xlu0 %v840_v11, %s1881_s0  ;;  %1032 = vrot.lane.b32.xlu1 %v841_v33, %s1881_s0  ;;  %v3069_v62 = vmax.f32 %v2092_v6, 0.0 }
 0x15d   :  { %1483 = vst.msk [vmem:[%s2975_s4] sm:$0xf] %vm1482_vm1, %v1682_v49  ;;  %1486 = vst.msk [vmem:[%s2975_s4 + $0xc] sm:$0xf] %vm1482_vm1, %v1685_v47  ;;  %v1194_v55 = vmax.f32 %v1130_v23, 0.0 }
 0x15e   :  { %v1197_v61 = vmax.f32 %v1133_v4, 0.0  ;;  %v973_v59 = vpop.permute.xlu1 %972  ;;  %v909_v48 = vpop.permute.xlu0 %908 }
 0x15f   :  { %v1714_v54 = vpack.c.bf16 %v1194_v55, %v1194_v55  ;;  %v1131_v60 = vadd.f32 %v973_v59, %v3068_v52  ;;  %v1099_v41 = vadd.f32 %v909_v48, %v3069_v62  ;;  %v3070_v55 = vmax.f32 %v2110_v16, 0.0 }
 0x160   :  { %v1717_v51 = vpack.c.bf16 %v1197_v61, %v1197_v61  ;;  %v3071_v61 = vmax.f32 %v2113_v17, 0.0  ;;  %v3072_v62 = vmax.f32 %v2126_v26, 0.0 }
 0x161   :  { %1515 = vst.msk [vmem:[%s2975_s4 + $0x80] sm:$0xf] %vm1482_vm1, %v1714_v54  ;;  %v1195_v4 = vmax.f32 %v1131_v60, 0.0  ;;  %v1163_v49 = vmax.f32 %v1099_v41, 0.0  ;;  %v3073_v41 = vmax.f32 %v2132_v30, 0.0 }
 0x162   :  { %1518 = vst.msk [vmem:[%s2975_s4 + $0x8c] sm:$0xf] %vm1482_vm1, %v1717_v51  ;;  %v919_v47 = vpop.permute.xlu0 %918  ;;  %v921_v23 = vpop.permute.xlu1 %920 }
 0x163   :  { %v1715_v40 = vpack.c.bf16 %v1195_v4, %v1195_v4  ;;  %v1683_v8 = vpack.c.bf16 %v1163_v49, %v1163_v49  ;;  %v1104_v6 = vadd.f32 %v919_v47, %v3070_v55  ;;  %v1105_v59 = vadd.f32 %v921_v23, %v3071_v61 }
 0x164   :  { %v3074_v55 = vmax.f32 %v2147_v37, 0.0 }
 0x165   :  { %1516 = vst.msk [vmem:[%s2975_s4 + $0x84] sm:$0xf] %vm1482_vm1, %v1715_v40  ;;  %1484 = vst.msk [vmem:[%s2975_s4 + $0x4] sm:$0xf] %vm1482_vm1, %v1683_v8  ;;  %v1168_v48 = vmax.f32 %v1104_v6, 0.0  ;;  %v1169_v54 = vmax.f32 %v1105_v59, 0.0 }
 0x166   :  { %v983_v51 = vpop.permute.xlu0 %982  ;;  %v985_v52 = vpop.permute.xlu1 %984  ;;  %v3075_v6 = vmax.f32 %v2150_v38, 0.0 }
 0x167   :  { %v1688_v60 = vpack.c.bf16 %v1168_v48, %v1168_v48  ;;  %v1689_v16 = vpack.c.bf16 %v1169_v54, %v1169_v54  ;;  %v1136_v17 = vadd.f32 %v983_v51, %v3072_v62  ;;  %v1137_v4 = vadd.f32 %v985_v52, %v3073_v41 }
 0x169   :  { %1489 = vst.msk [vmem:[%s2975_s4 + $0x18] sm:$0xf] %vm1482_vm1, %v1688_v60  ;;  %1490 = vst.msk [vmem:[%s2975_s4 + $0x1c] sm:$0xf] %vm1482_vm1, %v1689_v16  ;;  %v1200_v49 = vmax.f32 %v1136_v17, 0.0  ;;  %v1201_v47 = vmax.f32 %v1137_v4, 0.0 }
 0x16a   :  { %v915_v23 = vpop.permute.xlu0 %914  ;;  %v917_v40 = vpop.permute.xlu1 %916  ;;  %v3076_v60 = vmax.f32 %v2174_v50, 0.0  ;;  %v3077_v16 = vmax.f32 %v2177_v56, 0.0 }
 0x16b   :  { %v1720_v8 = vpack.c.bf16 %v1200_v49, %v1200_v49  ;;  %v1721_v26 = vpack.c.bf16 %v1201_v47, %v1201_v47  ;;  %v1102_v30 = vadd.f32 %v915_v23, %v3074_v55  ;;  %v1103_v61 = vadd.f32 %v917_v40, %v3075_v6 }
 0x16c   :  { %v3078_v23 = vmax.f32 %v2184_v0, 0.0  ;;  %v3079_v40 = vmax.f32 %v2197_v12, 0.0 }
 0x16d   :  { %1521 = vst.msk [vmem:[%s2975_s4 + $0x98] sm:$0xf] %vm1482_vm1, %v1720_v8  ;;  %1522 = vst.msk [vmem:[%s2975_s4 + $0x9c] sm:$0xf] %vm1482_vm1, %v1721_v26  ;;  %v1166_v59 = vmax.f32 %v1102_v30, 0.0  ;;  %v1167_v48 = vmax.f32 %v1103_v61, 0.0 }
 0x16e   :  { %v979_v54 = vpop.permute.xlu0 %978  ;;  %v981_v51 = vpop.permute.xlu1 %980 }
 0x16f   :  { %v1686_v52 = vpack.c.bf16 %v1166_v59, %v1166_v59  ;;  %v1687_v37 = vpack.c.bf16 %v1167_v48, %v1167_v48  ;;  %v1134_v38 = vadd.f32 %v979_v54, %v3076_v60  ;;  %v1135_v62 = vadd.f32 %v981_v51, %v3077_v16  ;;  %v3080_v59 = vld [vmem:[#allocation2_spill] sm:$0xff]  ;;  %v3082_v54 = vld [vmem:[#allocation3_spill] sm:$0xff] }
 0x170   :  { %v3081_v48 = vmax.f32 %v3080_v59, 0.0  ;;  %v3083_v51 = vmax.f32 %v3082_v54, 0.0  ;;  %v3090_v59 = vld [vmem:[#allocation7_spill] sm:$0xff] }
 0x171   :  { %1487 = vst.msk [vmem:[%s2975_s4 + $0x10] sm:$0xf] %vm1482_vm1, %v1686_v52  ;;  %1488 = vst.msk [vmem:[%s2975_s4 + $0x14] sm:$0xf] %vm1482_vm1, %v1687_v37  ;;  %v1198_v17 = vmax.f32 %v1134_v38, 0.0  ;;  %v1199_v41 = vmax.f32 %v1135_v62, 0.0 }
 0x172   :  { %v927_v4 = vpop.permute.xlu0 %926  ;;  %v929_v49 = vpop.permute.xlu1 %928 }
 0x173   :  { %v1718_v47 = vpack.c.bf16 %v1198_v17, %v1198_v17  ;;  %v1719_v50 = vpack.c.bf16 %v1199_v41, %v1199_v41  ;;  %v1108_v56 = vadd.f32 %v927_v4, %v3078_v23  ;;  %v1109_v8 = vadd.f32 %v929_v49, %v3079_v40  ;;  %v3084_v41 = vld [vmem:[#allocation4_spill] sm:$0xff] }
 0x174   :  { %v3085_v4 = vmax.f32 %v3084_v41, 0.0  ;;  %v3094_v41 = vld [vmem:[#allocation9_spill] sm:$0xff] }
 0x175   :  { %1519 = vst.msk [vmem:[%s2975_s4 + $0x90] sm:$0xf] %vm1482_vm1, %v1718_v47  ;;  %1520 = vst.msk [vmem:[%s2975_s4 + $0x94] sm:$0xf] %vm1482_vm1, %v1719_v50  ;;  %v1172_v26 = vmax.f32 %v1108_v56, 0.0  ;;  %v1173_v55 = vmax.f32 %v1109_v8, 0.0 }
 0x176   :  { %v991_v30 = vpop.permute.xlu0 %990  ;;  %v993_v6 = vpop.permute.xlu1 %992  ;;  %v3086_v47 = vld [vmem:[#allocation6_spill] sm:$0xff] }
 0x177   :  { %v1692_v61 = vpack.c.bf16 %v1172_v26, %v1172_v26  ;;  %v1693_v0 = vpack.c.bf16 %v1173_v55, %v1173_v55  ;;  %v1140_v12 = vadd.f32 %v991_v30, %v3081_v48  ;;  %v1141_v52 = vadd.f32 %v993_v6, %v3083_v51  ;;  %v3088_v6 = vld [vmem:[#allocation5_spill] sm:$0xff] }
 0x178   :  { %v3087_v50 = vmax.f32 %v3086_v47, 0.0  ;;  %v3091_v48 = vmax.f32 %v3090_v59, 0.0 }
 0x179   :  { %1493 = vst.msk [vmem:[%s2975_s4 + $0x28] sm:$0xf] %vm1482_vm1, %v1692_v61  ;;  %1494 = vst.msk [vmem:[%s2975_s4 + $0x2c] sm:$0xf] %vm1482_vm1, %v1693_v0  ;;  %v1204_v37 = vmax.f32 %v1140_v12, 0.0  ;;  %v1205_v60 = vmax.f32 %v1141_v52, 0.0 }
 0x17a   :  { %v923_v38 = vpop.permute.xlu0 %922  ;;  %v925_v16 = vpop.permute.xlu1 %924  ;;  %v3089_v61 = vmax.f32 %v3088_v6, 0.0  ;;  %v3098_v6 = vld [vmem:[#allocation11_spill] sm:$0xff] }
 0x17b   :  { %v1724_v62 = vpack.c.bf16 %v1204_v37, %v1204_v37  ;;  %v1725_v17 = vpack.c.bf16 %v1205_v60, %v1205_v60  ;;  %v1106_v49 = vadd.f32 %v923_v38, %v3085_v4  ;;  %v1107_v23 = vadd.f32 %v925_v16, %v3087_v50  ;;  %v3092_v16 = vld [vmem:[#allocation8_spill] sm:$0xff] }
 0x17c   :  { %v3095_v4 = vmax.f32 %v3094_v41, 0.0 }
 0x17d   :  { %1525 = vst.msk [vmem:[%s2975_s4 + $0xa8] sm:$0xf] %vm1482_vm1, %v1724_v62  ;;  %1526 = vst.msk [vmem:[%s2975_s4 + $0xac] sm:$0xf] %vm1482_vm1, %v1725_v17  ;;  %v1170_v56 = vmax.f32 %v1106_v49, 0.0  ;;  %v1171_v40 = vmax.f32 %v1107_v23, 0.0 }
 0x17e   :  { %v987_v8 = vpop.permute.xlu0 %986  ;;  %v989_v26 = vpop.permute.xlu1 %988  ;;  %v3093_v62 = vmax.f32 %v3092_v16, 0.0 }
 0x17f   :  { %v1690_v55 = vpack.c.bf16 %v1170_v56, %v1170_v56  ;;  %v1691_v30 = vpack.c.bf16 %v1171_v40, %v1171_v40  ;;  %v1138_v0 = vadd.f32 %v987_v8, %v3089_v61  ;;  %v1139_v12 = vadd.f32 %v989_v26, %v3091_v48  ;;  %v3096_v26 = vld [vmem:[#allocation10_spill] sm:$0xff] }
 0x180   :  { %v3099_v61 = vmax.f32 %v3098_v6, 0.0  ;;  %v3105_v6 = vmax.f32 %v2235_v20, 0.0 }
 0x181   :  { %1491 = vst.msk [vmem:[%s2975_s4 + $0x20] sm:$0xf] %vm1482_vm1, %v1690_v55  ;;  %1492 = vst.msk [vmem:[%s2975_s4 + $0x24] sm:$0xf] %vm1482_vm1, %v1691_v30  ;;  %v1202_v54 = vmax.f32 %v1138_v0, 0.0  ;;  %v1203_v51 = vmax.f32 %v1139_v12, 0.0 }
 0x182   :  { %v935_v52 = vpop.permute.xlu0 %934  ;;  %v937_v37 = vpop.permute.xlu1 %936  ;;  %v3097_v55 = vmax.f32 %v3096_v26, 0.0 }
 0x183   :  { %v1722_v60 = vpack.c.bf16 %v1202_v54, %v1202_v54  ;;  %v1723_v38 = vpack.c.bf16 %v1203_v51, %v1203_v51  ;;  %v1112_v17 = vadd.f32 %v935_v52, %v3093_v62  ;;  %v1113_v49 = vadd.f32 %v937_v37, %v3095_v4 }
 0x184   :  { %v3100_v37 = vmax.f32 %v2381_v35, 0.0 }
 0x185   :  { %1523 = vst.msk [vmem:[%s2975_s4 + $0xa0] sm:$0xf] %vm1482_vm1, %v1722_v60  ;;  %1524 = vst.msk [vmem:[%s2975_s4 + $0xa4] sm:$0xf] %vm1482_vm1, %v1723_v38  ;;  %v1176_v47 = vmax.f32 %v1112_v17, 0.0  ;;  %v1177_v50 = vmax.f32 %v1113_v49, 0.0 }
 0x186   :  { %v999_v23 = vpop.permute.xlu0 %998  ;;  %v1001_v56 = vpop.permute.xlu1 %1000  ;;  %v3101_v38 = vmax.f32 %v2396_v25, 0.0 }
 0x187   :  { %v1696_v40 = vpack.c.bf16 %v1176_v47, %v1176_v47  ;;  %v1697_v8 = vpack.c.bf16 %v1177_v50, %v1177_v50  ;;  %v1144_v30 = vadd.f32 %v999_v23, %v3097_v55  ;;  %v1145_v0 = vadd.f32 %v1001_v56, %v3099_v61 }
 0x188   :  { %v3102_v47 = vmax.f32 %v2402_v14, 0.0  ;;  %v3103_v50 = vmax.f32 %v2430_v21, 0.0 }
 0x189   :  { %1497 = vst.msk [vmem:[%s2975_s4 + $0x38] sm:$0xf] %vm1482_vm1, %v1696_v40  ;;  %1498 = vst.msk [vmem:[%s2975_s4 + $0x3c] sm:$0xf] %vm1482_vm1, %v1697_v8  ;;  %v1208_v59 = vmax.f32 %v1144_v30, 0.0  ;;  %v1209_v48 = vmax.f32 %v1145_v0, 0.0 }
 0x18a   :  { %v931_v12 = vpop.permute.xlu0 %930  ;;  %v933_v54 = vpop.permute.xlu1 %932  ;;  %v3104_v30 = vmax.f32 %v2216_v22, 0.0 }
 0x18b   :  { %v1728_v51 = vpack.c.bf16 %v1208_v59, %v1208_v59  ;;  %v1729_v52 = vpack.c.bf16 %v1209_v48, %v1209_v48  ;;  %v1110_v60 = vadd.f32 %v931_v12, %v3100_v37  ;;  %v1111_v16 = vadd.f32 %v933_v54, %v3101_v38 }
 0x18d   :  { %1529 = vst.msk [vmem:[%s2975_s4 + $0xb8] sm:$0xf] %vm1482_vm1, %v1728_v51  ;;  %1530 = vst.msk [vmem:[%s2975_s4 + $0xbc] sm:$0xf] %vm1482_vm1, %v1729_v52  ;;  %v1174_v62 = vmax.f32 %v1110_v60, 0.0  ;;  %v1175_v17 = vmax.f32 %v1111_v16, 0.0 }
 0x18e   :  { %v995_v41 = vpop.permute.xlu0 %994  ;;  %v997_v4 = vpop.permute.xlu1 %996  ;;  %v3106_v51 = vmax.f32 %v2220_v9, 0.0  ;;  %v3107_v52 = vmax.f32 %v2244_v32, 0.0 }
 0x18f   :  { %v1694_v49 = vpack.c.bf16 %v1174_v62, %v1174_v62  ;;  %v1695_v35 = vpack.c.bf16 %v1175_v17, %v1175_v17  ;;  %v1142_v25 = vadd.f32 %v995_v41, %v3102_v47  ;;  %v1143_v23 = vadd.f32 %v997_v4, %v3103_v50 }
 0x190   :  { %v3108_v41 = vmax.f32 %v2223_v18, 0.0  ;;  %v3109_v4 = vmax.f32 %v2241_v63, 0.0 }
 0x191   :  { %1495 = vst.msk [vmem:[%s2975_s4 + $0x30] sm:$0xf] %vm1482_vm1, %v1694_v49  ;;  %1496 = vst.msk [vmem:[%s2975_s4 + $0x34] sm:$0xf] %vm1482_vm1, %v1695_v35  ;;  %v1206_v56 = vmax.f32 %v1142_v25, 0.0  ;;  %v1207_v40 = vmax.f32 %v1143_v23, 0.0 }
 0x192   :  { %v943_v8 = vpop.permute.xlu0 %942  ;;  %v945_v26 = vpop.permute.xlu1 %944 }
 0x193   :  { %v1726_v55 = vpack.c.bf16 %v1206_v56, %v1206_v56  ;;  %v1727_v14 = vpack.c.bf16 %v1207_v40, %v1207_v40  ;;  %v1116_v21 = vadd.f32 %v943_v8, %v3104_v30  ;;  %v1117_v61 = vadd.f32 %v945_v26, %v3105_v6 }
 0x194   :  { %v3110_v56 = vmax.f32 %v2227_v1, 0.0  ;;  %v3111_v40 = vmax.f32 %v2256_v13, 0.0  ;;  %v3112_v6 = vmax.f32 %v2283_v19, 0.0 }
 0x195   :  { %1527 = vst.msk [vmem:[%s2975_s4 + $0xb0] sm:$0xf] %vm1482_vm1, %v1726_v55  ;;  %1528 = vst.msk [vmem:[%s2975_s4 + $0xb4] sm:$0xf] %vm1482_vm1, %v1727_v14  ;;  %v1180_v0 = vmax.f32 %v1116_v21, 0.0  ;;  %v1181_v59 = vmax.f32 %v1117_v61, 0.0 }
 0x196   :  { %v1007_v48 = vpop.permute.xlu0 %1006  ;;  %v1009_v12 = vpop.permute.xlu1 %1008  ;;  %v3113_v61 = vmax.f32 %v2301_v7, 0.0 }
 0x197   :  { %v1700_v54 = vpack.c.bf16 %v1180_v0, %v1180_v0  ;;  %v1701_v22 = vpack.c.bf16 %v1181_v59, %v1181_v59  ;;  %v1148_v20 = vadd.f32 %v1007_v48, %v3106_v51  ;;  %v1149_v37 = vadd.f32 %v1009_v12, %v3107_v52 }
 0x198   :  { %v3114_v51 = vmax.f32 %v2287_v2, 0.0 }
 0x199   :  { %1501 = vst.msk [vmem:[%s2975_s4 + $0x48] sm:$0xf] %vm1482_vm1, %v1700_v54  ;;  %1502 = vst.msk [vmem:[%s2975_s4 + $0x4c] sm:$0xf] %vm1482_vm1, %v1701_v22  ;;  %v1212_v60 = vmax.f32 %v1148_v20, 0.0  ;;  %v1213_v38 = vmax.f32 %v1149_v37, 0.0 }
 0x19a   :  { %v939_v16 = vpop.permute.xlu0 %938  ;;  %v941_v62 = vpop.permute.xlu1 %940  ;;  %v3115_v20 = vmax.f32 %v2310_v29, 0.0 }
 0x19b   :  { %v1732_v17 = vpack.c.bf16 %v1212_v60, %v1212_v60  ;;  %v1733_v9 = vpack.c.bf16 %v1213_v38, %v1213_v38  ;;  %v1114_v32 = vadd.f32 %v939_v16, %v3108_v41  ;;  %v1115_v49 = vadd.f32 %v941_v62, %v3109_v4 }
 0x19d   :  { %1533 = vst.msk [vmem:[%s2975_s4 + $0xc8] sm:$0xf] %vm1482_vm1, %v1732_v17  ;;  %1534 = vst.msk [vmem:[%s2975_s4 + $0xcc] sm:$0xf] %vm1482_vm1, %v1733_v9  ;;  %v1178_v35 = vmax.f32 %v1114_v32, 0.0  ;;  %v1179_v47 = vmax.f32 %v1115_v49, 0.0 }
 0x19e   :  { %v1003_v25 = vpop.permute.xlu0 %1002  ;;  %v1005_v50 = vpop.permute.xlu1 %1004  ;;  %v3116_v17 = vmax.f32 %v2290_v10, 0.0  ;;  %v3117_v9 = vmax.f32 %v2307_v57, 0.0 }
 0x19f   :  { %v1698_v23 = vpack.c.bf16 %v1178_v35, %v1178_v35  ;;  %v1699_v18 = vpack.c.bf16 %v1179_v47, %v1179_v47  ;;  %v1146_v63 = vadd.f32 %v1003_v25, %v3110_v56  ;;  %v1147_v8 = vadd.f32 %v1005_v50, %v3111_v40 }
 0x1a0   :  { %v3118_v25 = vmax.f32 %v2294_v24, 0.0  ;;  %v3119_v50 = vmax.f32 %v2322_v43, 0.0 }
 0x1a1   :  { %1499 = vst.msk [vmem:[%s2975_s4 + $0x40] sm:$0xf] %vm1482_vm1, %v1698_v23  ;;  %1500 = vst.msk [vmem:[%s2975_s4 + $0x44] sm:$0xf] %vm1482_vm1, %v1699_v18  ;;  %v1210_v26 = vmax.f32 %v1146_v63, 0.0  ;;  %v1211_v55 = vmax.f32 %v1147_v8, 0.0 }
 0x1a2   :  { %v951_v14 = vpop.permute.xlu0 %950  ;;  %v953_v30 = vpop.permute.xlu1 %952 }
 0x1a3   :  { %v1730_v21 = vpack.c.bf16 %v1210_v26, %v1210_v26  ;;  %v1731_v1 = vpack.c.bf16 %v1211_v55, %v1211_v55  ;;  %v1120_v13 = vadd.f32 %v951_v14, %v3112_v6  ;;  %v1121_v0 = vadd.f32 %v953_v30, %v3113_v61 }
 0x1a4   :  { %v3120_v26 = vmax.f32 %v2350_v46, 0.0  ;;  %v3121_v55 = vmax.f32 %v2369_v53, 0.0  ;;  %v3122_v61 = vmax.f32 %v2354_v34, 0.0 }
 0x1a5   :  { %1531 = vst.msk [vmem:[%s2975_s4 + $0xc0] sm:$0xf] %vm1482_vm1, %v1730_v21  ;;  %1532 = vst.msk [vmem:[%s2975_s4 + $0xc4] sm:$0xf] %vm1482_vm1, %v1731_v1  ;;  %v1184_v59 = vmax.f32 %v1120_v13, 0.0  ;;  %v1185_v48 = vmax.f32 %v1121_v0, 0.0 }
 0x1a6   :  { %v1015_v12 = vpop.permute.xlu0 %1014  ;;  %v1017_v54 = vpop.permute.xlu1 %1016  ;;  %v3123_v0 = vmax.f32 %v2378_v28, 0.0 }
 0x1a7   :  { %v1704_v22 = vpack.c.bf16 %v1184_v59, %v1184_v59  ;;  %v1705_v19 = vpack.c.bf16 %v1185_v48, %v1185_v48  ;;  %v1152_v7 = vadd.f32 %v1015_v12, %v3114_v51  ;;  %v1153_v52 = vadd.f32 %v1017_v54, %v3115_v20 }
 0x1a8   :  { %v3124_v51 = vmax.f32 %v2357_v44, 0.0 }
 0x1a9   :  { %1505 = vst.msk [vmem:[%s2975_s4 + $0x58] sm:$0xf] %vm1482_vm1, %v1704_v22  ;;  %1506 = vst.msk [vmem:[%s2975_s4 + $0x5c] sm:$0xf] %vm1482_vm1, %v1705_v19  ;;  %v1216_v37 = vmax.f32 %v1152_v7, 0.0  ;;  %v1217_v60 = vmax.f32 %v1153_v52, 0.0 }
 0x1aa   :  { %v947_v38 = vpop.permute.xlu0 %946  ;;  %v949_v16 = vpop.permute.xlu1 %948  ;;  %v3125_v7 = vmax.f32 %v2375_v5, 0.0 }
 0x1ab   :  { %v1736_v62 = vpack.c.bf16 %v1216_v37, %v1216_v37  ;;  %v1737_v2 = vpack.c.bf16 %v1217_v60, %v1217_v60  ;;  %v1118_v29 = vadd.f32 %v947_v38, %v3116_v17  ;;  %v1119_v41 = vadd.f32 %v949_v16, %v3117_v9 }
 0x1ad   :  { %1537 = vst.msk [vmem:[%s2975_s4 + $0xd8] sm:$0xf] %vm1482_vm1, %v1736_v62  ;;  %1538 = vst.msk [vmem:[%s2975_s4 + $0xdc] sm:$0xf] %vm1482_vm1, %v1737_v2  ;;  %v1182_v32 = vmax.f32 %v1118_v29, 0.0  ;;  %v1183_v4 = vmax.f32 %v1119_v41, 0.0 }
 0x1ae   :  { %v1011_v49 = vpop.permute.xlu0 %1010  ;;  %v1013_v35 = vpop.permute.xlu1 %1012  ;;  %v3126_v62 = vmax.f32 %v2361_v15, 0.0  ;;  %v3127_v2 = vmax.f32 %v2390_v39, 0.0 }
 0x1af   :  { %v1702_v47 = vpack.c.bf16 %v1182_v32, %v1182_v32  ;;  %v1703_v10 = vpack.c.bf16 %v1183_v4, %v1183_v4  ;;  %v1150_v57 = vadd.f32 %v1011_v49, %v3118_v25  ;;  %v1151_v23 = vadd.f32 %v1013_v35, %v3119_v50  ;;  %v3128_v49 = vld [vmem:[#allocation12_spill] sm:$0xff] }
 0x1b0   :  { %v3129_v35 = vmax.f32 %v3128_v49, 0.0 }
 0x1b1   :  { %1503 = vst.msk [vmem:[%s2975_s4 + $0x50] sm:$0xf] %vm1482_vm1, %v1702_v47  ;;  %1504 = vst.msk [vmem:[%s2975_s4 + $0x54] sm:$0xf] %vm1482_vm1, %v1703_v10  ;;  %v1214_v18 = vmax.f32 %v1150_v57, 0.0  ;;  %v1215_v56 = vmax.f32 %v1151_v23, 0.0 }
 0x1b2   :  { %v959_v63 = vpop.permute.xlu0 %958  ;;  %v961_v40 = vpop.permute.xlu1 %960  ;;  %v3130_v47 = vld [vmem:[#allocation14_spill] sm:$0xff] }
 0x1b3   :  { %v1734_v8 = vpack.c.bf16 %v1214_v18, %v1214_v18  ;;  %v1735_v24 = vpack.c.bf16 %v1215_v56, %v1215_v56  ;;  %v1124_v43 = vadd.f32 %v959_v63, %v3120_v26  ;;  %v1125_v14 = vadd.f32 %v961_v40, %v3121_v55  ;;  %v3132_v40 = vld [vmem:[#allocation13_spill] sm:$0xff] }
 0x1b4   :  { %v3131_v10 = vmax.f32 %v3130_v47, 0.0 }
 0x1b5   :  { %1535 = vst.msk [vmem:[%s2975_s4 + $0xd0] sm:$0xf] %vm1482_vm1, %v1734_v8  ;;  %1536 = vst.msk [vmem:[%s2975_s4 + $0xd4] sm:$0xf] %vm1482_vm1, %v1735_v24  ;;  %v1188_v30 = vmax.f32 %v1124_v43, 0.0  ;;  %v1189_v21 = vmax.f32 %v1125_v14, 0.0 }
 0x1b6   :  { %v1023_v1 = vpop.permute.xlu0 %1022  ;;  %v1025_v6 = vpop.permute.xlu1 %1024  ;;  %v3133_v8 = vmax.f32 %v3132_v40, 0.0 }
 0x1b7   :  { %v1708_v13 = vpack.c.bf16 %v1188_v30, %v1188_v30  ;;  %v1709_v46 = vpack.c.bf16 %v1189_v21, %v1189_v21  ;;  %v1156_v53 = vadd.f32 %v1023_v1, %v3122_v61  ;;  %v1157_v59 = vadd.f32 %v1025_v6, %v3123_v0 }
 0x1b9   :  { %1509 = vst.msk [vmem:[%s2975_s4 + $0x68] sm:$0xf] %vm1482_vm1, %v1708_v13  ;;  %1510 = vst.msk [vmem:[%s2975_s4 + $0x6c] sm:$0xf] %vm1482_vm1, %v1709_v46  ;;  %v1220_v48 = vmax.f32 %v1156_v53, 0.0  ;;  %v1221_v12 = vmax.f32 %v1157_v59, 0.0 }
 0x1ba   :  { %v955_v54 = vpop.permute.xlu0 %954  ;;  %v957_v22 = vpop.permute.xlu1 %956 }
 0x1bb   :  { %v1740_v19 = vpack.c.bf16 %v1220_v48, %v1220_v48  ;;  %v1741_v34 = vpack.c.bf16 %v1221_v12, %v1221_v12  ;;  %v1122_v28 = vadd.f32 %v955_v54, %v3124_v51  ;;  %v1123_v20 = vadd.f32 %v957_v22, %v3125_v7 }
 0x1bd   :  { %1541 = vst.msk [vmem:[%s2975_s4 + $0xe8] sm:$0xf] %vm1482_vm1, %v1740_v19  ;;  %1542 = vst.msk [vmem:[%s2975_s4 + $0xec] sm:$0xf] %vm1482_vm1, %v1741_v34  ;;  %v1186_v52 = vmax.f32 %v1122_v28, 0.0  ;;  %v1187_v37 = vmax.f32 %v1123_v20, 0.0 }
 0x1be   :  { %v1019_v60 = vpop.permute.xlu0 %1018  ;;  %v1021_v38 = vpop.permute.xlu1 %1020 }
 0x1bf   :  { %v1706_v16 = vpack.c.bf16 %v1186_v52, %v1186_v52  ;;  %v1707_v44 = vpack.c.bf16 %v1187_v37, %v1187_v37  ;;  %v1154_v5 = vadd.f32 %v1019_v60, %v3126_v62  ;;  %v1155_v17 = vadd.f32 %v1021_v38, %v3127_v2 }
 0x1c1   :  { %1507 = vst.msk [vmem:[%s2975_s4 + $0x60] sm:$0xf] %vm1482_vm1, %v1706_v16  ;;  %1508 = vst.msk [vmem:[%s2975_s4 + $0x64] sm:$0xf] %vm1482_vm1, %v1707_v44  ;;  %v1218_v29 = vmax.f32 %v1154_v5, 0.0  ;;  %v1219_v9 = vmax.f32 %v1155_v17, 0.0 }
 0x1c2   :  { %v967_v41 = vpop.permute.xlu0 %966  ;;  %v969_v32 = vpop.permute.xlu1 %968 }
 0x1c3   :  { %v1738_v4 = vpack.c.bf16 %v1218_v29, %v1218_v29  ;;  %v1739_v15 = vpack.c.bf16 %v1219_v9, %v1219_v9  ;;  %v1128_v39 = vadd.f32 %v967_v41, %v3129_v35  ;;  %v1129_v25 = vadd.f32 %v969_v32, %v3131_v10 }
 0x1c5   :  { %1539 = vst.msk [vmem:[%s2975_s4 + $0xe0] sm:$0xf] %vm1482_vm1, %v1738_v4  ;;  %1540 = vst.msk [vmem:[%s2975_s4 + $0xe4] sm:$0xf] %vm1482_vm1, %v1739_v15  ;;  %v1192_v57 = vmax.f32 %v1128_v39, 0.0  ;;  %v1193_v50 = vmax.f32 %v1129_v25, 0.0 }
 0x1c6   :  { %v963_v23 = vpop.permute.xlu0 %962  ;;  %v965_v18 = vpop.permute.xlu1 %964 }
 0x1c7   :  { %v1712_v56 = vpack.c.bf16 %v1192_v57, %v1192_v57  ;;  %v1713_v63 = vpack.c.bf16 %v1193_v50, %v1193_v50  ;;  %v1126_v24 = vadd.f32 %v963_v23, %v3133_v8  ;;  %v1127_v26 = vadd.f32 %v965_v18, %v807_v36 }
 0x1c8   :  { %v3134_v36 = vmax.f32 %v2449_v58, 0.0 }
 0x1c9   :  { %1513 = vst.msk [vmem:[%s2975_s4 + $0x78] sm:$0xf] %vm1482_vm1, %v1712_v56  ;;  %1514 = vst.msk [vmem:[%s2975_s4 + $0x7c] sm:$0xf] %vm1482_vm1, %v1713_v63  ;;  %v1190_v43 = vmax.f32 %v1126_v24, 0.0  ;;  %v1191_v55 = vmax.f32 %v1127_v26, 0.0 }
 0x1ca   :  { %v1027_v14 = vpop.permute.xlu0 %1026  ;;  %v1029_v30 = vpop.permute.xlu1 %1028 }
 0x1cb   :  { %v1710_v21 = vpack.c.bf16 %v1190_v43, %v1190_v43  ;;  %v1711_v1 = vpack.c.bf16 %v1191_v55, %v1191_v55  ;;  %v1158_v42 = vadd.f32 %v1027_v14, %v838_v45  ;;  %v1159_v6 = vadd.f32 %v1029_v30, %v3134_v36 }
 0x1cd   :  { %1511 = vst.msk [vmem:[%s2975_s4 + $0x70] sm:$0xf] %vm1482_vm1, %v1710_v21  ;;  %1512 = vst.msk [vmem:[%s2975_s4 + $0x74] sm:$0xf] %vm1482_vm1, %v1711_v1  ;;  %v1222_v13 = vmax.f32 %v1158_v42, 0.0  ;;  %v1223_v46 = vmax.f32 %v1159_v6, 0.0 }
 0x1ce   :  { %v1031_v61 = vpop.permute.xlu0 %1030  ;;  %v1033_v53 = vpop.permute.xlu1 %1032 }
 0x1cf   :  { %v1742_v0 = vpack.c.bf16 %v1222_v13, %v1222_v13  ;;  %v1743_v27 = vpack.c.bf16 %v1223_v46, %v1223_v46  ;;  %v1160_v45 = vadd.f32 %v1031_v61, %v840_v11  ;;  %v1161_v58 = vadd.f32 %v1033_v53, %v841_v33 }
 0x1d1   :  { %1543 = vst.msk [vmem:[%s2975_s4 + $0xf0] sm:$0xf] %vm1482_vm1, %v1742_v0  ;;  %1544 = vst.msk [vmem:[%s2975_s4 + $0xf4] sm:$0xf] %vm1482_vm1, %v1743_v27  ;;  %v1224_v59 = vmax.f32 %v1160_v45, 0.0  ;;  %v1225_v48 = vmax.f32 %v1161_v58, 0.0 }
 0x1d3   :  { %v1744_v12 = vpack.c.bf16 %v1224_v59, %v1224_v59  ;;  %v1745_v54 = vpack.c.bf16 %v1225_v48, %v1225_v48 }
 0x1d5   :  { %1545 = vst.msk [vmem:[%s2975_s4 + $0xf8] sm:$0xf] %vm1482_vm1, %v1744_v12  ;;  %1546 = vst.msk [vmem:[%s2975_s4 + $0xfc] sm:$0xf] %vm1482_vm1, %v1745_v54 }

// kernel: _lambda_.9
= control target key start
LH: loop header
LB: loop body
LE: loop exit
PB: predicated region body
PF: predicated region fallthrough
CT: control target
= control target key end

     0   :  { %vm343_vm0 = vcmask 1041408   ;;  %vm246_vm1 = vcmask 31744   ;;  %vm1354_vm2 = vcmask 130048   ;;  %s2912_s1 = inlined_call_operand.vmem [shape: bf16[4,32], index: 1, kind: input, shape index: {}]   ;;  %s2913_s0 = inlined_call_operand.vmem [shape: bf16[512,4], index: 0, kind: input, shape index: {}]   ;;  %s2914_s2 = inlined_call_operand.vmem [shape: f32[1,32], index: 2, kind: input, shape index: {}]   ;;  %s2915_s3 = inlined_call_operand.vmem [shape: f32[1,32], index: 3, kind: input, shape index: {}]   ;;  %s2916_s4 = inlined_call_operand.vmem [shape: f32[512,16], index: 4, kind: input, shape index: {}]   ;;  %s2917_s5 = inlined_call_operand.vmem [shape: f32[512,16], index: 5, kind: output, shape index: {}]  }
   0x1   :  { %v85_v0 = vld [vmem:[%s2912_s1] sm:$0x3]  ;;  %v1595_v4 = vld [vmem:[%s2913_s0 + $0x8] sm:$0xff]   ;;  %v1597_v6 = vld [vmem:[%s2913_s0 + $0x10] sm:$0xff]  }
   0x2   :  { %1590 = vmatprep.subr.msk.bf16.mxu0 %vm343_vm0, %v85_v0  ;;  %1591 = vmatprep.subr.msk.bf16.mxu1 %vm343_vm0, %v85_v0  ;;  %v345_v1 = vsel %vm343_vm0, %v85_v0, 0  ;;  %v1593_v2 = vld [vmem:[%s2913_s0] sm:$0xff]   ;;  %v1596_v5 = vld [vmem:[%s2913_s0 + $0x88] sm:$0xff]   ;;  %v1599_v7 = vld [vmem:[%s2913_s0 + $0x90] sm:$0xff]  }
   0x3   :  { %1523 = vmatpush3.bf16.msra.mxu0 %v345_v1  ;;  %1589 = vmatpush3.bf16.msra.mxu1 %v345_v1  ;;  %v1594_v3 = vld [vmem:[%s2913_s0 + $0x80] sm:$0xff]   ;;  %v1598_v8 = vld [vmem:[%s2913_s0 + $0x18] sm:$0xff]   ;;  %v1602_v12 = vld [vmem:[%s2913_s0 + $0x28] sm:$0xff]  }
   0x4   :  { %1524 = vmatprep.mubr.msk.bf16.mxu0 %vm246_vm1, %v1593_v2  ;;  %1556 = vmatprep.mubr.msk.bf16.mxu1 %vm246_vm1, %v1594_v3  ;;  %v1600_v9 = vld [vmem:[%s2913_s0 + $0x98] sm:$0xff]   ;;  %v1601_v10 = vld [vmem:[%s2913_s0 + $0x20] sm:$0xff]   ;;  %v1604_v13 = vld [vmem:[%s2913_s0 + $0xa8] sm:$0xff]  }
   0x5   :  { %v1603_v11 = vld [vmem:[%s2913_s0 + $0xa0] sm:$0xff]   ;;  %v1605_v14 = vld [vmem:[%s2913_s0 + $0x30] sm:$0xff]   ;;  %v1606_v16 = vld [vmem:[%s2913_s0 + $0x38] sm:$0xff]  }
   0x6   :  { %1525 = vmatmul.mubr.msk.bf16.vlgmr.msra.gmra.mrb[0].mxu0 %vm246_vm1, %v1595_v4  ;;  %1557 = vmatmul.mubr.msk.bf16.vlgmr.msra.gmra.mrb[0].mxu1 %vm246_vm1, %v1596_v5  ;;  %v1607_v15 = vld [vmem:[%s2913_s0 + $0xb0] sm:$0xff]   ;;  %v1608_v17 = vld [vmem:[%s2913_s0 + $0xb8] sm:$0xff]   ;;  %v1609_v18 = vld [vmem:[%s2913_s0 + $0x40] sm:$0xff]  }
   0x7   :  { %1528 = vmatprep.mubr.msk.bf16.mxu0 %vm246_vm1, %v1597_v6  ;;  %1560 = vmatprep.mubr.msk.bf16.mxu1 %vm246_vm1, %v1599_v7  ;;  %v1611_v19 = vld [vmem:[%s2913_s0 + $0xc0] sm:$0xff]   ;;  %v1610_v20 = vld [vmem:[%s2913_s0 + $0x48] sm:$0xff]   ;;  %v1613_v22 = vld [vmem:[%s2913_s0 + $0x50] sm:$0xff]  }
   0x8   :  { %v1612_v21 = vld [vmem:[%s2913_s0 + $0xc8] sm:$0xff]   ;;  %v1615_v23 = vld [vmem:[%s2913_s0 + $0xd0] sm:$0xff]   ;;  %v1614_v24 = vld [vmem:[%s2913_s0 + $0x58] sm:$0xff]  }
   0x9   :  { %v1616_v25 = vld [vmem:[%s2913_s0 + $0xd8] sm:$0xff]   ;;  %v1617_v26 = vld [vmem:[%s2913_s0 + $0x60] sm:$0xff]   ;;  %v1618_v28 = vld [vmem:[%s2913_s0 + $0x68] sm:$0xff]  }
   0xa   :  { %v1619_v27 = vld [vmem:[%s2913_s0 + $0xe0] sm:$0xff]   ;;  %v1620_v29 = vld [vmem:[%s2913_s0 + $0xe8] sm:$0xff]   ;;  %v1621_v30 = vld [vmem:[%s2913_s0 + $0x70] sm:$0xff]  }
   0xb   :  { %v1623_v31 = vld [vmem:[%s2913_s0 + $0xf0] sm:$0xff]   ;;  %v1622_v32 = vld [vmem:[%s2913_s0 + $0x78] sm:$0xff]   ;;  %v1790_v34 = vld [vmem:[%s2914_s2] ss:$0 sm:$0xff] }
   0xc   :  { %v1624_v33 = vld [vmem:[%s2913_s0 + $0xf8] sm:$0xff]   ;;  %v1795_v36 = vld [vmem:[%s2915_s3] ss:$0 sm:$0xff]  ;;  %s1625_s0 = smov 112  }
   0xe   :  { %1529 = vmatmul.mubr.msk.bf16.gmra.mrb[4].mxu0 %vm246_vm1, %v1598_v8  ;;  %1561 = vmatmul.mubr.msk.bf16.gmra.mrb[4].mxu1 %vm246_vm1, %v1600_v9 }
   0xf   :  { %1532 = vmatprep.mubr.msk.bf16.mxu0 %vm246_vm1, %v1601_v10  ;;  %1564 = vmatprep.mubr.msk.bf16.mxu1 %vm246_vm1, %v1603_v11 }
  0x16   :  { %1533 = vmatmul.mubr.msk.bf16.gmra.mrb[8].mxu0 %vm246_vm1, %v1602_v12  ;;  %1565 = vmatmul.mubr.msk.bf16.gmra.mrb[8].mxu1 %vm246_vm1, %v1604_v13 }
  0x17   :  { %1536 = vmatprep.mubr.msk.bf16.mxu0 %vm246_vm1, %v1605_v14  ;;  %1568 = vmatprep.mubr.msk.bf16.mxu1 %vm246_vm1, %v1607_v15 }
  0x1e   :  { %1537 = vmatmul.mubr.msk.bf16.gmra.mrb[12].mxu0 %vm246_vm1, %v1606_v16  ;;  %1569 = vmatmul.mubr.msk.bf16.gmra.mrb[12].mxu1 %vm246_vm1, %v1608_v17 }
  0x1f   :  { %1540 = vmatprep.mubr.msk.bf16.mxu0 %vm246_vm1, %v1609_v18  ;;  %1572 = vmatprep.mubr.msk.bf16.mxu1 %vm246_vm1, %v1611_v19 }
  0x26   :  { %1541 = vmatmul.mubr.msk.bf16.gmra.mrb[16].mxu0 %vm246_vm1, %v1610_v20  ;;  %1573 = vmatmul.mubr.msk.bf16.gmra.mrb[16].mxu1 %vm246_vm1, %v1612_v21 }
  0x27   :  { %1544 = vmatprep.mubr.msk.bf16.mxu0 %vm246_vm1, %v1613_v22  ;;  %1576 = vmatprep.mubr.msk.bf16.mxu1 %vm246_vm1, %v1615_v23 }
  0x2e   :  { %1545 = vmatmul.mubr.msk.bf16.gmra.mrb[20].mxu0 %vm246_vm1, %v1614_v24  ;;  %1577 = vmatmul.mubr.msk.bf16.gmra.mrb[20].mxu1 %vm246_vm1, %v1616_v25 }
  0x2f   :  { %1548 = vmatprep.mubr.msk.bf16.mxu0 %vm246_vm1, %v1617_v26  ;;  %1580 = vmatprep.mubr.msk.bf16.mxu1 %vm246_vm1, %v1619_v27 }
  0x36   :  { %1549 = vmatmul.mubr.msk.bf16.gmra.mrb[24].mxu0 %vm246_vm1, %v1618_v28  ;;  %1581 = vmatmul.mubr.msk.bf16.gmra.mrb[24].mxu1 %vm246_vm1, %v1620_v29 }
  0x37   :  { %1552 = vmatprep.mubr.msk.bf16.mxu0 %vm246_vm1, %v1621_v30  ;;  %1584 = vmatprep.mubr.msk.bf16.mxu1 %vm246_vm1, %v1623_v31 }
  0x3e   :  { %1553 = vmatmul.mubr.msk.bf16.gmra.mrb[28].mxu0 %vm246_vm1, %v1622_v32  ;;  %1585 = vmatmul.mubr.msk.bf16.gmra.mrb[28].mxu1 %vm246_vm1, %v1624_v33 }
  0xd9   :  { %v1526_v35 = vpop.f32.mrb[0].mxu0  ;;  %v1558_v38 = vpop.f32.mrb[0].mxu1 }
  0xda   :  { %v645_v37 = vmul.f32 %v1526_v35, %v1790_v34  ;;  %v381_v39 = vpop.f32.mrb[1].mxu0  ;;  %v677_v40 = vmul.f32 %v1558_v38, %v1790_v34  ;;  %v509_v42 = vpop.f32.mrb[1].mxu1 }
  0xdb   :  { %v643_v41 = vmul.f32 %v1790_v34, %v381_v39  ;;  %v1527_v43 = vpop.f32.mrb[2].mxu0  ;;  %v1559_v45 = vpop.f32.mrb[2].mxu1  ;;  %v675_v54 = vmul.f32 %v1790_v34, %v509_v42 }
  0xdc   :  { %v646_v44 = vmul.f32 %v1527_v43, %v1790_v34  ;;  %v384_v46 = vpop.f32.mrb[3].mxu0  ;;  %v1802_v47 = vadd.f32 %v1795_v36, %v645_v37  ;;  %v512_v48 = vpop.f32.mrb[3].mxu1  ;;  %v1805_v49 = vadd.f32 %v1795_v36, %v677_v40  ;;  %v678_v51 = vmul.f32 %v1559_v45, %v1790_v34 }
  0xdd   :  { %v1813_v53 = vadd.f32 %v1795_v36, %v643_v41  ;;  %v676_v59 = vmul.f32 %v1790_v34, %v512_v48  ;;  %v1830_v63 = vadd.f32 %v1795_v36, %v675_v54  ;;  %v644_v0 = vmul.f32 %v1790_v34, %v384_v46 }
  0xde   :  { %v1808_v50 = vadd.f32 %v1795_v36, %v646_v44  ;;  %v2939_v52 = vmax.f32 %v1802_v47, 0.0  ;;  %v2938_v55 = vmax.f32 %v1805_v49, 0.0  ;;  %v1825_v58 = vadd.f32 %v1795_v36, %v678_v51 }
  0xdf   :  { %v2935_v62 = vmax.f32 %v1813_v53, 0.0  ;;  %v1841_v7 = vadd.f32 %v1795_v36, %v676_v59  ;;  %v2931_v9 = vmax.f32 %v1830_v63, 0.0  ;;  %v1846_v10 = vadd.f32 %v1795_v36, %v644_v0 }
  0xe0   :  { %910 = vrot.lane.b32.xlu1 %v2939_v52, %s1625_s0  ;;  %974 = vrot.lane.b32.xlu0 %v2938_v55, %s1625_s0  ;;  %v2937_v57 = vmax.f32 %v1808_v50, 0.0  ;;  %v2934_v6 = vmax.f32 %v1825_v58, 0.0 }
  0xe1   :  { %v1530_v56 = vpop.f32.mrb[4].mxu0  ;;  %v1562_v61 = vpop.f32.mrb[4].mxu1  ;;  %v2930_v13 = vmax.f32 %v1841_v7, 0.0  ;;  %v2928_v18 = vmax.f32 %v1846_v10, 0.0 }
  0xe2   :  { %v397_v60 = vpop.f32.mrb[5].mxu0  ;;  %v525_v2 = vpop.f32.mrb[5].mxu1  ;;  %v649_v11 = vmul.f32 %v1530_v56, %v1790_v34  ;;  %v681_v20 = vmul.f32 %v1562_v61, %v1790_v34 }
  0xe3   :  { %v1531_v1 = vpop.f32.mrb[6].mxu0  ;;  %v1563_v4 = vpop.f32.mrb[6].mxu1  ;;  %v647_v30 = vmul.f32 %v1790_v34, %v397_v60  ;;  %v679_v32 = vmul.f32 %v1790_v34, %v525_v2 }
  0xe4   :  { %912 = vrot.lane.b32.xlu1 %v2937_v57, %s1625_s0  ;;  %v400_v3 = vpop.f32.mrb[7].mxu0  ;;  %906 = vrot.lane.b32.xlu0 %v2935_v62, %s1625_s0  ;;  %v528_v5 = vpop.f32.mrb[7].mxu1  ;;  %v650_v8 = vmul.f32 %v1531_v1, %v1790_v34  ;;  %v682_v15 = vmul.f32 %v1563_v4, %v1790_v34  ;;  %v1862_v19 = vadd.f32 %v1795_v36, %v649_v11 }
  0xe5   :  { %v648_v27 = vmul.f32 %v1790_v34, %v400_v3  ;;  %v1881_v31 = vadd.f32 %v1795_v36, %v681_v20  ;;  %v680_v33 = vmul.f32 %v1790_v34, %v528_v5  ;;  %v1902_v41 = vadd.f32 %v1795_v36, %v647_v30 }
  0xe6   :  { %v1857_v14 = vadd.f32 %v1795_v36, %v650_v8  ;;  %v1876_v28 = vadd.f32 %v1795_v36, %v682_v15  ;;  %v2926_v29 = vmax.f32 %v1862_v19, 0.0  ;;  %v1917_v48 = vadd.f32 %v1795_v36, %v679_v32 }
  0xe7   :  { %v1894_v37 = vadd.f32 %v1795_v36, %v648_v27  ;;  %v2924_v42 = vmax.f32 %v1881_v31, 0.0  ;;  %v1920_v51 = vadd.f32 %v1795_v36, %v680_v33  ;;  %v2920_v61 = vmax.f32 %v1902_v41, 0.0 }
  0xe8   :  { %976 = vrot.lane.b32.xlu1 %v2934_v6, %s1625_s0  ;;  %970 = vrot.lane.b32.xlu0 %v2931_v9, %s1625_s0  ;;  %v2927_v26 = vmax.f32 %v1857_v14, 0.0  ;;  %v2925_v38 = vmax.f32 %v1876_v28, 0.0  ;;  %v2919_v2 = vmax.f32 %v1917_v48, 0.0 }
  0xe9   :  { %v1534_v12 = vpop.f32.mrb[8].mxu0  ;;  %v1566_v17 = vpop.f32.mrb[8].mxu1  ;;  %v2922_v56 = vmax.f32 %v1894_v37, 0.0  ;;  %v2918_v3 = vmax.f32 %v1920_v51, 0.0 }
  0xea   :  { %v413_v16 = vpop.f32.mrb[9].mxu0  ;;  %v541_v22 = vpop.f32.mrb[9].mxu1  ;;  %v653_v59 = vmul.f32 %v1534_v12, %v1790_v34  ;;  %v685_v0 = vmul.f32 %v1566_v17, %v1790_v34 }
  0xeb   :  { %v1535_v21 = vpop.f32.mrb[10].mxu0  ;;  %v1567_v24 = vpop.f32.mrb[10].mxu1  ;;  %v651_v4 = vmul.f32 %v1790_v34, %v413_v16  ;;  %v683_v12 = vmul.f32 %v1790_v34, %v541_v22 }
  0xec   :  { %972 = vrot.lane.b32.xlu1 %v2930_v13, %s1625_s0  ;;  %v416_v23 = vpop.f32.mrb[11].mxu0  ;;  %908 = vrot.lane.b32.xlu0 %v2928_v18, %s1625_s0  ;;  %v1871_v25 = vpop.f32.mrb[11].mxu1  ;;  %v654_v60 = vmul.f32 %v1535_v21, %v1790_v34  ;;  %v686_v1 = vmul.f32 %v1567_v24, %v1790_v34  ;;  %v1943_v8 = vadd.f32 %v1795_v36, %v653_v59 }
  0xed   :  { %v652_v21 = vmul.f32 %v1790_v34, %v416_v23  ;;  %v1952_v16 = vadd.f32 %v1795_v36, %v685_v0 }
  0xee   :  { %2990 = vst [vmem:[#allocation2_spill] sm:$0xff] %v1943_v8  ;;  %v1946_v11 = vadd.f32 %v1795_v36, %v654_v60  ;;  %v1957_v33 = vadd.f32 %v1795_v36, %v686_v1 }
  0xef   :  { %2991 = vst [vmem:[#allocation3_spill] sm:$0xff] %v1952_v16 }
  0xf0   :  { %920 = vrot.lane.b32.xlu1 %v2927_v26, %s1625_s0  ;;  %918 = vrot.lane.b32.xlu0 %v2926_v29, %s1625_s0  ;;  %2992 = vst [vmem:[#allocation4_spill] sm:$0xff] %v1957_v33 }
  0xf1   :  { %v1891_v35 = vpop.f32.mrb[12].mxu0  ;;  %v1899_v40 = vpop.f32.mrb[12].mxu1 }
  0xf2   :  { %v1897_v39 = vpop.f32.mrb[13].mxu0  ;;  %v1907_v44 = vpop.f32.mrb[13].mxu1 }
  0xf3   :  { %v1905_v43 = vpop.f32.mrb[14].mxu0  ;;  %v1914_v46 = vpop.f32.mrb[14].mxu1 }
  0xf4   :  { %984 = vrot.lane.b32.xlu1 %v2925_v38, %s1625_s0  ;;  %v1912_v45 = vpop.f32.mrb[15].mxu0  ;;  %982 = vrot.lane.b32.xlu0 %v2924_v42, %s1625_s0  ;;  %v1925_v54 = vpop.f32.mrb[15].mxu1 }
  0xf8   :  { %916 = vrot.lane.b32.xlu1 %v2922_v56, %s1625_s0  ;;  %914 = vrot.lane.b32.xlu0 %v2920_v61, %s1625_s0  ;;  %v1996_v61 = vadd.f32 %v1795_v36, %v652_v21  ;;  %v2929_v21 = vmax.f32 %v1957_v33, 0.0 }
  0xf9   :  { %v1542_v5 = vpop.f32.mrb[16].mxu0  ;;  %v1574_v20 = vpop.f32.mrb[16].mxu1 }
  0xfa   :  { %v661_v15 = vmul.f32 %v1542_v5, %v1790_v34  ;;  %v445_v17 = vpop.f32.mrb[17].mxu0  ;;  %v693_v30 = vmul.f32 %v1574_v20, %v1790_v34  ;;  %v573_v32 = vpop.f32.mrb[17].mxu1  ;;  %2993 = vst [vmem:[#allocation5_spill] sm:$0xff] %v1996_v61 }
  0xfb   :  { %v659_v24 = vmul.f32 %v1790_v34, %v445_v17  ;;  %v1543_v27 = vpop.f32.mrb[18].mxu0  ;;  %v691_v60 = vmul.f32 %v1790_v34, %v573_v32  ;;  %v1575_v0 = vpop.f32.mrb[18].mxu1 }
  0xfc   :  { %980 = vrot.lane.b32.xlu1 %v2918_v3, %s1625_s0  ;;  %v1963_v22 = vadd.f32 %v1795_v36, %v661_v15  ;;  %v662_v23 = vmul.f32 %v1543_v27, %v1790_v34  ;;  %v448_v59 = vpop.f32.mrb[19].mxu0  ;;  %978 = vrot.lane.b32.xlu0 %v2919_v2, %s1625_s0  ;;  %v1975_v17 = vadd.f32 %v1795_v36, %v693_v30  ;;  %v576_v20 = vpop.f32.mrb[19].mxu1  ;;  %v2921_v27 = vmax.f32 %v1946_v11, 0.0 }
  0xfd   :  { %v1971_v1 = vadd.f32 %v1795_v36, %v659_v24  ;;  %v660_v5 = vmul.f32 %v1790_v34, %v448_v59  ;;  %v694_v15 = vmul.f32 %v1575_v0, %v1790_v34  ;;  %v1983_v3 = vadd.f32 %v1795_v36, %v691_v60 }
  0xfe   :  { %v1980_v32 = vadd.f32 %v1795_v36, %v662_v23  ;;  %v692_v2 = vmul.f32 %v1790_v34, %v576_v20  ;;  %v2923_v24 = vmax.f32 %v1943_v8, 0.0  ;;  %v684_v59 = vmul.f32 %v1790_v34, %v1871_v25 }
  0xff   :  { %v1990_v30 = vadd.f32 %v1795_v36, %v660_v5  ;;  %v1993_v0 = vadd.f32 %v1795_v36, %v694_v15  ;;  %v2008_v60 = vadd.f32 %v1795_v36, %v651_v4  ;;  %v2011_v5 = vadd.f32 %v1795_v36, %v683_v12 }
 0x100   :  { %928 = vrot.lane.b32.xlu1 %v2921_v27, %s1625_s0  ;;  %v2002_v23 = vadd.f32 %v1795_v36, %v692_v2  ;;  %926 = vrot.lane.b32.xlu0 %v2923_v24, %s1625_s0  ;;  %v2932_v2 = vmax.f32 %v1952_v16, 0.0  ;;  %v2017_v56 = vadd.f32 %v1795_v36, %v684_v59  ;;  %v2933_v12 = vmax.f32 %v1996_v61, 0.0 }
 0x101   :  { %v1546_v25 = vpop.f32.mrb[20].mxu0  ;;  %2994 = vst [vmem:[#allocation6_spill] sm:$0xff] %v2008_v60  ;;  %2995 = vst [vmem:[#allocation7_spill] sm:$0xff] %v2011_v5  ;;  %v1578_v27 = vpop.f32.mrb[20].mxu1 }
 0x102   :  { %v665_v15 = vmul.f32 %v1546_v25, %v1790_v34  ;;  %v461_v20 = vpop.f32.mrb[21].mxu0  ;;  %2996 = vst [vmem:[#allocation8_spill] sm:$0xff] %v2017_v56  ;;  %v697_v4 = vmul.f32 %v1578_v27, %v1790_v34  ;;  %v589_v38 = vpop.f32.mrb[21].mxu1 }
 0x103   :  { %v663_v24 = vmul.f32 %v1790_v34, %v461_v20  ;;  %v1547_v42 = vpop.f32.mrb[22].mxu0  ;;  %v695_v59 = vmul.f32 %v1790_v34, %v589_v38  ;;  %v1579_v18 = vpop.f32.mrb[22].mxu1 }
 0x104   :  { %992 = vrot.lane.b32.xlu1 %v2929_v21, %s1625_s0  ;;  %v2026_v25 = vadd.f32 %v1795_v36, %v665_v15  ;;  %v666_v29 = vmul.f32 %v1547_v42, %v1790_v34  ;;  %v464_v26 = vpop.f32.mrb[23].mxu0  ;;  %990 = vrot.lane.b32.xlu0 %v2932_v2, %s1625_s0  ;;  %v2038_v21 = vadd.f32 %v1795_v36, %v697_v4  ;;  %v592_v13 = vpop.f32.mrb[23].mxu1  ;;  %v2936_v2 = vmax.f32 %v2008_v60, 0.0 }
 0x105   :  { %v2034_v27 = vadd.f32 %v1795_v36, %v663_v24  ;;  %v664_v20 = vmul.f32 %v1790_v34, %v464_v26  ;;  %v698_v15 = vmul.f32 %v1579_v18, %v1790_v34  ;;  %v658_v42 = vmul.f32 %v1905_v43, %v1790_v34 }
 0x106   :  { %v2044_v38 = vadd.f32 %v1795_v36, %v666_v29  ;;  %v2047_v9 = vadd.f32 %v1795_v36, %v695_v59  ;;  %v696_v24 = vmul.f32 %v1790_v34, %v592_v13  ;;  %v657_v26 = vmul.f32 %v1891_v35, %v1790_v34 }
 0x107   :  { %v2054_v4 = vadd.f32 %v1795_v36, %v664_v20  ;;  %v2057_v18 = vadd.f32 %v1795_v36, %v698_v15  ;;  %v690_v29 = vmul.f32 %v1914_v46, %v1790_v34  ;;  %v2943_v43 = vmax.f32 %v2011_v5, 0.0 }
 0x108   :  { %924 = vrot.lane.b32.xlu1 %v2933_v12, %s1625_s0  ;;  %v2065_v13 = vadd.f32 %v1795_v36, %v696_v24  ;;  %v2940_v35 = vmax.f32 %v2017_v56, 0.0  ;;  %922 = vrot.lane.b32.xlu0 %v2936_v2, %s1625_s0  ;;  %v655_v20 = vmul.f32 %v1790_v34, %v1897_v39  ;;  %v2075_v15 = vadd.f32 %v1795_v36, %v658_v42 }
 0x109   :  { %v1550_v59 = vpop.f32.mrb[24].mxu0  ;;  %v689_v46 = vmul.f32 %v1899_v40, %v1790_v34  ;;  %v1582_v6 = vpop.f32.mrb[24].mxu1  ;;  %v2081_v62 = vadd.f32 %v1795_v36, %v657_v26  ;;  %v656_v2 = vmul.f32 %v1790_v34, %v1912_v45  ;;  %v2088_v52 = vadd.f32 %v1795_v36, %v690_v29 }
 0x10a   :  { %2997 = vst [vmem:[#allocation9_spill] sm:$0xff] %v2075_v15  ;;  %v669_v24 = vmul.f32 %v1550_v59, %v1790_v34  ;;  %v477_v12 = vpop.f32.mrb[25].mxu0  ;;  %v701_v39 = vmul.f32 %v1582_v6, %v1790_v34  ;;  %v605_v42 = vpop.f32.mrb[25].mxu1 }
 0x10b   :  { %2998 = vst [vmem:[#allocation10_spill] sm:$0xff] %v2081_v62  ;;  %v667_v57 = vmul.f32 %v1790_v34, %v477_v12  ;;  %v1551_v55 = vpop.f32.mrb[26].mxu0  ;;  %2999 = vst [vmem:[#allocation11_spill] sm:$0xff] %v2088_v52  ;;  %v699_v45 = vmul.f32 %v1790_v34, %v605_v42  ;;  %v1583_v12 = vpop.f32.mrb[26].mxu1 }
 0x10c   :  { %988 = vrot.lane.b32.xlu1 %v2940_v35, %s1625_s0  ;;  %v2094_v40 = vadd.f32 %v1795_v36, %v669_v24  ;;  %v670_v26 = vmul.f32 %v1551_v55, %v1790_v34  ;;  %v480_v59 = vpop.f32.mrb[27].mxu0  ;;  %986 = vrot.lane.b32.xlu0 %v2943_v43, %s1625_s0  ;;  %v2106_v35 = vadd.f32 %v1795_v36, %v701_v39  ;;  %v608_v56 = vpop.f32.mrb[27].mxu1  ;;  %v2945_v55 = vmax.f32 %v2075_v15, 0.0 }
 0x10d   :  { %v2102_v6 = vadd.f32 %v1795_v36, %v667_v57  ;;  %v668_v29 = vmul.f32 %v1790_v34, %v480_v59  ;;  %v702_v24 = vmul.f32 %v1583_v12, %v1790_v34  ;;  %v2114_v60 = vadd.f32 %v1795_v36, %v699_v45 }
 0x10e   :  { %v2111_v42 = vadd.f32 %v1795_v36, %v670_v26  ;;  %v700_v43 = vmul.f32 %v1790_v34, %v608_v56  ;;  %v2947_v57 = vmax.f32 %v2081_v62, 0.0  ;;  %v2119_v59 = vadd.f32 %v1795_v36, %v689_v46 }
 0x10f   :  { %3000 = vst [vmem:[#allocation12_spill] sm:$0xff] %v2114_v60  ;;  %v2122_v39 = vadd.f32 %v1795_v36, %v668_v29  ;;  %v2125_v12 = vadd.f32 %v1795_v36, %v702_v24  ;;  %v688_v26 = vmul.f32 %v1790_v34, %v1925_v54  ;;  %v2139_v45 = vadd.f32 %v1795_v36, %v656_v2 }
 0x110   :  { %936 = vrot.lane.b32.xlu1 %v2945_v55, %s1625_s0  ;;  %v2133_v56 = vadd.f32 %v1795_v36, %v700_v43  ;;  %934 = vrot.lane.b32.xlu0 %v2947_v57, %s1625_s0  ;;  %v687_v29 = vmul.f32 %v1790_v34, %v1907_v44  ;;  %v2952_v54 = vmax.f32 %v2088_v52, 0.0  ;;  %v2146_v43 = vadd.f32 %v1795_v36, %v655_v20 }
 0x111   :  { %v1554_v46 = vpop.f32.mrb[28].mxu0  ;;  %v1586_v55 = vpop.f32.mrb[28].mxu1  ;;  %v2152_v16 = vadd.f32 %v1795_v36, %v688_v26 }
 0x112   :  { %v673_v24 = vmul.f32 %v1554_v46, %v1790_v34  ;;  %v493_v15 = vpop.f32.mrb[29].mxu0  ;;  %v705_v2 = vmul.f32 %v1586_v55, %v1790_v34  ;;  %v621_v61 = vpop.f32.mrb[29].mxu1  ;;  %v3002_v55 = vmax.f32 %v2119_v59, 0.0 }
 0x113   :  { %v671_v57 = vmul.f32 %v1790_v34, %v493_v15  ;;  %v1555_v62 = vpop.f32.mrb[30].mxu0  ;;  %v703_v5 = vmul.f32 %v1790_v34, %v621_v61  ;;  %v1587_v15 = vpop.f32.mrb[30].mxu1 }
 0x114   :  { %1000 = vrot.lane.b32.xlu1 %v2952_v54, %s1625_s0  ;;  %v2158_v44 = vadd.f32 %v1795_v36, %v673_v24  ;;  %v674_v20 = vmul.f32 %v1555_v62, %v1790_v34  ;;  %v496_v46 = vpop.f32.mrb[31].mxu0  ;;  %998 = vrot.lane.b32.xlu0 %v3002_v55, %s1625_s0  ;;  %v2170_v54 = vadd.f32 %v1795_v36, %v705_v2  ;;  %v624_v52 = vpop.f32.mrb[31].mxu1  ;;  %v2983_v62 = vmax.f32 %v2139_v45, 0.0 }
 0x115   :  { %v2166_v26 = vadd.f32 %v1795_v36, %v671_v57  ;;  %v672_v33 = vmul.f32 %v1790_v34, %v496_v46  ;;  %v706_v24 = vmul.f32 %v1587_v15, %v1790_v34  ;;  %v2178_v8 = vadd.f32 %v1795_v36, %v703_v5 }
 0x116   :  { %3001 = vst [vmem:[#allocation13_spill] sm:$0xff] %v2158_v44  ;;  %v2175_v61 = vadd.f32 %v1795_v36, %v674_v20  ;;  %v704_v55 = vmul.f32 %v1790_v34, %v624_v52  ;;  %v2982_v57 = vmax.f32 %v2146_v43, 0.0  ;;  %v2183_v46 = vadd.f32 %v1795_v36, %v687_v29 }
 0x117   :  { %v2186_v2 = vadd.f32 %v1795_v36, %v672_v33  ;;  %v2189_v15 = vadd.f32 %v1795_v36, %v706_v24  ;;  %v2980_v34 = vmax.f32 %v2152_v16, 0.0  ;;  %v2977_v33 = vmax.f32 %v1980_v32, 0.0 }
 0x118   :  { %3003 = vst [vmem:[#allocation14_spill] sm:$0xff] %v2175_v61  ;;  %932 = vrot.lane.b32.xlu1 %v2983_v62, %s1625_s0  ;;  %v2195_v5 = vadd.f32 %v1795_v36, %v704_v55  ;;  %930 = vrot.lane.b32.xlu0 %v2982_v57, %s1625_s0  ;;  %v2979_v52 = vmax.f32 %v2183_v46, 0.0  ;;  %v2955_v36 = vmax.f32 %v1963_v22, 0.0  ;;  %v2956_v29 = vmax.f32 %v1993_v0, 0.0 }
 0x119   :  { %v2957_v20 = vmax.f32 %v1975_v17, 0.0  ;;  %v2958_v24 = vmax.f32 %v1990_v30, 0.0  ;;  %v2959_v55 = vmax.f32 %v1971_v1, 0.0  ;;  %v3005_v62 = vmax.f32 %v1805_v49, 0.0 }
 0x11a   :  { %v838_v49 = vmax.f32 %v2178_v8, 0.0  ;;  %v1224_v8 = vld [vmem:[%s2916_s4 + $0x1f0] sm:$0xff] }
 0x11c   :  { %996 = vrot.lane.b32.xlu1 %v2980_v34, %s1625_s0  ;;  %994 = vrot.lane.b32.xlu0 %v2979_v52, %s1625_s0  ;;  %v1196_v52 = vld [vmem:[%s2916_s4 + $0x110] sm:$0xff] }
 0x120   :  { %944 = vrot.lane.b32.xlu1 %v2977_v33, %s1625_s0  ;;  %942 = vrot.lane.b32.xlu0 %v2955_v36, %s1625_s0  ;;  %v2960_v36 = vmax.f32 %v2002_v23, 0.0 }
 0x124   :  { %1008 = vrot.lane.b32.xlu1 %v2956_v29, %s1625_s0  ;;  %1006 = vrot.lane.b32.xlu0 %v2957_v20, %s1625_s0  ;;  %v2961_v29 = vmax.f32 %v1983_v3, 0.0  ;;  %v2962_v20 = vmax.f32 %v2044_v38, 0.0 }
 0x128   :  { %940 = vrot.lane.b32.xlu1 %v2958_v24, %s1625_s0  ;;  %938 = vrot.lane.b32.xlu0 %v2959_v55, %s1625_s0  ;;  %v2963_v24 = vmax.f32 %v2026_v25, 0.0  ;;  %v2964_v55 = vmax.f32 %v2057_v18, 0.0 }
 0x12c   :  { %1004 = vrot.lane.b32.xlu1 %v2960_v36, %s1625_s0  ;;  %1002 = vrot.lane.b32.xlu0 %v2961_v29, %s1625_s0  ;;  %v2965_v36 = vmax.f32 %v2038_v21, 0.0  ;;  %v2966_v29 = vmax.f32 %v2054_v4, 0.0 }
 0x130   :  { %952 = vrot.lane.b32.xlu1 %v2962_v20, %s1625_s0  ;;  %950 = vrot.lane.b32.xlu0 %v2963_v24, %s1625_s0  ;;  %v2967_v20 = vmax.f32 %v2034_v27, 0.0  ;;  %v2968_v24 = vmax.f32 %v2065_v13, 0.0 }
 0x134   :  { %1016 = vrot.lane.b32.xlu1 %v2964_v55, %s1625_s0  ;;  %1014 = vrot.lane.b32.xlu0 %v2965_v36, %s1625_s0  ;;  %v2969_v55 = vmax.f32 %v2047_v9, 0.0  ;;  %v2970_v36 = vmax.f32 %v2111_v42, 0.0 }
 0x138   :  { %948 = vrot.lane.b32.xlu1 %v2966_v29, %s1625_s0  ;;  %946 = vrot.lane.b32.xlu0 %v2967_v20, %s1625_s0  ;;  %v2971_v29 = vmax.f32 %v2094_v40, 0.0  ;;  %v2972_v20 = vmax.f32 %v2125_v12, 0.0 }
 0x13c   :  { %1012 = vrot.lane.b32.xlu1 %v2968_v24, %s1625_s0  ;;  %1010 = vrot.lane.b32.xlu0 %v2969_v55, %s1625_s0  ;;  %v2973_v24 = vmax.f32 %v2106_v35, 0.0  ;;  %v2974_v55 = vmax.f32 %v2122_v39, 0.0 }
 0x140   :  { %960 = vrot.lane.b32.xlu1 %v2970_v36, %s1625_s0  ;;  %958 = vrot.lane.b32.xlu0 %v2971_v29, %s1625_s0  ;;  %v2975_v36 = vmax.f32 %v2102_v6, 0.0  ;;  %v2976_v29 = vmax.f32 %v2133_v56, 0.0 }
 0x144   :  { %1024 = vrot.lane.b32.xlu1 %v2972_v20, %s1625_s0  ;;  %1022 = vrot.lane.b32.xlu0 %v2973_v24, %s1625_s0  ;;  %v2978_v20 = vmax.f32 %v2114_v60, 0.0  ;;  %v2981_v24 = vmax.f32 %v2175_v61, 0.0  ;;  %v839_v61 = vmax.f32 %v2195_v5, 0.0 }
 0x148   :  { %956 = vrot.lane.b32.xlu1 %v2974_v55, %s1625_s0  ;;  %954 = vrot.lane.b32.xlu0 %v2975_v36, %s1625_s0  ;;  %v2984_v55 = vmax.f32 %v2158_v44, 0.0  ;;  %v2989_v36 = vmax.f32 %v2186_v2, 0.0 }
 0x14c   :  { %1020 = vrot.lane.b32.xlu1 %v2976_v29, %s1625_s0  ;;  %1018 = vrot.lane.b32.xlu0 %v2978_v20, %s1625_s0  ;;  %v1164_v29 = vld [vmem:[%s2916_s4 + $0x10] sm:$0xff]  ;;  %v2988_v20 = vmax.f32 %v2166_v26, 0.0 }
 0x150   :  { %968 = vrot.lane.b32.xlu1 %v2981_v24, %s1625_s0  ;;  %966 = vrot.lane.b32.xlu0 %v2984_v55, %s1625_s0  ;;  %v3004_v24 = vmax.f32 %v1802_v47, 0.0  ;;  %v1165_v47 = vld [vmem:[%s2916_s4 + $0x18] sm:$0xff] }
 0x152   :  { %v911_v33 = vpop.permute.xlu1 %910  ;;  %v975_v34 = vpop.permute.xlu0 %974 }
 0x153   :  { %v1100_v57 = vadd.f32 %v911_v33, %v3004_v24  ;;  %v1132_v55 = vadd.f32 %v975_v34, %v3005_v62 }
 0x154   :  { %964 = vrot.lane.b32.xlu1 %v2989_v36, %s1625_s0  ;;  %962 = vrot.lane.b32.xlu0 %v2988_v20, %s1625_s0  ;;  %v3007_v36 = vmax.f32 %v1813_v53, 0.0 }
 0x155   :  { %v1228_v44 = vadd.f32 %v1164_v29, %v1100_v57  ;;  %v1260_v60 = vadd.f32 %v1196_v52, %v1132_v55  ;;  %v1162_v57 = vld [vmem:[%s2916_s4] sm:$0xff]  ;;  %v3006_v29 = vmax.f32 %v1808_v50, 0.0  ;;  %v841_v50 = vmax.f32 %v2189_v15, 0.0 }
 0x156   :  { %v913_v33 = vpop.permute.xlu1 %912  ;;  %v907_v34 = vpop.permute.xlu0 %906  ;;  %v840_v55 = vmax.f32 %v2170_v54, 0.0 }
 0x157   :  { %v1292_v62 = vmax.f32 %v1228_v44, 0.0  ;;  %v1101_v24 = vadd.f32 %v913_v33, %v3006_v29  ;;  %v1324_v20 = vmax.f32 %v1260_v60, 0.0  ;;  %v1098_v52 = vadd.f32 %v907_v34, %v3007_v36  ;;  %v1197_v60 = vld [vmem:[%s2916_s4 + $0x118] sm:$0xff]  ;;  %v1194_v33 = vld [vmem:[%s2916_s4 + $0x100] sm:$0xff] }
 0x158   :  { %1028 = vrot.lane.b32.xlu1 %v839_v61, %s1625_s0  ;;  %1026 = vrot.lane.b32.xlu0 %v838_v49, %s1625_s0  ;;  %v3008_v34 = vmax.f32 %v1825_v58, 0.0 }
 0x159   :  { %1357 = vst.msk [vmem:[%s2917_s5 + $0x10] sm:$0xff] %vm1354_vm2, %v1292_v62  ;;  %v1229_v44 = vadd.f32 %v1165_v47, %v1101_v24  ;;  %1389 = vst.msk [vmem:[%s2917_s5 + $0x110] sm:$0xff] %vm1354_vm2, %v1324_v20  ;;  %v1226_v53 = vadd.f32 %v1162_v57, %v1098_v52  ;;  %v3009_v20 = vmax.f32 %v1830_v63, 0.0  ;;  %v1195_v63 = vld [vmem:[%s2916_s4 + $0x108] sm:$0xff] }
 0x15a   :  { %v977_v36 = vpop.permute.xlu1 %976  ;;  %v971_v62 = vpop.permute.xlu0 %970 }
 0x15b   :  { %v1293_v47 = vmax.f32 %v1229_v44, 0.0  ;;  %v1133_v29 = vadd.f32 %v977_v36, %v3008_v34  ;;  %v1290_v24 = vmax.f32 %v1226_v53, 0.0  ;;  %v1130_v57 = vadd.f32 %v971_v62, %v3009_v20 }
 0x15c   :  { %1032 = vrot.lane.b32.xlu1 %v841_v50, %s1625_s0  ;;  %1030 = vrot.lane.b32.xlu0 %v840_v55, %s1625_s0  ;;  %v3010_v36 = vmax.f32 %v1841_v7, 0.0 }
 0x15d   :  { %1358 = vst.msk [vmem:[%s2917_s5 + $0x18] sm:$0xff] %vm1354_vm2, %v1293_v47  ;;  %v1261_v52 = vadd.f32 %v1197_v60, %v1133_v29  ;;  %1355 = vst.msk [vmem:[%s2917_s5] sm:$0xff] %vm1354_vm2, %v1290_v24  ;;  %v1258_v58 = vadd.f32 %v1194_v33, %v1130_v57  ;;  %v1163_v60 = vld [vmem:[%s2916_s4 + $0x8] sm:$0xff]  ;;  %v3011_v29 = vmax.f32 %v1846_v10, 0.0  ;;  %v1169_v24 = vld [vmem:[%s2916_s4 + $0x38] sm:$0xff] }
 0x15e   :  { %v973_v44 = vpop.permute.xlu1 %972  ;;  %v909_v62 = vpop.permute.xlu0 %908  ;;  %v1168_v10 = vld [vmem:[%s2916_s4 + $0x30] sm:$0xff] }
 0x15f   :  { %v1325_v53 = vmax.f32 %v1261_v52, 0.0  ;;  %v1131_v47 = vadd.f32 %v973_v44, %v3010_v36  ;;  %v1322_v34 = vmax.f32 %v1258_v58, 0.0  ;;  %v1099_v20 = vadd.f32 %v909_v62, %v3011_v29 }
 0x160   :  { %v3012_v44 = vmax.f32 %v1857_v14, 0.0  ;;  %v3013_v36 = vmax.f32 %v1862_v19, 0.0  ;;  %v1201_v14 = vld [vmem:[%s2916_s4 + $0x138] sm:$0xff]  ;;  %v1200_v19 = vld [vmem:[%s2916_s4 + $0x130] sm:$0xff] }
 0x161   :  { %1390 = vst.msk [vmem:[%s2917_s5 + $0x118] sm:$0xff] %vm1354_vm2, %v1325_v53  ;;  %v1259_v33 = vadd.f32 %v1195_v63, %v1131_v47  ;;  %1387 = vst.msk [vmem:[%s2917_s5 + $0x100] sm:$0xff] %vm1354_vm2, %v1322_v34  ;;  %v1227_v7 = vadd.f32 %v1163_v60, %v1099_v20 }
 0x162   :  { %v921_v57 = vpop.permute.xlu1 %920  ;;  %v919_v58 = vpop.permute.xlu0 %918 }
 0x163   :  { %v1323_v52 = vmax.f32 %v1259_v33, 0.0  ;;  %v1105_v63 = vadd.f32 %v921_v57, %v3012_v44  ;;  %v1291_v53 = vmax.f32 %v1227_v7, 0.0  ;;  %v1104_v47 = vadd.f32 %v919_v58, %v3013_v36 }
 0x164   :  { %v3014_v33 = vmax.f32 %v1876_v28, 0.0  ;;  %v3015_v57 = vmax.f32 %v1881_v31, 0.0  ;;  %v1167_v28 = vld [vmem:[%s2916_s4 + $0x28] sm:$0xff]  ;;  %v1166_v31 = vld [vmem:[%s2916_s4 + $0x20] sm:$0xff]  ;;  %v3016_v36 = vmax.f32 %v1894_v37, 0.0 }
 0x165   :  { %1388 = vst.msk [vmem:[%s2917_s5 + $0x108] sm:$0xff] %vm1354_vm2, %v1323_v52  ;;  %v1233_v60 = vadd.f32 %v1169_v24, %v1105_v63  ;;  %1356 = vst.msk [vmem:[%s2917_s5 + $0x8] sm:$0xff] %vm1354_vm2, %v1291_v53  ;;  %v1232_v62 = vadd.f32 %v1168_v10, %v1104_v47  ;;  %v1199_v37 = vld [vmem:[%s2916_s4 + $0x128] sm:$0xff] }
 0x166   :  { %v985_v34 = vpop.permute.xlu1 %984  ;;  %v983_v20 = vpop.permute.xlu0 %982 }
 0x167   :  { %v1297_v29 = vmax.f32 %v1233_v60, 0.0  ;;  %v1137_v7 = vadd.f32 %v985_v34, %v3014_v33  ;;  %v1296_v24 = vmax.f32 %v1232_v62, 0.0  ;;  %v1136_v52 = vadd.f32 %v983_v20, %v3015_v57 }
 0x168   :  { %v3017_v62 = vmax.f32 %v1902_v41, 0.0  ;;  %v1198_v41 = vld [vmem:[%s2916_s4 + $0x120] sm:$0xff] }
 0x169   :  { %1362 = vst.msk [vmem:[%s2917_s5 + $0x38] sm:$0xff] %vm1354_vm2, %v1297_v29  ;;  %v1265_v10 = vadd.f32 %v1201_v14, %v1137_v7  ;;  %1361 = vst.msk [vmem:[%s2917_s5 + $0x30] sm:$0xff] %vm1354_vm2, %v1296_v24  ;;  %v1264_v58 = vadd.f32 %v1200_v19, %v1136_v52  ;;  %v3018_v7 = vmax.f32 %v1920_v51, 0.0  ;;  %v3019_v52 = vmax.f32 %v1917_v48, 0.0  ;;  %v1173_v51 = vld [vmem:[%s2916_s4 + $0x58] sm:$0xff]  ;;  %v1172_v48 = vld [vmem:[%s2916_s4 + $0x50] sm:$0xff] }
 0x16a   :  { %v917_v44 = vpop.permute.xlu1 %916  ;;  %v915_v53 = vpop.permute.xlu0 %914 }
 0x16b   :  { %v1329_v63 = vmax.f32 %v1265_v10, 0.0  ;;  %v1103_v47 = vadd.f32 %v917_v44, %v3016_v36  ;;  %v1328_v60 = vmax.f32 %v1264_v58, 0.0  ;;  %v1102_v14 = vadd.f32 %v915_v53, %v3017_v62 }
 0x16c   :  { %v3020_v53 = vmax.f32 %v1946_v11, 0.0  ;;  %v1205_v11 = vld [vmem:[%s2916_s4 + $0x158] sm:$0xff] }
 0x16d   :  { %1394 = vst.msk [vmem:[%s2917_s5 + $0x138] sm:$0xff] %vm1354_vm2, %v1329_v63  ;;  %v1231_v34 = vadd.f32 %v1167_v28, %v1103_v47  ;;  %1393 = vst.msk [vmem:[%s2917_s5 + $0x130] sm:$0xff] %vm1354_vm2, %v1328_v60  ;;  %v1230_v29 = vadd.f32 %v1166_v31, %v1102_v14  ;;  %v3021_v60 = vld [vmem:[#allocation2_spill] sm:$0xff] }
 0x16e   :  { %v981_v19 = vpop.permute.xlu1 %980  ;;  %v979_v33 = vpop.permute.xlu0 %978  ;;  %v3022_v62 = vmax.f32 %v3021_v60, 0.0 }
 0x16f   :  { %v1295_v20 = vmax.f32 %v1231_v34, 0.0  ;;  %v1135_v24 = vadd.f32 %v981_v19, %v3018_v7  ;;  %v1294_v57 = vmax.f32 %v1230_v29, 0.0  ;;  %v1134_v10 = vadd.f32 %v979_v33, %v3019_v52  ;;  %v3023_v33 = vld [vmem:[#allocation4_spill] sm:$0xff]  ;;  %v3025_v52 = vld [vmem:[#allocation3_spill] sm:$0xff] }
 0x170   :  { %v3024_v7 = vmax.f32 %v3023_v33, 0.0  ;;  %v1202_v33 = vld [vmem:[%s2916_s4 + $0x140] sm:$0xff] }
 0x171   :  { %1360 = vst.msk [vmem:[%s2917_s5 + $0x28] sm:$0xff] %vm1354_vm2, %v1295_v20  ;;  %v1263_v58 = vadd.f32 %v1199_v37, %v1135_v24  ;;  %1359 = vst.msk [vmem:[%s2917_s5 + $0x20] sm:$0xff] %vm1354_vm2, %v1294_v57  ;;  %v1262_v28 = vadd.f32 %v1198_v41, %v1134_v10  ;;  %v1204_v20 = vld [vmem:[%s2916_s4 + $0x150] sm:$0xff]  ;;  %v3026_v10 = vmax.f32 %v3025_v52, 0.0 }
 0x172   :  { %v929_v44 = vpop.permute.xlu1 %928  ;;  %v927_v31 = vpop.permute.xlu0 %926 }
 0x173   :  { %v1327_v63 = vmax.f32 %v1263_v58, 0.0  ;;  %v1109_v36 = vadd.f32 %v929_v44, %v3020_v53  ;;  %v1326_v47 = vmax.f32 %v1262_v28, 0.0  ;;  %v1108_v14 = vadd.f32 %v927_v31, %v3022_v62  ;;  %v1171_v44 = vld [vmem:[%s2916_s4 + $0x48] sm:$0xff]  ;;  %v1170_v31 = vld [vmem:[%s2916_s4 + $0x40] sm:$0xff] }
 0x175   :  { %1392 = vst.msk [vmem:[%s2917_s5 + $0x128] sm:$0xff] %vm1354_vm2, %v1327_v63  ;;  %v1237_v34 = vadd.f32 %v1173_v51, %v1109_v36  ;;  %1391 = vst.msk [vmem:[%s2917_s5 + $0x120] sm:$0xff] %vm1354_vm2, %v1326_v47  ;;  %v1236_v29 = vadd.f32 %v1172_v48, %v1108_v14  ;;  %v3027_v36 = vld [vmem:[#allocation5_spill] sm:$0xff]  ;;  %v3029_v14 = vld [vmem:[#allocation6_spill] sm:$0xff] }
 0x176   :  { %v993_v37 = vpop.permute.xlu1 %992  ;;  %v991_v41 = vpop.permute.xlu0 %990  ;;  %v3028_v47 = vmax.f32 %v3027_v36, 0.0  ;;  %v1176_v36 = vld [vmem:[%s2916_s4 + $0x70] sm:$0xff] }
 0x177   :  { %v1301_v19 = vmax.f32 %v1237_v34, 0.0  ;;  %v1141_v24 = vadd.f32 %v993_v37, %v3024_v7  ;;  %v1300_v57 = vmax.f32 %v1236_v29, 0.0  ;;  %v1140_v58 = vadd.f32 %v991_v41, %v3026_v10 }
 0x178   :  { %v3030_v34 = vmax.f32 %v3029_v14, 0.0 }
 0x179   :  { %1366 = vst.msk [vmem:[%s2917_s5 + $0x58] sm:$0xff] %vm1354_vm2, %v1301_v19  ;;  %v1269_v28 = vadd.f32 %v1205_v11, %v1141_v24  ;;  %1365 = vst.msk [vmem:[%s2917_s5 + $0x50] sm:$0xff] %vm1354_vm2, %v1300_v57  ;;  %v1268_v51 = vadd.f32 %v1204_v20, %v1140_v58  ;;  %v1203_v19 = vld [vmem:[%s2916_s4 + $0x148] sm:$0xff]  ;;  %v3031_v24 = vld [vmem:[#allocation8_spill] sm:$0xff] }
 0x17a   :  { %v925_v63 = vpop.permute.xlu1 %924  ;;  %v923_v53 = vpop.permute.xlu0 %922  ;;  %v3032_v57 = vmax.f32 %v3031_v24, 0.0  ;;  %v3033_v58 = vld [vmem:[#allocation7_spill] sm:$0xff]  ;;  %v1208_v24 = vld [vmem:[%s2916_s4 + $0x170] sm:$0xff] }
 0x17b   :  { %v1333_v48 = vmax.f32 %v1269_v28, 0.0  ;;  %v1107_v60 = vadd.f32 %v925_v63, %v3028_v47  ;;  %v1332_v62 = vmax.f32 %v1268_v51, 0.0  ;;  %v1106_v29 = vadd.f32 %v923_v53, %v3030_v34 }
 0x17c   :  { %v3034_v28 = vmax.f32 %v3033_v58, 0.0 }
 0x17d   :  { %1398 = vst.msk [vmem:[%s2917_s5 + $0x158] sm:$0xff] %vm1354_vm2, %v1333_v48  ;;  %v1235_v11 = vadd.f32 %v1171_v44, %v1107_v60  ;;  %1397 = vst.msk [vmem:[%s2917_s5 + $0x150] sm:$0xff] %vm1354_vm2, %v1332_v62  ;;  %v1234_v37 = vadd.f32 %v1170_v31, %v1106_v29  ;;  %v1177_v48 = vld [vmem:[%s2916_s4 + $0x78] sm:$0xff]  ;;  %v3037_v29 = vld [vmem:[#allocation10_spill] sm:$0xff] }
 0x17e   :  { %v989_v20 = vpop.permute.xlu1 %988  ;;  %v987_v7 = vpop.permute.xlu0 %986  ;;  %v3035_v60 = vld [vmem:[#allocation9_spill] sm:$0xff] }
 0x17f   :  { %v1299_v41 = vmax.f32 %v1235_v11, 0.0  ;;  %v1139_v52 = vadd.f32 %v989_v20, %v3032_v57  ;;  %v1298_v10 = vmax.f32 %v1234_v37, 0.0  ;;  %v1138_v51 = vadd.f32 %v987_v7, %v3034_v28 }
 0x180   :  { %v3036_v62 = vmax.f32 %v3035_v60, 0.0  ;;  %v3038_v11 = vmax.f32 %v3037_v29, 0.0  ;;  %v3042_v60 = vmax.f32 %v2139_v45, 0.0  ;;  %v1207_v45 = vld [vmem:[%s2916_s4 + $0x168] sm:$0xff] }
 0x181   :  { %1364 = vst.msk [vmem:[%s2917_s5 + $0x48] sm:$0xff] %vm1354_vm2, %v1299_v41  ;;  %v1267_v44 = vadd.f32 %v1203_v19, %v1139_v52  ;;  %1363 = vst.msk [vmem:[%s2917_s5 + $0x40] sm:$0xff] %vm1354_vm2, %v1298_v10  ;;  %v1266_v63 = vadd.f32 %v1202_v33, %v1138_v51  ;;  %v1209_v41 = vld [vmem:[%s2916_s4 + $0x178] sm:$0xff]  ;;  %v3039_v52 = vld [vmem:[#allocation11_spill] sm:$0xff]  ;;  %v3041_v51 = vmax.f32 %v2119_v59, 0.0 }
 0x182   :  { %v937_v31 = vpop.permute.xlu1 %936  ;;  %v935_v47 = vpop.permute.xlu0 %934  ;;  %v3040_v10 = vmax.f32 %v3039_v52, 0.0  ;;  %v1174_v59 = vld [vmem:[%s2916_s4 + $0x60] sm:$0xff] }
 0x183   :  { %v1331_v53 = vmax.f32 %v1267_v44, 0.0  ;;  %v1113_v14 = vadd.f32 %v937_v31, %v3036_v62  ;;  %v1330_v34 = vmax.f32 %v1266_v63, 0.0  ;;  %v1112_v37 = vadd.f32 %v935_v47, %v3038_v11  ;;  %v1175_v31 = vld [vmem:[%s2916_s4 + $0x68] sm:$0xff] }
 0x185   :  { %1396 = vst.msk [vmem:[%s2917_s5 + $0x148] sm:$0xff] %vm1354_vm2, %v1331_v53  ;;  %v1241_v19 = vadd.f32 %v1177_v48, %v1113_v14  ;;  %1395 = vst.msk [vmem:[%s2917_s5 + $0x140] sm:$0xff] %vm1354_vm2, %v1330_v34  ;;  %v1240_v20 = vadd.f32 %v1176_v36, %v1112_v37  ;;  %v3043_v34 = vmax.f32 %v2146_v43, 0.0  ;;  %v1206_v43 = vld [vmem:[%s2916_s4 + $0x160] sm:$0xff] }
 0x186   :  { %v1001_v33 = vpop.permute.xlu1 %1000  ;;  %v999_v57 = vpop.permute.xlu0 %998 }
 0x187   :  { %v1305_v7 = vmax.f32 %v1241_v19, 0.0  ;;  %v1145_v58 = vadd.f32 %v1001_v33, %v3040_v10  ;;  %v1304_v28 = vmax.f32 %v1240_v20, 0.0  ;;  %v1144_v44 = vadd.f32 %v999_v57, %v3041_v51 }
 0x188   :  { %v3044_v33 = vmax.f32 %v2152_v16, 0.0  ;;  %v3045_v57 = vmax.f32 %v2183_v46, 0.0  ;;  %v1181_v16 = vld [vmem:[%s2916_s4 + $0x98] sm:$0xff]  ;;  %v1180_v46 = vld [vmem:[%s2916_s4 + $0x90] sm:$0xff] }
 0x189   :  { %1370 = vst.msk [vmem:[%s2917_s5 + $0x78] sm:$0xff] %vm1354_vm2, %v1305_v7  ;;  %v1273_v63 = vadd.f32 %v1209_v41, %v1145_v58  ;;  %1369 = vst.msk [vmem:[%s2917_s5 + $0x70] sm:$0xff] %vm1354_vm2, %v1304_v28  ;;  %v1272_v48 = vadd.f32 %v1208_v24, %v1144_v44 }
 0x18a   :  { %v933_v53 = vpop.permute.xlu1 %932  ;;  %v931_v47 = vpop.permute.xlu0 %930 }
 0x18b   :  { %v1337_v36 = vmax.f32 %v1273_v63, 0.0  ;;  %v1111_v62 = vadd.f32 %v933_v53, %v3042_v60  ;;  %v1336_v14 = vmax.f32 %v1272_v48, 0.0  ;;  %v1110_v29 = vadd.f32 %v931_v47, %v3043_v34 }
 0x18c   :  { %v3046_v63 = vmax.f32 %v1980_v32, 0.0  ;;  %v3047_v53 = vmax.f32 %v1963_v22, 0.0  ;;  %v1213_v32 = vld [vmem:[%s2916_s4 + $0x198] sm:$0xff]  ;;  %v1212_v22 = vld [vmem:[%s2916_s4 + $0x190] sm:$0xff]  ;;  %v3048_v34 = vmax.f32 %v1993_v0, 0.0  ;;  %v1179_v0 = vld [vmem:[%s2916_s4 + $0x88] sm:$0xff] }
 0x18d   :  { %1402 = vst.msk [vmem:[%s2917_s5 + $0x178] sm:$0xff] %vm1354_vm2, %v1337_v36  ;;  %v1239_v11 = vadd.f32 %v1175_v31, %v1111_v62  ;;  %1401 = vst.msk [vmem:[%s2917_s5 + $0x170] sm:$0xff] %vm1354_vm2, %v1336_v14  ;;  %v1238_v37 = vadd.f32 %v1174_v59, %v1110_v29 }
 0x18e   :  { %v997_v19 = vpop.permute.xlu1 %996  ;;  %v995_v41 = vpop.permute.xlu0 %994 }
 0x18f   :  { %v1303_v20 = vmax.f32 %v1239_v11, 0.0  ;;  %v1143_v7 = vadd.f32 %v997_v19, %v3044_v33  ;;  %v1302_v24 = vmax.f32 %v1238_v37, 0.0  ;;  %v1142_v52 = vadd.f32 %v995_v41, %v3045_v57 }
 0x190   :  { %v3049_v37 = vmax.f32 %v1975_v17, 0.0  ;;  %v1178_v17 = vld [vmem:[%s2916_s4 + $0x80] sm:$0xff] }
 0x191   :  { %1368 = vst.msk [vmem:[%s2917_s5 + $0x68] sm:$0xff] %vm1354_vm2, %v1303_v20  ;;  %v1271_v10 = vadd.f32 %v1207_v45, %v1143_v7  ;;  %1367 = vst.msk [vmem:[%s2917_s5 + $0x60] sm:$0xff] %vm1354_vm2, %v1302_v24  ;;  %v1270_v58 = vadd.f32 %v1206_v43, %v1142_v52  ;;  %v3050_v7 = vmax.f32 %v1990_v30, 0.0  ;;  %v3051_v52 = vmax.f32 %v1971_v1, 0.0  ;;  %v1211_v30 = vld [vmem:[%s2916_s4 + $0x188] sm:$0xff]  ;;  %v1210_v1 = vld [vmem:[%s2916_s4 + $0x180] sm:$0xff] }
 0x192   :  { %v945_v28 = vpop.permute.xlu1 %944  ;;  %v943_v44 = vpop.permute.xlu0 %942 }
 0x193   :  { %v1335_v51 = vmax.f32 %v1271_v10, 0.0  ;;  %v1117_v48 = vadd.f32 %v945_v28, %v3046_v63  ;;  %v1334_v31 = vmax.f32 %v1270_v58, 0.0  ;;  %v1116_v36 = vadd.f32 %v943_v44, %v3047_v53 }
 0x194   :  { %v3052_v44 = vmax.f32 %v2002_v23, 0.0  ;;  %v1185_v23 = vld [vmem:[%s2916_s4 + $0xb8] sm:$0xff] }
 0x195   :  { %1400 = vst.msk [vmem:[%s2917_s5 + $0x168] sm:$0xff] %vm1354_vm2, %v1335_v51  ;;  %v1245_v59 = vadd.f32 %v1181_v16, %v1117_v48  ;;  %1399 = vst.msk [vmem:[%s2917_s5 + $0x160] sm:$0xff] %vm1354_vm2, %v1334_v31  ;;  %v1244_v47 = vadd.f32 %v1180_v46, %v1116_v36  ;;  %v3053_v31 = vmax.f32 %v1983_v3, 0.0  ;;  %v1184_v3 = vld [vmem:[%s2916_s4 + $0xb0] sm:$0xff] }
 0x196   :  { %v1009_v60 = vpop.permute.xlu1 %1008  ;;  %v1007_v14 = vpop.permute.xlu0 %1006 }
 0x197   :  { %v1309_v62 = vmax.f32 %v1245_v59, 0.0  ;;  %v1149_v29 = vadd.f32 %v1009_v60, %v3048_v34  ;;  %v1308_v11 = vmax.f32 %v1244_v47, 0.0  ;;  %v1148_v45 = vadd.f32 %v1007_v14, %v3049_v37 }
 0x198   :  { %v3055_v34 = vmax.f32 %v2026_v25, 0.0  ;;  %v1216_v25 = vld [vmem:[%s2916_s4 + $0x1b0] sm:$0xff] }
 0x199   :  { %1374 = vst.msk [vmem:[%s2917_s5 + $0x98] sm:$0xff] %vm1354_vm2, %v1309_v62  ;;  %v1277_v19 = vadd.f32 %v1213_v32, %v1149_v29  ;;  %1373 = vst.msk [vmem:[%s2917_s5 + $0x90] sm:$0xff] %vm1354_vm2, %v1308_v11  ;;  %v1276_v20 = vadd.f32 %v1212_v22, %v1148_v45  ;;  %v3054_v62 = vmax.f32 %v2044_v38, 0.0  ;;  %v1217_v38 = vld [vmem:[%s2916_s4 + $0x1b8] sm:$0xff] }
 0x19a   :  { %v941_v43 = vpop.permute.xlu1 %940  ;;  %v939_v33 = vpop.permute.xlu0 %938 }
 0x19b   :  { %v1341_v41 = vmax.f32 %v1277_v19, 0.0  ;;  %v1115_v24 = vadd.f32 %v941_v43, %v3050_v7  ;;  %v1340_v57 = vmax.f32 %v1276_v20, 0.0  ;;  %v1114_v10 = vadd.f32 %v939_v33, %v3051_v52 }
 0x19d   :  { %1406 = vst.msk [vmem:[%s2917_s5 + $0x198] sm:$0xff] %vm1354_vm2, %v1341_v41  ;;  %v1243_v58 = vadd.f32 %v1179_v0, %v1115_v24  ;;  %1405 = vst.msk [vmem:[%s2917_s5 + $0x190] sm:$0xff] %vm1354_vm2, %v1340_v57  ;;  %v1242_v16 = vadd.f32 %v1178_v17, %v1114_v10  ;;  %v3056_v0 = vmax.f32 %v2057_v18, 0.0  ;;  %v3057_v17 = vmax.f32 %v2038_v21, 0.0  ;;  %v1183_v18 = vld [vmem:[%s2916_s4 + $0xa8] sm:$0xff]  ;;  %v1182_v21 = vld [vmem:[%s2916_s4 + $0xa0] sm:$0xff] }
 0x19e   :  { %v1005_v28 = vpop.permute.xlu1 %1004  ;;  %v1003_v46 = vpop.permute.xlu0 %1002 }
 0x19f   :  { %v1307_v51 = vmax.f32 %v1243_v58, 0.0  ;;  %v1147_v63 = vadd.f32 %v1005_v28, %v3052_v44  ;;  %v1306_v48 = vmax.f32 %v1242_v16, 0.0  ;;  %v1146_v53 = vadd.f32 %v1003_v46, %v3053_v31 }
 0x1a0   :  { %v3058_v58 = vmax.f32 %v2054_v4, 0.0  ;;  %v3059_v28 = vmax.f32 %v2034_v27, 0.0  ;;  %v1215_v4 = vld [vmem:[%s2916_s4 + $0x1a8] sm:$0xff]  ;;  %v1214_v27 = vld [vmem:[%s2916_s4 + $0x1a0] sm:$0xff]  ;;  %v3060_v31 = vmax.f32 %v2065_v13, 0.0  ;;  %v1189_v13 = vld [vmem:[%s2916_s4 + $0xd8] sm:$0xff] }
 0x1a1   :  { %1372 = vst.msk [vmem:[%s2917_s5 + $0x88] sm:$0xff] %vm1354_vm2, %v1307_v51  ;;  %v1275_v36 = vadd.f32 %v1211_v30, %v1147_v63  ;;  %1371 = vst.msk [vmem:[%s2917_s5 + $0x80] sm:$0xff] %vm1354_vm2, %v1306_v48  ;;  %v1274_v59 = vadd.f32 %v1210_v1, %v1146_v53 }
 0x1a2   :  { %v953_v47 = vpop.permute.xlu1 %952  ;;  %v951_v60 = vpop.permute.xlu0 %950 }
 0x1a3   :  { %v1339_v32 = vmax.f32 %v1275_v36, 0.0  ;;  %v1121_v22 = vadd.f32 %v953_v47, %v3054_v62  ;;  %v1338_v14 = vmax.f32 %v1274_v59, 0.0  ;;  %v1120_v29 = vadd.f32 %v951_v60, %v3055_v34 }
 0x1a4   :  { %v3061_v59 = vmax.f32 %v2047_v9, 0.0  ;;  %v1188_v9 = vld [vmem:[%s2916_s4 + $0xd0] sm:$0xff] }
 0x1a5   :  { %1404 = vst.msk [vmem:[%s2917_s5 + $0x188] sm:$0xff] %vm1354_vm2, %v1339_v32  ;;  %v1249_v11 = vadd.f32 %v1185_v23, %v1121_v22  ;;  %1403 = vst.msk [vmem:[%s2917_s5 + $0x180] sm:$0xff] %vm1354_vm2, %v1338_v14  ;;  %v1248_v37 = vadd.f32 %v1184_v3, %v1120_v29  ;;  %v3062_v22 = vmax.f32 %v2111_v42, 0.0  ;;  %v3063_v29 = vmax.f32 %v2094_v40, 0.0  ;;  %v1221_v42 = vld [vmem:[%s2916_s4 + $0x1d8] sm:$0xff]  ;;  %v1220_v40 = vld [vmem:[%s2916_s4 + $0x1d0] sm:$0xff] }
 0x1a6   :  { %v1017_v45 = vpop.permute.xlu1 %1016  ;;  %v1015_v20 = vpop.permute.xlu0 %1014 }
 0x1a7   :  { %v1313_v19 = vmax.f32 %v1249_v11, 0.0  ;;  %v1153_v43 = vadd.f32 %v1017_v45, %v3056_v0  ;;  %v1312_v41 = vmax.f32 %v1248_v37, 0.0  ;;  %v1152_v33 = vadd.f32 %v1015_v20, %v3057_v17 }
 0x1a8   :  { %v3064_v20 = vmax.f32 %v2125_v12, 0.0  ;;  %v1187_v12 = vld [vmem:[%s2916_s4 + $0xc8] sm:$0xff] }
 0x1a9   :  { %1378 = vst.msk [vmem:[%s2917_s5 + $0xb8] sm:$0xff] %vm1354_vm2, %v1313_v19  ;;  %v1281_v7 = vadd.f32 %v1217_v38, %v1153_v43  ;;  %1377 = vst.msk [vmem:[%s2917_s5 + $0xb0] sm:$0xff] %vm1354_vm2, %v1312_v41  ;;  %v1280_v24 = vadd.f32 %v1216_v25, %v1152_v33  ;;  %v3065_v41 = vmax.f32 %v2106_v35, 0.0  ;;  %v1186_v35 = vld [vmem:[%s2916_s4 + $0xc0] sm:$0xff] }
 0x1aa   :  { %v949_v57 = vpop.permute.xlu1 %948  ;;  %v947_v10 = vpop.permute.xlu0 %946 }
 0x1ab   :  { %v1345_v52 = vmax.f32 %v1281_v7, 0.0  ;;  %v1119_v16 = vadd.f32 %v949_v57, %v3058_v58  ;;  %v1344_v30 = vmax.f32 %v1280_v24, 0.0  ;;  %v1118_v51 = vadd.f32 %v947_v10, %v3059_v28 }
 0x1ac   :  { %v3067_v58 = vmax.f32 %v2102_v6, 0.0  ;;  %v1218_v6 = vld [vmem:[%s2916_s4 + $0x1c0] sm:$0xff] }
 0x1ad   :  { %1410 = vst.msk [vmem:[%s2917_s5 + $0x1b8] sm:$0xff] %vm1354_vm2, %v1345_v52  ;;  %v1247_v1 = vadd.f32 %v1183_v18, %v1119_v16  ;;  %1409 = vst.msk [vmem:[%s2917_s5 + $0x1b0] sm:$0xff] %vm1354_vm2, %v1344_v30  ;;  %v1246_v46 = vadd.f32 %v1182_v21, %v1118_v51  ;;  %v3066_v52 = vmax.f32 %v2122_v39, 0.0  ;;  %v1219_v39 = vld [vmem:[%s2916_s4 + $0x1c8] sm:$0xff] }
 0x1ae   :  { %v1013_v44 = vpop.permute.xlu1 %1012  ;;  %v1011_v48 = vpop.permute.xlu0 %1010 }
 0x1af   :  { %v1311_v63 = vmax.f32 %v1247_v1, 0.0  ;;  %v1151_v53 = vadd.f32 %v1013_v44, %v3060_v31  ;;  %v1310_v36 = vmax.f32 %v1246_v46, 0.0  ;;  %v1150_v23 = vadd.f32 %v1011_v48, %v3061_v59 }
 0x1b1   :  { %1376 = vst.msk [vmem:[%s2917_s5 + $0xa8] sm:$0xff] %vm1354_vm2, %v1311_v63  ;;  %v1279_v47 = vadd.f32 %v1215_v4, %v1151_v53  ;;  %1375 = vst.msk [vmem:[%s2917_s5 + $0xa0] sm:$0xff] %vm1354_vm2, %v1310_v36  ;;  %v1278_v32 = vadd.f32 %v1214_v27, %v1150_v23  ;;  %v3068_v4 = vmax.f32 %v2133_v56, 0.0  ;;  %v3069_v27 = vld [vmem:[#allocation12_spill] sm:$0xff]  ;;  %v1193_v56 = vld [vmem:[%s2916_s4 + $0xf8] sm:$0xff] }
 0x1b2   :  { %v961_v3 = vpop.permute.xlu1 %960  ;;  %v959_v62 = vpop.permute.xlu0 %958  ;;  %v3070_v48 = vmax.f32 %v3069_v27, 0.0 }
 0x1b3   :  { %v1343_v60 = vmax.f32 %v1279_v47, 0.0  ;;  %v1125_v14 = vadd.f32 %v961_v3, %v3062_v22  ;;  %v1342_v34 = vmax.f32 %v1278_v32, 0.0  ;;  %v1124_v11 = vadd.f32 %v959_v62, %v3063_v29  ;;  %v1192_v47 = vld [vmem:[%s2916_s4 + $0xf0] sm:$0xff]  ;;  %v3073_v62 = vld [vmem:[#allocation13_spill] sm:$0xff] }
 0x1b4   :  { %v3074_v22 = vmax.f32 %v3073_v62, 0.0 }
 0x1b5   :  { %1408 = vst.msk [vmem:[%s2917_s5 + $0x1a8] sm:$0xff] %vm1354_vm2, %v1343_v60  ;;  %v1253_v37 = vadd.f32 %v1189_v13, %v1125_v14  ;;  %1407 = vst.msk [vmem:[%s2917_s5 + $0x1a0] sm:$0xff] %vm1354_vm2, %v1342_v34  ;;  %v1252_v38 = vadd.f32 %v1188_v9, %v1124_v11  ;;  %v3071_v13 = vld [vmem:[#allocation14_spill] sm:$0xff]  ;;  %v1191_v11 = vld [vmem:[%s2916_s4 + $0xe8] sm:$0xff] }
 0x1b6   :  { %v1025_v45 = vpop.permute.xlu1 %1024  ;;  %v1023_v25 = vpop.permute.xlu0 %1022  ;;  %v3072_v3 = vmax.f32 %v3071_v13, 0.0 }
 0x1b7   :  { %v1317_v19 = vmax.f32 %v1253_v37, 0.0  ;;  %v1157_v0 = vadd.f32 %v1025_v45, %v3064_v20  ;;  %v1316_v43 = vmax.f32 %v1252_v38, 0.0  ;;  %v1156_v17 = vadd.f32 %v1023_v25, %v3065_v41 }
 0x1b8   :  { %v3076_v20 = vmax.f32 %v2166_v26, 0.0  ;;  %v1222_v26 = vld [vmem:[%s2916_s4 + $0x1e0] sm:$0xff] }
 0x1b9   :  { %1382 = vst.msk [vmem:[%s2917_s5 + $0xd8] sm:$0xff] %vm1354_vm2, %v1317_v19  ;;  %v1285_v33 = vadd.f32 %v1221_v42, %v1157_v0  ;;  %1381 = vst.msk [vmem:[%s2917_s5 + $0xd0] sm:$0xff] %vm1354_vm2, %v1316_v43  ;;  %v1284_v7 = vadd.f32 %v1220_v40, %v1156_v17  ;;  %v1190_v42 = vld [vmem:[%s2916_s4 + $0xe0] sm:$0xff]  ;;  %v3075_v19 = vmax.f32 %v2186_v2, 0.0  ;;  %v1223_v2 = vld [vmem:[%s2916_s4 + $0x1e8] sm:$0xff] }
 0x1ba   :  { %v957_v24 = vpop.permute.xlu1 %956  ;;  %v955_v57 = vpop.permute.xlu0 %954 }
 0x1bb   :  { %v1349_v18 = vmax.f32 %v1285_v33, 0.0  ;;  %v1123_v21 = vadd.f32 %v957_v24, %v3066_v52  ;;  %v1348_v10 = vmax.f32 %v1284_v7, 0.0  ;;  %v1122_v16 = vadd.f32 %v955_v57, %v3067_v58 }
 0x1bd   :  { %1414 = vst.msk [vmem:[%s2917_s5 + $0x1d8] sm:$0xff] %vm1354_vm2, %v1349_v18  ;;  %v1251_v30 = vadd.f32 %v1187_v12, %v1123_v21  ;;  %1413 = vst.msk [vmem:[%s2917_s5 + $0x1d0] sm:$0xff] %vm1354_vm2, %v1348_v10  ;;  %v1250_v28 = vadd.f32 %v1186_v35, %v1122_v16 }
 0x1be   :  { %v1021_v51 = vpop.permute.xlu1 %1020  ;;  %v1019_v46 = vpop.permute.xlu0 %1018 }
 0x1bf   :  { %v1315_v1 = vmax.f32 %v1251_v30, 0.0  ;;  %v1155_v44 = vadd.f32 %v1021_v51, %v3068_v4  ;;  %v1314_v63 = vmax.f32 %v1250_v28, 0.0  ;;  %v1154_v31 = vadd.f32 %v1019_v46, %v3070_v48 }
 0x1c1   :  { %1380 = vst.msk [vmem:[%s2917_s5 + $0xc8] sm:$0xff] %vm1354_vm2, %v1315_v1  ;;  %v1283_v53 = vadd.f32 %v1219_v39, %v1155_v44  ;;  %1379 = vst.msk [vmem:[%s2917_s5 + $0xc0] sm:$0xff] %vm1354_vm2, %v1314_v63  ;;  %v1282_v36 = vadd.f32 %v1218_v6, %v1154_v31 }
 0x1c2   :  { %v969_v59 = vpop.permute.xlu1 %968  ;;  %v967_v32 = vpop.permute.xlu0 %966 }
 0x1c3   :  { %v1347_v23 = vmax.f32 %v1283_v53, 0.0  ;;  %v1129_v60 = vadd.f32 %v969_v59, %v3072_v3  ;;  %v1346_v9 = vmax.f32 %v1282_v36, 0.0  ;;  %v1128_v14 = vadd.f32 %v967_v32, %v3074_v22 }
 0x1c5   :  { %1412 = vst.msk [vmem:[%s2917_s5 + $0x1c8] sm:$0xff] %vm1354_vm2, %v1347_v23  ;;  %v1257_v34 = vadd.f32 %v1193_v56, %v1129_v60  ;;  %1411 = vst.msk [vmem:[%s2917_s5 + $0x1c0] sm:$0xff] %vm1354_vm2, %v1346_v9  ;;  %v1256_v29 = vadd.f32 %v1192_v47, %v1128_v14 }
 0x1c6   :  { %v965_v37 = vpop.permute.xlu1 %964  ;;  %v963_v45 = vpop.permute.xlu0 %962 }
 0x1c7   :  { %v1321_v38 = vmax.f32 %v1257_v34, 0.0  ;;  %v1127_v40 = vadd.f32 %v965_v37, %v3075_v19  ;;  %v1320_v25 = vmax.f32 %v1256_v29, 0.0  ;;  %v1126_v0 = vadd.f32 %v963_v45, %v3076_v20 }
 0x1c9   :  { %1386 = vst.msk [vmem:[%s2917_s5 + $0xf8] sm:$0xff] %vm1354_vm2, %v1321_v38  ;;  %v1255_v43 = vadd.f32 %v1191_v11, %v1127_v40  ;;  %1385 = vst.msk [vmem:[%s2917_s5 + $0xf0] sm:$0xff] %vm1354_vm2, %v1320_v25  ;;  %v1254_v41 = vadd.f32 %v1190_v42, %v1126_v0 }
 0x1ca   :  { %v1029_v17 = vpop.permute.xlu1 %1028  ;;  %v1027_v7 = vpop.permute.xlu0 %1026 }
 0x1cb   :  { %v1319_v33 = vmax.f32 %v1255_v43, 0.0  ;;  %v1159_v12 = vadd.f32 %v1029_v17, %v839_v61  ;;  %v1318_v24 = vmax.f32 %v1254_v41, 0.0  ;;  %v1158_v18 = vadd.f32 %v1027_v7, %v838_v49  ;;  %v1225_v61 = vld [vmem:[%s2916_s4 + $0x1f8] sm:$0xff] }
 0x1cd   :  { %1384 = vst.msk [vmem:[%s2917_s5 + $0xe8] sm:$0xff] %vm1354_vm2, %v1319_v33  ;;  %v1287_v35 = vadd.f32 %v1223_v2, %v1159_v12  ;;  %1383 = vst.msk [vmem:[%s2917_s5 + $0xe0] sm:$0xff] %vm1354_vm2, %v1318_v24  ;;  %v1286_v57 = vadd.f32 %v1222_v26, %v1158_v18 }
 0x1ce   :  { %v1033_v5 = vpop.permute.xlu1 %1032  ;;  %v1031_v49 = vpop.permute.xlu0 %1030 }
 0x1cf   :  { %v1351_v52 = vmax.f32 %v1287_v35, 0.0  ;;  %v1161_v21 = vadd.f32 %v1033_v5, %v841_v50  ;;  %v1350_v10 = vmax.f32 %v1286_v57, 0.0  ;;  %v1160_v58 = vadd.f32 %v1031_v49, %v840_v55 }
 0x1d1   :  { %1416 = vst.msk [vmem:[%s2917_s5 + $0x1e8] sm:$0xff] %vm1354_vm2, %v1351_v52  ;;  %v1289_v16 = vadd.f32 %v1225_v61, %v1161_v21  ;;  %1415 = vst.msk [vmem:[%s2917_s5 + $0x1e0] sm:$0xff] %vm1354_vm2, %v1350_v10  ;;  %v1288_v30 = vadd.f32 %v1224_v8, %v1160_v58 }
 0x1d3   :  { %v1353_v28 = vmax.f32 %v1289_v16, 0.0  ;;  %v1352_v39 = vmax.f32 %v1288_v30, 0.0 }
 0x1d5   :  { %1418 = vst.msk [vmem:[%s2917_s5 + $0x1f8] sm:$0xff] %vm1354_vm2, %v1353_v28  ;;  %1417 = vst.msk [vmem:[%s2917_s5 + $0x1f0] sm:$0xff] %vm1354_vm2, %v1352_v39 }

// kernel: _lambda_.7
= control target key start
LH: loop header
LB: loop body
LE: loop exit
PB: predicated region body
PF: predicated region fallthrough
CT: control target
= control target key end

     0   :  { %s4272_s15 = smov 0   ;;  %s5288_s0 = inlined_call_operand.vmem [shape: bf16[1024,4], index: 0, kind: input, shape index: {}, may-alias: {0,1}]   ;;  %s5289_s1 = inlined_call_operand.vmem [shape: bf16[1024,4], index: 1, kind: input, shape index: {}, may-alias: {0,1}]   ;;  %s5290_s2 = inlined_call_operand.vmem [shape: bf16[9,4,8], index: 2, kind: input, shape index: {}]   ;;  %s5291_s3 = inlined_call_operand.vmem [shape: f32[768,1], index: 3, kind: input, shape index: {}]   ;;  %s5292_s4 = inlined_call_operand.vmem [shape: f32[3,2,8], index: 4, kind: output, shape index: {}]  }
   0x1 LB: > { %s4278_s16 = sadd.s32 4294967295, %s4244_s15   ;;  %p3295_p0 = scmp.ge.s32.totalorder %s4244_s15, 1  ;;  %s4244_s15 = sphi %s4272_s15, %s14_s15  }
   0x2   : > { %p189_p1 = scmp.lt.s32.totalorder %s4244_s15, 4 }
   0x4   : > { %p190_p2 = pnand %p3295_p0, %p189_p1 }
   0x6   : > { %193 = sbr.rel (%p190_p2) target bundleno = 553 (0x229), region = 36 }
   0xd   : > { %v3322_v0 = vld [vmem:[%s5290_s2 + $0x2] sm:$0x3]  ;;  %vm568_vm0 = vcmask 1041408   ;;  %v4288_v1 = vld [vmem:[%s5290_s2 + $0x8] sm:$0x3]  ;;  %s4291_s21 = sshll.u32 %s4278_s16, 5 }
   0xe   : > { %4195 = vmatprep.subr.msk.bf16.mxu1 %vm568_vm0, %v3322_v0  ;;  %4199 = vmatprep.subr.msk.bf16.mxu0 %vm568_vm0, %v4288_v1  ;;  %v570_v2 = vsel %vm568_vm0, %v3322_v0, 0  ;;  %v4299_v3 = vsel %vm568_vm0, %v4288_v1, 0  ;;  %p226_p3 = scmp.lt.s32.totalorder %s4291_s21, 127  ;;  %v383_v4 = vld [vmem:[%s5290_s2] sm:$0x3]  ;;  %vm519_vm3 = vcmask 31744  }
   0xf   : > { %5298 = vst [vmem:[#allocation2_spill] sm:$0xff] %v4299_v3  ;;  %3632 = vmatpush3.bf16.msra.mxu1 %v570_v2  ;;  %3768 = vmatpush3.bf16.msra.mxu0 %v4299_v3  ;;  %v3406_v5 = vld [vmem:[%s5290_s2 + $0xa] sm:$0x3]  ;;  %vm386_vm1 = vsmask.f32 7424  ;;  %v766_v8 = vsel %vm568_vm0, %v383_v4, 0 }
  0x10   : > { %s227_s26 = scalar_select %p226_p3, %s4291_s21, 127  ;;  %4196 = vmatprep.subr.msk.bf16.mxu1 %vm568_vm0, %v383_v4  ;;  %4201 = vmatprep.subr.msk.bf16.mxu0 %vm568_vm0, %v3406_v5  ;;  %vm1414_vm2 = vsmask.f32 6400  ;;  %v1818_v10 = vsel %vm568_vm0, %v3406_v5, 0  ;;  %v4362_v36 = vld [vmem:[%s5290_s2 + $0x4] sm:$0x3] }
  0x11   : > { %s3477_s7 = sadd.s32 32, %s4291_s21  ;;  %v4394_v51 = vld [vmem:[%s5290_s2 + $0xc] sm:$0x3]  ;;  %vm1735_vm4 = vcmask 1045504   ;;  %vm2218_vm5 = vsmask.f32 5376 }
  0x12   : > { %s3297_s27 = sshll.u32 %s227_s26, 2  ;;  %p4412_p4 = scmp.lt.s32.totalorder %s3477_s7, 127  ;;  %vm931_vm6 = vcmask 1046528   ;;  %vm2537_vm7 = vcmask 1044480   ;;  %vm3039_vm8 = vcmask 64512   ;;  %vm3210_vm9 = vcmask 1040384  }
  0x13   : > { %s4315_s30 = scalar_lea.vmem %s5288_s0, %s3297_s27  ;;  %p240_p5 = scmp.lt.s32.totalorder %s4291_s21, 95  ;;  %vm3212_vm10 = vcmask 58368  }
  0x14   : > { %v4318_v6 = vld [vmem:[%s4315_s30] sm:$0xff]   ;;  %v4321_v7 = vld [vmem:[%s4315_s30 + $0x8] sm:$0xff]   ;;  %v4325_v9 = vld [vmem:[%s4315_s30 + $0x10] sm:$0xff]   ;;  %s5309_s7 = smov (!%p4412_p4, %s3477_s7), 127  ;;  %p245_p6 = scmp.lt.s32.totalorder %s4278_s16, 2 }
  0x15   : > { %v388_v11 = vshrl.u32 %v4318_v6, 16  ;;  %v390_v12 = vshll.u32 %v4318_v6, 16  ;;  %v395_v13 = vshll.u32 %v4321_v7, 16  ;;  %v399_v14 = vshrl.u32 %v4321_v7, 16  ;;  %v4339_v17 = vld [vmem:[%s4315_s30 + $0x18] sm:$0xff]   ;;  %v4342_v18 = vld [vmem:[%s4315_s30 + $0x20] sm:$0xff]  }
  0x16   : > { %v4333_v15 = vshll.u32 %v4325_v9, 16  ;;  %v4336_v16 = vshrl.u32 %v4325_v9, 16  ;;  %v4348_v26 = vshll.u32 %v4339_v17, 16  ;;  %v4351_v30 = vshrl.u32 %v4339_v17, 16  ;;  %v4354_v31 = vld [vmem:[%s4315_s30 + $0x28] sm:$0xff]   ;;  %v4371_v41 = vld [vmem:[%s4315_s30 + $0x30] sm:$0xff]  }
  0x17   : > { %v392_v19 = vrot.slane %v390_v12, 1  ;;  %v397_v20 = vrot.slane %v395_v13, 1  ;;  %v1415_v21 = vrot.slane %v399_v14, 1  ;;  %v1416_v22 = vrot.slane %v395_v13, 2  ;;  %v4389_v50 = vld [vmem:[%s4315_s30 + $0x38] sm:$0xff]   ;;  %v4423_v63 = vld [vmem:[%s4315_s30 + $0x40] sm:$0xff]  }
  0x18   : > { %v1418_v23 = vrot.slane %v4336_v16, 1  ;;  %v1419_v24 = vrot.slane %v4333_v15, 2  ;;  %v405_v25 = vrot.slane %v4333_v15, 1  ;;  %v1423_v33 = vrot.slane %v4348_v26, 2  ;;  %s3299_s11 = sshll.u32 %s5309_s7, 2  ;;  %s5311_s21 = smov (!%p240_p5, %s4291_s21), 95 }
  0x19   : > { %v393_v27 = vor.u32 %v392_v19, %v388_v11  ;;  %v401_v28 = vor.u32 %v399_v14, %v397_v20  ;;  %v1417_v29 = vor.u32 %v1416_v22, %v1415_v21  ;;  %v413_v35 = vrot.slane %v4348_v26, 1  ;;  %s4467_s14 = scalar_lea.vmem %s5289_s1, %s3299_s11  ;;  %s3301_s24 = sshll.u32 %s5311_s21, 3 }
  0x1a   : > { %v1420_v32 = vor.u32 %v1419_v24, %v1418_v23  ;;  %v409_v34 = vor.u32 %v4336_v16, %v405_v25  ;;  %v1422_v39 = vrot.slane %v4351_v30, 1  ;;  %v4368_v40 = vshll.u32 %v4342_v18, 16  ;;  %v4454_v23 = vld [vmem:[%s4315_s30 + $0x48] sm:$0xff]   ;;  %s4816_s27 = scalar_lea.vmem %s5291_s3, %s3301_s24  ;;  %s5313_s16 = smov (!%p245_p6, %s4278_s16), 2 }
  0x1b   : > { %v398_v37 = vsel %vm386_vm1, %v393_v27, %v397_v20  ;;  %v406_v38 = vsel %vm386_vm1, %v401_v28, %v405_v25  ;;  %v4377_v44 = vshrl.u32 %v4342_v18, 16  ;;  %v417_v45 = vor.u32 %v4351_v30, %v413_v35  ;;  %s3302_s21 = sshll.u32 %s5313_s16, 1 }
  0x1c   : > { %3633 = vmatprep.mubr.msk.bf16.mxu1 %vm519_vm3, %v398_v37  ;;  %v1421_v42 = vsel %vm1414_vm2, %v1417_v29, %v1420_v32  ;;  %v414_v43 = vsel %vm386_vm1, %v409_v34, %v413_v35  ;;  %v1424_v46 = vor.u32 %v1423_v33, %v1422_v39  ;;  %v1427_v47 = vrot.slane %v4368_v40, 2 }
  0x1d   : > { %3769 = vmatprep.mubr.msk.bf16.mxu0 %vm519_vm3, %v1421_v42  ;;  %3634 = vmatmul.mubr.msk.bf16.vlgmr.msra.gmra.mrb[0].mxu1 %vm519_vm3, %v406_v38  ;;  %v421_v48 = vrot.slane %v4368_v40, 1  ;;  %v4386_v49 = vshll.u32 %v4354_v31, 16  ;;  %v1426_v52 = vrot.slane %v4377_v44, 1  ;;  %v4399_v53 = vshrl.u32 %v4354_v31, 16 }
  0x1e   : > { %3666 = vmatpush3.bf16.msra.mxu1 %v766_v8  ;;  %3637 = vmatprep.mubr.msk.bf16.mxu1 %vm519_vm3, %v414_v43  ;;  %v4402_v54 = vshll.u32 %v4371_v41, 16  ;;  %v4405_v55 = vshrl.u32 %v4371_v41, 16  ;;  %v1425_v56 = vsel %vm1414_vm2, %v1420_v32, %v1424_v46  ;;  %v4427_v2 = vshll.u32 %v4389_v50, 16 }
  0x1f   : > { %v1431_v57 = vrot.slane %v4386_v49, 2  ;;  %v425_v58 = vor.u32 %v4377_v44, %v421_v48  ;;  %4197 = vmatprep.subr.msk.bf16.mxu1 %vm568_vm0, %v4362_v36  ;;  %3770 = vmatmul.mubr.msk.bf16.vlgmr.msra.gmra.mrb[0].mxu0 %vm519_vm3, %v1425_v56  ;;  %v1428_v59 = vor.u32 %v1427_v47, %v1426_v52  ;;  %v1430_v60 = vrot.slane %v4399_v53, 1  ;;  %v4484_v47 = vld [vmem:[%s4315_s30 + $0x50] sm:$0xff]  }
  0x20   : > { %v429_v61 = vrot.slane %v4386_v49, 1  ;;  %v1434_v62 = vrot.slane %v4405_v55, 1  ;;  %3802 = vmatpush3.bf16.msra.mxu0 %v1818_v10  ;;  %v1435_v0 = vrot.slane %v4402_v54, 2  ;;  %v4430_v4 = vshrl.u32 %v4389_v50, 16 }
  0x21   : > { %v1429_v5 = vsel %vm1414_vm2, %v1424_v46, %v1428_v59  ;;  %v422_v8 = vsel %vm386_vm1, %v417_v45, %v421_v48  ;;  %v1432_v11 = vor.u32 %v1431_v57, %v1430_v60  ;;  %4202 = vmatprep.subr.msk.bf16.mxu0 %vm568_vm0, %v4394_v51  ;;  %v437_v13 = vrot.slane %v4402_v54, 1 }
  0x22   : > { %3773 = vmatprep.mubr.msk.bf16.mxu0 %vm519_vm3, %v1429_v5  ;;  %v430_v10 = vsel %vm386_vm1, %v425_v58, %v429_v61  ;;  %v1436_v12 = vor.u32 %v1435_v0, %v1434_v62  ;;  %v4444_v14 = vshll.u32 %v4423_v63, 16  ;;  %v1438_v20 = vrot.slane %v4430_v4, 1  ;;  %v4492_v58 = vld [vmem:[%s4315_s30 + $0x58] sm:$0xff]  }
  0x23   : > { %v1433_v19 = vsel %vm1414_vm2, %v1428_v59, %v1432_v11  ;;  %v1439_v21 = vrot.slane %v4427_v2, 2  ;;  %v4451_v22 = vshrl.u32 %v4423_v63, 16  ;;  %v433_v25 = vor.u32 %v4399_v53, %v429_v61 }
  0x24   : > { %v1437_v24 = vsel %vm1414_vm2, %v1432_v11, %v1436_v12  ;;  %v1443_v27 = vrot.slane %v4444_v14, 2  ;;  %v441_v28 = vor.u32 %v4405_v55, %v437_v13  ;;  %v445_v29 = vrot.slane %v4427_v2, 1 }
  0x25   : > { %3638 = vmatmul.mubr.msk.bf16.gmra.mrb[4].mxu1 %vm519_vm3, %v422_v8  ;;  %v1442_v32 = vrot.slane %v4451_v22, 1  ;;  %v1440_v33 = vor.u32 %v1439_v21, %v1438_v20  ;;  %v4471_v34 = vshll.u32 %v4454_v23, 16  ;;  %v4474_v35 = vshrl.u32 %v4454_v23, 16 }
  0x26   : > { %3641 = vmatprep.mubr.msk.bf16.mxu1 %vm519_vm3, %v430_v10  ;;  %v438_v37 = vsel %vm386_vm1, %v433_v25, %v437_v13  ;;  %v446_v39 = vsel %vm386_vm1, %v441_v28, %v445_v29  ;;  %v453_v43 = vrot.slane %v4444_v14, 1  ;;  %v449_v52 = vor.u32 %v4430_v4, %v445_v29  ;;  %v4512_v10 = vld [vmem:[%s4315_s30 + $0x60] sm:$0xff]   ;;  %v4524_v25 = vld [vmem:[%s4315_s30 + $0x68] sm:$0xff]  }
  0x27   : > { %3774 = vmatmul.mubr.msk.bf16.gmra.mrb[4].mxu0 %vm519_vm3, %v1433_v19  ;;  %v1444_v38 = vor.u32 %v1443_v27, %v1442_v32  ;;  %v1441_v42 = vsel %vm1414_vm2, %v1436_v12, %v1440_v33  ;;  %v1446_v45 = vrot.slane %v4474_v35, 1  ;;  %v1447_v46 = vrot.slane %v4471_v34, 2 }
  0x28   : > { %3777 = vmatprep.mubr.msk.bf16.mxu0 %vm519_vm3, %v1437_v24  ;;  %v457_v56 = vor.u32 %v4451_v22, %v453_v43  ;;  %v461_v57 = vrot.slane %v4471_v34, 1  ;;  %v4499_v60 = vshll.u32 %v4484_v47, 16  ;;  %v454_v61 = vsel %vm386_vm1, %v449_v52, %v453_v43  ;;  %v4548_v43 = vld [vmem:[%s4467_s14 + $0x10] sm:$0xff]  }
  0x29   : > { %v1445_v48 = vsel %vm1414_vm2, %v1440_v33, %v1444_v38  ;;  %v4496_v59 = vor.u32 %v1447_v46, %v1446_v45  ;;  %v1736_v62 = vrot.slane %v4321_v7, 2  ;;  %v1737_v0 = vrot.slane %v4325_v9, 2  ;;  %5301 = vst [vmem:[#allocation4_spill] sm:$0xff] %v4548_v43 }
  0x2a   : > { %v462_v5 = vsel %vm386_vm1, %v457_v56, %v461_v57  ;;  %v4506_v8 = vshrl.u32 %v4484_v47, 16  ;;  %v4509_v11 = vshll.u32 %v4492_v58, 16  ;;  %v469_v13 = vrot.slane %v4499_v60, 1 }
  0x2b   : > { %5300 = vst [vmem:[#allocation3_spill] sm:$0xff] %v4496_v59  ;;  %v1449_v12 = vsel %vm1414_vm2, %v1444_v38, %v4496_v59  ;;  %v1738_v19 = vsel %vm1735_vm4, %v1736_v62, %v1737_v0  ;;  %v465_v20 = vor.u32 %v4474_v35, %v461_v57  ;;  %v4528_v27 = vshrl.u32 %v4492_v58, 16 }
  0x2c   : > { %v473_v21 = vor.u32 %v4506_v8, %v469_v13  ;;  %v477_v24 = vrot.slane %v4509_v11, 1  ;;  %v4531_v28 = vshll.u32 %v4512_v10, 16  ;;  %v1739_v29 = vrot.slane %v4339_v17, 2 }
  0x2d   : > { %3642 = vmatmul.mubr.msk.bf16.gmra.mrb[8].mxu1 %vm519_vm3, %v438_v37  ;;  %v470_v32 = vsel %vm386_vm1, %v465_v20, %v469_v13  ;;  %v1741_v33 = vrot.slane %v4342_v18, 2  ;;  %v4539_v38 = vshrl.u32 %v4512_v10, 16  ;;  %v2021_v56 = vsel %vm568_vm0, %v4394_v51, 0  ;;  %v4573_v13 = vld [vmem:[%s4315_s30 + $0x78] sm:$0xff]  }
  0x2e   : > { %3645 = vmatprep.mubr.msk.bf16.mxu1 %vm519_vm3, %v446_v39  ;;  %v478_v37 = vsel %vm386_vm1, %v473_v21, %v477_v24  ;;  %v4542_v39 = vshll.u32 %v4524_v25, 16  ;;  %v481_v45 = vor.u32 %v4528_v27, %v477_v24  ;;  %v485_v46 = vrot.slane %v4531_v28, 1 }
  0x2f   : > { %3778 = vmatmul.mubr.msk.bf16.gmra.mrb[8].mxu0 %vm519_vm3, %v1441_v42  ;;  %v4545_v42 = vld [vmem:[%s4467_s14 + $0x8] sm:$0xff]   ;;  %v4557_v52 = vsel %vm1735_vm4, %v1737_v0, %v1739_v29  ;;  %v4563_v57 = vsel %vm1735_vm4, %v1739_v29, %v1741_v33  ;;  %v2015_v20 = vrot.slane %v4548_v43, 2  ;;  %v2219_v29 = vrot.slane %v4336_v16, 2 }
  0x30   : > { %3781 = vmatprep.mubr.msk.bf16.mxu0 %vm519_vm3, %v1445_v48  ;;  %v4553_v48 = vld [vmem:[%s4315_s30 + $0x70] sm:$0xff]   ;;  %v493_v0 = vrot.slane %v4542_v39, 1  ;;  %v5296_v51 = vrot.slane %v4545_v42, 2  ;;  %v486_v21 = vsel %vm386_vm1, %v481_v45, %v485_v46  ;;  %v2222_v45 = vrot.slane %v4351_v30, 2 }
  0x31   : > { %v4586_v24 = vshll.u32 %v4553_v48, 16  ;;  %v2226_v16 = vrot.slane %v4377_v44, 2  ;;  %v4608_v43 = vshll.u32 %v4573_v13, 16  ;;  %v2230_v30 = vrot.slane %v4399_v53, 2 }
  0x32   : > { %v4598_v62 = vsel %vm1735_vm4, %v5296_v51, %v2015_v20  ;;  %v2231_v3 = vrot.slane %v4386_v49, 3  ;;  %v5302_v53 = vrot.slane %v4371_v41, 2 }
  0x33   : > { %v501_v44 = vrot.slane %v4586_v24, 1 }
  0x35   : > { %3646 = vmatmul.mubr.msk.bf16.gmra.mrb[12].mxu1 %vm519_vm3, %v454_v61  ;;  %v1743_v61 = vrot.slane %v4354_v31, 2 }
  0x36   : > { %3649 = vmatprep.mubr.msk.bf16.mxu1 %vm519_vm3, %v462_v5  ;;  %v4568_v5 = vshrl.u32 %v4524_v25, 16 }
  0x37   : > { %3782 = vmatmul.mubr.msk.bf16.gmra.mrb[12].mxu0 %vm519_vm3, %v1449_v12  ;;  %v489_v12 = vor.u32 %v4539_v38, %v485_v46  ;;  %v2223_v46 = vrot.slane %v4348_v26, 3  ;;  %v4612_v26 = vsel %vm1735_vm4, %v1741_v33, %v1743_v61  ;;  %v4626_v33 = vsel %vm1735_vm4, %v1743_v61, %v5302_v53 }
  0x38   : > { %3803 = vmatprep.mubr.msk.bf16.mxu0 %vm519_vm3, %v1738_v19  ;;  %v4579_v19 = vld [vmem:[%s5290_s2 + $0xe] sm:$0x3]  ;;  %v497_v49 = vor.u32 %v4568_v5, %v493_v0  ;;  %v2238_v61 = vrot.slane %v4430_v4, 2 }
  0x39   : > { %v494_v59 = vsel %vm386_vm1, %v489_v12, %v493_v0  ;;  %v2224_v20 = vor.u32 %v2223_v46, %v2222_v45  ;;  %v2234_v12 = vrot.slane %v4405_v55, 2  ;;  %v2232_v45 = vor.u32 %v2231_v3, %v2230_v30 }
  0x3a   : > { %v509_v55 = vrot.slane %v4608_v43, 1  ;;  %v2239_v0 = vrot.slane %v4427_v2, 3  ;;  %v1747_v3 = vrot.slane %v4389_v50, 2  ;;  %v2242_v30 = vrot.slane %v4451_v22, 2 }
  0x3c   : > { %v2240_v4 = vor.u32 %v2239_v0, %v2238_v61  ;;  %v2247_v61 = vrot.slane %v4471_v34, 3  ;;  %v1751_v0 = vrot.slane %v4454_v23, 2 }
  0x3d   : > { %3650 = vmatmul.mubr.msk.bf16.gmra.mrb[16].mxu1 %vm519_vm3, %v470_v32  ;;  %v2220_v32 = vrot.slane %v4333_v15, 3 }
  0x3e   : > { %3653 = vmatprep.mubr.msk.bf16.mxu1 %vm519_vm3, %v478_v37  ;;  %v4593_v37 = vshrl.u32 %v4553_v48, 16 }
  0x3f   : > { %3804 = vmatmul.mubr.msk.bf16.vlgmr.msra.gmra.mrb[0].mxu0 %vm519_vm3, %v4557_v52  ;;  %v2221_v15 = vor.u32 %v2220_v32, %v2219_v29  ;;  %v2235_v29 = vrot.slane %v4402_v54, 3  ;;  %v4630_v32 = vld [vmem:[%s4467_s14] sm:$0xff]  }
  0x40   : > { %3836 = vmatpush3.bf16.msra.mxu0 %v2021_v56  ;;  %3807 = vmatprep.mubr.msk.bf16.mxu0 %vm519_vm3, %v4563_v57  ;;  %v2227_v56 = vrot.slane %v4368_v40, 3  ;;  %v505_v46 = vor.u32 %v4593_v37, %v501_v44 }
  0x41   : > { %4203 = vmatprep.subr.msk.bf16.mxu0 %vm568_vm0, %v4579_v19  ;;  %v4618_v40 = vsel %vm2218_vm5, %v2221_v15, %v2224_v20  ;;  %v2236_v54 = vor.u32 %v2235_v29, %v2234_v12  ;;  %v1749_v15 = vrot.slane %v4423_v63, 2  ;;  %v2243_v12 = vrot.slane %v4444_v14, 3 }
  0x42   : > { %v2228_v51 = vor.u32 %v2227_v56, %v2226_v16  ;;  %v502_v56 = vsel %vm386_vm1, %v497_v49, %v501_v44  ;;  %v510_v2 = vsel %vm386_vm1, %v505_v46, %v509_v55  ;;  %v5303_v44 = vmov %v5302_v53 }
  0x43   : > { %v4649_v16 = vsel %vm2218_vm5, %v2232_v45, %v2236_v54  ;;  %v4662_v29 = vsel %vm2218_vm5, %v2236_v54, %v2240_v4  ;;  %v4668_v53 = vsel %vm1735_vm4, %v5303_v44, %v1747_v3  ;;  %v2244_v49 = vor.u32 %v2243_v12, %v2242_v30 }
  0x44   : > { %v2246_v54 = vrot.slane %v4474_v35, 2  ;;  %v1752_v35 = vsel %vm1735_vm4, %v1749_v15, %v1751_v0  ;;  %v1757_v30 = vrot.slane %v4512_v10, 2  ;;  %v1014_v12 = vsel %vm568_vm0, %v4362_v36, 0 }
  0x45   : > { %3654 = vmatmul.mubr.msk.bf16.gmra.mrb[20].mxu1 %vm519_vm3, %v486_v21  ;;  %v4633_v21 = vsel %vm2218_vm5, %v2224_v20, %v2228_v51  ;;  %v4653_v20 = vshrl.u32 %v4573_v13, 16  ;;  %v4677_v46 = vsel %vm2218_vm5, %v2240_v4, %v2244_v49  ;;  %v1759_v36 = vrot.slane %v4524_v25, 2 }
  0x46   : > { %3657 = vmatprep.mubr.msk.bf16.mxu1 %vm519_vm3, %v494_v59  ;;  %v4640_v59 = vsel %vm2218_vm5, %v2228_v51, %v2232_v45  ;;  %v4656_v51 = vshll.u32 %v4630_v32, 16  ;;  %v4672_v45 = vsel %vm1735_vm4, %v1747_v3, %v1749_v15  ;;  %v4711_v15 = vld [vmem:[%s5290_s2 + $0x6] sm:$0x3] }
  0x47   : > { %3808 = vmatmul.mubr.msk.bf16.gmra.mrb[4].mxu0 %vm519_vm3, %v4612_v26  ;;  %v513_v22 = vor.u32 %v4653_v20, %v509_v55  ;;  %v1753_v55 = vrot.slane %v4484_v47, 2 }
  0x48   : > { %3811 = vmatprep.mubr.msk.bf16.mxu0 %vm519_vm3, %v4626_v33  ;;  %v517_v14 = vrot.slane %v4656_v51, 1 }
  0x49   : > { %v4699_v34 = vsel %vm1735_vm4, %v1751_v0, %v1753_v55  ;;  %v1765_v0 = vrot.slane %v4630_v32, 2 }
  0x4a   : > { %v518_v3 = vsel %vm386_vm1, %v513_v22, %v517_v14  ;;  %v1761_v22 = vrot.slane %v4553_v48, 2  ;;  %v4731_v14 = vsel %vm1735_vm4, %v1757_v30, %v1759_v36 }
  0x4d   : > { %3658 = vmatmul.mubr.msk.bf16.gmra.mrb[24].mxu1 %vm519_vm3, %v502_v56  ;;  %v4688_v56 = vor.u32 %v2247_v61, %v2246_v54  ;;  %v4736_v54 = vsel %vm1735_vm4, %v1759_v36, %v1761_v22  ;;  %v1763_v61 = vrot.slane %v4573_v13, 2  ;;  %v4780_v36 = vld [vmem:[%s5290_s2 + $0x10] sm:$0x3] }
  0x4e   : > { %3661 = vmatprep.mubr.msk.bf16.mxu1 %vm519_vm3, %v510_v2  ;;  %v1755_v2 = vrot.slane %v4492_v58, 2 }
  0x4f   : > { %3812 = vmatmul.mubr.msk.bf16.gmra.mrb[8].mxu0 %vm519_vm3, %v4668_v53  ;;  %v4692_v4 = vsel %vm2218_vm5, %v2244_v49, %v4688_v56 }
  0x50   : > { %3815 = vmatprep.mubr.msk.bf16.mxu0 %vm519_vm3, %v4672_v45  ;;  %v1756_v44 = vsel %vm1735_vm4, %v1753_v55, %v1755_v2  ;;  %v4719_v49 = vsel %vm1735_vm4, %v1755_v2, %v1757_v30  ;;  %v4752_v55 = vsel %vm1735_vm4, %v1763_v61, %v1765_v0  ;;  %v5304_v2 = vrot.slane %v4545_v42, 2 }
  0x52   : > { %v4763_v30 = vsel %vm1735_vm4, %v1765_v0, %v5304_v2  ;;  %v2822_v2 = vld [vmem:[%s4816_s27 + $0x38] sm:$0xff] }
  0x55   : > { %3662 = vmatmul.mubr.msk.bf16.gmra.mrb[28].mxu1 %vm519_vm3, %v518_v3  ;;  %v4747_v3 = vsel %vm1735_vm4, %v1761_v22, %v1763_v61  ;;  %v2819_v22 = vld [vmem:[%s4816_s27 + $0x20] sm:$0xff] }
  0x56   : > { %3667 = vmatprep.mubr.msk.bf16.mxu1 %vm519_vm3, %v4318_v6 }
  0x57   : > { %3816 = vmatmul.mubr.msk.bf16.gmra.mrb[12].mxu0 %vm519_vm3, %v1752_v35 }
  0x58   : > { %3819 = vmatprep.mubr.msk.bf16.mxu0 %vm519_vm3, %v4699_v34 }
  0x5d   : > { %3668 = vmatmul.mubr.msk.bf16.vlgmr.msra.gmra.mrb[0].mxu1 %vm519_vm3, %v4321_v7 }
  0x5e   : > { %3700 = vmatpush3.bf16.msra.mxu1 %v1014_v12  ;;  %3671 = vmatprep.mubr.msk.bf16.mxu1 %vm519_vm3, %v4325_v9  ;;  %v2340_v12 = vsel %vm568_vm0, %v4579_v19, 0  ;;  %v4246_v19 = vmov 0  }
  0x5f   : > { %4198 = vmatprep.subr.msk.bf16.mxu1 %vm568_vm0, %v4711_v15  ;;  %3820 = vmatmul.mubr.msk.bf16.gmra.mrb[16].mxu0 %vm519_vm3, %v1756_v44 }
  0x60   : > { %3823 = vmatprep.mubr.msk.bf16.mxu0 %vm519_vm3, %v4719_v49  ;;  %4214 = vset.pattern.permute.xlu0 %v4246_v19 }
  0x61   : > { %4215 = vset.pattern.permute.xlu1 %v4246_v19 }
  0x65   : > { %3672 = vmatmul.mubr.msk.bf16.gmra.mrb[4].mxu1 %vm519_vm3, %v4339_v17 }
  0x66   : > { %3675 = vmatprep.mubr.msk.bf16.mxu1 %vm519_vm3, %v4342_v18 }
  0x67   : > { %3824 = vmatmul.mubr.msk.bf16.gmra.mrb[20].mxu0 %vm519_vm3, %v4731_v14 }
  0x68   : > { %3827 = vmatprep.mubr.msk.bf16.mxu0 %vm519_vm3, %v4736_v54 }
  0x6d   : > { %3676 = vmatmul.mubr.msk.bf16.gmra.mrb[8].mxu1 %vm519_vm3, %v4354_v31 }
  0x6e   : > { %3679 = vmatprep.mubr.msk.bf16.mxu1 %vm519_vm3, %v4371_v41 }
  0x6f   : > { %3828 = vmatmul.mubr.msk.bf16.gmra.mrb[24].mxu0 %vm519_vm3, %v4747_v3 }
  0x70   : > { %3831 = vmatprep.mubr.msk.bf16.mxu0 %vm519_vm3, %v4752_v55 }
  0x75   : > { %3680 = vmatmul.mubr.msk.bf16.gmra.mrb[12].mxu1 %vm519_vm3, %v4389_v50 }
  0x76   : > { %3683 = vmatprep.mubr.msk.bf16.mxu1 %vm519_vm3, %v4423_v63 }
  0x77   : > { %3832 = vmatmul.mubr.msk.bf16.gmra.mrb[28].mxu0 %vm519_vm3, %v4763_v30 }
  0x78   : > { %3837 = vmatprep.mubr.msk.bf16.mxu0 %vm519_vm3, %v4557_v52  ;;  %v932_v52 = vrot.slane %v4318_v6, 1  ;;  %v935_v6 = vrot.slane %v4325_v9, 1 }
  0x7d   : > { %3684 = vmatmul.mubr.msk.bf16.gmra.mrb[16].mxu1 %vm519_vm3, %v4454_v23 }
  0x7e   : > { %3687 = vmatprep.mubr.msk.bf16.mxu1 %vm519_vm3, %v4484_v47 }
  0x7f   : > { %3838 = vmatmul.mubr.msk.bf16.vlgmr.msra.gmra.mrb[0].mxu0 %vm519_vm3, %v4563_v57  ;;  %v933_v57 = vrot.slane %v4321_v7, 1  ;;  %v937_v7 = vrot.slane %v4339_v17, 1  ;;  %v2816_v17 = vld [vmem:[%s4816_s27 + $0x8] sm:$0xff] }
  0x80   : > { %3870 = vmatpush3.bf16.msra.mxu0 %v2340_v12  ;;  %3841 = vmatprep.mubr.msk.bf16.mxu0 %vm519_vm3, %v4612_v26  ;;  %v2823_v12 = vld [vmem:[%s4816_s27 + $0x40] sm:$0xff] }
  0x81   : > { %4204 = vmatprep.subr.msk.bf16.mxu0 %vm568_vm0, %v4780_v36  ;;  %v934_v26 = vsel %vm931_vm6, %v932_v52, %v933_v57  ;;  %v4824_v9 = vsel %vm931_vm6, %v933_v57, %v935_v6  ;;  %v2824_v57 = vld [vmem:[%s4816_s27 + $0x48] sm:$0xff] }
  0x85   : > { %3688 = vmatmul.mubr.msk.bf16.gmra.mrb[20].mxu1 %vm519_vm3, %v4492_v58 }
  0x86   : > { %3691 = vmatprep.mubr.msk.bf16.mxu1 %vm519_vm3, %v4512_v10 }
  0x87   : > { %3842 = vmatmul.mubr.msk.bf16.gmra.mrb[4].mxu0 %vm519_vm3, %v4626_v33  ;;  %v2815_v33 = vld [vmem:[%s4816_s27] sm:$0xff] }
  0x88   : > { %3845 = vmatprep.mubr.msk.bf16.mxu0 %vm519_vm3, %v4668_v53  ;;  %v2817_v53 = vld [vmem:[%s4816_s27 + $0x10] sm:$0xff]  ;;  %2849 = vperm.xlu0 %4214, %v2815_v33   ;;  %v2826_v33 = vld [vmem:[%s4816_s27 + $0x58] sm:$0xff] }
  0x89   : > { %2859 = vperm.xlu1 %4215, %v2817_v53   ;;  %v2827_v53 = vld [vmem:[%s4816_s27 + $0x60] sm:$0xff] }
  0x8c   : > { %2854 = vperm.xlu0 %4214, %v2816_v17  }
  0x8d   : > { %3692 = vmatmul.mubr.msk.bf16.gmra.mrb[24].mxu1 %vm519_vm3, %v4524_v25 }
  0x8e   : > { %3695 = vmatprep.mubr.msk.bf16.mxu1 %vm519_vm3, %v4553_v48 }
  0x8f   : > { %3846 = vmatmul.mubr.msk.bf16.gmra.mrb[8].mxu0 %vm519_vm3, %v4672_v45  ;;  %v1217_v45 = vsel %vm568_vm0, %v4711_v15, 0  ;;  %v2818_v15 = vld [vmem:[%s4816_s27 + $0x18] sm:$0xff] }
  0x90   : > { %3849 = vmatprep.mubr.msk.bf16.mxu0 %vm519_vm3, %v1752_v35  ;;  %v4830_v35 = vsel %vm931_vm6, %v935_v6, %v937_v7  ;;  %2864 = vperm.xlu1 %4215, %v2818_v15   ;;  %v1481_v6 = vshrl.u32 %v4545_v42, 16 }
  0x91   : > { %2869 = vperm.xlu0 %4214, %v2819_v22   ;;  %v951_v22 = vrot.slane %v4484_v47, 1 }
  0x92   : > { %v4890_v17 = vrot.slane %v1481_v6, 1 }
  0x95   : > { %3696 = vmatmul.mubr.msk.bf16.gmra.mrb[28].mxu1 %vm519_vm3, %v4573_v13 }
  0x96   : > { %3701 = vmatprep.mubr.msk.bf16.mxu1 %vm519_vm3, %v934_v26  ;;  %v2825_v26 = vld [vmem:[%s4816_s27 + $0x50] sm:$0xff] }
  0x97   : > { %3850 = vmatmul.mubr.msk.bf16.gmra.mrb[12].mxu0 %vm519_vm3, %v4699_v34  ;;  %v939_v34 = vrot.slane %v4342_v18, 1  ;;  %v2820_v18 = vld [vmem:[%s4816_s27 + $0x28] sm:$0xff] }
  0x98   : > { %3853 = vmatprep.mubr.msk.bf16.mxu0 %vm519_vm3, %v1756_v44  ;;  %v941_v44 = vrot.slane %v4354_v31, 1  ;;  %2874 = vperm.xlu1 %4215, %v2820_v18   ;;  %v953_v18 = vrot.slane %v4492_v58, 1 }
  0x99   : > { %v4847_v61 = vsel %vm931_vm6, %v937_v7, %v939_v34  ;;  %v1484_v7 = vshll.u32 %v4545_v42, 16 }
  0x9a   : > { %v4851_v0 = vsel %vm931_vm6, %v939_v34, %v941_v44 }
  0x9c   : > { %2884 = vperm.xlu1 %4215, %v2822_v2   ;;  %v2832_v2 = vld [vmem:[%s4816_s27 + $0x88] sm:$0xff] }
  0x9d   : > { %3702 = vmatmul.mubr.msk.bf16.vlgmr.msra.gmra.mrb[0].mxu1 %vm519_vm3, %v4824_v9 }
  0x9e   : > { %3734 = vmatpush3.bf16.msra.mxu1 %v1217_v45  ;;  %3705 = vmatprep.mubr.msk.bf16.mxu1 %vm519_vm3, %v4830_v35  ;;  %v4894_v45 = vrot.slane %v1484_v7, 2 }
  0x9f   : > { %4200 = vmatprep.subr.msk.bf16.mxu1 %vm568_vm0, %v4288_v1  ;;  %3854 = vmatmul.mubr.msk.bf16.gmra.mrb[16].mxu0 %vm519_vm3, %v4719_v49  ;;  %v2821_v1 = vld [vmem:[%s4816_s27 + $0x30] sm:$0xff]  ;;  %v943_v49 = vrot.slane %v4371_v41, 1 }
  0xa0   : > { %3857 = vmatprep.mubr.msk.bf16.mxu0 %vm519_vm3, %v4731_v14  ;;  %2879 = vperm.xlu0 %4214, %v2821_v1   ;;  %v945_v14 = vrot.slane %v4389_v50, 1  ;;  %v1487_v15 = vor.u32 %v4894_v45, %v4890_v17  ;;  %v2830_v1 = vld [vmem:[%s4816_s27 + $0x78] sm:$0xff] }
  0xa1   : > { %v4867_v52 = vsel %vm931_vm6, %v941_v44, %v943_v49  ;;  %2894 = vperm.xlu1 %4215, %v2824_v57   ;;  %v2833_v57 = vld [vmem:[%s4816_s27 + $0x90] sm:$0xff] }
  0xa2   : > { %v4871_v19 = vsel %vm931_vm6, %v943_v49, %v945_v14  ;;  %v2831_v49 = vld [vmem:[%s4816_s27 + $0x80] sm:$0xff] }
  0xa4   : > { %2889 = vperm.xlu0 %4214, %v2823_v12   ;;  %v4923_v12 = vsel %vm931_vm6, %v951_v22, %v953_v18 }
  0xa5   : > { %3706 = vmatmul.mubr.msk.bf16.gmra.mrb[4].mxu1 %vm519_vm3, %v4847_v61  ;;  %2904 = vperm.xlu1 %4215, %v2826_v33  }
  0xa6   : > { %3709 = vmatprep.mubr.msk.bf16.mxu1 %vm519_vm3, %v4851_v0 }
  0xa7   : > { %3858 = vmatmul.mubr.msk.bf16.gmra.mrb[20].mxu0 %vm519_vm3, %v4736_v54  ;;  %v947_v54 = vrot.slane %v4423_v63, 1 }
  0xa8   : > { %3861 = vmatprep.mubr.msk.bf16.mxu0 %vm519_vm3, %v4747_v3  ;;  %2899 = vperm.xlu0 %4214, %v2825_v26   ;;  %v949_v3 = vrot.slane %v4454_v23, 1  ;;  %v957_v26 = vrot.slane %v4524_v25, 1 }
  0xa9   : > { %v4897_v34 = vsel %vm931_vm6, %v945_v14, %v947_v54 }
  0xaa   : > { %v4901_v44 = vsel %vm931_vm6, %v947_v54, %v949_v3  ;;  %v4919_v14 = vsel %vm931_vm6, %v949_v3, %v951_v22  ;;  %v2834_v54 = vld [vmem:[%s4816_s27 + $0x98] sm:$0xff]  ;;  %v2835_v3 = vld [vmem:[%s4816_s27 + $0xa0] sm:$0xff] }
  0xab   : > { %v2839_v22 = vld [vmem:[%s4816_s27 + $0xc0] sm:$0xff] }
  0xac   : > { %2909 = vperm.xlu0 %4214, %v2827_v53   ;;  %v2836_v53 = vld [vmem:[%s4816_s27 + $0xa8] sm:$0xff] }
  0xad   : > { %3710 = vmatmul.mubr.msk.bf16.gmra.mrb[8].mxu1 %vm519_vm3, %v4867_v52 }
  0xae   : > { %3713 = vmatprep.mubr.msk.bf16.mxu1 %vm519_vm3, %v4871_v19 }
  0xaf   : > { %3862 = vmatmul.mubr.msk.bf16.gmra.mrb[24].mxu0 %vm519_vm3, %v4752_v55  ;;  %v2828_v55 = vld [vmem:[%s4816_s27 + $0x68] sm:$0xff] }
  0xb0   : > { %3865 = vmatprep.mubr.msk.bf16.mxu0 %vm519_vm3, %v4763_v30  ;;  %v2829_v30 = vld [vmem:[%s4816_s27 + $0x70] sm:$0xff]  ;;  %2914 = vperm.xlu1 %4215, %v2828_v55  }
  0xb1   : > { %2919 = vperm.xlu0 %4214, %v2829_v30   ;;  %v2837_v55 = vld [vmem:[%s4816_s27 + $0xb0] sm:$0xff]  ;;  %v2838_v30 = vld [vmem:[%s4816_s27 + $0xb8] sm:$0xff] }
  0xb4   : > { %2924 = vperm.xlu1 %4215, %v2830_v1  }
  0xb5   : > { %3714 = vmatmul.mubr.msk.bf16.gmra.mrb[12].mxu1 %vm519_vm3, %v4897_v34  ;;  %2929 = vperm.xlu0 %4214, %v2831_v49   ;;  %v2840_v49 = vld [vmem:[%s4816_s27 + $0xc8] sm:$0xff] }
  0xb6   : > { %3717 = vmatprep.mubr.msk.bf16.mxu1 %vm519_vm3, %v4901_v44 }
  0xb7   : > { %3866 = vmatmul.mubr.msk.bf16.gmra.mrb[28].mxu0 %vm519_vm3, %v4598_v62  ;;  %v2620_v62 = vsel %vm568_vm0, %v4780_v36, 0 }
  0xb8   : > { %3871 = vmatprep.mubr.msk.bf16.mxu0 %vm519_vm3, %v4618_v40  ;;  %2934 = vperm.xlu1 %4215, %v2832_v2   ;;  %v955_v40 = vrot.slane %v4512_v10, 1  ;;  %v2841_v2 = vld [vmem:[%s4816_s27 + $0xd0] sm:$0xff] }
  0xb9   : > { %2939 = vperm.xlu0 %4214, %v2833_v57   ;;  %v2251_v57 = vrot.slane %v4499_v60, 3 }
  0xba   : > { %v4941_v36 = vsel %vm931_vm6, %v953_v18, %v955_v40  ;;  %v4944_v33 = vsel %vm931_vm6, %v955_v40, %v957_v26  ;;  %v2255_v40 = vrot.slane %v4509_v11, 3 }
  0xbc   : > { %2944 = vperm.xlu1 %4215, %v2834_v54   ;;  %v2843_v54 = vld [vmem:[%s4816_s27 + $0xe0] sm:$0xff] }
  0xbd   : > { %3718 = vmatmul.mubr.msk.bf16.gmra.mrb[16].mxu1 %vm519_vm3, %v4919_v14  ;;  %2949 = vperm.xlu0 %4214, %v2835_v3  }
  0xbe   : > { %3721 = vmatprep.mubr.msk.bf16.mxu1 %vm519_vm3, %v4923_v12 }
  0xbf   : > { %3872 = vmatmul.mubr.msk.bf16.vlgmr.msra.gmra.mrb[0].mxu0 %vm519_vm3, %v4633_v21  ;;  %v959_v21 = vrot.slane %v4553_v48, 1 }
  0xc0   : > { %3904 = vmatpush3.bf16.msra.mxu0 %v2620_v62  ;;  %3875 = vmatprep.mubr.msk.bf16.mxu0 %vm519_vm3, %v4640_v59  ;;  %v961_v59 = vrot.slane %v4573_v13, 1  ;;  %v2254_v62 = vrot.slane %v4528_v27, 2 }
  0xc1   : > { %2954 = vperm.xlu1 %4215, %v2836_v53   ;;  %2959 = vperm.xlu0 %4214, %v2837_v55   ;;  %v4961_v18 = vsel %vm931_vm6, %v957_v26, %v959_v21  ;;  %v2842_v26 = vld [vmem:[%s4816_s27 + $0xd8] sm:$0xff] }
  0xc2   : > { %v4964_v1 = vsel %vm931_vm6, %v959_v21, %v961_v59  ;;  %v2256_v55 = vor.u32 %v2255_v40, %v2254_v62  ;;  %v2844_v21 = vld [vmem:[%s4816_s27 + $0xe8] sm:$0xff]  ;;  %v2266_v62 = vrot.slane %v4593_v37, 2  ;;  %v2267_v40 = vrot.slane %v4586_v24, 3 }
  0xc5   : > { %3722 = vmatmul.mubr.msk.bf16.gmra.mrb[20].mxu1 %vm519_vm3, %v4941_v36  ;;  %2964 = vperm.xlu1 %4215, %v2838_v30   ;;  %v2845_v30 = vld [vmem:[%s4816_s27 + $0xf0] sm:$0xff] }
  0xc6   : > { %3725 = vmatprep.mubr.msk.bf16.mxu1 %vm519_vm3, %v4944_v33  ;;  %2969 = vperm.xlu0 %4214, %v2839_v22   ;;  %v2259_v22 = vrot.slane %v4531_v28, 3 }
  0xc7   : > { %3876 = vmatmul.mubr.msk.bf16.gmra.mrb[4].mxu0 %vm519_vm3, %v4649_v16  ;;  %v2250_v16 = vrot.slane %v4506_v8, 2 }
  0xc8   : > { %3879 = vmatprep.mubr.msk.bf16.mxu0 %vm519_vm3, %v4662_v29  ;;  %v963_v29 = vrot.slane %v4630_v32, 1 }
  0xc9   : > { %2974 = vperm.xlu1 %4215, %v2840_v49   ;;  %v2252_v3 = vor.u32 %v2251_v57, %v2250_v16  ;;  %v2262_v49 = vrot.slane %v4568_v5, 2  ;;  %v2846_v16 = vld [vmem:[%s4816_s27 + $0xf8] sm:$0xff] }
  0xca   : > { %2979 = vperm.xlu0 %4214, %v2841_v2   ;;  %v4986_v53 = vsel %vm931_vm6, %v961_v59, %v963_v29  ;;  %v2263_v2 = vrot.slane %v4542_v39, 3 }
  0xcb   : > { %v2257_v59 = vsel %vm2218_vm5, %v2252_v3, %v2256_v55 }
  0xcc   : > { %v2264_v57 = vor.u32 %v2263_v2, %v2262_v49  ;;  %v2279_v49 = vrot.slane %v1484_v7, 3  ;;  %v5306_v2 = vld [vmem:[#allocation4_spill] sm:$0xff] }
  0xcd   : > { %3726 = vmatmul.mubr.msk.bf16.gmra.mrb[24].mxu1 %vm519_vm3, %v4961_v18  ;;  %2984 = vperm.xlu1 %4215, %v2842_v26   ;;  %v5305_v26 = vld [vmem:[#allocation2_spill] sm:$0xff] }
  0xce   : > { %3729 = vmatprep.mubr.msk.bf16.mxu1 %vm519_vm3, %v4964_v1  ;;  %2989 = vperm.xlu0 %4214, %v2843_v54  }
  0xcf   : > { %3880 = vmatmul.mubr.msk.bf16.gmra.mrb[8].mxu0 %vm519_vm3, %v4677_v46  ;;  %v2253_v46 = vsel %vm2218_vm5, %v4688_v56, %v2252_v3  ;;  %v2270_v3 = vrot.slane %v4653_v20, 2 }
  0xd0   : > { %3883 = vmatprep.mubr.msk.bf16.mxu0 %vm519_vm3, %v4692_v4  ;;  %v2258_v4 = vrot.slane %v4539_v38, 2 }
  0xd1   : > { %2994 = vperm.xlu1 %4215, %v2844_v21   ;;  %v2271_v21 = vrot.slane %v4608_v43, 3 }
  0xd2   : > { %2999 = vperm.xlu0 %4214, %v2845_v30   ;;  %v2260_v56 = vor.u32 %v2259_v22, %v2258_v4  ;;  %v2275_v4 = vrot.slane %v4656_v51, 3 }
  0xd3   : > { %v2272_v30 = vor.u32 %v2271_v21, %v2270_v3  ;;  %v4237_v21 = vld [vmem:[%s4315_s30 + $0x20] sm:$0xff]  }
  0xd4   : > { %v2265_v54 = vsel %vm2218_vm5, %v2260_v56, %v2264_v57 }
  0xd5   : > { %3730 = vmatmul.mubr.msk.bf16.gmra.mrb[28].mxu1 %vm519_vm3, %v4986_v53  ;;  %3004 = vperm.xlu1 %4215, %v2846_v16   ;;  %v2283_v16 = vshrl.u32 %v5306_v2, 16 }
  0xd6   : > { %3735 = vmatprep.mubr.msk.bf16.mxu1 %vm519_vm3, %v4824_v9  ;;  %v2261_v9 = vsel %vm2218_vm5, %v2256_v55, %v2260_v56  ;;  %v1474_v55 = vshrl.u32 %v4630_v32, 16  ;;  %v2286_v56 = vshll.u32 %v5306_v2, 16 }
  0xd7   : > { %3884 = vmatmul.mubr.msk.bf16.gmra.mrb[12].mxu0 %vm519_vm3, %v2253_v46 }
  0xd8   : > { %3887 = vmatprep.mubr.msk.bf16.mxu0 %vm519_vm3, %v2257_v59  ;;  %v2278_v59 = vrot.slane %v1481_v6, 2 }
  0xdd   : > { %3736 = vmatmul.mubr.msk.bf16.vlgmr.msra.gmra.mrb[0].mxu1 %vm519_vm3, %v4830_v35  ;;  %v2268_v35 = vor.u32 %v2267_v40, %v2266_v62  ;;  %v4235_v40 = vld [vmem:[%s4315_s30 + $0x10] sm:$0xff]  }
  0xde   : > { %3938 = vmatpush3.bf16.msra.mxu1 %v5305_v26  ;;  %3739 = vmatprep.mubr.msk.bf16.mxu1 %vm519_vm3, %v4847_v61  ;;  %v2274_v61 = vrot.slane %v1474_v55, 2  ;;  %v2538_v26 = vrot.slane %v4235_v40, 3  ;;  %v1471_v40 = vrot.slane %v4608_v43, 2  ;;  %v2565_v43 = vrot.slane %v4630_v32, 3 }
  0xdf   : > { %3888 = vmatmul.mubr.msk.bf16.gmra.mrb[16].mxu0 %vm519_vm3, %v2261_v9  ;;  %v2269_v46 = vsel %vm2218_vm5, %v2264_v57, %v2268_v35  ;;  %v2273_v22 = vsel %vm2218_vm5, %v2268_v35, %v2272_v30  ;;  %v2285_v57 = vrot.slane %v2283_v16, 2  ;;  %v2288_v9 = vrot.slane %v2286_v56, 3 }
  0xe0   : > { %3891 = vmatprep.mubr.msk.bf16.mxu0 %vm519_vm3, %v2265_v54  ;;  %v4236_v54 = vld [vmem:[%s4315_s30 + $0x18] sm:$0xff]   ;;  %v2541_v35 = vrot.slane %v4237_v21, 3  ;;  %v1459_v16 = vrot.slane %v4531_v28, 2  ;;  %v2559_v28 = vrot.slane %v4524_v25, 3  ;;  %v2569_v32 = vrot.slane %v5306_v2, 3  ;;  %s248_s30 = scalar_lea.vmem %s5292_s4, %s3302_s21 }
  0xe1   : > { %v2289_v62 = vor.u32 %v2288_v9, %v2285_v57  ;;  %v2539_v3 = vrot.slane %v4236_v54, 3  ;;  %v1466_v57 = vrot.slane %v4593_v37, 1  ;;  %v1467_v9 = vrot.slane %v4586_v24, 2 }
  0xe2   : > { %v2563_v24 = vrot.slane %v4573_v13, 3  ;;  %v1470_v37 = vrot.slane %v4653_v20, 1  ;;  %v1476_v54 = vrot.slane %v1474_v55, 1 }
  0xe3   : > { %v1468_v25 = vor.u32 %v1467_v9, %v1466_v57 }
  0xe4   : > { %v1472_v13 = vor.u32 %v1471_v40, %v1470_v37  ;;  %v2566_v21 = vsel %vm2537_vm7, %v2563_v24, %v2565_v43 }
  0xe5   : > { %3740 = vmatmul.mubr.msk.bf16.gmra.mrb[4].mxu1 %vm519_vm3, %v4851_v0  ;;  %v2276_v0 = vor.u32 %v2275_v4, %v2274_v61  ;;  %v2547_v61 = vrot.slane %v4389_v50, 3  ;;  %v1450_v50 = vrot.slane %v4506_v8, 1  ;;  %v1451_v4 = vrot.slane %v4499_v60, 2 }
  0xe6   : > { %3743 = vmatprep.mubr.msk.bf16.mxu1 %vm519_vm3, %v4867_v52  ;;  %v2280_v52 = vor.u32 %v2279_v49, %v2278_v59  ;;  %v2555_v60 = vrot.slane %v4492_v58, 3  ;;  %v1454_v8 = vrot.slane %v4528_v27, 1  ;;  %v1473_v20 = vsel %vm1414_vm2, %v1468_v25, %v1472_v13 }
  0xe7   : > { %3892 = vmatmul.mubr.msk.bf16.gmra.mrb[20].mxu0 %vm519_vm3, %v2269_v46  ;;  %v2277_v6 = vsel %vm2218_vm5, %v2272_v30, %v2276_v0  ;;  %v2543_v30 = vrot.slane %v4354_v31, 3  ;;  %v2545_v46 = vrot.slane %v4371_v41, 3  ;;  %v2551_v41 = vrot.slane %v4454_v23, 3 }
  0xe8   : > { %3895 = vmatprep.mubr.msk.bf16.mxu0 %vm519_vm3, %v2273_v22  ;;  %v2281_v7 = vsel %vm2218_vm5, %v2276_v0, %v2280_v52  ;;  %v1211_v22 = vrot.slane %v4545_v42, 1  ;;  %v1452_v59 = vor.u32 %v1451_v4, %v1450_v50  ;;  %v1458_v0 = vrot.slane %v4539_v38, 1 }
  0xe9   : > { %v2546_v31 = vsel %vm2537_vm7, %v2543_v30, %v2545_v46  ;;  %v1462_v38 = vrot.slane %v4568_v5, 1 }
  0xea   : > { %v1212_v23 = vsel %vm931_vm6, %v963_v29, %v1211_v22  ;;  %v1460_v56 = vor.u32 %v1459_v16, %v1458_v0 }
  0xed   : > { %3744 = vmatmul.mubr.msk.bf16.gmra.mrb[8].mxu1 %vm519_vm3, %v4871_v19  ;;  %v2290_v19 = vsel %vm2218_vm5, %v2280_v52, %v2289_v62  ;;  %v1463_v52 = vrot.slane %v4542_v39, 2  ;;  %v2561_v39 = vrot.slane %v4553_v48, 3 }
  0xee   : > { %3747 = vmatprep.mubr.msk.bf16.mxu1 %vm519_vm3, %v4897_v34  ;;  %v2540_v34 = vsel %vm2537_vm7, %v2538_v26, %v2539_v3 }
  0xef   : > { %3896 = vmatmul.mubr.msk.bf16.gmra.mrb[24].mxu0 %vm519_vm3, %v2277_v6  ;;  %v1464_v62 = vor.u32 %v1463_v52, %v1462_v38  ;;  %v2564_v48 = vsel %vm2537_vm7, %v2561_v39, %v2563_v24 }
  0xf0   : > { %3899 = vmatprep.mubr.msk.bf16.mxu0 %vm519_vm3, %v2281_v7 }
  0xf1   : > { %v1465_v5 = vsel %vm1414_vm2, %v1460_v56, %v1464_v62  ;;  %v1469_v26 = vsel %vm1414_vm2, %v1464_v62, %v1468_v25 }
  0xf5   : > { %3748 = vmatmul.mubr.msk.bf16.gmra.mrb[12].mxu1 %vm519_vm3, %v4901_v44  ;;  %v2542_v44 = vsel %vm2537_vm7, %v2539_v3, %v2541_v35  ;;  %v1477_v3 = vrot.slane %v4656_v51, 2  ;;  %v2567_v51 = vrot.slane %v4545_v42, 3 }
  0xf6   : > { %3751 = vmatprep.mubr.msk.bf16.mxu1 %vm519_vm3, %v4919_v14  ;;  %v2544_v14 = vsel %vm2537_vm7, %v2541_v35, %v2543_v30 }
  0xf7   : > { %3900 = vmatmul.mubr.msk.bf16.gmra.mrb[28].mxu0 %vm519_vm3, %v2290_v19  ;;  %v2562_v19 = vsel %vm2537_vm7, %v2559_v28, %v2561_v39  ;;  %v2568_v35 = vsel %vm2537_vm7, %v2565_v43, %v2567_v51  ;;  %v2570_v30 = vsel %vm2537_vm7, %v2567_v51, %v2569_v32 }
  0xf8   : > { %3905 = vmatprep.mubr.msk.bf16.mxu0 %vm519_vm3, %v2540_v34  ;;  %v1478_v34 = vor.u32 %v1477_v3, %v1476_v54 }
  0xfa   : > { %v1479_v55 = vsel %vm1414_vm2, %v1472_v13, %v1478_v34  ;;  %v1488_v42 = vsel %vm1414_vm2, %v1478_v34, %v1487_v15 }
  0xfd   : > { %3752 = vmatmul.mubr.msk.bf16.gmra.mrb[16].mxu1 %vm519_vm3, %v4923_v12  ;;  %v2548_v12 = vsel %vm2537_vm7, %v2545_v46, %v2547_v61 }
  0xfe   : > { %3755 = vmatprep.mubr.msk.bf16.mxu1 %vm519_vm3, %v4941_v36  ;;  %v2549_v36 = vrot.slane %v4423_v63, 3  ;;  %v2553_v63 = vrot.slane %v4484_v47, 3 }
  0xff   : > { %3906 = vmatmul.mubr.msk.bf16.vlgmr.msra.gmra.mrb[0].mxu0 %vm519_vm3, %v2542_v44 }
 0x100   : > { %3909 = vmatprep.mubr.msk.bf16.mxu0 %vm519_vm3, %v2544_v14  ;;  %v2554_v47 = vsel %vm2537_vm7, %v2551_v41, %v2553_v63  ;;  %v2556_v29 = vsel %vm2537_vm7, %v2553_v63, %v2555_v60 }
 0x105   : > { %3756 = vmatmul.mubr.msk.bf16.gmra.mrb[20].mxu1 %vm519_vm3, %v4944_v33  ;;  %v2550_v33 = vsel %vm2537_vm7, %v2547_v61, %v2549_v36 }
 0x106   : > { %3759 = vmatprep.mubr.msk.bf16.mxu1 %vm519_vm3, %v4961_v18  ;;  %v2552_v18 = vsel %vm2537_vm7, %v2549_v36, %v2551_v41 }
 0x107   : > { %3910 = vmatmul.mubr.msk.bf16.gmra.mrb[4].mxu0 %vm519_vm3, %v2546_v31  ;;  %v2850_v31 = vpop.permute.xlu0 %2849 }
 0x108   : > { %3913 = vmatprep.mubr.msk.bf16.mxu0 %vm519_vm3, %v2548_v12  ;;  %v2860_v12 = vpop.permute.xlu1 %2859 }
 0x10b   : > { %v2855_v2 = vpop.permute.xlu0 %2854 }
 0x10d   : > { %3760 = vmatmul.mubr.msk.bf16.gmra.mrb[24].mxu1 %vm519_vm3, %v4964_v1  ;;  %v1455_v1 = vrot.slane %v4509_v11, 2  ;;  %v2557_v11 = vrot.slane %v4512_v10, 3 }
 0x10e   : > { %3763 = vmatprep.mubr.msk.bf16.mxu1 %vm519_vm3, %v4986_v53  ;;  %v5307_v53 = vld [vmem:[#allocation3_spill] sm:$0xff] }
 0x10f   : > { %3914 = vmatmul.mubr.msk.bf16.gmra.mrb[8].mxu0 %vm519_vm3, %v2550_v33  ;;  %v1453_v49 = vsel %vm1414_vm2, %v5307_v53, %v1452_v59  ;;  %v1456_v58 = vor.u32 %v1455_v1, %v1454_v8  ;;  %v2558_v7 = vsel %vm2537_vm7, %v2555_v60, %v2557_v11  ;;  %v2560_v10 = vsel %vm2537_vm7, %v2557_v11, %v2559_v28  ;;  %v2865_v17 = vpop.permute.xlu1 %2864 }
 0x110   : > { %3917 = vmatprep.mubr.msk.bf16.mxu0 %vm519_vm3, %v2552_v18  ;;  %v2870_v45 = vpop.permute.xlu0 %2869 }
 0x111   : > { %v1457_v27 = vsel %vm1414_vm2, %v1452_v59, %v1456_v58  ;;  %v1461_v6 = vsel %vm1414_vm2, %v1456_v58, %v1460_v56 }
 0x115   : > { %3764 = vmatmul.mubr.msk.bf16.gmra.mrb[28].mxu1 %vm519_vm3, %v1212_v23 }
 0x116   : > { %3785 = vmatprep.mubr.msk.bf16.mxu1 %vm519_vm3, %v1453_v49 }
 0x117   : > { %3918 = vmatmul.mubr.msk.bf16.gmra.mrb[12].mxu0 %vm519_vm3, %v2554_v47  ;;  %v2875_v18 = vpop.permute.xlu1 %2874 }
 0x118   : > { %3921 = vmatprep.mubr.msk.bf16.mxu0 %vm519_vm3, %v2556_v29 }
 0x11b   : > { %v2885_v23 = vpop.permute.xlu1 %2884 }
 0x11d   : > { %3786 = vmatmul.mubr.msk.bf16.vlgmr.msra.gmra.mrb[16].mxu1 %vm519_vm3, %v1457_v27 }
 0x11e   : > { %3789 = vmatprep.mubr.msk.bf16.mxu1 %vm519_vm3, %v1461_v6 }
 0x11f   : > { %3922 = vmatmul.mubr.msk.bf16.gmra.mrb[16].mxu0 %vm519_vm3, %v2558_v7  ;;  %v2880_v63 = vpop.permute.xlu0 %2879 }
 0x120   : > { %3925 = vmatprep.mubr.msk.bf16.mxu0 %vm519_vm3, %v2560_v10  ;;  %v5168_v0 = vpop.permute.xlu1 %2894 }
 0x123   : > { %v5166_v49 = vpop.permute.xlu0 %2889 }
 0x124   : > { %v5172_v29 = vpop.permute.xlu1 %2904 }
 0x125   : > { %3790 = vmatmul.mubr.msk.bf16.gmra.mrb[20].mxu1 %vm519_vm3, %v1465_v5 }
 0x126   : > { %3793 = vmatprep.mubr.msk.bf16.mxu1 %vm519_vm3, %v1469_v26 }
 0x127   : > { %3926 = vmatmul.mubr.msk.bf16.gmra.mrb[20].mxu0 %vm519_vm3, %v2562_v19  ;;  %v5170_v16 = vpop.permute.xlu0 %2899 }
 0x128   : > { %3929 = vmatprep.mubr.msk.bf16.mxu0 %vm519_vm3, %v2564_v48 }
 0x12b   : > { %v5174_v9 = vpop.permute.xlu0 %2909 }
 0x12d   : > { %3794 = vmatmul.mubr.msk.bf16.gmra.mrb[24].mxu1 %vm519_vm3, %v1473_v20 }
 0x12e   : > { %3797 = vmatprep.mubr.msk.bf16.mxu1 %vm519_vm3, %v1479_v55 }
 0x12f   : > { %3930 = vmatmul.mubr.msk.bf16.gmra.mrb[24].mxu0 %vm519_vm3, %v2566_v21  ;;  %v5176_v25 = vpop.permute.xlu1 %2914 }
 0x130   : > { %3933 = vmatprep.mubr.msk.bf16.mxu0 %vm519_vm3, %v2568_v35  ;;  %v5183_v51 = vpop.permute.xlu0 %2919 }
 0x135   : > { %3798 = vmatmul.mubr.msk.bf16.gmra.mrb[28].mxu1 %vm519_vm3, %v1488_v42 }
 0x137   : > { %3934 = vmatmul.mubr.msk.bf16.gmra.mrb[28].mxu0 %vm519_vm3, %v2570_v30 }
 0x1b0   : > { %v3737_v44 = vpop.f32.mrb[0].mxu1 }
 0x1b1   : > { %v1253_v14 = vpop.f32.mrb[1].mxu1 }
 0x1b2   : > { %v3738_v46 = vpop.f32.mrb[2].mxu1 }
 0x1b3   : > { %v1256_v61 = vpop.f32.mrb[3].mxu1 }
 0x1b8   : > { %v3741_v36 = vpop.f32.mrb[4].mxu1 }
 0x1b9   : > { %v1269_v41 = vpop.f32.mrb[5].mxu1 }
 0x1ba   : > { %v3742_v50 = vpop.f32.mrb[6].mxu1 }
 0x1bb   : > { %v1272_v4 = vpop.f32.mrb[7].mxu1 }
 0x1c0   : > { %v5150_v15 = vpop.f32.mrb[8].mxu1 }
 0x1c1   : > { %v5152_v33 = vpop.f32.mrb[9].mxu1 }
 0x1c2   : > { %v5154_v22 = vpop.f32.mrb[10].mxu1 }
 0x1c3   : > { %v5156_v59 = vpop.f32.mrb[11].mxu1 }
 0x1c8   : > { %v5158_v60 = vpop.f32.mrb[12].mxu1 }
 0x1c9   : > { %v5160_v8 = vpop.f32.mrb[13].mxu1 }
 0x1ca   : > { %v5162_v1 = vpop.f32.mrb[14].mxu1 }
 0x1cb   : > { %v5164_v53 = vpop.f32.mrb[15].mxu1 }
 0x1d2   : > { %v3907_v47 = vpop.f32.mrb[0].mxu0 }
 0x1d3   : > { %v3939_v58 = vadd.f32 %v3907_v47, %v3737_v44  ;;  %v2656_v56 = vpop.f32.mrb[1].mxu0 }
 0x1d4   : > { %v3940_v11 = vadd.f32 %v2656_v56, %v1253_v14  ;;  %v3908_v27 = vpop.f32.mrb[2].mxu0 }
 0x1d5   : > { %v3009_v28 = vmul.f32 %v3939_v58, %v2860_v12  ;;  %v3941_v38 = vadd.f32 %v3908_v27, %v3738_v46  ;;  %v2659_v52 = vpop.f32.mrb[3].mxu0 }
 0x1d6   : > { %v3007_v6 = vmul.f32 %v3940_v11, %v2850_v31  ;;  %v3942_v57 = vadd.f32 %v2659_v52, %v1256_v61  ;;  %v5187_v61 = vpop.permute.xlu1 %2924 }
 0x1d7   : > { %v3010_v10 = vmul.f32 %v3941_v38, %v2865_v17  ;;  %v3111_v39 = vmul.f32 %v3939_v58, %v3009_v28  ;;  %v3043_v26 = vsel %vm3039_vm8, %v3009_v28, 0.0 }
 0x1d8   : > { %v3109_v7 = vmul.f32 %v3940_v11, %v3007_v6  ;;  %v3008_v62 = vmul.f32 %v3942_v57, %v2855_v2  ;;  %v3040_v5 = vsel %vm3039_vm8, %v3007_v6, 0.0 }
 0x1d9   : > { %v3112_v13 = vmul.f32 %v3941_v38, %v3010_v10  ;;  %v3144_v55 = vsel %vm3039_vm8, %v3111_v39, 0.0  ;;  %v3045_v30 = vsel %vm3039_vm8, %v3010_v10, 0.0 }
 0x1da   : > { %v3041_v24 = vsel %vm3039_vm8, %v3008_v62, 0.0  ;;  %v3110_v37 = vmul.f32 %v3942_v57, %v3008_v62  ;;  %v3911_v40 = vpop.f32.mrb[4].mxu0  ;;  %v3141_v48 = vsel %vm3039_vm8, %v3109_v7, 0.0 }
 0x1db   : > { %v3042_v54 = vadd.f32 %v3041_v24, %v3040_v5  ;;  %v3943_v3 = vadd.f32 %v3911_v40, %v3741_v36  ;;  %v2672_v19 = vpop.f32.mrb[5].mxu0  ;;  %v3146_v36 = vsel %vm3039_vm8, %v3112_v13, 0.0 }
 0x1dc   : > { %v3142_v34 = vsel %vm3039_vm8, %v3110_v37, 0.0  ;;  %v3944_v43 = vadd.f32 %v2672_v19, %v1269_v41  ;;  %v3912_v20 = vpop.f32.mrb[6].mxu0 }
 0x1dd   : > { %v3044_v21 = vadd.f32 %v3043_v26, %v3042_v54  ;;  %v3143_v35 = vadd.f32 %v3142_v34, %v3141_v48  ;;  %v3945_v32 = vadd.f32 %v3912_v20, %v3742_v50  ;;  %v2675_v42 = vpop.f32.mrb[7].mxu0  ;;  %v3013_v44 = vmul.f32 %v3943_v3, %v2880_v63 }
 0x1de   : > { %v3011_v14 = vmul.f32 %v3944_v43, %v2870_v45  ;;  %v3946_v46 = vadd.f32 %v2675_v42, %v1272_v4  ;;  %v5193_v4 = vpop.permute.xlu0 %2929 }
 0x1df   : > { %v3145_v31 = vadd.f32 %v3144_v55, %v3143_v35  ;;  %v3046_v12 = vadd.f32 %v3045_v30, %v3044_v21  ;;  %v3014_v56 = vmul.f32 %v3945_v32, %v2885_v23  ;;  %v3115_v50 = vmul.f32 %v3943_v3, %v3013_v44  ;;  %v5198_v23 = vpop.permute.xlu1 %2934 }
 0x1e0   : > { %v3047_v41 = vsel %vm3039_vm8, %v3011_v14, 0.0  ;;  %v3113_v2 = vmul.f32 %v3944_v43, %v3011_v14  ;;  %v3012_v17 = vmul.f32 %v3946_v46, %v2875_v18  ;;  %v3051_v57 = vsel %vm3039_vm8, %v3013_v44, 0.0 }
 0x1e1   : > { %v3048_v47 = vadd.f32 %v3047_v41, %v3046_v12  ;;  %v3147_v58 = vadd.f32 %v3146_v36, %v3145_v31  ;;  %v3116_v10 = vmul.f32 %v3945_v32, %v3014_v56  ;;  %v3053_v37 = vsel %vm3039_vm8, %v3014_v56, 0.0 }
 0x1e2   : > { %v3148_v11 = vsel %vm3039_vm8, %v3113_v2, 0.0  ;;  %v3049_v63 = vsel %vm3039_vm8, %v3012_v17, 0.0  ;;  %v3915_v45 = vpop.f32.mrb[8].mxu0  ;;  %v3114_v38 = vmul.f32 %v3946_v46, %v3012_v17  ;;  %v3152_v54 = vsel %vm3039_vm8, %v3115_v50, 0.0 }
 0x1e3   : > { %v3149_v27 = vadd.f32 %v3148_v11, %v3147_v58  ;;  %v3050_v28 = vadd.f32 %v3049_v63, %v3048_v47  ;;  %v3947_v52 = vadd.f32 %v3915_v45, %v5150_v15  ;;  %v2688_v6 = vpop.f32.mrb[9].mxu0  ;;  %v3154_v43 = vsel %vm3039_vm8, %v3116_v10, 0.0  ;;  %v5215_v32 = vpop.permute.xlu1 %2944 }
 0x1e4   : > { %v3948_v18 = vadd.f32 %v2688_v6, %v5152_v33  ;;  %v3916_v7 = vpop.f32.mrb[10].mxu0  ;;  %v3150_v39 = vsel %vm3039_vm8, %v3114_v38, 0.0 }
 0x1e5   : > { %v3052_v62 = vadd.f32 %v3051_v57, %v3050_v28  ;;  %v3949_v5 = vadd.f32 %v3916_v7, %v5154_v22  ;;  %v2691_v24 = vpop.f32.mrb[11].mxu0  ;;  %v3151_v40 = vadd.f32 %v3150_v39, %v3149_v27  ;;  %v3017_v33 = vmul.f32 %v3947_v52, %v5170_v16  ;;  %v5209_v22 = vpop.permute.xlu0 %2939 }
 0x1e6   : > { %v3015_v15 = vmul.f32 %v3948_v18, %v5166_v49  ;;  %v3950_v26 = vadd.f32 %v2691_v24, %v5156_v59 }
 0x1e7   : > { %v3054_v3 = vadd.f32 %v3053_v37, %v3052_v62  ;;  %v3153_v19 = vadd.f32 %v3152_v54, %v3151_v40  ;;  %v3018_v49 = vmul.f32 %v3949_v5, %v5172_v29  ;;  %v3119_v42 = vmul.f32 %v3947_v52, %v3017_v33  ;;  %v5231_v6 = vpop.permute.xlu1 %2954 }
 0x1e8   : > { %v3055_v48 = vsel %vm3039_vm8, %v3015_v15, 0.0  ;;  %v3117_v13 = vmul.f32 %v3948_v18, %v3015_v15  ;;  %v3016_v34 = vmul.f32 %v3950_v26, %v5168_v0  ;;  %v3059_v14 = vsel %vm3039_vm8, %v3017_v33, 0.0 }
 0x1e9   : > { %v3056_v20 = vadd.f32 %v3055_v48, %v3054_v3  ;;  %v3155_v55 = vadd.f32 %v3154_v43, %v3153_v19  ;;  %v3120_v36 = vmul.f32 %v3949_v5, %v3018_v49  ;;  %v3061_v47 = vsel %vm3039_vm8, %v3018_v49, 0.0  ;;  %v5225_v50 = vpop.permute.xlu0 %2949 }
 0x1ea   : > { %v3156_v59 = vsel %vm3039_vm8, %v3117_v13, 0.0  ;;  %v3057_v21 = vsel %vm3039_vm8, %v3016_v34, 0.0  ;;  %v3118_v16 = vmul.f32 %v3950_v26, %v3016_v34  ;;  %v3919_v35 = vpop.f32.mrb[12].mxu0  ;;  %v3160_v11 = vsel %vm3039_vm8, %v3119_v42, 0.0 }
 0x1eb   : > { %v3058_v30 = vadd.f32 %v3057_v21, %v3056_v20  ;;  %v3951_v0 = vadd.f32 %v3919_v35, %v5158_v60  ;;  %v2704_v44 = vpop.f32.mrb[13].mxu0  ;;  %v3157_v46 = vadd.f32 %v3156_v59, %v3155_v55  ;;  %v2965_v59 = vpop.permute.xlu1 %2964 }
 0x1ec   : > { %v3158_v31 = vsel %vm3039_vm8, %v3118_v16, 0.0  ;;  %v3952_v29 = vadd.f32 %v2704_v44, %v5160_v8  ;;  %v3920_v12 = vpop.f32.mrb[14].mxu0 }
 0x1ed   : > { %v3060_v41 = vadd.f32 %v3059_v14, %v3058_v30  ;;  %v3953_v2 = vadd.f32 %v3920_v12, %v5162_v1  ;;  %v2707_v17 = vpop.f32.mrb[15].mxu0  ;;  %v3159_v58 = vadd.f32 %v3158_v31, %v3157_v46  ;;  %v3021_v63 = vmul.f32 %v3951_v0, %v5183_v51  ;;  %v2960_v3 = vpop.permute.xlu0 %2959 }
 0x1ee   : > { %v3019_v56 = vmul.f32 %v3952_v29, %v5174_v9  ;;  %v3954_v60 = vadd.f32 %v2707_v17, %v5164_v53  ;;  %v3162_v9 = vsel %vm3039_vm8, %v3120_v36, 0.0 }
 0x1ef   : > { %v3062_v8 = vadd.f32 %v3061_v47, %v3060_v41  ;;  %v3161_v27 = vadd.f32 %v3160_v11, %v3159_v58  ;;  %v3022_v57 = vmul.f32 %v3953_v2, %v5187_v61  ;;  %v3123_v24 = vmul.f32 %v3951_v0, %v3021_v63 }
 0x1f0   : > { %v3787_v45 = vpop.f32.mrb[16].mxu1  ;;  %v3063_v28 = vsel %vm3039_vm8, %v3019_v56, 0.0  ;;  %v3121_v1 = vmul.f32 %v3952_v29, %v3019_v56  ;;  %v3020_v38 = vmul.f32 %v3954_v60, %v5176_v25  ;;  %v3067_v15 = vsel %vm3039_vm8, %v3021_v63, 0.0 }
 0x1f1   : > { %v1638_v52 = vpop.f32.mrb[17].mxu1  ;;  %v3064_v53 = vadd.f32 %v3063_v28, %v3062_v8  ;;  %v3163_v7 = vadd.f32 %v3162_v9, %v3161_v27  ;;  %v3124_v19 = vmul.f32 %v3953_v2, %v3022_v57  ;;  %v3069_v43 = vsel %vm3039_vm8, %v3022_v57, 0.0  ;;  %v2970_v58 = vpop.permute.xlu0 %2969 }
 0x1f2   : > { %v3788_v18 = vpop.f32.mrb[18].mxu1  ;;  %v3164_v51 = vsel %vm3039_vm8, %v3121_v1, 0.0  ;;  %v3065_v10 = vsel %vm3039_vm8, %v3020_v38, 0.0  ;;  %v3122_v62 = vmul.f32 %v3954_v60, %v3020_v38  ;;  %v3923_v39 = vpop.f32.mrb[16].mxu0  ;;  %v3168_v21 = vsel %vm3039_vm8, %v3123_v24, 0.0 }
 0x1f3   : > { %v1641_v5 = vpop.f32.mrb[19].mxu1  ;;  %v3066_v37 = vadd.f32 %v3065_v10, %v3064_v53  ;;  %v3955_v25 = vadd.f32 %v3923_v39, %v3787_v45  ;;  %v2720_v40 = vpop.f32.mrb[17].mxu0  ;;  %v3165_v26 = vadd.f32 %v3164_v51, %v3163_v7  ;;  %v3170_v31 = vsel %vm3039_vm8, %v3124_v19, 0.0 }
 0x1f4   : > { %v3166_v54 = vsel %vm3039_vm8, %v3122_v62, 0.0  ;;  %v3956_v33 = vadd.f32 %v2720_v40, %v1638_v52  ;;  %v3924_v61 = vpop.f32.mrb[18].mxu0  ;;  %v2975_v28 = vpop.permute.xlu1 %2974 }
 0x1f5   : > { %v3068_v48 = vadd.f32 %v3067_v15, %v3066_v37  ;;  %v3957_v13 = vadd.f32 %v3924_v61, %v3788_v18  ;;  %v2723_v34 = vpop.f32.mrb[19].mxu0  ;;  %v3167_v20 = vadd.f32 %v3166_v54, %v3165_v26  ;;  %v3025_v16 = vmul.f32 %v3955_v25, %v5209_v22  ;;  %v2980_v15 = vpop.permute.xlu0 %2979 }
 0x1f6   : > { %v3023_v49 = vmul.f32 %v3956_v33, %v5193_v4  ;;  %v3958_v55 = vadd.f32 %v2723_v34, %v1641_v5 }
 0x1f7   : > { %v3070_v35 = vadd.f32 %v3069_v43, %v3068_v48  ;;  %v3169_v30 = vadd.f32 %v3168_v21, %v3167_v20  ;;  %v3026_v4 = vmul.f32 %v3957_v13, %v5215_v32  ;;  %v3127_v56 = vmul.f32 %v3955_v25, %v3025_v16 }
 0x1f8   : > { %v3791_v42 = vpop.f32.mrb[20].mxu1  ;;  %v3071_v0 = vsel %vm3039_vm8, %v3023_v49, 0.0  ;;  %v3125_v44 = vmul.f32 %v3956_v33, %v3023_v49  ;;  %v3024_v14 = vmul.f32 %v3958_v55, %v5198_v23  ;;  %v3075_v63 = vsel %vm3039_vm8, %v3025_v16, 0.0  ;;  %v2985_v43 = vpop.permute.xlu1 %2984 }
 0x1f9   : > { %v1654_v46 = vpop.f32.mrb[21].mxu1  ;;  %v3072_v29 = vadd.f32 %v3071_v0, %v3070_v35  ;;  %v3171_v36 = vadd.f32 %v3170_v31, %v3169_v30  ;;  %v3128_v1 = vmul.f32 %v3957_v13, %v3026_v4  ;;  %v3077_v53 = vsel %vm3039_vm8, %v3026_v4, 0.0 }
 0x1fa   : > { %v3792_v12 = vpop.f32.mrb[22].mxu1  ;;  %v3172_v41 = vsel %vm3039_vm8, %v3125_v44, 0.0  ;;  %v3073_v22 = vsel %vm3039_vm8, %v3024_v14, 0.0  ;;  %v3126_v2 = vmul.f32 %v3958_v55, %v3024_v14  ;;  %v3927_v17 = vpop.f32.mrb[20].mxu0  ;;  %v3176_v51 = vsel %vm3039_vm8, %v3127_v56, 0.0 }
 0x1fb   : > { %v1657_v47 = vpop.f32.mrb[23].mxu1  ;;  %v3074_v60 = vadd.f32 %v3073_v22, %v3072_v29  ;;  %v3959_v11 = vadd.f32 %v3927_v17, %v3791_v42  ;;  %v2736_v23 = vpop.f32.mrb[21].mxu0  ;;  %v3173_v8 = vadd.f32 %v3172_v41, %v3171_v36  ;;  %v3178_v26 = vsel %vm3039_vm8, %v3128_v1, 0.0 }
 0x1fc   : > { %v3174_v45 = vsel %vm3039_vm8, %v3126_v2, 0.0  ;;  %v3960_v32 = vadd.f32 %v2736_v23, %v1654_v46  ;;  %v3928_v27 = vpop.f32.mrb[22].mxu0  ;;  %v2990_v2 = vpop.permute.xlu0 %2989 }
 0x1fd   : > { %v3076_v38 = vadd.f32 %v3075_v63, %v3074_v60  ;;  %v3961_v52 = vadd.f32 %v3928_v27, %v3792_v12  ;;  %v2739_v9 = vpop.f32.mrb[23].mxu0  ;;  %v3175_v57 = vadd.f32 %v3174_v45, %v3173_v8  ;;  %v3029_v10 = vmul.f32 %v3959_v11, %v2960_v3  ;;  %v2995_v23 = vpop.permute.xlu1 %2994 }
 0x1fe   : > { %v3027_v18 = vmul.f32 %v3960_v32, %v5225_v50  ;;  %v3962_v7 = vadd.f32 %v2739_v9, %v1657_v47 }
 0x1ff   : > { %v3078_v62 = vadd.f32 %v3077_v53, %v3076_v38  ;;  %v3177_v5 = vadd.f32 %v3176_v51, %v3175_v57  ;;  %v3030_v33 = vmul.f32 %v3961_v52, %v2965_v59  ;;  %v3131_v20 = vmul.f32 %v3959_v11, %v3029_v10 }
 0x200   : > { %v3795_v39 = vpop.f32.mrb[24].mxu1  ;;  %v3079_v24 = vsel %vm3039_vm8, %v3027_v18, 0.0  ;;  %v3129_v37 = vmul.f32 %v3960_v32, %v3027_v18  ;;  %v3028_v25 = vmul.f32 %v3962_v7, %v5231_v6  ;;  %v3083_v21 = vsel %vm3039_vm8, %v3029_v10, 0.0 }
 0x201   : > { %v1670_v40 = vpop.f32.mrb[25].mxu1  ;;  %v3080_v54 = vadd.f32 %v3079_v24, %v3078_v62  ;;  %v3179_v50 = vadd.f32 %v3178_v26, %v3177_v5  ;;  %v3132_v30 = vmul.f32 %v3961_v52, %v3030_v33  ;;  %v3085_v46 = vsel %vm3039_vm8, %v3030_v33, 0.0 }
 0x202   : > { %v3796_v61 = vpop.f32.mrb[26].mxu1  ;;  %v3180_v19 = vsel %vm3039_vm8, %v3129_v37, 0.0  ;;  %v3081_v3 = vsel %vm3039_vm8, %v3028_v25, 0.0  ;;  %v3130_v48 = vmul.f32 %v3962_v7, %v3028_v25  ;;  %v3931_v13 = vpop.f32.mrb[24].mxu0  ;;  %v3184_v12 = vsel %vm3039_vm8, %v3131_v20, 0.0 }
 0x203   : > { %v1673_v34 = vpop.f32.mrb[27].mxu1  ;;  %v3082_v49 = vadd.f32 %v3081_v3, %v3080_v54  ;;  %v3963_v55 = vadd.f32 %v3931_v13, %v3795_v39  ;;  %v2752_v6 = vpop.f32.mrb[25].mxu0  ;;  %v3181_v16 = vadd.f32 %v3180_v19, %v3179_v50  ;;  %v3186_v63 = vsel %vm3039_vm8, %v3132_v30, 0.0 }
 0x204   : > { %v3182_v35 = vsel %vm3039_vm8, %v3130_v48, 0.0  ;;  %v3964_v59 = vadd.f32 %v2752_v6, %v1670_v40  ;;  %v3932_v42 = vpop.f32.mrb[26].mxu0  ;;  %v3000_v40 = vpop.permute.xlu0 %2999 }
 0x205   : > { %v3084_v0 = vadd.f32 %v3083_v21, %v3082_v49  ;;  %v3965_v44 = vadd.f32 %v3932_v42, %v3796_v61  ;;  %v2755_v14 = vpop.f32.mrb[27].mxu0  ;;  %v3183_v31 = vadd.f32 %v3182_v35, %v3181_v16  ;;  %v3033_v36 = vmul.f32 %v3963_v55, %v2980_v15  ;;  %v3005_v3 = vpop.permute.xlu1 %3004 }
 0x206   : > { %v3031_v29 = vmul.f32 %v3964_v59, %v2970_v58  ;;  %v3966_v4 = vadd.f32 %v2755_v14, %v1673_v34 }
 0x207   : > { %v3086_v41 = vadd.f32 %v3085_v46, %v3084_v0  ;;  %v3185_v17 = vadd.f32 %v3184_v12, %v3183_v31  ;;  %v3034_v45 = vmul.f32 %v3965_v44, %v2985_v43  ;;  %v3135_v53 = vmul.f32 %v3963_v55, %v3033_v36 }
 0x208   : > { %v3799_v22 = vpop.f32.mrb[28].mxu1  ;;  %v3087_v47 = vsel %vm3039_vm8, %v3031_v29, 0.0  ;;  %v3133_v56 = vmul.f32 %v3964_v59, %v3031_v29  ;;  %v3032_v60 = vmul.f32 %v3966_v4, %v2975_v28  ;;  %v3091_v28 = vsel %vm3039_vm8, %v3033_v36, 0.0 }
 0x209   : > { %v1686_v11 = vpop.f32.mrb[29].mxu1  ;;  %v3088_v8 = vadd.f32 %v3087_v47, %v3086_v41  ;;  %v3187_v58 = vadd.f32 %v3186_v63, %v3185_v17  ;;  %v3136_v5 = vmul.f32 %v3965_v44, %v3034_v45  ;;  %v3093_v15 = vsel %vm3039_vm8, %v3034_v45, 0.0 }
 0x20a   : > { %v3800_v32 = vpop.f32.mrb[30].mxu1  ;;  %v3188_v27 = vsel %vm3039_vm8, %v3133_v56, 0.0  ;;  %v3089_v1 = vsel %vm3039_vm8, %v3032_v60, 0.0  ;;  %v3134_v38 = vmul.f32 %v3966_v4, %v3032_v60  ;;  %v3935_v52 = vpop.f32.mrb[28].mxu0  ;;  %v3192_v61 = vsel %vm3039_vm8, %v3135_v53, 0.0 }
 0x20b   : > { %v1689_v9 = vpop.f32.mrb[31].mxu1  ;;  %v3090_v57 = vadd.f32 %v3089_v1, %v3088_v8  ;;  %v3967_v18 = vadd.f32 %v3935_v52, %v3799_v22  ;;  %v2768_v7 = vpop.f32.mrb[29].mxu0  ;;  %v3189_v51 = vadd.f32 %v3188_v27, %v3187_v58  ;;  %v3194_v20 = vsel %vm3039_vm8, %v3136_v5, 0.0 }
 0x20c   : > { %v3190_v10 = vsel %vm3039_vm8, %v3134_v38, 0.0  ;;  %v3968_v62 = vadd.f32 %v2768_v7, %v1686_v11  ;;  %v3936_v39 = vpop.f32.mrb[30].mxu0 }
 0x20d   : > { %v3092_v24 = vadd.f32 %v3091_v28, %v3090_v57  ;;  %v3969_v37 = vadd.f32 %v3936_v39, %v3800_v32  ;;  %v2771_v25 = vpop.f32.mrb[31].mxu0  ;;  %v3191_v26 = vadd.f32 %v3190_v10, %v3189_v51  ;;  %v3037_v50 = vmul.f32 %v3967_v18, %v3000_v40 }
 0x20e   : > { %v3035_v54 = vmul.f32 %v3968_v62, %v2990_v2  ;;  %v3970_v33 = vadd.f32 %v2771_v25, %v1689_v9 }
 0x20f   : > { %v3094_v19 = vadd.f32 %v3093_v15, %v3092_v24  ;;  %v3193_v48 = vadd.f32 %v3192_v61, %v3191_v26  ;;  %v3038_v55 = vmul.f32 %v3969_v37, %v3005_v3  ;;  %v3139_v59 = vmul.f32 %v3967_v18, %v3037_v50 }
 0x210   : > { %v3095_v13 = vsel %vm3039_vm8, %v3035_v54, 0.0  ;;  %v3137_v34 = vmul.f32 %v3968_v62, %v3035_v54  ;;  %v3036_v43 = vmul.f32 %v3970_v33, %v2995_v23  ;;  %v3099_v30 = vsel %vm3039_vm8, %v3037_v50, 0.0 }
 0x211   : > { %v3096_v49 = vadd.f32 %v3095_v13, %v3094_v19  ;;  %v3195_v6 = vadd.f32 %v3194_v20, %v3193_v48  ;;  %v3140_v14 = vmul.f32 %v3969_v37, %v3038_v55  ;;  %v3101_v31 = vsel %vm3039_vm8, %v3038_v55, 0.0 }
 0x212   : > { %v3196_v21 = vsel %vm3039_vm8, %v3137_v34, 0.0  ;;  %v3097_v16 = vsel %vm3039_vm8, %v3036_v43, 0.0  ;;  %v3138_v35 = vmul.f32 %v3970_v33, %v3036_v43  ;;  %v3200_v4 = vsel %vm3039_vm8, %v3139_v59, 0.0 }
 0x213   : > { %v3098_v42 = vadd.f32 %v3097_v16, %v3096_v49  ;;  %v3197_v0 = vadd.f32 %v3196_v21, %v3195_v6  ;;  %v3202_v41 = vsel %vm3039_vm8, %v3140_v14, 0.0 }
 0x214   : > { %v3198_v44 = vsel %vm3039_vm8, %v3138_v35, 0.0 }
 0x215   : > { %v3100_v46 = vadd.f32 %v3099_v30, %v3098_v42  ;;  %v3199_v29 = vadd.f32 %v3198_v44, %v3197_v0 }
 0x217   : > { %v3102_v12 = vadd.f32 %v3101_v31, %v3100_v46  ;;  %v3201_v36 = vadd.f32 %v3200_v4, %v3199_v29 }
 0x219   : > { %v3103_v22 = vrot.slane %v3102_v12, 4  ;;  %v3203_v2 = vadd.f32 %v3202_v41, %v3201_v36 }
 0x21b   : > { %v3104_v17 = vadd.f32 %v3103_v22, %v3102_v12  ;;  %v3204_v47 = vrot.slane %v3203_v2, 4 }
 0x21d   : > { %v3105_v56 = vrot.slane %v3104_v17, 2  ;;  %v3205_v60 = vadd.f32 %v3204_v47, %v3203_v2 }
 0x21f   : > { %v3106_v11 = vadd.f32 %v3105_v56, %v3104_v17  ;;  %v3206_v23 = vrot.slane %v3205_v60, 2 }
 0x221   : > { %v3107_v63 = vrot.slane %v3106_v11, 1  ;;  %v3207_v8 = vadd.f32 %v3206_v23, %v3205_v60 }
 0x223   : > { %v3208_v45 = vrot.slane %v3207_v8, 1  ;;  %v3108_v32 = vadd.f32 %v3107_v63, %v3106_v11 }
 0x225   : > { %v3209_v58 = vadd.f32 %v3208_v45, %v3207_v8 }
 0x227   : > { %v3211_v27 = vsel %vm3210_vm9, %v3108_v32, %v3209_v58 }
 0x228   : > { %3213 = vst.msk [vmem:[%s248_s30] sm:$0x3] %vm3212_vm10, %v3211_v27 }
 0x229 PF: > { %s14_s15 = sadd.s32 1, %s4244_s15  }
 0x22a   : > { %p11_p7 = scmp.ge.s32.totalorder %s14_s15, 5  }
 0x22c   :  { %13 = sbr.rel (!%p11_p7) target bundleno = 1 (0x1), region = 80 }

// kernel: _lambda_.8
= control target key start
LH: loop header
LB: loop body
LE: loop exit
PB: predicated region body
PF: predicated region fallthrough
CT: control target
= control target key end

     0   :  { %s5256_s27 = smov 0   ;;  %s6694_s0 = inlined_call_operand.vmem [shape: bf16[1024,4], index: 0, kind: input, shape index: {}, may-alias: {0,1}]   ;;  %s6695_s1 = inlined_call_operand.vmem [shape: bf16[1024,4], index: 1, kind: input, shape index: {}, may-alias: {0,1}]   ;;  %s6696_s2 = inlined_call_operand.vmem [shape: bf16[9,4,8], index: 2, kind: input, shape index: {}]   ;;  %s6697_s3 = inlined_call_operand.vmem [shape: f32[1,8], index: 3, kind: input, shape index: {}]   ;;  %s6698_s4 = inlined_call_operand.vmem [shape: f32[1,8], index: 4, kind: input, shape index: {}]   ;;  %s6699_s5 = inlined_call_operand.vmem [shape: f32[768,1], index: 5, kind: input, shape index: {}]   ;;  %s6700_s6 = inlined_call_operand.vmem [shape: bf16[4,32], index: 6, kind: input, shape index: {}]   ;;  %s6701_s7 = inlined_call_operand.vmem [shape: bf16[768,4], index: 7, kind: output, shape index: {0}]   ;;  %s6702_s8 = inlined_call_operand.vmem [shape: f32[3,2,32], index: 8, kind: output, shape index: {1}]  }
   0x1 LB: > { %s5262_s28 = sadd.s32 4294967295, %s5207_s27   ;;  %p4127_p0 = scmp.ge.s32.totalorder %s5207_s27, 1  ;;  %s5207_s27 = sphi %s5256_s27, %s19_s27  }
   0x2   : > { %p292_p1 = scmp.lt.s32.totalorder %s5207_s27, 4 }
   0x4   : > { %p293_p2 = pnand %p4127_p0, %p292_p1 }
   0x6   : > { %296 = sbr.rel (%p293_p2) target bundleno = 931 (0x3a3), region = 48 }
   0xd   : > { %vm690_vm0 = vcmask 1041408   ;;  %v4223_v0 = vld [vmem:[%s6696_s2 + $0x8] sm:$0x3]  ;;  %v4156_v1 = vld [vmem:[%s6696_s2 + $0x2] sm:$0x3]  ;;  %s5273_s11 = sshll.u32 %s5262_s28, 5 }
   0xe   : > { %5164 = vmatprep.subr.msk.bf16.mxu0 %vm690_vm0, %v4223_v0  ;;  %5160 = vmatprep.subr.msk.bf16.mxu1 %vm690_vm0, %v4156_v1  ;;  %v1660_v2 = vsel %vm690_vm0, %v4223_v0, 0  ;;  %v692_v3 = vsel %vm690_vm0, %v4156_v1, 0  ;;  %p342_p3 = scmp.lt.s32.totalorder %s5273_s11, 127  ;;  %v4240_v4 = vld [vmem:[%s6696_s2 + $0xa] sm:$0x3]  ;;  %vm641_vm3 = vcmask 31744  }
   0xf   : > { %4701 = vmatpush3.bf16.msra.mxu0 %v1660_v2  ;;  %4565 = vmatpush3.bf16.msra.mxu1 %v692_v3  ;;  %v505_v5 = vld [vmem:[%s6696_s2] sm:$0x3]  ;;  %vm508_vm1 = vsmask.f32 7424  ;;  %vm1536_vm2 = vsmask.f32 6400 }
  0x10   : > { %s343_s14 = scalar_select %p342_p3, %s5273_s11, 127  ;;  %5165 = vmatprep.subr.msk.bf16.mxu0 %vm690_vm0, %v4240_v4  ;;  %5161 = vmatprep.subr.msk.bf16.mxu1 %vm690_vm0, %v505_v5  ;;  %v1940_v8 = vsel %vm690_vm0, %v4240_v4, 0  ;;  %v888_v10 = vsel %vm690_vm0, %v505_v5, 0  ;;  %v5366_v50 = vld [vmem:[%s6696_s2 + $0xc] sm:$0x3]  ;;  %vm1857_vm4 = vcmask 1045504  }
  0x11   : > { %s4361_s21 = sadd.s32 32, %s5273_s11  ;;  %vm2340_vm5 = vsmask.f32 5376  ;;  %vm1053_vm6 = vcmask 1046528   ;;  %vm2659_vm7 = vcmask 1044480   ;;  %s5209_s24 = smov 124  }
  0x12   : > { %s4129_s17 = sshll.u32 %s343_s14, 2  ;;  %p5384_p4 = scmp.lt.s32.totalorder %s4361_s21, 127  ;;  %vm3367_vm8 = vcmask 27648   ;;  %vm3837_vm9 = vcmask 261120   ;;  %vm4008_vm10 = vcmask 1040384   ;;  %vm4010_vm11 = vcmask 254976  }
  0x13   : > { %s5292_s20 = scalar_lea.vmem %s6694_s0, %s4129_s17  ;;  %p356_p5 = scmp.lt.s32.totalorder %s5273_s11, 95 }
  0x14   : > { %v5295_v6 = vld [vmem:[%s5292_s20] sm:$0xff]   ;;  %v5298_v7 = vld [vmem:[%s5292_s20 + $0x8] sm:$0xff]   ;;  %v5302_v9 = vld [vmem:[%s5292_s20 + $0x10] sm:$0xff]   ;;  %s6752_s21 = smov (!%p5384_p4, %s4361_s21), 127  ;;  %p367_p6 = scmp.lt.s32.totalorder %s5262_s28, 2 }
  0x15   : > { %v510_v11 = vshrl.u32 %v5295_v6, 16  ;;  %v512_v12 = vshll.u32 %v5295_v6, 16  ;;  %v517_v13 = vshll.u32 %v5298_v7, 16  ;;  %v521_v14 = vshrl.u32 %v5298_v7, 16  ;;  %v5316_v17 = vld [vmem:[%s5292_s20 + $0x18] sm:$0xff]   ;;  %v5319_v18 = vld [vmem:[%s5292_s20 + $0x20] sm:$0xff]  }
  0x16   : > { %v5310_v15 = vshll.u32 %v5302_v9, 16  ;;  %v5313_v16 = vshrl.u32 %v5302_v9, 16  ;;  %v5325_v26 = vshll.u32 %v5316_v17, 16  ;;  %v5328_v30 = vshrl.u32 %v5316_v17, 16  ;;  %v5331_v31 = vld [vmem:[%s5292_s20 + $0x28] sm:$0xff]   ;;  %v5343_v40 = vld [vmem:[%s5292_s20 + $0x30] sm:$0xff]  }
  0x17   : > { %v514_v19 = vrot.slane %v512_v12, 1  ;;  %v519_v20 = vrot.slane %v517_v13, 1  ;;  %v1537_v21 = vrot.slane %v521_v14, 1  ;;  %v1538_v22 = vrot.slane %v517_v13, 2  ;;  %v5361_v49 = vld [vmem:[%s5292_s20 + $0x38] sm:$0xff]   ;;  %v5393_v62 = vld [vmem:[%s5292_s20 + $0x40] sm:$0xff]  }
  0x18   : > { %v1540_v23 = vrot.slane %v5313_v16, 1  ;;  %v1541_v24 = vrot.slane %v5310_v15, 2  ;;  %v527_v25 = vrot.slane %v5310_v15, 1  ;;  %v1545_v33 = vrot.slane %v5325_v26, 2  ;;  %s4131_s25 = sshll.u32 %s6752_s21, 2  ;;  %s6754_s11 = smov (!%p356_p5, %s5273_s11), 95 }
  0x19   : > { %v515_v27 = vor.u32 %v514_v19, %v510_v11  ;;  %v523_v28 = vor.u32 %v521_v14, %v519_v20  ;;  %v1539_v29 = vor.u32 %v1538_v22, %v1537_v21  ;;  %v535_v35 = vrot.slane %v5325_v26, 1  ;;  %s5445_s10 = scalar_lea.vmem %s6695_s1, %s4131_s25  ;;  %s4133_s25 = sshll.u32 %s6754_s11, 3 }
  0x1a   : > { %v1542_v32 = vor.u32 %v1541_v24, %v1540_v23  ;;  %v531_v34 = vor.u32 %v5313_v16, %v527_v25  ;;  %v1544_v38 = vrot.slane %v5328_v30, 1  ;;  %v5340_v39 = vshll.u32 %v5319_v18, 16  ;;  %v5431_v24 = vld [vmem:[%s5292_s20 + $0x50] sm:$0xff]   ;;  %s6405_s30 = scalar_lea.vmem %s6699_s5, %s4133_s25  ;;  %s4135_s9 = sshll.u32 %s6754_s11, 2 }
  0x1b   : > { %v520_v36 = vsel %vm508_vm1, %v515_v27, %v519_v20  ;;  %v528_v37 = vsel %vm508_vm1, %v523_v28, %v527_v25  ;;  %v5349_v43 = vshrl.u32 %v5319_v18, 16  ;;  %v539_v44 = vor.u32 %v5328_v30, %v535_v35  ;;  %v5424_v20 = vld [vmem:[%s5292_s20 + $0x48] sm:$0xff]   ;;  %s6446_s13 = scalar_lea.vmem %s6701_s7, %s4135_s9  ;;  %s6756_s28 = smov (!%p367_p6, %s5262_s28), 2 }
  0x1c   : > { %4566 = vmatprep.mubr.msk.bf16.mxu1 %vm641_vm3, %v520_v36  ;;  %v1543_v41 = vsel %vm1536_vm2, %v1539_v29, %v1542_v32  ;;  %v536_v42 = vsel %vm508_vm1, %v531_v34, %v535_v35  ;;  %v1546_v45 = vor.u32 %v1545_v33, %v1544_v38  ;;  %v1549_v46 = vrot.slane %v5340_v39, 2  ;;  %v5439_v29 = vld [vmem:[%s6696_s2 + $0x4] sm:$0x3]  ;;  %s4136_s11 = sshll.u32 %s6756_s28, 1 }
  0x1d   : > { %4702 = vmatprep.mubr.msk.bf16.mxu0 %vm641_vm3, %v1543_v41  ;;  %4567 = vmatmul.mubr.msk.bf16.vlgmr.msra.gmra.mrb[0].mxu1 %vm641_vm3, %v528_v37  ;;  %v543_v47 = vrot.slane %v5340_v39, 1  ;;  %v5358_v48 = vshll.u32 %v5331_v31, 16  ;;  %v1548_v51 = vrot.slane %v5349_v43, 1  ;;  %v5371_v52 = vshrl.u32 %v5331_v31, 16  ;;  %s370_s16 = scalar_lea.vmem %s6702_s8, %s4136_s11 }
  0x1e   : > { %4570 = vmatprep.mubr.msk.bf16.mxu1 %vm641_vm3, %v536_v42  ;;  %v5374_v53 = vshll.u32 %v5343_v40, 16  ;;  %v5377_v54 = vshrl.u32 %v5343_v40, 16  ;;  %4599 = vmatpush3.bf16.msra.mxu1 %v888_v10  ;;  %v1547_v55 = vsel %vm1536_vm2, %v1542_v32, %v1546_v45  ;;  %v5397_v0 = vshll.u32 %v5361_v49, 16 }
  0x1f   : > { %v1553_v56 = vrot.slane %v5358_v48, 2  ;;  %v547_v57 = vor.u32 %v5349_v43, %v543_v47  ;;  %4703 = vmatmul.mubr.msk.bf16.vlgmr.msra.gmra.mrb[0].mxu0 %vm641_vm3, %v1547_v55  ;;  %v1550_v58 = vor.u32 %v1549_v46, %v1548_v51  ;;  %v1552_v59 = vrot.slane %v5371_v52, 1  ;;  %5162 = vmatprep.subr.msk.bf16.mxu1 %vm690_vm0, %v5439_v29 }
  0x20   : > { %v551_v60 = vrot.slane %v5358_v48, 1  ;;  %v1556_v61 = vrot.slane %v5377_v54, 1  ;;  %4735 = vmatpush3.bf16.msra.mxu0 %v1940_v8  ;;  %v1557_v63 = vrot.slane %v5374_v53, 2  ;;  %v5400_v1 = vshrl.u32 %v5361_v49, 16 }
  0x21   : > { %v1551_v2 = vsel %vm1536_vm2, %v1546_v45, %v1550_v58  ;;  %v544_v3 = vsel %vm508_vm1, %v539_v44, %v543_v47  ;;  %v1554_v4 = vor.u32 %v1553_v56, %v1552_v59  ;;  %5166 = vmatprep.subr.msk.bf16.mxu0 %vm690_vm0, %v5366_v50  ;;  %v559_v10 = vrot.slane %v5374_v53, 1  ;;  %v5470_v47 = vld [vmem:[%s5292_s20 + $0x58] sm:$0xff]  }
  0x22   : > { %4706 = vmatprep.mubr.msk.bf16.mxu0 %vm641_vm3, %v1551_v2  ;;  %v552_v5 = vsel %vm508_vm1, %v547_v57, %v551_v60  ;;  %v1558_v8 = vor.u32 %v1557_v63, %v1556_v61  ;;  %v5414_v11 = vshll.u32 %v5393_v62, 16  ;;  %v1560_v13 = vrot.slane %v5400_v1, 1 }
  0x23   : > { %v1555_v12 = vsel %vm1536_vm2, %v1550_v58, %v1554_v4  ;;  %v1561_v14 = vrot.slane %v5397_v0, 2  ;;  %v5421_v19 = vshrl.u32 %v5393_v62, 16  ;;  %v555_v22 = vor.u32 %v5371_v52, %v551_v60  ;;  %v5478_v58 = vld [vmem:[%s5292_s20 + $0x60] sm:$0xff]  }
  0x24   : > { %v1559_v21 = vsel %vm1536_vm2, %v1554_v4, %v1558_v8  ;;  %v1565_v23 = vrot.slane %v5414_v11, 2  ;;  %v563_v25 = vor.u32 %v5377_v54, %v559_v10  ;;  %v567_v27 = vrot.slane %v5397_v0, 1 }
  0x25   : > { %4571 = vmatmul.mubr.msk.bf16.gmra.mrb[4].mxu1 %vm641_vm3, %v544_v3  ;;  %v1564_v28 = vrot.slane %v5421_v19, 1  ;;  %v1562_v32 = vor.u32 %v1561_v14, %v1560_v13  ;;  %v5451_v33 = vshll.u32 %v5424_v20, 16  ;;  %v5454_v34 = vshrl.u32 %v5424_v20, 16 }
  0x26   : > { %4574 = vmatprep.mubr.msk.bf16.mxu1 %vm641_vm3, %v552_v5  ;;  %v560_v35 = vsel %vm508_vm1, %v555_v22, %v559_v10  ;;  %v5458_v37 = vshll.u32 %v5431_v24, 16  ;;  %v5461_v38 = vshrl.u32 %v5431_v24, 16  ;;  %v568_v41 = vsel %vm508_vm1, %v563_v25, %v567_v27  ;;  %v5504_v22 = vld [vmem:[%s5292_s20 + $0x68] sm:$0xff]  }
  0x27   : > { %4707 = vmatmul.mubr.msk.bf16.gmra.mrb[4].mxu0 %vm641_vm3, %v1555_v12  ;;  %v1566_v36 = vor.u32 %v1565_v23, %v1564_v28  ;;  %v1563_v42 = vsel %vm1536_vm2, %v1558_v8, %v1562_v32  ;;  %v575_v44 = vrot.slane %v5414_v11, 1  ;;  %v1568_v45 = vrot.slane %v5454_v34, 1 }
  0x28   : > { %4710 = vmatprep.mubr.msk.bf16.mxu0 %vm641_vm3, %v1559_v21  ;;  %v1569_v46 = vrot.slane %v5451_v33, 2  ;;  %v571_v55 = vor.u32 %v5400_v1, %v567_v27  ;;  %v1572_v56 = vrot.slane %v5461_v38, 1  ;;  %v1573_v57 = vrot.slane %v5458_v37, 2 }
  0x29   : > { %v1567_v51 = vsel %vm1536_vm2, %v1562_v32, %v1566_v36  ;;  %v579_v59 = vor.u32 %v5421_v19, %v575_v44  ;;  %v583_v60 = vrot.slane %v5451_v33, 1  ;;  %v5485_v63 = vshll.u32 %v5470_v47, 16  ;;  %v5512_v32 = vld [vmem:[%s5292_s20 + $0x70] sm:$0xff]  }
  0x2a   : > { %v1570_v61 = vor.u32 %v1569_v46, %v1568_v45  ;;  %v5488_v2 = vshrl.u32 %v5470_v47, 16  ;;  %v576_v3 = vsel %vm508_vm1, %v571_v55, %v575_v44  ;;  %v1574_v4 = vor.u32 %v1573_v57, %v1572_v56 }
  0x2b   : > { %v5492_v5 = vshll.u32 %v5478_v58, 16  ;;  %v5495_v8 = vshrl.u32 %v5478_v58, 16  ;;  %v584_v10 = vsel %vm508_vm1, %v579_v59, %v583_v60  ;;  %v591_v13 = vrot.slane %v5458_v37, 1 }
  0x2c   : > { %v1571_v12 = vsel %vm1536_vm2, %v1566_v36, %v1570_v61  ;;  %v1576_v14 = vrot.slane %v5488_v2, 1  ;;  %v1577_v21 = vrot.slane %v5485_v63, 2  ;;  %v1575_v23 = vsel %vm1536_vm2, %v1570_v61, %v1574_v4 }
  0x2d   : > { %4575 = vmatmul.mubr.msk.bf16.gmra.mrb[8].mxu1 %vm641_vm3, %v560_v35  ;;  %v587_v25 = vor.u32 %v5454_v34, %v583_v60  ;;  %v1580_v27 = vrot.slane %v5495_v8, 1  ;;  %v1581_v28 = vrot.slane %v5492_v5, 2  ;;  %v595_v35 = vor.u32 %v5461_v38, %v591_v13 }
  0x2e   : > { %4578 = vmatprep.mubr.msk.bf16.mxu1 %vm641_vm3, %v568_v41  ;;  %v599_v36 = vrot.slane %v5485_v63, 1  ;;  %v1578_v41 = vor.u32 %v1577_v21, %v1576_v14  ;;  %v5522_v44 = vshrl.u32 %v5504_v22, 16  ;;  %v5529_v55 = vshrl.u32 %v5512_v32, 16  ;;  %v5546_v21 = vld [vmem:[%s5445_s10] sm:$0xff]  }
  0x2f   : > { %4711 = vmatmul.mubr.msk.bf16.gmra.mrb[8].mxu0 %vm641_vm3, %v1563_v42  ;;  %v5519_v42 = vshll.u32 %v5504_v22, 16  ;;  %v592_v45 = vsel %vm508_vm1, %v587_v25, %v591_v13  ;;  %v1582_v46 = vor.u32 %v1581_v28, %v1580_v27  ;;  %v607_v59 = vrot.slane %v5492_v5, 1 }
  0x30   : > { %4714 = vmatprep.mubr.msk.bf16.mxu0 %vm641_vm3, %v1567_v51  ;;  %v5526_v51 = vshll.u32 %v5512_v32, 16  ;;  %6728 = vst [vmem:[#allocation4_spill] sm:$0xff] %v5529_v55  ;;  %v600_v56 = vsel %vm508_vm1, %v595_v35, %v599_v36  ;;  %v1579_v57 = vsel %vm1536_vm2, %v1574_v4, %v1578_v41  ;;  %v1584_v60 = vrot.slane %v5522_v44, 1 }
  0x31   : > { %6726 = vst [vmem:[#allocation2_spill] sm:$0xff] %v5519_v42  ;;  %v1585_v61 = vrot.slane %v5519_v42, 2  ;;  %v1588_v13 = vrot.slane %v5529_v55, 1  ;;  %v611_v4 = vor.u32 %v5495_v8, %v607_v59 }
  0x32   : > { %6727 = vst [vmem:[#allocation3_spill] sm:$0xff] %v5526_v51  ;;  %v1589_v14 = vrot.slane %v5526_v51, 2 }
  0x33   : > { %v1586_v25 = vor.u32 %v1585_v61, %v1584_v60  ;;  %v623_v60 = vrot.slane %v5526_v51, 1 }
  0x35   : > { %4579 = vmatmul.mubr.msk.bf16.gmra.mrb[12].mxu1 %vm641_vm3, %v576_v3  ;;  %v5538_v3 = vld [vmem:[%s5292_s20 + $0x78] sm:$0xff]  }
  0x36   : > { %4582 = vmatprep.mubr.msk.bf16.mxu1 %vm641_vm3, %v584_v10  ;;  %v1583_v10 = vsel %vm1536_vm2, %v1578_v41, %v1582_v46  ;;  %v5553_v27 = vshll.u32 %v5538_v3, 16  ;;  %v5556_v28 = vshrl.u32 %v5538_v3, 16  ;;  %v5560_v41 = vshll.u32 %v5546_v21, 16 }
  0x37   : > { %4715 = vmatmul.mubr.msk.bf16.gmra.mrb[12].mxu0 %vm641_vm3, %v1571_v12  ;;  %v603_v12 = vor.u32 %v5488_v2, %v599_v36  ;;  %v1590_v36 = vor.u32 %v1589_v14, %v1588_v13 }
  0x38   : > { %4718 = vmatprep.mubr.msk.bf16.mxu0 %vm641_vm3, %v1575_v23  ;;  %v615_v23 = vrot.slane %v5519_v42, 1  ;;  %v1592_v61 = vrot.slane %v5556_v28, 1  ;;  %v5570_v42 = vld [vmem:[%s5445_s10 + $0x8] sm:$0xff]   ;;  %v1599_v14 = vrot.slane %v5560_v41, 2 }
  0x39   : > { %v608_v35 = vsel %vm508_vm1, %v603_v12, %v607_v59  ;;  %6729 = vst [vmem:[#allocation5_spill] sm:$0xff] %v5570_v42  ;;  %v1591_v59 = vsel %vm1536_vm2, %v1586_v25, %v1590_v36 }
  0x3a   : > { %v619_v12 = vor.u32 %v5522_v44, %v615_v23 }
  0x3d   : > { %4583 = vmatmul.mubr.msk.bf16.gmra.mrb[16].mxu1 %vm641_vm3, %v592_v45  ;;  %v6705_v45 = vshrl.u32 %v5546_v21, 16 }
  0x3e   : > { %4586 = vmatprep.mubr.msk.bf16.mxu1 %vm641_vm3, %v600_v56  ;;  %v616_v56 = vsel %vm508_vm1, %v611_v4, %v615_v23  ;;  %v631_v4 = vrot.slane %v5553_v27, 1  ;;  %v624_v23 = vsel %vm508_vm1, %v619_v12, %v623_v60 }
  0x3f   : > { %4719 = vmatmul.mubr.msk.bf16.gmra.mrb[16].mxu0 %vm641_vm3, %v1579_v57  ;;  %v1587_v57 = vsel %vm1536_vm2, %v1582_v46, %v1586_v25  ;;  %v1598_v13 = vrot.slane %v6705_v45, 1  ;;  %v627_v46 = vor.u32 %v5529_v55, %v623_v60  ;;  %v6707_v25 = vshll.u32 %v5570_v42, 16 }
  0x40   : > { %4722 = vmatprep.mubr.msk.bf16.mxu0 %vm641_vm3, %v1583_v10  ;;  %v1593_v10 = vrot.slane %v5553_v27, 2  ;;  %v635_v60 = vor.u32 %v5556_v28, %v631_v4 }
  0x41   : > { %v1600_v51 = vor.u32 %v1599_v14, %v1598_v13  ;;  %v632_v45 = vsel %vm508_vm1, %v627_v46, %v631_v4  ;;  %v1858_v13 = vrot.slane %v5298_v7, 2  ;;  %v1859_v14 = vrot.slane %v5302_v9, 2  ;;  %v5602_v46 = vld [vmem:[%s5445_s10 + $0x10] sm:$0xff]  }
  0x42   : > { %6730 = vst [vmem:[#allocation6_spill] sm:$0xff] %v5602_v46  ;;  %v6709_v4 = vrot.slane %v5570_v42, 2 }
  0x45   : > { %4587 = vmatmul.mubr.msk.bf16.gmra.mrb[20].mxu1 %vm641_vm3, %v608_v35  ;;  %v1594_v35 = vor.u32 %v1593_v10, %v1592_v61  ;;  %v1608_v61 = vrot.slane %v6707_v25, 2  ;;  %v1887_v25 = vrot.slane %v5546_v21, 2 }
  0x46   : > { %4590 = vmatprep.mubr.msk.bf16.mxu1 %vm641_vm3, %v616_v56  ;;  %v6708_v56 = vshrl.u32 %v5570_v42, 16 }
  0x47   : > { %4723 = vmatmul.mubr.msk.bf16.gmra.mrb[20].mxu0 %vm641_vm3, %v1587_v57  ;;  %v1595_v55 = vsel %vm1536_vm2, %v1590_v36, %v1594_v35  ;;  %v1601_v10 = vsel %vm1536_vm2, %v1594_v35, %v1600_v51  ;;  %v1860_v35 = vsel %vm1857_vm4, %v1858_v13, %v1859_v14 }
  0x48   : > { %4726 = vmatprep.mubr.msk.bf16.mxu0 %vm641_vm3, %v1591_v59  ;;  %v1605_v57 = vrot.slane %v6708_v56, 1  ;;  %v639_v59 = vrot.slane %v5560_v41, 1  ;;  %v1054_v56 = vrot.slane %v5295_v6, 1 }
  0x4a   : > { %v1609_v12 = vor.u32 %v1608_v61, %v1605_v57  ;;  %v640_v36 = vsel %vm508_vm1, %v635_v60, %v639_v59  ;;  %v2341_v57 = vrot.slane %v5313_v16, 2  ;;  %v1861_v61 = vrot.slane %v5316_v17, 2 }
  0x4b   : > { %v2345_v60 = vrot.slane %v5325_v26, 3  ;;  %v1863_v59 = vrot.slane %v5319_v18, 2  ;;  %v2348_v16 = vrot.slane %v5349_v43, 2  ;;  %v2143_v43 = vsel %vm690_vm0, %v5366_v50, 0 }
  0x4c   : > { %v5636_v26 = vsel %vm1857_vm4, %v1859_v14, %v1861_v61  ;;  %v5653_v14 = vld [vmem:[%s6696_s2 + $0xe] sm:$0x3]  ;;  %v1865_v50 = vrot.slane %v5331_v31, 2 }
  0x4d   : > { %4591 = vmatmul.mubr.msk.bf16.gmra.mrb[24].mxu1 %vm641_vm3, %v624_v23 }
  0x4e   : > { %4594 = vmatprep.mubr.msk.bf16.mxu1 %vm641_vm3, %v632_v45  ;;  %v1610_v45 = vsel %vm1536_vm2, %v1600_v51, %v1609_v12  ;;  %v2342_v51 = vrot.slane %v5310_v15, 3  ;;  %v2349_v15 = vrot.slane %v5340_v39, 3  ;;  %v5648_v39 = vsel %vm1857_vm4, %v1861_v61, %v1863_v59 }
  0x4f   : > { %4727 = vmatmul.mubr.msk.bf16.gmra.mrb[24].mxu0 %vm641_vm3, %v1595_v55  ;;  %v2137_v55 = vrot.slane %v5602_v46, 2  ;;  %v1869_v61 = vrot.slane %v5361_v49, 2  ;;  %v6731_v46 = vrot.slane %v5570_v42, 2 }
  0x50   : > { %4730 = vmatprep.mubr.msk.bf16.mxu0 %vm641_vm3, %v1601_v10  ;;  %v2344_v10 = vrot.slane %v5328_v30, 2  ;;  %v2343_v12 = vor.u32 %v2342_v51, %v2341_v57  ;;  %v5672_v57 = vsel %vm1857_vm4, %v1863_v59, %v1865_v50 }
  0x51   : > { %v5614_v23 = vsel %vm1857_vm4, %v6709_v4, %v2137_v55  ;;  %v1055_v4 = vrot.slane %v5298_v7, 1 }
  0x52   : > { %v2346_v13 = vor.u32 %v2345_v60, %v2344_v10  ;;  %v1871_v10 = vrot.slane %v5393_v62, 2 }
  0x54   : > { %v5639_v30 = vsel %vm2340_vm5, %v2343_v12, %v2346_v13  ;;  %v5693_v59 = vsel %vm1857_vm4, %v1869_v61, %v1871_v10  ;;  %v1873_v12 = vrot.slane %v5424_v20, 2 }
  0x55   : > { %4595 = vmatmul.mubr.msk.bf16.gmra.mrb[28].mxu1 %vm641_vm3, %v640_v36  ;;  %v1136_v36 = vsel %vm690_vm0, %v5439_v29, 0  ;;  %v5641_v29 = vor.u32 %v2349_v15, %v2348_v16  ;;  %v1877_v15 = vrot.slane %v5470_v47, 2 }
  0x56   : > { %4600 = vmatprep.mubr.msk.bf16.mxu1 %vm641_vm3, %v5295_v6  ;;  %v1057_v6 = vrot.slane %v5302_v9, 1 }
  0x57   : > { %4731 = vmatmul.mubr.msk.bf16.gmra.mrb[28].mxu0 %vm641_vm3, %v1610_v45  ;;  %v5631_v45 = vld [vmem:[%s6696_s2 + $0x6] sm:$0x3]  ;;  %v5659_v55 = vsel %vm2340_vm5, %v2346_v13, %v5641_v29  ;;  %v5704_v13 = vsel %vm1857_vm4, %v1871_v10, %v1873_v12  ;;  %v1883_v10 = vrot.slane %v5512_v32, 2 }
  0x58   : > { %4736 = vmatprep.mubr.msk.bf16.mxu0 %vm641_vm3, %v1860_v35  ;;  %v1867_v35 = vrot.slane %v5343_v40, 2 }
  0x5a   : > { %v5677_v51 = vsel %vm1857_vm4, %v1865_v50, %v1867_v35  ;;  %v5688_v60 = vsel %vm1857_vm4, %v1867_v35, %v1869_v61  ;;  %v1881_v61 = vrot.slane %v5504_v22, 2 }
  0x5d   : > { %4601 = vmatmul.mubr.msk.bf16.vlgmr.msra.gmra.mrb[0].mxu1 %vm641_vm3, %v5298_v7  ;;  %v1059_v7 = vrot.slane %v5316_v17, 1 }
  0x5e   : > { %4604 = vmatprep.mubr.msk.bf16.mxu1 %vm641_vm3, %v5302_v9  ;;  %4633 = vmatpush3.bf16.msra.mxu1 %v1136_v36  ;;  %v1875_v36 = vrot.slane %v5431_v24, 2 }
  0x5f   : > { %5163 = vmatprep.subr.msk.bf16.mxu1 %vm690_vm0, %v5631_v45  ;;  %4737 = vmatmul.mubr.msk.bf16.vlgmr.msra.gmra.mrb[0].mxu0 %vm641_vm3, %v5636_v26  ;;  %v5784_v42 = vsel %vm1053_vm6, %v1057_v6, %v1059_v7 }
  0x60   : > { %4769 = vmatpush3.bf16.msra.mxu0 %v2143_v43  ;;  %4740 = vmatprep.mubr.msk.bf16.mxu0 %vm641_vm3, %v5648_v39  ;;  %v5709_v16 = vsel %vm1857_vm4, %v1873_v12, %v1875_v36  ;;  %v1879_v43 = vrot.slane %v5478_v58, 2  ;;  %v5720_v50 = vsel %vm1857_vm4, %v1875_v36, %v1877_v15  ;;  %v5741_v36 = vsel %vm1857_vm4, %v1881_v61, %v1883_v10 }
  0x61   : > { %5167 = vmatprep.subr.msk.bf16.mxu0 %vm690_vm0, %v5653_v14 }
  0x62   : > { %v5725_v35 = vsel %vm1857_vm4, %v1877_v15, %v1879_v43  ;;  %v5736_v12 = vsel %vm1857_vm4, %v1879_v43, %v1881_v61  ;;  %v1885_v15 = vrot.slane %v5538_v3, 2 }
  0x64   : > { %v5752_v43 = vsel %vm1857_vm4, %v1883_v10, %v1885_v15  ;;  %v5757_v61 = vsel %vm1857_vm4, %v1885_v15, %v1887_v25  ;;  %v1056_v10 = vsel %vm1053_vm6, %v1054_v56, %v1055_v4  ;;  %v5771_v15 = vsel %vm1857_vm4, %v1887_v25, %v6731_v46 }
  0x65   : > { %4605 = vmatmul.mubr.msk.bf16.gmra.mrb[4].mxu1 %vm641_vm3, %v5316_v17  ;;  %v5781_v56 = vsel %vm1053_vm6, %v1055_v4, %v1057_v6  ;;  %v1339_v25 = vsel %vm690_vm0, %v5631_v45, 0  ;;  %v2462_v46 = vsel %vm690_vm0, %v5653_v14, 0  ;;  %v1063_v4 = vrot.slane %v5331_v31, 1 }
  0x66   : > { %4608 = vmatprep.mubr.msk.bf16.mxu1 %vm641_vm3, %v5319_v18  ;;  %v1065_v6 = vrot.slane %v5343_v40, 1 }
  0x67   : > { %4741 = vmatmul.mubr.msk.bf16.gmra.mrb[4].mxu0 %vm641_vm3, %v5672_v57 }
  0x68   : > { %4744 = vmatprep.mubr.msk.bf16.mxu0 %vm641_vm3, %v5677_v51 }
  0x6d   : > { %4609 = vmatmul.mubr.msk.bf16.gmra.mrb[8].mxu1 %vm641_vm3, %v5331_v31 }
  0x6e   : > { %4612 = vmatprep.mubr.msk.bf16.mxu1 %vm641_vm3, %v5343_v40 }
  0x6f   : > { %4745 = vmatmul.mubr.msk.bf16.gmra.mrb[8].mxu0 %vm641_vm3, %v5688_v60 }
  0x70   : > { %4748 = vmatprep.mubr.msk.bf16.mxu0 %vm641_vm3, %v5693_v59 }
  0x75   : > { %4613 = vmatmul.mubr.msk.bf16.gmra.mrb[12].mxu1 %vm641_vm3, %v5361_v49 }
  0x76   : > { %4616 = vmatprep.mubr.msk.bf16.mxu1 %vm641_vm3, %v5393_v62 }
  0x77   : > { %4749 = vmatmul.mubr.msk.bf16.gmra.mrb[12].mxu0 %vm641_vm3, %v5704_v13 }
  0x78   : > { %4752 = vmatprep.mubr.msk.bf16.mxu0 %vm641_vm3, %v5709_v16 }
  0x7d   : > { %4617 = vmatmul.mubr.msk.bf16.gmra.mrb[16].mxu1 %vm641_vm3, %v5424_v20 }
  0x7e   : > { %4620 = vmatprep.mubr.msk.bf16.mxu1 %vm641_vm3, %v5431_v24 }
  0x7f   : > { %4753 = vmatmul.mubr.msk.bf16.gmra.mrb[16].mxu0 %vm641_vm3, %v5720_v50 }
  0x80   : > { %4756 = vmatprep.mubr.msk.bf16.mxu0 %vm641_vm3, %v5725_v35 }
  0x85   : > { %4621 = vmatmul.mubr.msk.bf16.gmra.mrb[20].mxu1 %vm641_vm3, %v5470_v47 }
  0x86   : > { %4624 = vmatprep.mubr.msk.bf16.mxu1 %vm641_vm3, %v5478_v58 }
  0x87   : > { %4757 = vmatmul.mubr.msk.bf16.gmra.mrb[20].mxu0 %vm641_vm3, %v5736_v12 }
  0x88   : > { %4760 = vmatprep.mubr.msk.bf16.mxu0 %vm641_vm3, %v5741_v36 }
  0x8d   : > { %4625 = vmatmul.mubr.msk.bf16.gmra.mrb[24].mxu1 %vm641_vm3, %v5504_v22 }
  0x8e   : > { %4628 = vmatprep.mubr.msk.bf16.mxu1 %vm641_vm3, %v5512_v32 }
  0x8f   : > { %4761 = vmatmul.mubr.msk.bf16.gmra.mrb[24].mxu0 %vm641_vm3, %v5752_v43 }
  0x90   : > { %4764 = vmatprep.mubr.msk.bf16.mxu0 %vm641_vm3, %v5757_v61 }
  0x95   : > { %4629 = vmatmul.mubr.msk.bf16.gmra.mrb[28].mxu1 %vm641_vm3, %v5538_v3 }
  0x96   : > { %4634 = vmatprep.mubr.msk.bf16.mxu1 %vm641_vm3, %v1056_v10  ;;  %v5799_v10 = vld [vmem:[%s6696_s2 + $0x10] sm:$0x3] }
  0x97   : > { %4765 = vmatmul.mubr.msk.bf16.gmra.mrb[28].mxu0 %vm641_vm3, %v5771_v15 }
  0x98   : > { %4770 = vmatprep.mubr.msk.bf16.mxu0 %vm641_vm3, %v5636_v26  ;;  %v1061_v26 = vrot.slane %v5319_v18, 1 }
  0x9a   : > { %v1062_v45 = vsel %vm1053_vm6, %v1059_v7, %v1061_v26  ;;  %v5809_v14 = vsel %vm1053_vm6, %v1061_v26, %v1063_v4  ;;  %v1073_v26 = vrot.slane %v5431_v24, 1 }
  0x9d   : > { %4635 = vmatmul.mubr.msk.bf16.vlgmr.msra.gmra.mrb[0].mxu1 %vm641_vm3, %v5781_v56 }
  0x9e   : > { %4638 = vmatprep.mubr.msk.bf16.mxu1 %vm641_vm3, %v5784_v42  ;;  %4667 = vmatpush3.bf16.msra.mxu1 %v1339_v25  ;;  %v1069_v25 = vrot.slane %v5393_v62, 1 }
  0x9f   : > { %4771 = vmatmul.mubr.msk.bf16.vlgmr.msra.gmra.mrb[0].mxu0 %vm641_vm3, %v5648_v39  ;;  %v1067_v39 = vrot.slane %v5361_v49, 1 }
  0xa0   : > { %4803 = vmatpush3.bf16.msra.mxu0 %v2462_v46  ;;  %4774 = vmatprep.mubr.msk.bf16.mxu0 %vm641_vm3, %v5672_v57  ;;  %v5821_v57 = vsel %vm1053_vm6, %v1063_v4, %v1065_v6  ;;  %v1071_v46 = vrot.slane %v5424_v20, 1  ;;  %v1075_v4 = vrot.slane %v5470_v47, 1 }
  0xa1   : > { %5168 = vmatprep.subr.msk.bf16.mxu0 %vm690_vm0, %v5799_v10  ;;  %v5824_v7 = vsel %vm1053_vm6, %v1065_v6, %v1067_v39  ;;  %v1077_v6 = vrot.slane %v5478_v58, 1 }
  0xa5   : > { %4639 = vmatmul.mubr.msk.bf16.gmra.mrb[4].mxu1 %vm641_vm3, %v1062_v45 }
  0xa6   : > { %4642 = vmatprep.mubr.msk.bf16.mxu1 %vm641_vm3, %v5809_v14 }
  0xa7   : > { %4775 = vmatmul.mubr.msk.bf16.gmra.mrb[4].mxu0 %vm641_vm3, %v5677_v51  ;;  %v5837_v51 = vsel %vm1053_vm6, %v1067_v39, %v1069_v25  ;;  %v1079_v39 = vrot.slane %v5504_v22, 1 }
  0xa8   : > { %4778 = vmatprep.mubr.msk.bf16.mxu0 %vm641_vm3, %v5688_v60  ;;  %v5840_v60 = vsel %vm1053_vm6, %v1069_v25, %v1071_v46  ;;  %v1081_v25 = vrot.slane %v5512_v32, 1 }
  0xad   : > { %4643 = vmatmul.mubr.msk.bf16.gmra.mrb[8].mxu1 %vm641_vm3, %v5821_v57 }
  0xae   : > { %4646 = vmatprep.mubr.msk.bf16.mxu1 %vm641_vm3, %v5824_v7 }
  0xaf   : > { %4779 = vmatmul.mubr.msk.bf16.gmra.mrb[8].mxu0 %vm641_vm3, %v5693_v59  ;;  %v5853_v59 = vsel %vm1053_vm6, %v1071_v46, %v1073_v26  ;;  %v1083_v46 = vrot.slane %v5538_v3, 1 }
  0xb0   : > { %4782 = vmatprep.mubr.msk.bf16.mxu0 %vm641_vm3, %v5704_v13  ;;  %v5856_v13 = vsel %vm1053_vm6, %v1073_v26, %v1075_v4  ;;  %v1085_v26 = vrot.slane %v5546_v21, 1 }
  0xb5   : > { %4647 = vmatmul.mubr.msk.bf16.gmra.mrb[12].mxu1 %vm641_vm3, %v5837_v51 }
  0xb6   : > { %4650 = vmatprep.mubr.msk.bf16.mxu1 %vm641_vm3, %v5840_v60 }
  0xb7   : > { %4783 = vmatmul.mubr.msk.bf16.gmra.mrb[12].mxu0 %vm641_vm3, %v5709_v16  ;;  %v5869_v16 = vsel %vm1053_vm6, %v1075_v4, %v1077_v6  ;;  %v2353_v4 = vrot.slane %v5358_v48, 3 }
  0xb8   : > { %4786 = vmatprep.mubr.msk.bf16.mxu0 %vm641_vm3, %v5720_v50  ;;  %v5872_v50 = vsel %vm1053_vm6, %v1077_v6, %v1079_v39  ;;  %v2357_v6 = vrot.slane %v5374_v53, 3 }
  0xbd   : > { %4651 = vmatmul.mubr.msk.bf16.gmra.mrb[16].mxu1 %vm641_vm3, %v5853_v59 }
  0xbe   : > { %4654 = vmatprep.mubr.msk.bf16.mxu1 %vm641_vm3, %v5856_v13 }
  0xbf   : > { %4787 = vmatmul.mubr.msk.bf16.gmra.mrb[16].mxu0 %vm641_vm3, %v5725_v35  ;;  %v5885_v35 = vsel %vm1053_vm6, %v1079_v39, %v1081_v25 }
  0xc0   : > { %4790 = vmatprep.mubr.msk.bf16.mxu0 %vm641_vm3, %v5736_v12  ;;  %v5888_v12 = vsel %vm1053_vm6, %v1081_v25, %v1083_v46  ;;  %v6732_v25 = vld [vmem:[#allocation2_spill] sm:$0xff] }
  0xc5   : > { %4655 = vmatmul.mubr.msk.bf16.gmra.mrb[20].mxu1 %vm641_vm3, %v5869_v16 }
  0xc6   : > { %4658 = vmatprep.mubr.msk.bf16.mxu1 %vm641_vm3, %v5872_v50 }
  0xc7   : > { %4791 = vmatmul.mubr.msk.bf16.gmra.mrb[20].mxu0 %vm641_vm3, %v5741_v36  ;;  %v5902_v36 = vsel %vm1053_vm6, %v1083_v46, %v1085_v26  ;;  %v2385_v46 = vrot.slane %v6732_v25, 3 }
  0xc8   : > { %4794 = vmatprep.mubr.msk.bf16.mxu0 %vm641_vm3, %v5752_v43  ;;  %v2352_v43 = vrot.slane %v5371_v52, 2  ;;  %v2360_v52 = vrot.slane %v5400_v1, 2  ;;  %v2368_v1 = vrot.slane %v5454_v34, 2  ;;  %v2376_v34 = vrot.slane %v5488_v2, 2 }
  0xc9   : > { %v2384_v2 = vrot.slane %v5522_v44, 2 }
  0xcd   : > { %4659 = vmatmul.mubr.msk.bf16.gmra.mrb[24].mxu1 %vm641_vm3, %v5885_v35 }
  0xce   : > { %4662 = vmatprep.mubr.msk.bf16.mxu1 %vm641_vm3, %v5888_v12 }
  0xcf   : > { %4795 = vmatmul.mubr.msk.bf16.gmra.mrb[24].mxu0 %vm641_vm3, %v5757_v61  ;;  %v2354_v61 = vor.u32 %v2353_v4, %v2352_v43  ;;  %v2386_v43 = vor.u32 %v2385_v46, %v2384_v2 }
  0xd0   : > { %4798 = vmatprep.mubr.msk.bf16.mxu0 %vm641_vm3, %v5771_v15  ;;  %v2356_v15 = vrot.slane %v5377_v54, 2 }
  0xd1   : > { %v2355_v48 = vsel %vm2340_vm5, %v5641_v29, %v2354_v61  ;;  %v2365_v29 = vrot.slane %v5414_v11, 3 }
  0xd2   : > { %v2358_v54 = vor.u32 %v2357_v6, %v2356_v15  ;;  %v2392_v15 = vrot.slane %v5556_v28, 2  ;;  %v2393_v6 = vrot.slane %v5553_v27, 3  ;;  %v6736_v28 = vld [vmem:[#allocation5_spill] sm:$0xff] }
  0xd5   : > { %4663 = vmatmul.mubr.msk.bf16.gmra.mrb[28].mxu1 %vm641_vm3, %v5902_v36 }
  0xd6   : > { %4668 = vmatprep.mubr.msk.bf16.mxu1 %vm641_vm3, %v5781_v56  ;;  %v2742_v56 = vsel %vm690_vm0, %v5799_v10, 0 }
  0xd7   : > { %4799 = vmatmul.mubr.msk.bf16.gmra.mrb[28].mxu0 %vm641_vm3, %v5614_v23  ;;  %v2361_v23 = vrot.slane %v5397_v0, 3 }
  0xd8   : > { %4804 = vmatprep.mubr.msk.bf16.mxu0 %vm641_vm3, %v5639_v30  ;;  %v2364_v30 = vrot.slane %v5421_v19, 2  ;;  %v2372_v19 = vrot.slane %v5461_v38, 2  ;;  %v2380_v38 = vrot.slane %v5495_v8, 2  ;;  %v6733_v8 = vld [vmem:[#allocation4_spill] sm:$0xff] }
  0xd9   : > { %v2362_v53 = vor.u32 %v2361_v23, %v2360_v52  ;;  %v2388_v4 = vrot.slane %v6733_v8, 2  ;;  %v6735_v52 = vshrl.u32 %v5546_v21, 16  ;;  %v2397_v23 = vrot.slane %v5560_v41, 3 }
  0xda   : > { %v2366_v10 = vor.u32 %v2365_v29, %v2364_v30  ;;  %v6739_v29 = vld [vmem:[#allocation6_spill] sm:$0xff] }
  0xdb   : > { %v2363_v0 = vsel %vm2340_vm5, %v2358_v54, %v2362_v53  ;;  %v2408_v41 = vshll.u32 %v6739_v29, 16 }
  0xdc   : > { %v2367_v11 = vsel %vm2340_vm5, %v2362_v53, %v2366_v10 }
  0xdd   : > { %4669 = vmatmul.mubr.msk.bf16.vlgmr.msra.gmra.mrb[0].mxu1 %vm641_vm3, %v5784_v42  ;;  %v2359_v42 = vsel %vm2340_vm5, %v2354_v61, %v2358_v54  ;;  %v6737_v54 = vshrl.u32 %v6736_v28, 16 }
  0xde   : > { %4672 = vmatprep.mubr.msk.bf16.mxu1 %vm641_vm3, %v1062_v45 }
  0xdf   : > { %4805 = vmatmul.mubr.msk.bf16.vlgmr.msra.gmra.mrb[0].mxu0 %vm641_vm3, %v5659_v55  ;;  %v2369_v55 = vrot.slane %v5451_v33, 3  ;;  %v2400_v53 = vrot.slane %v6737_v54, 2 }
  0xe0   : > { %4837 = vmatpush3.bf16.msra.mxu0 %v2742_v56  ;;  %4808 = vmatprep.mubr.msk.bf16.mxu0 %vm641_vm3, %v2355_v48  ;;  %v2394_v56 = vor.u32 %v2393_v6, %v2392_v15 }
  0xe1   : > { %v2370_v45 = vor.u32 %v2369_v55, %v2368_v1 }
  0xe3   : > { %v2371_v33 = vsel %vm2340_vm5, %v2366_v10, %v2370_v45  ;;  %v2410_v10 = vrot.slane %v2408_v41, 3 }
  0xe5   : > { %4673 = vmatmul.mubr.msk.bf16.gmra.mrb[4].mxu1 %vm641_vm3, %v5809_v14  ;;  %v2373_v14 = vrot.slane %v5458_v37, 3 }
  0xe6   : > { %4676 = vmatprep.mubr.msk.bf16.mxu1 %vm641_vm3, %v5821_v57  ;;  %v2377_v57 = vrot.slane %v5485_v63, 3 }
  0xe7   : > { %4809 = vmatmul.mubr.msk.bf16.gmra.mrb[4].mxu0 %vm641_vm3, %v2359_v42  ;;  %v6738_v42 = vshll.u32 %v6736_v28, 16 }
  0xe8   : > { %4812 = vmatprep.mubr.msk.bf16.mxu0 %vm641_vm3, %v2363_v0  ;;  %v2378_v39 = vor.u32 %v2377_v57, %v2376_v34  ;;  %v2405_v0 = vshrl.u32 %v6739_v29, 16  ;;  %v2663_v57 = vrot.slane %v5319_v18, 3  ;;  %v2671_v18 = vrot.slane %v5393_v62, 3 }
  0xe9   : > { %v2401_v30 = vrot.slane %v6738_v42, 3  ;;  %v2679_v62 = vrot.slane %v5478_v58, 3  ;;  %v2687_v58 = vrot.slane %v5546_v21, 3 }
  0xea   : > { %v2407_v55 = vrot.slane %v2405_v0, 2 }
  0xeb   : > { %v2402_v1 = vor.u32 %v2401_v30, %v2400_v53 }
  0xed   : > { %4677 = vmatmul.mubr.msk.bf16.gmra.mrb[8].mxu1 %vm641_vm3, %v5824_v7  ;;  %v2374_v7 = vor.u32 %v2373_v14, %v2372_v19  ;;  %v2411_v19 = vor.u32 %v2410_v10, %v2407_v55  ;;  %v2660_v14 = vrot.slane %v5302_v9, 3 }
  0xee   : > { %4680 = vmatprep.mubr.msk.bf16.mxu1 %vm641_vm3, %v5837_v51  ;;  %v2381_v51 = vrot.slane %v5492_v5, 3 }
  0xef   : > { %4813 = vmatmul.mubr.msk.bf16.gmra.mrb[8].mxu0 %vm641_vm3, %v2367_v11  ;;  %v2375_v37 = vsel %vm2340_vm5, %v2370_v45, %v2374_v7  ;;  %v2379_v63 = vsel %vm2340_vm5, %v2374_v7, %v2378_v39  ;;  %v1333_v11 = vrot.slane %v6736_v28, 1  ;;  %v2665_v7 = vrot.slane %v5331_v31, 3 }
  0xf0   : > { %4816 = vmatprep.mubr.msk.bf16.mxu0 %vm641_vm3, %v2371_v33  ;;  %v2661_v33 = vrot.slane %v5316_v17, 3  ;;  %v2667_v17 = vrot.slane %v5343_v40, 3  ;;  %v2673_v31 = vrot.slane %v5424_v20, 3  ;;  %v2675_v40 = vrot.slane %v5431_v24, 3 }
  0xf1   : > { %v2666_v9 = vsel %vm2659_vm7, %v2663_v57, %v2665_v7  ;;  %v2681_v20 = vrot.slane %v5504_v22, 3  ;;  %v2683_v24 = vrot.slane %v5512_v32, 3  ;;  %v2689_v22 = vrot.slane %v6736_v28, 3 }
  0xf2   : > { %v2662_v34 = vsel %vm2659_vm7, %v2660_v14, %v2661_v33  ;;  %v2676_v2 = vsel %vm2659_vm7, %v2673_v31, %v2675_v40  ;;  %v2691_v32 = vrot.slane %v6739_v29, 3 }
  0xf5   : > { %4681 = vmatmul.mubr.msk.bf16.gmra.mrb[12].mxu1 %vm641_vm3, %v5840_v60  ;;  %v2382_v60 = vor.u32 %v2381_v51, %v2380_v38 }
  0xf6   : > { %4684 = vmatprep.mubr.msk.bf16.mxu1 %vm641_vm3, %v5853_v59  ;;  %v6734_v59 = vld [vmem:[#allocation3_spill] sm:$0xff] }
  0xf7   : > { %4817 = vmatmul.mubr.msk.bf16.gmra.mrb[12].mxu0 %vm641_vm3, %v2375_v37  ;;  %v2383_v5 = vsel %vm2340_vm5, %v2378_v39, %v2382_v60  ;;  %v2389_v61 = vrot.slane %v6734_v59, 3  ;;  %v2387_v44 = vsel %vm2340_vm5, %v2382_v60, %v2386_v43  ;;  %v2669_v39 = vrot.slane %v5361_v49, 3 }
  0xf8   : > { %4820 = vmatprep.mubr.msk.bf16.mxu0 %vm641_vm3, %v2379_v63  ;;  %v2668_v37 = vsel %vm2659_vm7, %v2665_v7, %v2667_v17  ;;  %v2674_v63 = vsel %vm2659_vm7, %v2671_v18, %v2673_v31  ;;  %v2677_v49 = vrot.slane %v5470_v47, 3  ;;  %v2682_v60 = vsel %vm2659_vm7, %v2679_v62, %v2681_v20  ;;  %v6113_v7 = vld [vmem:[%s6697_s3] ss:$0 sm:$0xff] }
  0xf9   : > { %v2670_v38 = vsel %vm2659_vm7, %v2667_v17, %v2669_v39  ;;  %v2672_v51 = vsel %vm2659_vm7, %v2669_v39, %v2671_v18  ;;  %v2685_v47 = vrot.slane %v5538_v3, 3  ;;  %v2692_v3 = vsel %vm2659_vm7, %v2689_v22, %v2691_v32 }
  0xfa   : > { %v2678_v25 = vsel %vm2659_vm7, %v2675_v40, %v2677_v49  ;;  %v2680_v46 = vsel %vm2659_vm7, %v2677_v49, %v2679_v62 }
  0xfb   : > { %v2688_v8 = vsel %vm2659_vm7, %v2685_v47, %v2687_v58 }
  0xfd   : > { %4685 = vmatmul.mubr.msk.bf16.gmra.mrb[16].mxu1 %vm641_vm3, %v5856_v13  ;;  %v2390_v13 = vor.u32 %v2389_v61, %v2388_v4  ;;  %v2690_v4 = vsel %vm2659_vm7, %v2687_v58, %v2689_v22 }
  0xfe   : > { %4688 = vmatprep.mubr.msk.bf16.mxu1 %vm641_vm3, %v5869_v16  ;;  %v2396_v16 = vrot.slane %v6735_v52, 2 }
  0xff   : > { %4821 = vmatmul.mubr.msk.bf16.gmra.mrb[16].mxu0 %vm641_vm3, %v2383_v5  ;;  %v2391_v48 = vsel %vm2340_vm5, %v2386_v43, %v2390_v13  ;;  %v2395_v27 = vsel %vm2340_vm5, %v2390_v13, %v2394_v56  ;;  %v2684_v43 = vsel %vm2659_vm7, %v2681_v20, %v2683_v24  ;;  %v2686_v5 = vsel %vm2659_vm7, %v2683_v24, %v2685_v47  ;;  %v3400_v13 = vld [vmem:[%s6700_s6] sm:$0x3] }
 0x100   : > { %4824 = vmatprep.mubr.msk.bf16.mxu0 %vm641_vm3, %v2387_v44  ;;  %5169 = vmatprep.subr.msk.bf16.mxu1 %vm690_vm0, %v3400_v13  ;;  %v3450_v52 = vsel %vm690_vm0, %v3400_v13, 0 }
 0x101   : > { %4871 = vmatpush3.bf16.msra.mxu1 %v3450_v52 }
 0x105   : > { %4689 = vmatmul.mubr.msk.bf16.gmra.mrb[20].mxu1 %vm641_vm3, %v5872_v50  ;;  %v2398_v50 = vor.u32 %v2397_v23, %v2396_v16 }
 0x106   : > { %4692 = vmatprep.mubr.msk.bf16.mxu1 %vm641_vm3, %v5885_v35 }
 0x107   : > { %4825 = vmatmul.mubr.msk.bf16.gmra.mrb[20].mxu0 %vm641_vm3, %v2391_v48  ;;  %v2399_v35 = vsel %vm2340_vm5, %v2394_v56, %v2398_v50  ;;  %v2403_v45 = vsel %vm2340_vm5, %v2398_v50, %v2402_v1 }
 0x108   : > { %4828 = vmatprep.mubr.msk.bf16.mxu0 %vm641_vm3, %v2395_v27 }
 0x10d   : > { %4693 = vmatmul.mubr.msk.bf16.gmra.mrb[24].mxu1 %vm641_vm3, %v5888_v12  ;;  %v1334_v12 = vsel %vm1053_vm6, %v1085_v26, %v1333_v11  ;;  %v2664_v26 = vsel %vm2659_vm7, %v2661_v33, %v2663_v57 }
 0x10e   : > { %4696 = vmatprep.mubr.msk.bf16.mxu1 %vm641_vm3, %v5902_v36  ;;  %v2412_v36 = vsel %vm2340_vm5, %v2402_v1, %v2411_v19 }
 0x10f   : > { %4829 = vmatmul.mubr.msk.bf16.gmra.mrb[24].mxu0 %vm641_vm3, %v2399_v35 }
 0x110   : > { %4832 = vmatprep.mubr.msk.bf16.mxu0 %vm641_vm3, %v2403_v45 }
 0x115   : > { %4697 = vmatmul.mubr.msk.bf16.gmra.mrb[28].mxu1 %vm641_vm3, %v1334_v12 }
 0x117   : > { %4833 = vmatmul.mubr.msk.bf16.gmra.mrb[28].mxu0 %vm641_vm3, %v2412_v36 }
 0x118   : > { %4838 = vmatprep.mubr.msk.bf16.mxu0 %vm641_vm3, %v2662_v34 }
 0x11f   : > { %4839 = vmatmul.mubr.msk.bf16.vlgmr.msra.gmra.mrb[0].mxu0 %vm641_vm3, %v2664_v26 }
 0x120   : > { %4842 = vmatprep.mubr.msk.bf16.mxu0 %vm641_vm3, %v2666_v9 }
 0x127   : > { %4843 = vmatmul.mubr.msk.bf16.gmra.mrb[4].mxu0 %vm641_vm3, %v2668_v37  ;;  %v6118_v37 = vld [vmem:[%s6698_s4] ss:$0 sm:$0xff] }
 0x128   : > { %4846 = vmatprep.mubr.msk.bf16.mxu0 %vm641_vm3, %v2670_v38 }
 0x12f   : > { %4847 = vmatmul.mubr.msk.bf16.gmra.mrb[8].mxu0 %vm641_vm3, %v2672_v51 }
 0x130   : > { %4850 = vmatprep.mubr.msk.bf16.mxu0 %vm641_vm3, %v2674_v63 }
 0x137   : > { %4851 = vmatmul.mubr.msk.bf16.gmra.mrb[12].mxu0 %vm641_vm3, %v2676_v2 }
 0x138   : > { %4854 = vmatprep.mubr.msk.bf16.mxu0 %vm641_vm3, %v2678_v25 }
 0x13f   : > { %4855 = vmatmul.mubr.msk.bf16.gmra.mrb[16].mxu0 %vm641_vm3, %v2680_v46 }
 0x140   : > { %4858 = vmatprep.mubr.msk.bf16.mxu0 %vm641_vm3, %v2682_v60 }
 0x147   : > { %4859 = vmatmul.mubr.msk.bf16.gmra.mrb[20].mxu0 %vm641_vm3, %v2684_v43 }
 0x148   : > { %4862 = vmatprep.mubr.msk.bf16.mxu0 %vm641_vm3, %v2686_v5 }
 0x14f   : > { %4863 = vmatmul.mubr.msk.bf16.gmra.mrb[24].mxu0 %vm641_vm3, %v2688_v8 }
 0x150   : > { %4866 = vmatprep.mubr.msk.bf16.mxu0 %vm641_vm3, %v2690_v4 }
 0x157   : > { %4867 = vmatmul.mubr.msk.bf16.gmra.mrb[28].mxu0 %vm641_vm3, %v2692_v3 }
 0x1b0   : > { %v4670_v59 = vpop.f32.mrb[0].mxu1 }
 0x1b1   : > { %v1375_v61 = vpop.f32.mrb[1].mxu1 }
 0x1b2   : > { %v4671_v44 = vpop.f32.mrb[2].mxu1 }
 0x1b3   : > { %v1378_v21 = vpop.f32.mrb[3].mxu1 }
 0x1b8   : > { %v4674_v15 = vpop.f32.mrb[4].mxu1 }
 0x1b9   : > { %v1391_v6 = vpop.f32.mrb[5].mxu1 }
 0x1ba   : > { %v4675_v56 = vpop.f32.mrb[6].mxu1 }
 0x1bb   : > { %v1394_v48 = vpop.f32.mrb[7].mxu1 }
 0x1c0   : > { %v6062_v16 = vpop.f32.mrb[8].mxu1 }
 0x1c1   : > { %v6064_v23 = vpop.f32.mrb[9].mxu1 }
 0x1c2   : > { %v6066_v27 = vpop.f32.mrb[10].mxu1 }
 0x1c3   : > { %v6068_v28 = vpop.f32.mrb[11].mxu1 }
 0x1c8   : > { %v6070_v54 = vpop.f32.mrb[12].mxu1 }
 0x1c9   : > { %v6072_v53 = vpop.f32.mrb[13].mxu1 }
 0x1ca   : > { %v6074_v42 = vpop.f32.mrb[14].mxu1 }
 0x1cb   : > { %v6076_v30 = vpop.f32.mrb[15].mxu1 }
 0x1d0   : > { %v6078_v50 = vpop.f32.mrb[16].mxu1 }
 0x1d1   : > { %v6080_v29 = vpop.f32.mrb[17].mxu1 }
 0x1d2   : > { %v6082_v0 = vpop.f32.mrb[18].mxu1 }
 0x1d3   : > { %v6084_v41 = vpop.f32.mrb[19].mxu1 }
 0x1d8   : > { %v6086_v1 = vpop.f32.mrb[20].mxu1 }
 0x1d9   : > { %v6088_v35 = vpop.f32.mrb[21].mxu1 }
 0x1da   : > { %v6090_v55 = vpop.f32.mrb[22].mxu1 }
 0x1db   : > { %v6092_v10 = vpop.f32.mrb[23].mxu1 }
 0x1e0   : > { %v6094_v45 = vpop.f32.mrb[24].mxu1 }
 0x1e1   : > { %v6096_v11 = vpop.f32.mrb[25].mxu1 }
 0x1e2   : > { %v6098_v19 = vpop.f32.mrb[26].mxu1 }
 0x1e3   : > { %v6100_v12 = vpop.f32.mrb[27].mxu1 }
 0x1e8   : > { %v6102_v14 = vpop.f32.mrb[28].mxu1 }
 0x1e9   : > { %v6104_v33 = vpop.f32.mrb[29].mxu1 }
 0x1ea   : > { %v6106_v36 = vpop.f32.mrb[30].mxu1 }
 0x1eb   : > { %v6108_v34 = vpop.f32.mrb[31].mxu1 }
 0x1f2   : > { %v4840_v57 = vpop.f32.mrb[0].mxu0 }
 0x1f3   : > { %v4904_v26 = vadd.f32 %v4840_v57, %v4670_v59  ;;  %v2778_v9 = vpop.f32.mrb[1].mxu0 }
 0x1f4   : > { %v4905_v17 = vadd.f32 %v2778_v9, %v1375_v61  ;;  %v4841_v39 = vpop.f32.mrb[2].mxu0 }
 0x1f5   : > { %v2946_v38 = vmul.f32 %v4904_v26, %v6113_v7  ;;  %v4906_v18 = vadd.f32 %v4841_v39, %v4671_v44  ;;  %v2781_v31 = vpop.f32.mrb[3].mxu0 }
 0x1f6   : > { %v2944_v51 = vmul.f32 %v4905_v17, %v6113_v7  ;;  %v4907_v63 = vadd.f32 %v2781_v31, %v1378_v21 }
 0x1f7   : > { %v2947_v40 = vmul.f32 %v4906_v18, %v6113_v7  ;;  %v6124_v49 = vadd.f32 %v6118_v37, %v2946_v38 }
 0x1f8   : > { %v2945_v2 = vmul.f32 %v4907_v63, %v6113_v7  ;;  %v6128_v25 = vadd.f32 %v6118_v37, %v2944_v51 }
 0x1f9   : > { %v3017_v62 = vmax.f32 %v6124_v49, 0.0  ;;  %v6132_v20 = vadd.f32 %v6118_v37, %v2947_v40 }
 0x1fa   : > { %v4844_v46 = vpop.f32.mrb[4].mxu0  ;;  %v3015_v60 = vmax.f32 %v6128_v25, 0.0  ;;  %v6136_v24 = vadd.f32 %v6118_v37, %v2945_v2 }
 0x1fb   : > { %v4908_v47 = vadd.f32 %v4844_v46, %v4674_v15  ;;  %v2794_v43 = vpop.f32.mrb[5].mxu0  ;;  %3083 = vrot.lane.b32.xlu1 %v3017_v62, %s5209_s24  ;;  %v3018_v4 = vmax.f32 %v6132_v20, 0.0 }
 0x1fc   : > { %v4909_v5 = vadd.f32 %v2794_v43, %v1391_v6  ;;  %v4845_v58 = vpop.f32.mrb[6].mxu0  ;;  %3079 = vrot.lane.b32.xlu0 %v3015_v60, %s5209_s24  ;;  %v3016_v61 = vmax.f32 %v6136_v24, 0.0 }
 0x1fd   : > { %v4910_v22 = vadd.f32 %v4845_v58, %v4675_v56  ;;  %v2797_v8 = vpop.f32.mrb[7].mxu0  ;;  %v2950_v32 = vmul.f32 %v4908_v47, %v6113_v7 }
 0x1fe   : > { %v2948_v3 = vmul.f32 %v4909_v5, %v6113_v7  ;;  %v4911_v59 = vadd.f32 %v2797_v8, %v1394_v48 }
 0x1ff   : > { %3085 = vrot.lane.b32.xlu1 %v3018_v4, %s5209_s24  ;;  %v2951_v44 = vmul.f32 %v4910_v22, %v6113_v7  ;;  %v6164_v48 = vadd.f32 %v6118_v37, %v2950_v32 }
 0x200   : > { %v2949_v21 = vmul.f32 %v4911_v59, %v6113_v7  ;;  %3081 = vrot.lane.b32.xlu0 %v3016_v61, %s5209_s24  ;;  %v6157_v15 = vadd.f32 %v6118_v37, %v2948_v3 }
 0x201   : > { %v6173_v39 = vadd.f32 %v6118_v37, %v2951_v44 }
 0x202   : > { %v4848_v6 = vpop.f32.mrb[8].mxu0  ;;  %v3019_v13 = vmax.f32 %v6157_v15, 0.0  ;;  %v6161_v56 = vadd.f32 %v6118_v37, %v2949_v21 }
 0x203   : > { %v4912_v52 = vadd.f32 %v4848_v6, %v6062_v16  ;;  %v2810_v57 = vpop.f32.mrb[9].mxu0 }
 0x204   : > { %v4913_v26 = vadd.f32 %v2810_v57, %v6064_v23  ;;  %v4849_v9 = vpop.f32.mrb[10].mxu0  ;;  %3087 = vrot.lane.b32.xlu0 %v3019_v13, %s5209_s24  ;;  %v3020_v17 = vmax.f32 %v6161_v56, 0.0  ;;  %v3021_v23 = vmax.f32 %v6164_v48, 0.0 }
 0x205   : > { %v4914_v38 = vadd.f32 %v4849_v9, %v6066_v27  ;;  %v2813_v18 = vpop.f32.mrb[11].mxu0  ;;  %v2954_v31 = vmul.f32 %v4912_v52, %v6113_v7  ;;  %v3022_v27 = vmax.f32 %v6173_v39, 0.0 }
 0x206   : > { %v2952_v16 = vmul.f32 %v4913_v26, %v6113_v7  ;;  %v4915_v51 = vadd.f32 %v2813_v18, %v6068_v28  ;;  %3089 = vrot.lane.b32.xlu1 %v3020_v17, %s5209_s24 }
 0x207   : > { %v2955_v63 = vmul.f32 %v4914_v38, %v6113_v7  ;;  %v6200_v43 = vadd.f32 %v6118_v37, %v2954_v31 }
 0x208   : > { %v2953_v40 = vmul.f32 %v4915_v51, %v6113_v7  ;;  %3091 = vrot.lane.b32.xlu0 %v3021_v23, %s5209_s24  ;;  %v6190_v2 = vadd.f32 %v6118_v37, %v2952_v16  ;;  %v5210_v51 = vmov 0  }
 0x209   : > { %v6209_v3 = vadd.f32 %v6118_v37, %v2955_v63  ;;  %5181 = vset.pattern.permute.xlu1 %v5210_v51  ;;  %5180 = vset.pattern.permute.xlu0 %v5210_v51 }
 0x20a   : > { %v4852_v28 = vpop.f32.mrb[12].mxu0  ;;  %3093 = vrot.lane.b32.xlu1 %v3022_v27, %s5209_s24  ;;  %v3023_v46 = vmax.f32 %v6190_v2, 0.0  ;;  %v6197_v47 = vadd.f32 %v6118_v37, %v2953_v40 }
 0x20b   : > { %v4916_v5 = vadd.f32 %v4852_v28, %v6070_v54  ;;  %v2826_v58 = vpop.f32.mrb[13].mxu0 }
 0x20c   : > { %v4917_v22 = vadd.f32 %v2826_v58, %v6072_v53  ;;  %v4853_v8 = vpop.f32.mrb[14].mxu0  ;;  %3095 = vrot.lane.b32.xlu0 %v3023_v46, %s5209_s24  ;;  %v3024_v32 = vmax.f32 %v6197_v47, 0.0  ;;  %v3025_v53 = vmax.f32 %v6200_v43, 0.0 }
 0x20d   : > { %v4918_v59 = vadd.f32 %v4853_v8, %v6074_v42  ;;  %v2829_v44 = vpop.f32.mrb[15].mxu0  ;;  %v2958_v21 = vmul.f32 %v4916_v5, %v6113_v7  ;;  %v3026_v42 = vmax.f32 %v6209_v3, 0.0 }
 0x20e   : > { %v2956_v54 = vmul.f32 %v4917_v22, %v6113_v7  ;;  %v4919_v6 = vadd.f32 %v2829_v44, %v6076_v30  ;;  %3097 = vrot.lane.b32.xlu1 %v3024_v32, %s5209_s24 }
 0x20f   : > { %v2959_v52 = vmul.f32 %v4918_v59, %v6113_v7  ;;  %v6236_v18 = vadd.f32 %v6118_v37, %v2958_v21 }
 0x210   : > { %v2957_v57 = vmul.f32 %v4919_v6, %v6113_v7  ;;  %3099 = vrot.lane.b32.xlu0 %v3025_v53, %s5209_s24  ;;  %v6226_v26 = vadd.f32 %v6118_v37, %v2956_v54 }
 0x211   : > { %v6245_v5 = vadd.f32 %v6118_v37, %v2959_v52 }
 0x212   : > { %v4856_v30 = vpop.f32.mrb[16].mxu0  ;;  %3101 = vrot.lane.b32.xlu1 %v3026_v42, %s5209_s24  ;;  %v3027_v9 = vmax.f32 %v6226_v26, 0.0  ;;  %v6233_v38 = vadd.f32 %v6118_v37, %v2957_v57 }
 0x213   : > { %v4920_v31 = vadd.f32 %v4856_v30, %v6078_v50  ;;  %v2842_v16 = vpop.f32.mrb[17].mxu0 }
 0x214   : > { %v4921_v63 = vadd.f32 %v2842_v16, %v6080_v29  ;;  %v4857_v40 = vpop.f32.mrb[18].mxu0  ;;  %3103 = vrot.lane.b32.xlu0 %v3027_v9, %s5209_s24  ;;  %v3028_v28 = vmax.f32 %v6233_v38, 0.0  ;;  %v3029_v29 = vmax.f32 %v6236_v18, 0.0 }
 0x215   : > { %v4922_v58 = vadd.f32 %v4857_v40, %v6082_v0  ;;  %v2845_v22 = vpop.f32.mrb[19].mxu0  ;;  %v2962_v50 = vmul.f32 %v4920_v31, %v6113_v7  ;;  %v3030_v0 = vmax.f32 %v6245_v5, 0.0 }
 0x216   : > { %v2960_v8 = vmul.f32 %v4921_v63, %v6113_v7  ;;  %v4923_v59 = vadd.f32 %v2845_v22, %v6084_v41  ;;  %3105 = vrot.lane.b32.xlu1 %v3028_v28, %s5209_s24 }
 0x217   : > { %v2963_v44 = vmul.f32 %v4922_v58, %v6113_v7  ;;  %v6272_v57 = vadd.f32 %v6118_v37, %v2962_v50 }
 0x218   : > { %v2961_v21 = vmul.f32 %v4923_v59, %v6113_v7  ;;  %3107 = vrot.lane.b32.xlu0 %v3029_v29, %s5209_s24  ;;  %v6262_v54 = vadd.f32 %v6118_v37, %v2960_v8 }
 0x219   : > { %v6281_v40 = vadd.f32 %v6118_v37, %v2963_v44 }
 0x21a   : > { %v4860_v41 = vpop.f32.mrb[20].mxu0  ;;  %3109 = vrot.lane.b32.xlu1 %v3030_v0, %s5209_s24  ;;  %v3031_v6 = vmax.f32 %v6262_v54, 0.0  ;;  %v6269_v52 = vadd.f32 %v6118_v37, %v2961_v21 }
 0x21b   : > { %v4924_v30 = vadd.f32 %v4860_v41, %v6086_v1  ;;  %v2858_v31 = vpop.f32.mrb[21].mxu0 }
 0x21c   : > { %v4925_v16 = vadd.f32 %v2858_v31, %v6088_v35  ;;  %v4861_v51 = vpop.f32.mrb[22].mxu0  ;;  %3111 = vrot.lane.b32.xlu0 %v3031_v6, %s5209_s24  ;;  %v3032_v63 = vmax.f32 %v6269_v52, 0.0  ;;  %v3033_v35 = vmax.f32 %v6272_v57, 0.0  ;;  %v6740_v52 = vmax.f32 %v6281_v40, 0.0 }
 0x21d   : > { %v4926_v58 = vadd.f32 %v4861_v51, %v6090_v55  ;;  %v2861_v22 = vpop.f32.mrb[23].mxu0  ;;  %v2966_v50 = vmul.f32 %v4924_v30, %v6113_v7  ;;  %v6714_v55 = vmax.f32 %v6281_v40, 0.0 }
 0x21e   : > { %v2964_v1 = vmul.f32 %v4925_v16, %v6113_v7  ;;  %v4927_v8 = vadd.f32 %v2861_v22, %v6092_v10  ;;  %3113 = vrot.lane.b32.xlu1 %v3032_v63, %s5209_s24 }
 0x21f   : > { %v2967_v59 = vmul.f32 %v4926_v58, %v6113_v7  ;;  %v6308_v31 = vadd.f32 %v6118_v37, %v2966_v50 }
 0x220   : > { %v2965_v44 = vmul.f32 %v4927_v8, %v6113_v7  ;;  %3115 = vrot.lane.b32.xlu0 %v3033_v35, %s5209_s24  ;;  %v6298_v21 = vadd.f32 %v6118_v37, %v2964_v1 }
 0x221   : > { %v6317_v8 = vadd.f32 %v6118_v37, %v2967_v59 }
 0x222   : > { %v4864_v10 = vpop.f32.mrb[24].mxu0  ;;  %3117 = vrot.lane.b32.xlu1 %v6714_v55, %s5209_s24  ;;  %v6718_v41 = vmax.f32 %v6298_v21, 0.0  ;;  %v6305_v30 = vadd.f32 %v6118_v37, %v2965_v44  ;;  %v6741_v57 = vmax.f32 %v6298_v21, 0.0  ;;  %v6743_v21 = vmax.f32 %v6308_v31, 0.0 }
 0x223   : > { %v4928_v16 = vadd.f32 %v4864_v10, %v6094_v45  ;;  %v2874_v51 = vpop.f32.mrb[25].mxu0 }
 0x224   : > { %v4929_v58 = vadd.f32 %v2874_v51, %v6096_v11  ;;  %v4865_v22 = vpop.f32.mrb[26].mxu0  ;;  %3119 = vrot.lane.b32.xlu0 %v6718_v41, %s5209_s24  ;;  %v6717_v1 = vmax.f32 %v6305_v30, 0.0  ;;  %v6715_v11 = vmax.f32 %v6308_v31, 0.0  ;;  %v6742_v40 = vmax.f32 %v6305_v30, 0.0 }
 0x225   : > { %v4930_v44 = vadd.f32 %v4865_v22, %v6098_v19  ;;  %v2877_v55 = vpop.f32.mrb[27].mxu0  ;;  %v2970_v50 = vmul.f32 %v4928_v16, %v6113_v7  ;;  %v6716_v19 = vmax.f32 %v6317_v8, 0.0  ;;  %v6744_v30 = vmax.f32 %v6317_v8, 0.0 }
 0x226   : > { %v2968_v45 = vmul.f32 %v4929_v58, %v6113_v7  ;;  %v4931_v10 = vadd.f32 %v2877_v55, %v6100_v12  ;;  %3121 = vrot.lane.b32.xlu1 %v6717_v1, %s5209_s24 }
 0x227   : > { %v2971_v51 = vmul.f32 %v4930_v44, %v6113_v7  ;;  %v6344_v22 = vadd.f32 %v6118_v37, %v2970_v50 }
 0x228   : > { %v2969_v59 = vmul.f32 %v4931_v10, %v6113_v7  ;;  %3123 = vrot.lane.b32.xlu0 %v6715_v11, %s5209_s24  ;;  %v6334_v16 = vadd.f32 %v6118_v37, %v2968_v45 }
 0x229   : > { %v6353_v1 = vadd.f32 %v6118_v37, %v2971_v51 }
 0x22a   : > { %v4868_v12 = vpop.f32.mrb[28].mxu0  ;;  %3125 = vrot.lane.b32.xlu1 %v6716_v19, %s5209_s24  ;;  %v3039_v55 = vmax.f32 %v6334_v16, 0.0  ;;  %v6341_v58 = vadd.f32 %v6118_v37, %v2969_v59  ;;  %v6745_v16 = vmax.f32 %v6344_v22, 0.0 }
 0x22b   : > { %v4932_v44 = vadd.f32 %v4868_v12, %v6102_v14  ;;  %v2890_v10 = vpop.f32.mrb[29].mxu0  ;;  %v6724_v12 = vmax.f32 %v6344_v22, 0.0 }
 0x22c   : > { %v4933_v45 = vadd.f32 %v2890_v10, %v6104_v33  ;;  %v4869_v11 = vpop.f32.mrb[30].mxu0  ;;  %3127 = vrot.lane.b32.xlu0 %v3039_v55, %s5209_s24  ;;  %v3040_v19 = vmax.f32 %v6341_v58, 0.0 }
 0x22d   : > { %v4934_v59 = vadd.f32 %v4869_v11, %v6106_v36  ;;  %v2893_v41 = vpop.f32.mrb[31].mxu0  ;;  %v2974_v50 = vmul.f32 %v4932_v44, %v6113_v7  ;;  %v6723_v36 = vmax.f32 %v6353_v1, 0.0 }
 0x22e   : > { %v2972_v14 = vmul.f32 %v4933_v45, %v6113_v7  ;;  %v4935_v33 = vadd.f32 %v2893_v41, %v6108_v34  ;;  %3129 = vrot.lane.b32.xlu1 %v3040_v19, %s5209_s24 }
 0x22f   : > { %v2975_v51 = vmul.f32 %v4934_v59, %v6113_v7 }
 0x230   : > { %v2973_v10 = vmul.f32 %v4935_v33, %v6113_v7  ;;  %3131 = vrot.lane.b32.xlu0 %v6724_v12, %s5209_s24  ;;  %v6371_v11 = vadd.f32 %v6118_v37, %v2972_v14  ;;  %v6381_v7 = vadd.f32 %v6118_v37, %v2974_v50  ;;  %v3614_v14 = vld [vmem:[%s6405_s30 + $0x8] sm:$0xff]  ;;  %v3616_v33 = vld [vmem:[%s6405_s30 + $0x18] sm:$0xff] }
 0x231   : > { %v6391_v45 = vadd.f32 %v6118_v37, %v2975_v51  ;;  %v3615_v51 = vld [vmem:[%s6405_s30 + $0x10] sm:$0xff] }
 0x232   : > { %3133 = vrot.lane.b32.xlu1 %v6723_v36, %s5209_s24  ;;  %v6721_v34 = vmax.f32 %v6371_v11, 0.0  ;;  %v6378_v41 = vadd.f32 %v6118_v37, %v2973_v10  ;;  %v6719_v59 = vmax.f32 %v6381_v7, 0.0  ;;  %v3613_v37 = vld [vmem:[%s6405_s30] sm:$0xff]  ;;  %v3618_v10 = vld [vmem:[%s6405_s30 + $0x28] sm:$0xff]  ;;  %v6747_v22 = vmax.f32 %v6371_v11, 0.0 }
 0x233   : > { %v6722_v50 = vmax.f32 %v6391_v45, 0.0  ;;  %v3638_v36 = vld [vmem:[%s6405_s30 + $0xc8] sm:$0xff] }
 0x234   : > { %3135 = vrot.lane.b32.xlu0 %v6721_v34, %s5209_s24  ;;  %v6720_v44 = vmax.f32 %v6378_v41, 0.0  ;;  %v3619_v34 = vld [vmem:[%s6405_s30 + $0x30] sm:$0xff] }
 0x236   : > { %3137 = vrot.lane.b32.xlu1 %v6720_v44, %s5209_s24  ;;  %v3620_v44 = vld [vmem:[%s6405_s30 + $0x38] sm:$0xff] }
 0x238   : > { %3139 = vrot.lane.b32.xlu0 %v6719_v59, %s5209_s24  ;;  %v3617_v59 = vld [vmem:[%s6405_s30 + $0x20] sm:$0xff] }
 0x23a   : > { %3141 = vrot.lane.b32.xlu1 %v6722_v50, %s5209_s24  ;;  %v3622_v50 = vld [vmem:[%s6405_s30 + $0x48] sm:$0xff] }
 0x23c   : > { %3647 = vperm.xlu0 %5180, %v3613_v37   ;;  %v3621_v37 = vld [vmem:[%s6405_s30 + $0x40] sm:$0xff] }
 0x23e   : > { %3652 = vperm.xlu1 %5181, %v3614_v14   ;;  %v3624_v14 = vld [vmem:[%s6405_s30 + $0x58] sm:$0xff] }
 0x240   : > { %3662 = vperm.xlu0 %5180, %v3616_v33   ;;  %v3623_v33 = vld [vmem:[%s6405_s30 + $0x50] sm:$0xff] }
 0x242   : > { %3657 = vperm.xlu1 %5181, %v3615_v51   ;;  %v3626_v51 = vld [vmem:[%s6405_s30 + $0x68] sm:$0xff] }
 0x244   : > { %3672 = vperm.xlu0 %5180, %v3618_v10   ;;  %v3625_v10 = vld [vmem:[%s6405_s30 + $0x60] sm:$0xff] }
 0x246   : > { %3667 = vperm.xlu1 %5181, %v3617_v59   ;;  %v3628_v59 = vld [vmem:[%s6405_s30 + $0x78] sm:$0xff] }
 0x248   : > { %3682 = vperm.xlu0 %5180, %v3620_v44   ;;  %v3627_v44 = vld [vmem:[%s6405_s30 + $0x70] sm:$0xff] }
 0x24a   : > { %3677 = vperm.xlu1 %5181, %v3619_v34   ;;  %v3630_v34 = vld [vmem:[%s6405_s30 + $0x88] sm:$0xff] }
 0x24c   : > { %3692 = vperm.xlu0 %5180, %v3622_v50   ;;  %v3629_v50 = vld [vmem:[%s6405_s30 + $0x80] sm:$0xff] }
 0x24e   : > { %3687 = vperm.xlu1 %5181, %v3621_v37   ;;  %v3632_v37 = vld [vmem:[%s6405_s30 + $0x98] sm:$0xff] }
 0x250   : > { %3702 = vperm.xlu0 %5180, %v3624_v14   ;;  %v3631_v14 = vld [vmem:[%s6405_s30 + $0x90] sm:$0xff] }
 0x252   : > { %3697 = vperm.xlu1 %5181, %v3623_v33   ;;  %v3634_v33 = vld [vmem:[%s6405_s30 + $0xa8] sm:$0xff] }
 0x254   : > { %3712 = vperm.xlu0 %5180, %v3626_v51   ;;  %v3633_v51 = vld [vmem:[%s6405_s30 + $0xa0] sm:$0xff] }
 0x256   : > { %3707 = vperm.xlu1 %5181, %v3625_v10   ;;  %v3636_v10 = vld [vmem:[%s6405_s30 + $0xb8] sm:$0xff] }
 0x258   : > { %3722 = vperm.xlu0 %5180, %v3628_v59   ;;  %v3635_v59 = vld [vmem:[%s6405_s30 + $0xb0] sm:$0xff] }
 0x25a   : > { %3717 = vperm.xlu1 %5181, %v3627_v44   ;;  %v3637_v44 = vld [vmem:[%s6405_s30 + $0xc0] sm:$0xff] }
 0x25c   : > { %3732 = vperm.xlu0 %5180, %v3630_v34  }
 0x25e   : > { %3727 = vperm.xlu1 %5181, %v3629_v50   ;;  %v3640_v50 = vld [vmem:[%s6405_s30 + $0xd8] sm:$0xff] }
 0x260   : > { %3742 = vperm.xlu0 %5180, %v3632_v37  }
 0x262   : > { %3737 = vperm.xlu1 %5181, %v3631_v14  }
 0x264   : > { %3752 = vperm.xlu0 %5180, %v3634_v33   ;;  %v3639_v33 = vld [vmem:[%s6405_s30 + $0xd0] sm:$0xff] }
 0x266   : > { %3747 = vperm.xlu1 %5181, %v3633_v51  }
 0x268   : > { %3762 = vperm.xlu0 %5180, %v3636_v10  }
 0x26a   : > { %3757 = vperm.xlu1 %5181, %v3635_v59  }
 0x26c   : > { %3772 = vperm.xlu0 %5180, %v3638_v36   ;;  %v3642_v36 = vld [vmem:[%s6405_s30 + $0xe8] sm:$0xff] }
 0x26d   : > { %v3084_v34 = vpop.permute.xlu1 %3083 }
 0x26e   : > { %v3177_v37 = vadd.f32 %v3084_v34, %v3017_v62  ;;  %v3080_v12 = vpop.permute.xlu0 %3079  ;;  %3767 = vperm.xlu1 %5181, %v3637_v44   ;;  %v3641_v44 = vld [vmem:[%s6405_s30 + $0xe0] sm:$0xff] }
 0x26f   : > { %v3175_v14 = vadd.f32 %v3080_v12, %v3015_v60 }
 0x270   : > { %v3209_v51 = vmax.f32 %v3177_v37, 0.0  ;;  %3782 = vperm.xlu0 %5180, %v3640_v50   ;;  %v3644_v37 = vld [vmem:[%s6405_s30 + $0xf8] sm:$0xff] }
 0x271   : > { %v3207_v49 = vmax.f32 %v3175_v14, 0.0  ;;  %v3086_v62 = vpop.permute.xlu1 %3085 }
 0x272   : > { %v4364_v10 = vpack.c.bf16 %v3209_v51, %v3209_v51  ;;  %v3178_v25 = vadd.f32 %v3086_v62, %v3018_v4  ;;  %v3082_v60 = vpop.permute.xlu0 %3081  ;;  %3777 = vperm.xlu1 %5181, %v3639_v33  }
 0x273   : > { %v4362_v12 = vpack.c.bf16 %v3207_v49, %v3207_v49  ;;  %v3176_v59 = vadd.f32 %v3082_v60, %v3016_v61  ;;  %v3643_v61 = vld [vmem:[%s6405_s30 + $0xf0] sm:$0xff] }
 0x274   : > { %3370 = vst.msk [vmem:[%s6446_s13 + $0x8] sm:$0xf] %vm3367_vm8, %v4364_v10  ;;  %v3210_v34 = vmax.f32 %v3178_v25, 0.0  ;;  %3792 = vperm.xlu0 %5180, %v3642_v36  }
 0x275   : > { %3368 = vst.msk [vmem:[%s6446_s13] sm:$0xf] %vm3367_vm8, %v4362_v12  ;;  %v3208_v50 = vmax.f32 %v3176_v59, 0.0 }
 0x276   : > { %v4365_v20 = vpack.c.bf16 %v3210_v34, %v3210_v34  ;;  %v3088_v4 = vpop.permute.xlu0 %3087  ;;  %3787 = vperm.xlu1 %5181, %v3641_v44   ;;  %v3240_v62 = vpack.c.bf16 %v3210_v34, %v3209_v51 }
 0x277   : > { %v3239_v14 = vpack.c.bf16 %v3208_v50, %v3207_v49  ;;  %v4363_v33 = vpack.c.bf16 %v3208_v50, %v3208_v50  ;;  %v3179_v24 = vadd.f32 %v3088_v4, %v3019_v13 }
 0x278   : > { %3371 = vst.msk [vmem:[%s6446_s13 + $0xc] sm:$0xf] %vm3367_vm8, %v4365_v20  ;;  %v3090_v10 = vpop.permute.xlu1 %3089  ;;  %3802 = vperm.xlu0 %5180, %v3644_v37  }
 0x279   : > { %3369 = vst.msk [vmem:[%s6446_s13 + $0x4] sm:$0xf] %vm3367_vm8, %v4363_v33  ;;  %v3211_v36 = vmax.f32 %v3179_v24, 0.0  ;;  %v3180_v25 = vadd.f32 %v3090_v10, %v3020_v17  ;;  %4872 = vmatprep.mubr.msk.bf16.mxu1 %vm641_vm3, %v3239_v14 }
 0x27a   : > { %4873 = vmatmul.mubr.msk.bf16.vlgmr.msra.gmra.mrb[32].mxu1 %vm641_vm3, %v3240_v62  ;;  %v3092_v15 = vpop.permute.xlu0 %3091  ;;  %3797 = vperm.xlu1 %5181, %v3643_v61  }
 0x27b   : > { %v4366_v13 = vpack.c.bf16 %v3211_v36, %v3211_v36  ;;  %v3212_v51 = vmax.f32 %v3180_v25, 0.0  ;;  %v3181_v49 = vadd.f32 %v3092_v15, %v3021_v23 }
 0x27c   : > { %v3094_v60 = vpop.permute.xlu1 %3093 }
 0x27d   : > { %3372 = vst.msk [vmem:[%s6446_s13 + $0x10] sm:$0xf] %vm3367_vm8, %v4366_v13  ;;  %v3241_v12 = vpack.c.bf16 %v3212_v51, %v3211_v36  ;;  %v4367_v59 = vpack.c.bf16 %v3212_v51, %v3212_v51  ;;  %v3213_v56 = vmax.f32 %v3181_v49, 0.0  ;;  %v3182_v17 = vadd.f32 %v3094_v60, %v3022_v27 }
 0x27e   : > { %v3096_v44 = vpop.permute.xlu0 %3095 }
 0x27f   : > { %3373 = vst.msk [vmem:[%s6446_s13 + $0x14] sm:$0xf] %vm3367_vm8, %v4367_v59  ;;  %v4368_v34 = vpack.c.bf16 %v3213_v56, %v3213_v56  ;;  %v3214_v50 = vmax.f32 %v3182_v17, 0.0  ;;  %v3183_v48 = vadd.f32 %v3096_v44, %v3023_v46  ;;  %4876 = vmatprep.mubr.msk.bf16.mxu1 %vm641_vm3, %v3241_v12 }
 0x280   : > { %v3098_v23 = vpop.permute.xlu1 %3097 }
 0x281   : > { %3374 = vst.msk [vmem:[%s6446_s13 + $0x18] sm:$0xf] %vm3367_vm8, %v4368_v34  ;;  %v3242_v37 = vpack.c.bf16 %v3214_v50, %v3213_v56  ;;  %v4369_v20 = vpack.c.bf16 %v3214_v50, %v3214_v50  ;;  %v3215_v4 = vmax.f32 %v3183_v48, 0.0  ;;  %v3184_v39 = vadd.f32 %v3098_v23, %v3024_v32 }
 0x282   : > { %v3100_v27 = vpop.permute.xlu0 %3099 }
 0x283   : > { %3375 = vst.msk [vmem:[%s6446_s13 + $0x1c] sm:$0xf] %vm3367_vm8, %v4369_v20  ;;  %v4370_v14 = vpack.c.bf16 %v3215_v4, %v3215_v4  ;;  %v3216_v33 = vmax.f32 %v3184_v39, 0.0  ;;  %v3185_v2 = vadd.f32 %v3100_v27, %v3025_v53  ;;  %4877 = vmatmul.mubr.msk.bf16.gmra.mrb[36].mxu1 %vm641_vm3, %v3242_v37 }
 0x284   : > { %v3102_v46 = vpop.permute.xlu1 %3101 }
 0x285   : > { %3376 = vst.msk [vmem:[%s6446_s13 + $0x20] sm:$0xf] %vm3367_vm8, %v4370_v14  ;;  %v3243_v24 = vpack.c.bf16 %v3216_v33, %v3215_v4  ;;  %v4371_v61 = vpack.c.bf16 %v3216_v33, %v3216_v33  ;;  %v3217_v62 = vmax.f32 %v3185_v2, 0.0  ;;  %v3186_v47 = vadd.f32 %v3102_v46, %v3026_v42 }
 0x286   : > { %v3104_v32 = vpop.permute.xlu0 %3103 }
 0x287   : > { %3377 = vst.msk [vmem:[%s6446_s13 + $0x24] sm:$0xf] %vm3367_vm8, %v4371_v61  ;;  %v4372_v10 = vpack.c.bf16 %v3217_v62, %v3217_v62  ;;  %v3218_v36 = vmax.f32 %v3186_v47, 0.0  ;;  %v3187_v43 = vadd.f32 %v3104_v32, %v3027_v9  ;;  %4880 = vmatprep.mubr.msk.bf16.mxu1 %vm641_vm3, %v3243_v24 }
 0x288   : > { %v3106_v53 = vpop.permute.xlu1 %3105 }
 0x289   : > { %3378 = vst.msk [vmem:[%s6446_s13 + $0x28] sm:$0xf] %vm3367_vm8, %v4372_v10  ;;  %v3244_v25 = vpack.c.bf16 %v3218_v36, %v3217_v62  ;;  %v4373_v15 = vpack.c.bf16 %v3218_v36, %v3218_v36  ;;  %v3219_v13 = vmax.f32 %v3187_v43, 0.0  ;;  %v3188_v3 = vadd.f32 %v3106_v53, %v3028_v28 }
 0x28a   : > { %v3108_v42 = vpop.permute.xlu0 %3107 }
 0x28b   : > { %3379 = vst.msk [vmem:[%s6446_s13 + $0x2c] sm:$0xf] %vm3367_vm8, %v4373_v15  ;;  %v4374_v51 = vpack.c.bf16 %v3219_v13, %v3219_v13  ;;  %v3220_v49 = vmax.f32 %v3188_v3, 0.0  ;;  %v3189_v26 = vadd.f32 %v3108_v42, %v3029_v29  ;;  %4881 = vmatmul.mubr.msk.bf16.gmra.mrb[40].mxu1 %vm641_vm3, %v3244_v25 }
 0x28c   : > { %v3110_v9 = vpop.permute.xlu1 %3109 }
 0x28d   : > { %3380 = vst.msk [vmem:[%s6446_s13 + $0x30] sm:$0xf] %vm3367_vm8, %v4374_v51  ;;  %v3245_v60 = vpack.c.bf16 %v3220_v49, %v3219_v13  ;;  %v4375_v12 = vpack.c.bf16 %v3220_v49, %v3220_v49  ;;  %v3221_v59 = vmax.f32 %v3189_v26, 0.0  ;;  %v3190_v38 = vadd.f32 %v3110_v9, %v3030_v0 }
 0x28e   : > { %v3112_v28 = vpop.permute.xlu0 %3111 }
 0x28f   : > { %3381 = vst.msk [vmem:[%s6446_s13 + $0x34] sm:$0xf] %vm3367_vm8, %v4375_v12  ;;  %v4376_v56 = vpack.c.bf16 %v3221_v59, %v3221_v59  ;;  %v3222_v17 = vmax.f32 %v3190_v38, 0.0  ;;  %v3191_v18 = vadd.f32 %v3112_v28, %v3031_v6  ;;  %4884 = vmatprep.mubr.msk.bf16.mxu1 %vm641_vm3, %v3245_v60 }
 0x290   : > { %v3114_v29 = vpop.permute.xlu1 %3113 }
 0x291   : > { %3382 = vst.msk [vmem:[%s6446_s13 + $0x38] sm:$0xf] %vm3367_vm8, %v4376_v56  ;;  %v3246_v44 = vpack.c.bf16 %v3222_v17, %v3221_v59  ;;  %v4377_v34 = vpack.c.bf16 %v3222_v17, %v3222_v17  ;;  %v3223_v50 = vmax.f32 %v3191_v18, 0.0  ;;  %v3192_v5 = vadd.f32 %v3114_v29, %v3032_v63 }
 0x292   : > { %v3116_v0 = vpop.permute.xlu0 %3115 }
 0x293   : > { %3383 = vst.msk [vmem:[%s6446_s13 + $0x3c] sm:$0xf] %vm3367_vm8, %v4377_v34  ;;  %v4378_v48 = vpack.c.bf16 %v3223_v50, %v3223_v50  ;;  %v3224_v23 = vmax.f32 %v3192_v5, 0.0  ;;  %v3193_v54 = vadd.f32 %v3116_v0, %v3033_v35  ;;  %4885 = vmatmul.mubr.msk.bf16.gmra.mrb[44].mxu1 %vm641_vm3, %v3246_v44 }
 0x294   : > { %v3118_v6 = vpop.permute.xlu1 %3117 }
 0x295   : > { %3384 = vst.msk [vmem:[%s6446_s13 + $0x40] sm:$0xf] %vm3367_vm8, %v4378_v48  ;;  %v3247_v37 = vpack.c.bf16 %v3224_v23, %v3223_v50  ;;  %v4379_v20 = vpack.c.bf16 %v3224_v23, %v3224_v23  ;;  %v3225_v4 = vmax.f32 %v3193_v54, 0.0  ;;  %v3194_v63 = vadd.f32 %v3118_v6, %v6740_v52 }
 0x296   : > { %v3120_v39 = vpop.permute.xlu0 %3119 }
 0x297   : > { %3385 = vst.msk [vmem:[%s6446_s13 + $0x44] sm:$0xf] %vm3367_vm8, %v4379_v20  ;;  %v4380_v27 = vpack.c.bf16 %v3225_v4, %v3225_v4  ;;  %v3226_v14 = vmax.f32 %v3194_v63, 0.0  ;;  %v3195_v35 = vadd.f32 %v3120_v39, %v6741_v57  ;;  %4888 = vmatprep.mubr.msk.bf16.mxu1 %vm641_vm3, %v3247_v37  ;;  %v6749_v37 = vmax.f32 %v6381_v7, 0.0 }
 0x298   : > { %v3122_v33 = vpop.permute.xlu1 %3121 }
 0x299   : > { %3386 = vst.msk [vmem:[%s6446_s13 + $0x48] sm:$0xf] %vm3367_vm8, %v4380_v27  ;;  %v3248_v2 = vpack.c.bf16 %v3226_v14, %v3225_v4  ;;  %v4381_v46 = vpack.c.bf16 %v3226_v14, %v3226_v14  ;;  %v3227_v24 = vmax.f32 %v3195_v35, 0.0  ;;  %v3196_v61 = vadd.f32 %v3122_v33, %v6742_v40 }
 0x29a   : > { %v3124_v62 = vpop.permute.xlu0 %3123 }
 0x29b   : > { %3387 = vst.msk [vmem:[%s6446_s13 + $0x4c] sm:$0xf] %vm3367_vm8, %v4381_v46  ;;  %v4382_v47 = vpack.c.bf16 %v3227_v24, %v3227_v24  ;;  %v3228_v32 = vmax.f32 %v3196_v61, 0.0  ;;  %v3197_v10 = vadd.f32 %v3124_v62, %v6743_v21  ;;  %4889 = vmatmul.mubr.msk.bf16.gmra.mrb[48].mxu1 %vm641_vm3, %v3248_v2 }
 0x29c   : > { %v3126_v36 = vpop.permute.xlu1 %3125 }
 0x29d   : > { %3388 = vst.msk [vmem:[%s6446_s13 + $0x50] sm:$0xf] %vm3367_vm8, %v4382_v47  ;;  %v3249_v43 = vpack.c.bf16 %v3228_v32, %v3227_v24  ;;  %v4383_v53 = vpack.c.bf16 %v3228_v32, %v3228_v32  ;;  %v3229_v25 = vmax.f32 %v3197_v10, 0.0  ;;  %v3198_v15 = vadd.f32 %v3126_v36, %v6744_v30 }
 0x29e   : > { %v3128_v13 = vpop.permute.xlu0 %3127 }
 0x29f   : > { %3389 = vst.msk [vmem:[%s6446_s13 + $0x54] sm:$0xf] %vm3367_vm8, %v4383_v53  ;;  %v4384_v3 = vpack.c.bf16 %v3229_v25, %v3229_v25  ;;  %v3230_v42 = vmax.f32 %v3198_v15, 0.0  ;;  %v3199_v31 = vadd.f32 %v3128_v13, %v3039_v55  ;;  %4892 = vmatprep.mubr.msk.bf16.mxu1 %vm641_vm3, %v3249_v43 }
 0x2a0   : > { %v3130_v51 = vpop.permute.xlu1 %3129 }
 0x2a1   : > { %3390 = vst.msk [vmem:[%s6446_s13 + $0x58] sm:$0xf] %vm3367_vm8, %v4384_v3  ;;  %v3250_v49 = vpack.c.bf16 %v3230_v42, %v3229_v25  ;;  %v4385_v26 = vpack.c.bf16 %v3230_v42, %v3230_v42  ;;  %v3231_v9 = vmax.f32 %v3199_v31, 0.0  ;;  %v3200_v8 = vadd.f32 %v3130_v51, %v3040_v19 }
 0x2a2   : > { %v3132_v60 = vpop.permute.xlu0 %3131  ;;  %v6746_v19 = vmax.f32 %v6353_v1, 0.0  ;;  %v6748_v1 = vmax.f32 %v6378_v41, 0.0  ;;  %v6750_v41 = vmax.f32 %v6391_v45, 0.0 }
 0x2a3   : > { %3391 = vst.msk [vmem:[%s6446_s13 + $0x5c] sm:$0xf] %vm3367_vm8, %v4385_v26  ;;  %v4386_v12 = vpack.c.bf16 %v3231_v9, %v3231_v9  ;;  %v3232_v59 = vmax.f32 %v3200_v8, 0.0  ;;  %v3201_v55 = vadd.f32 %v3132_v60, %v6745_v16  ;;  %4893 = vmatmul.mubr.msk.bf16.gmra.mrb[52].mxu1 %vm641_vm3, %v3250_v49 }
 0x2a4   : > { %v3134_v38 = vpop.permute.xlu1 %3133 }
 0x2a5   : > { %3392 = vst.msk [vmem:[%s6446_s13 + $0x60] sm:$0xf] %vm3367_vm8, %v4386_v12  ;;  %v3251_v28 = vpack.c.bf16 %v3232_v59, %v3231_v9  ;;  %v4387_v56 = vpack.c.bf16 %v3232_v59, %v3232_v59  ;;  %v3233_v17 = vmax.f32 %v3201_v55, 0.0  ;;  %v3202_v58 = vadd.f32 %v3134_v38, %v6746_v19 }
 0x2a6   : > { %v3136_v18 = vpop.permute.xlu0 %3135 }
 0x2a7   : > { %3393 = vst.msk [vmem:[%s6446_s13 + $0x64] sm:$0xf] %vm3367_vm8, %v4387_v56  ;;  %v4388_v29 = vpack.c.bf16 %v3233_v17, %v3233_v17  ;;  %v3234_v44 = vmax.f32 %v3202_v58, 0.0  ;;  %v3203_v34 = vadd.f32 %v3136_v18, %v6747_v22  ;;  %4896 = vmatprep.mubr.msk.bf16.mxu1 %vm641_vm3, %v3251_v28 }
 0x2a8   : > { %v3138_v50 = vpop.permute.xlu1 %3137 }
 0x2a9   : > { %3394 = vst.msk [vmem:[%s6446_s13 + $0x68] sm:$0xf] %vm3367_vm8, %v4388_v29  ;;  %v3252_v5 = vpack.c.bf16 %v3234_v44, %v3233_v17  ;;  %v4389_v0 = vpack.c.bf16 %v3234_v44, %v3234_v44  ;;  %v3235_v48 = vmax.f32 %v3203_v34, 0.0  ;;  %v3204_v23 = vadd.f32 %v3138_v50, %v6748_v1 }
 0x2aa   : > { %v3140_v54 = vpop.permute.xlu0 %3139 }
 0x2ab   : > { %3395 = vst.msk [vmem:[%s6446_s13 + $0x6c] sm:$0xf] %vm3367_vm8, %v4389_v0  ;;  %v4390_v6 = vpack.c.bf16 %v3235_v48, %v3235_v48  ;;  %v3236_v11 = vmax.f32 %v3204_v23, 0.0  ;;  %v3205_v20 = vadd.f32 %v3140_v54, %v6749_v37  ;;  %4897 = vmatmul.mubr.msk.bf16.gmra.mrb[56].mxu1 %vm641_vm3, %v3252_v5 }
 0x2ac   : > { %v3142_v4 = vpop.permute.xlu1 %3141 }
 0x2ad   : > { %3396 = vst.msk [vmem:[%s6446_s13 + $0x70] sm:$0xf] %vm3367_vm8, %v4390_v6  ;;  %v3253_v52 = vpack.c.bf16 %v3236_v11, %v3235_v48  ;;  %v4391_v63 = vpack.c.bf16 %v3236_v11, %v3236_v11  ;;  %v3237_v39 = vmax.f32 %v3205_v20, 0.0  ;;  %v3206_v27 = vadd.f32 %v3142_v4, %v6750_v41 }
 0x2af   : > { %3397 = vst.msk [vmem:[%s6446_s13 + $0x74] sm:$0xf] %vm3367_vm8, %v4391_v63  ;;  %v4392_v14 = vpack.c.bf16 %v3237_v39, %v3237_v39  ;;  %v3238_v57 = vmax.f32 %v3206_v27, 0.0  ;;  %4900 = vmatprep.mubr.msk.bf16.mxu1 %vm641_vm3, %v3253_v52 }
 0x2b1   : > { %3398 = vst.msk [vmem:[%s6446_s13 + $0x78] sm:$0xf] %vm3367_vm8, %v4392_v14  ;;  %v3254_v7 = vpack.c.bf16 %v3238_v57, %v3237_v39  ;;  %v4393_v35 = vpack.c.bf16 %v3238_v57, %v3238_v57 }
 0x2b3   : > { %3399 = vst.msk [vmem:[%s6446_s13 + $0x7c] sm:$0xf] %vm3367_vm8, %v4393_v35  ;;  %4901 = vmatmul.mubr.msk.bf16.gmra.mrb[60].mxu1 %vm641_vm3, %v3254_v7 }
 0x2bb   : > { %v3648_v2 = vpop.permute.xlu0 %3647 }
 0x2bd   : > { %v3653_v33 = vpop.permute.xlu1 %3652 }
 0x2bf   : > { %v3663_v24 = vpop.permute.xlu0 %3662 }
 0x2c1   : > { %v3658_v46 = vpop.permute.xlu1 %3657 }
 0x2c3   : > { %v3673_v40 = vpop.permute.xlu0 %3672 }
 0x2c5   : > { %v3668_v45 = vpop.permute.xlu1 %3667 }
 0x2c7   : > { %v3683_v62 = vpop.permute.xlu0 %3682 }
 0x2c9   : > { %v3678_v61 = vpop.permute.xlu1 %3677 }
 0x2cb   : > { %v6594_v32 = vpop.permute.xlu0 %3692 }
 0x2cd   : > { %v6592_v47 = vpop.permute.xlu1 %3687 }
 0x2cf   : > { %v6598_v36 = vpop.permute.xlu0 %3702 }
 0x2d1   : > { %v6596_v21 = vpop.permute.xlu1 %3697 }
 0x2d3   : > { %v6604_v8 = vpop.permute.xlu0 %3712 }
 0x2d5   : > { %v6600_v31 = vpop.permute.xlu1 %3707 }
 0x2d7   : > { %v6614_v1 = vpop.permute.xlu0 %3722 }
 0x2d9   : > { %v6611_v18 = vpop.permute.xlu1 %3717 }
 0x2dd   : > { %v6619_v27 = vpop.permute.xlu1 %3727 }
 0x34d   : > { %v4874_v10 = vpop.f32.mrb[32].mxu1 }
 0x34e   : > { %v3486_v43 = vpop.f32.mrb[33].mxu1  ;;  %v3807_v53 = vmul.f32 %v4874_v10, %v3658_v46 }
 0x34f   : > { %v3805_v25 = vmul.f32 %v3648_v2, %v3486_v43  ;;  %v4875_v30 = vpop.f32.mrb[34].mxu1 }
 0x350   : > { %v3489_v15 = vpop.f32.mrb[35].mxu1  ;;  %v3808_v3 = vmul.f32 %v4875_v30, %v3663_v24  ;;  %v3909_v51 = vmul.f32 %v4874_v10, %v3807_v53  ;;  %v3841_v12 = vsel %vm3837_vm9, %v3807_v53, 0.0  ;;  %v6623_v24 = vpop.permute.xlu0 %3732 }
 0x351   : > { %v3907_v13 = vmul.f32 %v3805_v25, %v3486_v43  ;;  %v3806_v42 = vmul.f32 %v3653_v33, %v3489_v15  ;;  %v3838_v49 = vsel %vm3837_vm9, %v3805_v25, 0.0 }
 0x352   : > { %v3910_v16 = vmul.f32 %v4875_v30, %v3808_v3  ;;  %v3942_v17 = vsel %vm3837_vm9, %v3909_v51, 0.0  ;;  %v3843_v19 = vsel %vm3837_vm9, %v3808_v3, 0.0 }
 0x353   : > { %v3839_v26 = vsel %vm3837_vm9, %v3806_v42, 0.0  ;;  %v3908_v9 = vmul.f32 %v3806_v42, %v3489_v15  ;;  %v3939_v59 = vsel %vm3837_vm9, %v3907_v13, 0.0 }
 0x354   : > { %v3840_v60 = vadd.f32 %v3839_v26, %v3838_v49  ;;  %v3944_v5 = vsel %vm3837_vm9, %v3910_v16, 0.0  ;;  %v3738_v26 = vpop.permute.xlu1 %3737  ;;  %v3743_v16 = vpop.permute.xlu0 %3742 }
 0x355   : > { %v3940_v55 = vsel %vm3837_vm9, %v3908_v9, 0.0 }
 0x356   : > { %v3842_v38 = vadd.f32 %v3841_v12, %v3840_v60  ;;  %v3941_v28 = vadd.f32 %v3940_v55, %v3939_v59  ;;  %v4878_v56 = vpop.f32.mrb[36].mxu1 }
 0x357   : > { %v3502_v58 = vpop.f32.mrb[37].mxu1  ;;  %v3811_v44 = vmul.f32 %v4878_v56, %v3678_v61 }
 0x358   : > { %v3943_v29 = vadd.f32 %v3942_v17, %v3941_v28  ;;  %v3809_v22 = vmul.f32 %v3668_v45, %v3502_v58  ;;  %v3844_v34 = vadd.f32 %v3843_v19, %v3842_v38  ;;  %v4879_v50 = vpop.f32.mrb[38].mxu1 }
 0x359   : > { %v3812_v0 = vmul.f32 %v4879_v50, %v3683_v62  ;;  %v3505_v48 = vpop.f32.mrb[39].mxu1  ;;  %v3913_v20 = vmul.f32 %v4878_v56, %v3811_v44  ;;  %v3849_v14 = vsel %vm3837_vm9, %v3811_v44, 0.0 }
 0x35a   : > { %v3845_v23 = vsel %vm3837_vm9, %v3809_v22, 0.0  ;;  %v3911_v54 = vmul.f32 %v3809_v22, %v3502_v58  ;;  %v3945_v6 = vadd.f32 %v3944_v5, %v3943_v29  ;;  %v3810_v11 = vmul.f32 %v3673_v40, %v3505_v48  ;;  %v3748_v5 = vpop.permute.xlu1 %3747 }
 0x35b   : > { %v3846_v37 = vadd.f32 %v3845_v23, %v3844_v34  ;;  %v3914_v57 = vmul.f32 %v4879_v50, %v3812_v0  ;;  %v3950_v45 = vsel %vm3837_vm9, %v3913_v20, 0.0  ;;  %v3851_v40 = vsel %vm3837_vm9, %v3812_v0, 0.0 }
 0x35c   : > { %v3946_v4 = vsel %vm3837_vm9, %v3911_v54, 0.0  ;;  %v3847_v52 = vsel %vm3837_vm9, %v3810_v11, 0.0  ;;  %v3912_v63 = vmul.f32 %v3810_v11, %v3505_v48 }
 0x35d   : > { %v3947_v39 = vadd.f32 %v3946_v4, %v3945_v6  ;;  %v3848_v41 = vadd.f32 %v3847_v52, %v3846_v37  ;;  %v3952_v30 = vsel %vm3837_vm9, %v3914_v57, 0.0 }
 0x35e   : > { %v3948_v7 = vsel %vm3837_vm9, %v3912_v63, 0.0  ;;  %v4882_v35 = vpop.f32.mrb[40].mxu1 }
 0x35f   : > { %v3850_v33 = vadd.f32 %v3849_v14, %v3848_v41  ;;  %v3949_v2 = vadd.f32 %v3948_v7, %v3947_v39  ;;  %v3518_v46 = vpop.f32.mrb[41].mxu1  ;;  %v3815_v43 = vmul.f32 %v4882_v35, %v6596_v21 }
 0x360   : > { %v3813_v61 = vmul.f32 %v6592_v47, %v3518_v46  ;;  %v4883_v62 = vpop.f32.mrb[42].mxu1 }
 0x361   : > { %v3951_v10 = vadd.f32 %v3950_v45, %v3949_v2  ;;  %v3852_v53 = vadd.f32 %v3851_v40, %v3850_v33  ;;  %v3521_v25 = vpop.f32.mrb[43].mxu1  ;;  %v3816_v49 = vmul.f32 %v4883_v62, %v6598_v36  ;;  %v3917_v60 = vmul.f32 %v4882_v35, %v3815_v43  ;;  %v3758_v2 = vpop.permute.xlu1 %3757 }
 0x362   : > { %v3853_v15 = vsel %vm3837_vm9, %v3813_v61, 0.0  ;;  %v3915_v13 = vmul.f32 %v3813_v61, %v3518_v46  ;;  %v3814_v3 = vmul.f32 %v6594_v32, %v3521_v25  ;;  %v3857_v55 = vsel %vm3837_vm9, %v3815_v43, 0.0 }
 0x363   : > { %v3854_v42 = vadd.f32 %v3853_v15, %v3852_v53  ;;  %v3953_v51 = vadd.f32 %v3952_v30, %v3951_v10  ;;  %v3918_v28 = vmul.f32 %v4883_v62, %v3816_v49  ;;  %v3859_v36 = vsel %vm3837_vm9, %v3816_v49, 0.0 }
 0x364   : > { %v3954_v47 = vsel %vm3837_vm9, %v3915_v13, 0.0  ;;  %v3855_v9 = vsel %vm3837_vm9, %v3814_v3, 0.0  ;;  %v3916_v59 = vmul.f32 %v3814_v3, %v3521_v25  ;;  %v3958_v44 = vsel %vm3837_vm9, %v3917_v60, 0.0 }
 0x365   : > { %v3955_v21 = vadd.f32 %v3954_v47, %v3953_v51  ;;  %v3856_v12 = vadd.f32 %v3855_v9, %v3854_v42  ;;  %v3960_v6 = vsel %vm3837_vm9, %v3918_v28, 0.0 }
 0x366   : > { %v4886_v38 = vpop.f32.mrb[44].mxu1  ;;  %v3956_v32 = vsel %vm3837_vm9, %v3916_v59, 0.0 }
 0x367   : > { %v3858_v56 = vadd.f32 %v3857_v55, %v3856_v12  ;;  %v3534_v17 = vpop.f32.mrb[45].mxu1  ;;  %v3957_v19 = vadd.f32 %v3956_v32, %v3955_v21  ;;  %v3819_v22 = vmul.f32 %v4886_v38, %v6611_v18  ;;  %v3768_v21 = vpop.permute.xlu1 %3767 }
 0x368   : > { %v3817_v58 = vmul.f32 %v6600_v31, %v3534_v17  ;;  %v4887_v29 = vpop.f32.mrb[46].mxu1  ;;  %v3753_v31 = vpop.permute.xlu0 %3752 }
 0x369   : > { %v3860_v34 = vadd.f32 %v3859_v36, %v3858_v56  ;;  %v3537_v50 = vpop.f32.mrb[47].mxu1  ;;  %v3959_v0 = vadd.f32 %v3958_v44, %v3957_v19  ;;  %v3820_v37 = vmul.f32 %v4887_v29, %v6614_v1  ;;  %v3921_v63 = vmul.f32 %v4886_v38, %v3819_v22 }
 0x36a   : > { %v3861_v48 = vsel %vm3837_vm9, %v3817_v58, 0.0  ;;  %v3919_v23 = vmul.f32 %v3817_v58, %v3534_v17  ;;  %v3818_v54 = vmul.f32 %v6604_v8, %v3537_v50  ;;  %v3865_v41 = vsel %vm3837_vm9, %v3819_v22, 0.0 }
 0x36b   : > { %v3862_v11 = vadd.f32 %v3861_v48, %v3860_v34  ;;  %v3961_v20 = vadd.f32 %v3960_v6, %v3959_v0  ;;  %v3922_v7 = vmul.f32 %v4887_v29, %v3820_v37  ;;  %v3867_v1 = vsel %vm3837_vm9, %v3820_v37, 0.0 }
 0x36c   : > { %v3962_v4 = vsel %vm3837_vm9, %v3919_v23, 0.0  ;;  %v3863_v18 = vsel %vm3837_vm9, %v3818_v54, 0.0  ;;  %v3920_v52 = vmul.f32 %v3818_v54, %v3537_v50  ;;  %v3966_v61 = vsel %vm3837_vm9, %v3921_v63, 0.0  ;;  %v3763_v53 = vpop.permute.xlu0 %3762 }
 0x36d   : > { %v3864_v39 = vadd.f32 %v3863_v18, %v3862_v11  ;;  %v3963_v14 = vadd.f32 %v3962_v4, %v3961_v20  ;;  %v3968_v3 = vsel %vm3837_vm9, %v3922_v7, 0.0  ;;  %v3778_v11 = vpop.permute.xlu1 %3777 }
 0x36e   : > { %v3964_v57 = vsel %vm3837_vm9, %v3920_v52, 0.0  ;;  %v4890_v8 = vpop.f32.mrb[48].mxu1 }
 0x36f   : > { %v3866_v35 = vadd.f32 %v3865_v41, %v3864_v39  ;;  %v3550_v33 = vpop.f32.mrb[49].mxu1  ;;  %v3965_v46 = vadd.f32 %v3964_v57, %v3963_v14  ;;  %v3823_v62 = vmul.f32 %v4890_v8, %v3738_v26 }
 0x370   : > { %v3821_v45 = vmul.f32 %v6619_v27, %v3550_v33  ;;  %v4891_v40 = vpop.f32.mrb[50].mxu1  ;;  %v3773_v32 = vpop.permute.xlu0 %3772 }
 0x371   : > { %v3868_v10 = vadd.f32 %v3867_v1, %v3866_v35  ;;  %v3553_v43 = vpop.f32.mrb[51].mxu1  ;;  %v3967_v25 = vadd.f32 %v3966_v61, %v3965_v46  ;;  %v3824_v51 = vmul.f32 %v4891_v40, %v3743_v16  ;;  %v3925_v26 = vmul.f32 %v4890_v8, %v3823_v62 }
 0x372   : > { %v3869_v30 = vsel %vm3837_vm9, %v3821_v45, 0.0  ;;  %v3923_v15 = vmul.f32 %v3821_v45, %v3550_v33  ;;  %v3822_v13 = vmul.f32 %v6623_v24, %v3553_v43  ;;  %v3873_v12 = vsel %vm3837_vm9, %v3823_v62, 0.0  ;;  %v3788_v62 = vpop.permute.xlu1 %3787 }
 0x373   : > { %v3870_v42 = vadd.f32 %v3869_v30, %v3868_v10  ;;  %v3969_v49 = vadd.f32 %v3968_v3, %v3967_v25  ;;  %v3926_v24 = vmul.f32 %v4891_v40, %v3824_v51  ;;  %v3875_v16 = vsel %vm3837_vm9, %v3824_v51, 0.0 }
 0x374   : > { %v3970_v27 = vsel %vm3837_vm9, %v3923_v15, 0.0  ;;  %v3871_v47 = vsel %vm3837_vm9, %v3822_v13, 0.0  ;;  %v3924_v9 = vmul.f32 %v3822_v13, %v3553_v43  ;;  %v3974_v58 = vsel %vm3837_vm9, %v3925_v26, 0.0  ;;  %v3783_v63 = vpop.permute.xlu0 %3782 }
 0x375   : > { %v3872_v60 = vadd.f32 %v3871_v47, %v3870_v42  ;;  %v3971_v59 = vadd.f32 %v3970_v27, %v3969_v49  ;;  %v3976_v23 = vsel %vm3837_vm9, %v3926_v24, 0.0 }
 0x376   : > { %v3972_v55 = vsel %vm3837_vm9, %v3924_v9, 0.0  ;;  %v4894_v38 = vpop.f32.mrb[52].mxu1  ;;  %v3798_v24 = vpop.permute.xlu1 %3797 }
 0x377   : > { %v3874_v28 = vadd.f32 %v3873_v12, %v3872_v60  ;;  %v3566_v56 = vpop.f32.mrb[53].mxu1  ;;  %v3973_v17 = vadd.f32 %v3972_v55, %v3971_v59  ;;  %v3827_v29 = vmul.f32 %v4894_v38, %v3758_v2 }
 0x378   : > { %v3825_v36 = vmul.f32 %v3748_v5, %v3566_v56  ;;  %v4895_v19 = vpop.f32.mrb[54].mxu1  ;;  %v3793_v3 = vpop.permute.xlu0 %3792 }
 0x379   : > { %v3876_v44 = vadd.f32 %v3875_v16, %v3874_v28  ;;  %v3569_v22 = vpop.f32.mrb[55].mxu1  ;;  %v3975_v34 = vadd.f32 %v3974_v58, %v3973_v17  ;;  %v3828_v6 = vmul.f32 %v4895_v19, %v3763_v53  ;;  %v3929_v18 = vmul.f32 %v4894_v38, %v3827_v29 }
 0x37a   : > { %v3877_v50 = vsel %vm3837_vm9, %v3825_v36, 0.0  ;;  %v3927_v0 = vmul.f32 %v3825_v36, %v3566_v56  ;;  %v3826_v48 = vmul.f32 %v3753_v31, %v3569_v22  ;;  %v3881_v39 = vsel %vm3837_vm9, %v3827_v29, 0.0 }
 0x37b   : > { %v3878_v54 = vadd.f32 %v3877_v50, %v3876_v44  ;;  %v3977_v37 = vadd.f32 %v3976_v23, %v3975_v34  ;;  %v3930_v57 = vmul.f32 %v4895_v19, %v3828_v6  ;;  %v3883_v35 = vsel %vm3837_vm9, %v3828_v6, 0.0 }
 0x37c   : > { %v3978_v20 = vsel %vm3837_vm9, %v3927_v0, 0.0  ;;  %v3879_v5 = vsel %vm3837_vm9, %v3826_v48, 0.0  ;;  %v3928_v4 = vmul.f32 %v3826_v48, %v3569_v22  ;;  %v3982_v46 = vsel %vm3837_vm9, %v3929_v18, 0.0  ;;  %v3803_v29 = vpop.permute.xlu0 %3802 }
 0x37d   : > { %v3880_v52 = vadd.f32 %v3879_v5, %v3878_v54  ;;  %v3979_v41 = vadd.f32 %v3978_v20, %v3977_v37  ;;  %v3984_v30 = vsel %vm3837_vm9, %v3930_v57, 0.0 }
 0x37e   : > { %v3980_v14 = vsel %vm3837_vm9, %v3928_v4, 0.0  ;;  %v4898_v31 = vpop.f32.mrb[56].mxu1 }
 0x37f   : > { %v3882_v8 = vadd.f32 %v3881_v39, %v3880_v52  ;;  %v3582_v7 = vpop.f32.mrb[57].mxu1  ;;  %v3981_v33 = vadd.f32 %v3980_v14, %v3979_v41  ;;  %v3831_v45 = vmul.f32 %v4898_v31, %v3778_v11 }
 0x380   : > { %v3829_v2 = vmul.f32 %v3768_v21, %v3582_v7  ;;  %v4899_v1 = vpop.f32.mrb[58].mxu1 }
 0x381   : > { %v3884_v40 = vadd.f32 %v3883_v35, %v3882_v8  ;;  %v3585_v61 = vpop.f32.mrb[59].mxu1  ;;  %v3983_v10 = vadd.f32 %v3982_v46, %v3981_v33  ;;  %v3832_v13 = vmul.f32 %v4899_v1, %v3783_v63  ;;  %v3933_v47 = vmul.f32 %v4898_v31, %v3831_v45 }
 0x382   : > { %v3885_v43 = vsel %vm3837_vm9, %v3829_v2, 0.0  ;;  %v3931_v53 = vmul.f32 %v3829_v2, %v3582_v7  ;;  %v3830_v25 = vmul.f32 %v3773_v32, %v3585_v61  ;;  %v3889_v26 = vsel %vm3837_vm9, %v3831_v45, 0.0 }
 0x383   : > { %v3886_v15 = vadd.f32 %v3885_v43, %v3884_v40  ;;  %v3985_v42 = vadd.f32 %v3984_v30, %v3983_v10  ;;  %v3934_v59 = vmul.f32 %v4899_v1, %v3832_v13  ;;  %v3891_v28 = vsel %vm3837_vm9, %v3832_v13, 0.0 }
 0x384   : > { %v3986_v51 = vsel %vm3837_vm9, %v3931_v53, 0.0  ;;  %v3887_v49 = vsel %vm3837_vm9, %v3830_v25, 0.0  ;;  %v3932_v27 = vmul.f32 %v3830_v25, %v3585_v61  ;;  %v3990_v17 = vsel %vm3837_vm9, %v3933_v47, 0.0 }
 0x385   : > { %v3888_v9 = vadd.f32 %v3887_v49, %v3886_v15  ;;  %v3987_v60 = vadd.f32 %v3986_v51, %v3985_v42  ;;  %v3992_v0 = vsel %vm3837_vm9, %v3934_v59, 0.0 }
 0x386   : > { %v3988_v21 = vsel %vm3837_vm9, %v3932_v27, 0.0  ;;  %v4902_v12 = vpop.f32.mrb[60].mxu1 }
 0x387   : > { %v3890_v55 = vadd.f32 %v3889_v26, %v3888_v9  ;;  %v3598_v38 = vpop.f32.mrb[61].mxu1  ;;  %v3989_v56 = vadd.f32 %v3988_v21, %v3987_v60  ;;  %v3835_v36 = vmul.f32 %v4902_v12, %v3798_v24 }
 0x388   : > { %v3833_v32 = vmul.f32 %v3788_v62, %v3598_v38  ;;  %v4903_v16 = vpop.f32.mrb[62].mxu1 }
 0x389   : > { %v3892_v19 = vadd.f32 %v3891_v28, %v3890_v55  ;;  %v3601_v58 = vpop.f32.mrb[63].mxu1  ;;  %v3991_v44 = vadd.f32 %v3990_v17, %v3989_v56  ;;  %v3836_v23 = vmul.f32 %v4903_v16, %v3803_v29  ;;  %v3937_v20 = vmul.f32 %v4902_v12, %v3835_v36 }
 0x38a   : > { %v3893_v22 = vsel %vm3837_vm9, %v3833_v32, 0.0  ;;  %v3935_v34 = vmul.f32 %v3833_v32, %v3598_v38  ;;  %v3834_v50 = vmul.f32 %v3793_v3, %v3601_v58  ;;  %v3897_v4 = vsel %vm3837_vm9, %v3835_v36, 0.0 }
 0x38b   : > { %v3894_v48 = vadd.f32 %v3893_v22, %v3892_v19  ;;  %v3993_v54 = vadd.f32 %v3992_v0, %v3991_v44  ;;  %v3938_v63 = vmul.f32 %v4903_v16, %v3836_v23  ;;  %v3899_v41 = vsel %vm3837_vm9, %v3836_v23, 0.0 }
 0x38c   : > { %v3994_v6 = vsel %vm3837_vm9, %v3935_v34, 0.0  ;;  %v3895_v11 = vsel %vm3837_vm9, %v3834_v50, 0.0  ;;  %v3936_v37 = vmul.f32 %v3834_v50, %v3601_v58  ;;  %v3998_v31 = vsel %vm3837_vm9, %v3937_v20, 0.0 }
 0x38d   : > { %v3896_v5 = vadd.f32 %v3895_v11, %v3894_v48  ;;  %v3995_v18 = vadd.f32 %v3994_v6, %v3993_v54  ;;  %v4000_v7 = vsel %vm3837_vm9, %v3938_v63, 0.0 }
 0x38e   : > { %v3996_v52 = vsel %vm3837_vm9, %v3936_v37, 0.0 }
 0x38f   : > { %v3898_v39 = vadd.f32 %v3897_v4, %v3896_v5  ;;  %v3997_v14 = vadd.f32 %v3996_v52, %v3995_v18 }
 0x391   : > { %v3900_v57 = vadd.f32 %v3899_v41, %v3898_v39  ;;  %v3999_v8 = vadd.f32 %v3998_v31, %v3997_v14 }
 0x393   : > { %v3901_v35 = vrot.slane %v3900_v57, 4  ;;  %v4001_v33 = vadd.f32 %v4000_v7, %v3999_v8 }
 0x395   : > { %v3902_v2 = vadd.f32 %v3901_v35, %v3900_v57  ;;  %v4002_v1 = vrot.slane %v4001_v33, 4 }
 0x397   : > { %v3903_v46 = vrot.slane %v3902_v2, 2  ;;  %v4003_v45 = vadd.f32 %v4002_v1, %v4001_v33 }
 0x399   : > { %v3904_v40 = vadd.f32 %v3903_v46, %v3902_v2  ;;  %v4004_v61 = vrot.slane %v4003_v45, 2 }
 0x39b   : > { %v3905_v62 = vrot.slane %v3904_v40, 1  ;;  %v4005_v10 = vadd.f32 %v4004_v61, %v4003_v45 }
 0x39d   : > { %v4006_v43 = vrot.slane %v4005_v10, 1  ;;  %v3906_v53 = vadd.f32 %v3905_v62, %v3904_v40 }
 0x39f   : > { %v4007_v25 = vadd.f32 %v4006_v43, %v4005_v10 }
 0x3a1   : > { %v4009_v30 = vsel %vm4008_vm10, %v3906_v53, %v4007_v25 }
 0x3a2   : > { %4011 = vst.msk [vmem:[%s370_s16] sm:$0x3] %vm4010_vm11, %v4009_v30 }
 0x3a3 PF: > { %s19_s27 = sadd.s32 1, %s5207_s27  }
 0x3a4   : > { %p16_p7 = scmp.ge.s32.totalorder %s19_s27, 5  }
 0x3a6   :  { %18 = sbr.rel (!%p16_p7) target bundleno = 1 (0x1), region = 104 }

</bundles_post_ra>
